<compile_context>
chip_gen: v7x
topology: tpu7x:2x2x1
jax: 0.10.0
libtpu: 0.0.40
codegen_flags: <defaults>
</compile_context>

<pallas_src>
import math

import jax
import jax.numpy as jnp
from jax.experimental import pallas as pl
from jax.experimental.pallas import tpu as pltpu

C_IN, C1, C2, C3, C4 = 3, 16, 32, 64, 128


# ----------------------------- Pallas kernel ------------------------------- #

def _make_encoder_kernel(H, W, B):
    Hp, Wp = H // 2, W // 2          # after pool1
    Hq, Wq = Hp // 2, Wp // 2        # after pool2
    R1 = B * (H + 2) - 2             # stacked conv1/conv2 output rows (incl. junk rows)
    R2 = B * (Hp + 2) - 2            # stacked conv3/conv4 output rows (incl. junk rows)

    def kernel(x_ref, m1_ref, b1_ref, m2_ref, b2_ref, m3_ref, b3_ref,
               m4_ref, b4_ref, t1_ref, s1_ref, t3_ref, s2_ref,
               o_ref, xp2, xp3, xp4):

        def conv(load_lhs, m_ref, b_ref):
            # relu( sum_dh lhs(dh) @ M[dh] + b ): bf16 MXU operands, f32 accumulation,
            # f32 bias/ReLU (v5e has no bf16 VPU path).
            acc = jnp.dot(load_lhs(0), m_ref[0], preferred_element_type=jnp.float32)
            acc = acc + jnp.dot(load_lhs(1), m_ref[1], preferred_element_type=jnp.float32)
            acc = acc + jnp.dot(load_lhs(2), m_ref[2], preferred_element_type=jnp.float32)
            return jnp.maximum(acc + b_ref[...], 0.0)

        def sel(s, v):
            # Exact 0/1 selection matmul (bf16 operands, f32 accumulate): restacks rows,
            # drops inter-image junk rows and emits exact zeros for the height-pad rows.
            return jnp.dot(s, v, preferred_element_type=jnp.float32)

        # ---- conv1: 3 -> 16 over the stacked (B*(H+2)) pre-padded slab ------------
        y1 = conv(lambda dh: x_ref[0, dh:dh + R1, :].astype(jnp.bfloat16),
                  m1_ref, b1_ref)                                        # (R1, W*16)
        xp2[...] = sel(t1_ref[...], y1.astype(jnp.bfloat16))             # padded layout

        # ---- conv2: 16 -> 32 (parity-split output columns) + maxpool 2x2 ----------
        y2 = conv(lambda dh: xp2[dh:dh + R1, :].astype(jnp.bfloat16),
                  m2_ref, b2_ref)                                        # (R1, W*32)
        mw = jnp.maximum(y2[:, :Wp * C2], y2[:, Wp * C2:]).astype(jnp.bfloat16)
        p1 = jnp.maximum(sel(s1_ref[0], mw), sel(s1_ref[1], mw))         # (B*(Hp+2), Wp*32)
        xp3[...] = p1

        # ---- conv3: 32 -> 64 ------------------------------------------------------
        y3 = conv(lambda dh: xp3[dh:dh + R2, :].astype(jnp.bfloat16),
                  m3_ref, b3_ref)                                        # (R2, Wp*64)
        xp4[...] = sel(t3_ref[...], y3.astype(jnp.bfloat16))

        # ---- conv4: 64 -> 128 (parity-split output columns) + maxpool 2x2 ---------
        y4 = conv(lambda dh: xp4[dh:dh + R2, :].astype(jnp.bfloat16),
                  m4_ref, b4_ref)                                        # (R2, Wp*128)
        mw4 = jnp.maximum(y4[:, :Wq * C4], y4[:, Wq * C4:]).astype(jnp.bfloat16)
        o_ref[0] = jnp.maximum(sel(s2_ref[0], mw4), sel(s2_ref[1], mw4))  # (B*Hq, Wq*128)

    return kernel


# -------------------------- weight packing (host/XLA) ----------------------- #

def _pack_conv_weights(w, width, parity_split):
    """w: (3,3,Cin,Cout) HWIO -> (3, width*Cin, width*Cout) banded (Toeplitz) matrices.

    M[dh][wi*Cin+ci, wo*Cout+co] = w[dh, wi-wo+1, ci, co] for wi-wo in {-1,0,1}; the
    SAME zero width-pad is folded into the band so no padded input columns are needed.
    If parity_split, output columns are permuted to (parity, wo//2, co) so the 2x2
    maxpool's width direction becomes a lane-half max inside the kernel.
    """
    _, _, cin, cout = w.shape
    mats = []
    for dh in range(3):
        m = jnp.zeros((width * cin, width * cout), w.dtype)
        for dw in range(3):
            m = m + jnp.kron(jnp.eye(width, width, k=1 - dw, dtype=w.dtype), w[dh, dw])
        mats.append(m)
    mat = jnp.stack(mats)
    if parity_split:
        mat = (mat.reshape(3, width * cin, width // 2, 2, cout)
                  .transpose(0, 1, 3, 2, 4)
                  .reshape(3, width * cin, width * cout))
    return mat.astype(jnp.bfloat16)


def _copy_select(B, Hin):
    """0/1 matrix (B*(Hin+2), B*(Hin+2)-2): stacked conv output -> next padded slab.

    Dest row b*(Hin+2)+1+i copies src row b*(Hin+2)+i; pad rows stay exactly zero and
    the junk rows at inter-image boundaries are never selected.
    """
    rows, cols = B * (Hin + 2), B * (Hin + 2) - 2
    b = jnp.arange(B)[:, None]
    i = jnp.arange(Hin)[None, :]
    dst = (b * (Hin + 2) + 1 + i).reshape(-1)
    src = (b * (Hin + 2) + i).reshape(-1)
    m = jnp.zeros((rows, cols), jnp.float32).at[dst, src].set(1.0)
    return m.astype(jnp.bfloat16)


def _pool_select(B, Hin, pad_out):
    """(2, rows, B*(Hin+2)-2) even/odd row-selection matrices for the pool height max.

    Src rows live in the stacked conv-output layout (stride Hin+2 per image). Dest is
    either the next conv's padded slab (stride Hin//2+2, offset 1) or, for the final
    pool, the compact output layout (stride Hin//2).
    """
    Hp = Hin // 2
    cols = B * (Hin + 2) - 2
    b = jnp.arange(B)[:, None]
    j = jnp.arange(Hp)[None, :]
    if pad_out:
        rows = B * (Hp + 2)
        dst = (b * (Hp + 2) + 1 + j).reshape(-1)
    else:
        rows = B * Hp
        dst = (b * Hp + j).reshape(-1)
    src = (b * (Hin + 2) + 2 * j).reshape(-1)
    se = jnp.zeros((rows, cols), jnp.float32).at[dst, src].set(1.0)
    so = jnp.zeros((rows, cols), jnp.float32).at[dst, src + 1].set(1.0)
    return jnp.stack([se, so]).astype(jnp.bfloat16)


def choose_batch_tile(N, H, max_rows=128):
    """Largest B with N % B == 0, grid = N//B >= 2 (keep both v7x TCs busy) and
    B*(H+2) <= max_rows (bounds the f32 accumulator / vreg pressure per conv)."""
    best = 1
    for b in range(1, N + 1):
        if N % b:
            continue
        if N >= 2 and N // b < 2:
            continue
        if b * (H + 2) > max_rows:
            continue
        best = b
    return best


def prepare_encoder(params, H, W, b_tile):
    """One-time packing of raw conv params into MXU-friendly fused-kernel operands."""
    Wp = W // 2
    (w1, b1), (w2, b2) = params["c1"], params["c2"]
    (w3, b3), (w4, b4) = params["c3"], params["c4"]
    return {
        "m1": _pack_conv_weights(w1, W, False),
        "b1": jnp.tile(b1, W).reshape(1, -1).astype(jnp.float32),
        "m2": _pack_conv_weights(w2, W, True),
        "b2": jnp.tile(b2, W).reshape(1, -1).astype(jnp.float32),
        "m3": _pack_conv_weights(w3, Wp, False),
        "b3": jnp.tile(b3, Wp).reshape(1, -1).astype(jnp.float32),
        "m4": _pack_conv_weights(w4, Wp, True),
        "b4": jnp.tile(b4, Wp).reshape(1, -1).astype(jnp.float32),
        "t1": _copy_select(b_tile, H),
        "s1": _pool_select(b_tile, H, pad_out=True),
        "t3": _copy_select(b_tile, H // 2),
        "s2": _pool_select(b_tile, H // 2, pad_out=False),
    }


# ------------------------------ JAX wrapper -------------------------------- #

def encoder_forward(packed, x_nchw, *, b_tile):
    """Fused Pallas encoder. Input NCHW (N,3,H,W) -> output NCHW (N,128,H//4,W//4)."""
    N, C, H, W = x_nchw.shape
    B = b_tile
    assert C == C_IN and H % 4 == 0 and W % 4 == 0 and N % B == 0
    Hp, Wp, Hq, Wq = H // 2, W // 2, H // 4, W // 4

    # NCHW -> lane-dense rows (width*channels on lanes), height-padded per image and
    # B_TILE images stacked on the row axis per grid step; the kernel-side padded
    # scratch copy of the old version is gone (padding rides the BlockSpec DMA).
    x2d = jnp.transpose(x_nchw, (0, 2, 3, 1)).reshape(N, H, W * C_IN)
    x2d = jnp.pad(x2d, ((0, 0), (1, 1), (0, 0)))
    x2d = x2d.reshape(N // B, B * (H + 2), W * C_IN)

    weight_bytes = sum(int(v.size) * v.dtype.itemsize for v in packed.values())
    block_bytes = B * (H + 2) * W * C_IN * 4 + B * Hq * Wq * C4 * 4
    scratch_bytes = 4 * (B * (H + 2) * W * C1
                         + B * (Hp + 2) * Wp * C2
                         + B * (Hp + 2) * Wp * C3)
    # Double-buffered operands + scratch + headroom, capped below v7x's 64 MiB VMEM.
    vmem_limit = int(max(32 << 20,
                         min(48 << 20,
                             2 * (weight_bytes + block_bytes) + scratch_bytes + (8 << 20))))

    flops = 2 * 9 * N * (H * W * C_IN * C1 + H * W * C1 * C2
                         + Hp * Wp * C2 * C3 + Hp * Wp * C3 * C4)
    bytes_accessed = (N // B) * block_bytes + weight_bytes

    cmap2 = lambda n: (0, 0)
    cmap3 = lambda n: (0, 0, 0)
    out = pl.pallas_call(
        _make_encoder_kernel(H, W, B),
        out_shape=jax.ShapeDtypeStruct((N // B, B * Hq, Wq * C4), jnp.float32),
        grid=(N // B,),
        in_specs=[
            pl.BlockSpec((1, B * (H + 2), W * C_IN), lambda n: (n, 0, 0)),
            pl.BlockSpec(packed["m1"].shape, cmap3),
            pl.BlockSpec(packed["b1"].shape, cmap2),
            pl.BlockSpec(packed["m2"].shape, cmap3),
            pl.BlockSpec(packed["b2"].shape, cmap2),
            pl.BlockSpec(packed["m3"].shape, cmap3),
            pl.BlockSpec(packed["b3"].shape, cmap2),
            pl.BlockSpec(packed["m4"].shape, cmap3),
            pl.BlockSpec(packed["b4"].shape, cmap2),
            pl.BlockSpec(packed["t1"].shape, cmap2),
            pl.BlockSpec(packed["s1"].shape, cmap3),
            pl.BlockSpec(packed["t3"].shape, cmap2),
            pl.BlockSpec(packed["s2"].shape, cmap3),
        ],
        out_specs=pl.BlockSpec((1, B * Hq, Wq * C4), lambda n: (n, 0, 0)),
        scratch_shapes=[
            pltpu.VMEM((B * (H + 2), W * C1), jnp.float32),     # conv2 padded input slab
            pltpu.VMEM((B * (Hp + 2), Wp * C2), jnp.float32),   # conv3 padded input slab
            pltpu.VMEM((B * (Hp + 2), Wp * C3), jnp.float32),   # conv4 padded input slab
        ],
        compiler_params=pltpu.CompilerParams(
            dimension_semantics=("parallel",),
            vmem_limit_bytes=vmem_limit,
        ),
        cost_estimate=pl.CostEstimate(flops=int(flops), transcendentals=0,
                                      bytes_accessed=int(bytes_accessed)),
    )(x2d, packed["m1"], packed["b1"], packed["m2"], packed["b2"],
      packed["m3"], packed["b3"], packed["m4"], packed["b4"],
      packed["t1"], packed["s1"], packed["t3"], packed["s2"])

    return jnp.transpose(out.reshape(N, Hq, Wq, C4), (0, 3, 1, 2))


# ------------------------------ params / reference -------------------------- #

def init_conv_params(key, cin, cout):
    """PyTorch-default-style deterministic init: U(-1/sqrt(fan_in), 1/sqrt(fan_in))."""
    kw, kb = jax.random.split(key)
    bound = 1.0 / math.sqrt(cin * 9)
    w = jax.random.uniform(kw, (3, 3, cin, cout), jnp.float32, -bound, bound)
    b = jax.random.uniform(kb, (cout,), jnp.float32, -bound, bound)
    return w, b


def make_encoder_params(key):
    keys = jax.random.split(key, 4)
    return {
        "c1": init_conv_params(keys[0], C_IN, C1),
        "c2": init_conv_params(keys[1], C1, C2),
        "c3": init_conv_params(keys[2], C2, C3),
        "c4": init_conv_params(keys[3], C3, C4),
    }


def encoder_reference(params, x_nchw):
    """Pure-JAX (XLA) reference for correctness checking."""
    x = jnp.transpose(x_nchw, (0, 2, 3, 1))
    dn = jax.lax.conv_dimension_numbers(x.shape, (3, 3, 3, 16), ("NHWC", "HWIO", "NHWC"))

    def conv(x, w, b):
        y = jax.lax.conv_general_dilated(x, w, (1, 1), "SAME", dimension_numbers=dn)
        return jax.nn.relu(y + b[None, None, None, :])

    def pool(x):
        return jax.lax.reduce_window(x, -jnp.inf, jax.lax.max,
                                     (1, 2, 2, 1), (1, 2, 2, 1), "VALID")

    x = conv(x, *params["c1"])
    x = conv(x, *params["c2"])
    x = pool(x)
    x = conv(x, *params["c3"])
    x = conv(x, *params["c4"])
    x = pool(x)
    return jnp.transpose(x, (0, 3, 1, 2))


if __name__ == "__main__":
    key = jax.random.PRNGKey(0)
    k_par, k_in = jax.random.split(key)
    params = make_encoder_params(k_par)

    N, H, W = 8, 16, 16
    x = jax.random.normal(k_in, (N, C_IN, H, W), jnp.float32)

    B = choose_batch_tile(N, H)                  # -> 4 here: grid of 2, ~70-row matmuls
    packed = prepare_encoder(params, H, W, B)    # one-time weight/selection packing

    fwd = jax.jit(encoder_forward, static_argnames=("b_tile",))
    y = jax.block_until_ready(fwd(packed, x, b_tile=B))
    assert y.shape == (N, C4, H // 4, W // 4), y.shape

    y_ref = jax.block_until_ready(jax.jit(encoder_reference)(params, x))
    max_err = float(jnp.max(jnp.abs(y - y_ref)))
    assert max_err < 3e-2, f"max abs error vs reference: {max_err}"  # bf16 MXU operands

    print("KERNEL_OK")
</pallas_src>

<mosaic_0001>
module attributes {stable_mosaic.version = 11 : i64} {
  func.func @kernel(%arg0: i32, %arg1: memref<1x72x48xf32, #tpu.memory_space<vmem>>, %arg2: memref<3x48x256xbf16, #tpu.memory_space<vmem>>, %arg3: memref<1x256xf32, #tpu.memory_space<vmem>>, %arg4: memref<3x256x512xbf16, #tpu.memory_space<vmem>>, %arg5: memref<1x512xf32, #tpu.memory_space<vmem>>, %arg6: memref<3x256x512xbf16, #tpu.memory_space<vmem>>, %arg7: memref<1x512xf32, #tpu.memory_space<vmem>>, %arg8: memref<3x512x1024xbf16, #tpu.memory_space<vmem>>, %arg9: memref<1x1024xf32, #tpu.memory_space<vmem>>, %arg10: memref<72x70xbf16, #tpu.memory_space<vmem>>, %arg11: memref<2x40x70xbf16, #tpu.memory_space<vmem>>, %arg12: memref<40x38xbf16, #tpu.memory_space<vmem>>, %arg13: memref<2x16x38xbf16, #tpu.memory_space<vmem>>, %arg14: memref<1x16x512xf32, #tpu.memory_space<vmem>>, %arg15: memref<72x256xf32, #tpu.memory_space<vmem>>, %arg16: memref<40x256xf32, #tpu.memory_space<vmem>>, %arg17: memref<40x512xf32, #tpu.memory_space<vmem>>) attributes {dimension_semantics = [#tpu.dimension_semantics<parallel>], iteration_bounds = array<i64: 2>, scalar_prefetch = 0 : i64, scratch_operands = 3 : i64, tpu.core_type = #tpu.core_type<tc>, window_params = [{transform_indices = @transform_0, window_bounds = array<i64: 1, 72, 48>}, {pipeline_mode = #tpu.pipeline_mode<synchronous>, transform_indices = @transform_1, window_bounds = array<i64: 3, 48, 256>}, {pipeline_mode = #tpu.pipeline_mode<synchronous>, transform_indices = @transform_2, window_bounds = array<i64: 1, 256>}, {pipeline_mode = #tpu.pipeline_mode<synchronous>, transform_indices = @transform_3, window_bounds = array<i64: 3, 256, 512>}, {pipeline_mode = #tpu.pipeline_mode<synchronous>, transform_indices = @transform_4, window_bounds = array<i64: 1, 512>}, {pipeline_mode = #tpu.pipeline_mode<synchronous>, transform_indices = @transform_5, window_bounds = array<i64: 3, 256, 512>}, {pipeline_mode = #tpu.pipeline_mode<synchronous>, transform_indices = @transform_6, window_bounds = array<i64: 1, 512>}, {pipeline_mode = #tpu.pipeline_mode<synchronous>, transform_indices = @transform_7, window_bounds = array<i64: 3, 512, 1024>}, {pipeline_mode = #tpu.pipeline_mode<synchronous>, transform_indices = @transform_8, window_bounds = array<i64: 1, 1024>}, {pipeline_mode = #tpu.pipeline_mode<synchronous>, transform_indices = @transform_9, window_bounds = array<i64: 72, 70>}, {pipeline_mode = #tpu.pipeline_mode<synchronous>, transform_indices = @transform_10, window_bounds = array<i64: 2, 40, 70>}, {pipeline_mode = #tpu.pipeline_mode<synchronous>, transform_indices = @transform_11, window_bounds = array<i64: 40, 38>}, {pipeline_mode = #tpu.pipeline_mode<synchronous>, transform_indices = @transform_12, window_bounds = array<i64: 2, 16, 38>}, {transform_indices = @transform_13, window_bounds = array<i64: 1, 16, 512>}]} {
    %c0 = arith.constant 0 : index
    %c0_0 = arith.constant 0 : index
    %c0_1 = arith.constant 0 : index
    %0 = vector.load %arg1[%c0, %c0_0, %c0_1] : memref<1x72x48xf32, #tpu.memory_space<vmem>>, vector<1x70x48xf32>
    %1 = vector.shape_cast %0 : vector<1x70x48xf32> to vector<70x48xf32>
    %2 = arith.truncf %1 : vector<70x48xf32> to vector<70x48xbf16>
    %c0_2 = arith.constant 0 : index
    %c0_3 = arith.constant 0 : index
    %c0_4 = arith.constant 0 : index
    %3 = vector.load %arg2[%c0_2, %c0_3, %c0_4] : memref<3x48x256xbf16, #tpu.memory_space<vmem>>, vector<1x48x256xbf16>
    %4 = vector.shape_cast %3 : vector<1x48x256xbf16> to vector<48x256xbf16>
    %cst = arith.constant dense<0.000000e+00> : vector<70x256xf32>
    %5 = tpu.matmul %2, %4, %cst {dimension_numbers = #tpu.dot_dimension_numbers<[1], [0], [0], [1], [0, 0, 1, 1], [], []>} : vector<70x48xbf16>, vector<48x256xbf16>, vector<70x256xf32> -> vector<70x256xf32>
    %c0_5 = arith.constant 0 : index
    %c1 = arith.constant 1 : index
    %c0_6 = arith.constant 0 : index
    %6 = vector.load %arg1[%c0_5, %c1, %c0_6] : memref<1x72x48xf32, #tpu.memory_space<vmem>>, vector<1x70x48xf32>
    %7 = vector.shape_cast %6 : vector<1x70x48xf32> to vector<70x48xf32>
    %8 = arith.truncf %7 : vector<70x48xf32> to vector<70x48xbf16>
    %c1_7 = arith.constant 1 : index
    %c0_8 = arith.constant 0 : index
    %c0_9 = arith.constant 0 : index
    %9 = vector.load %arg2[%c1_7, %c0_8, %c0_9] : memref<3x48x256xbf16, #tpu.memory_space<vmem>>, vector<1x48x256xbf16>
    %10 = vector.shape_cast %9 : vector<1x48x256xbf16> to vector<48x256xbf16>
    %cst_10 = arith.constant dense<0.000000e+00> : vector<70x256xf32>
    %11 = tpu.matmul %8, %10, %cst_10 {dimension_numbers = #tpu.dot_dimension_numbers<[1], [0], [0], [1], [0, 0, 1, 1], [], []>} : vector<70x48xbf16>, vector<48x256xbf16>, vector<70x256xf32> -> vector<70x256xf32>
    %12 = arith.addf %5, %11 : vector<70x256xf32>
    %c0_11 = arith.constant 0 : index
    %c2 = arith.constant 2 : index
    %c0_12 = arith.constant 0 : index
    %13 = vector.load %arg1[%c0_11, %c2, %c0_12] : memref<1x72x48xf32, #tpu.memory_space<vmem>>, vector<1x70x48xf32>
    %14 = vector.shape_cast %13 : vector<1x70x48xf32> to vector<70x48xf32>
    %15 = arith.truncf %14 : vector<70x48xf32> to vector<70x48xbf16>
    %c2_13 = arith.constant 2 : index
    %c0_14 = arith.constant 0 : index
    %c0_15 = arith.constant 0 : index
    %16 = vector.load %arg2[%c2_13, %c0_14, %c0_15] : memref<3x48x256xbf16, #tpu.memory_space<vmem>>, vector<1x48x256xbf16>
    %17 = vector.shape_cast %16 : vector<1x48x256xbf16> to vector<48x256xbf16>
    %cst_16 = arith.constant dense<0.000000e+00> : vector<70x256xf32>
    %18 = tpu.matmul %15, %17, %cst_16 {dimension_numbers = #tpu.dot_dimension_numbers<[1], [0], [0], [1], [0, 0, 1, 1], [], []>} : vector<70x48xbf16>, vector<48x256xbf16>, vector<70x256xf32> -> vector<70x256xf32>
    %19 = arith.addf %12, %18 : vector<70x256xf32>
    %c0_17 = arith.constant 0 : index
    %c0_18 = arith.constant 0 : index
    %20 = vector.load %arg3[%c0_17, %c0_18] : memref<1x256xf32, #tpu.memory_space<vmem>>, vector<1x256xf32>
    %21 = vector.broadcast %20 : vector<1x256xf32> to vector<70x256xf32>
    %22 = arith.addf %19, %21 : vector<70x256xf32>
    %cst_19 = arith.constant 0.000000e+00 : f32
    %23 = vector.broadcast %cst_19 : f32 to vector<70x256xf32>
    %24 = arith.maximumf %22, %23 : vector<70x256xf32>
    %c0_20 = arith.constant 0 : index
    %c0_21 = arith.constant 0 : index
    %25 = vector.load %arg10[%c0_20, %c0_21] : memref<72x70xbf16, #tpu.memory_space<vmem>>, vector<72x70xbf16>
    %26 = arith.truncf %24 : vector<70x256xf32> to vector<70x256xbf16>
    %cst_22 = arith.constant dense<0.000000e+00> : vector<72x256xf32>
    %27 = tpu.matmul %25, %26, %cst_22 {dimension_numbers = #tpu.dot_dimension_numbers<[1], [0], [0], [1], [0, 0, 1, 1], [], []>} : vector<72x70xbf16>, vector<70x256xbf16>, vector<72x256xf32> -> vector<72x256xf32>
    %c0_23 = arith.constant 0 : index
    %c0_24 = arith.constant 0 : index
    %28 = vector.load %arg15[%c0_23, %c0_24] : memref<72x256xf32, #tpu.memory_space<vmem>>, vector<72x256xf32>
    tpu.vector_store %arg15[%c0_23, %c0_24], %27 {strides = array<i32>} : memref<72x256xf32, #tpu.memory_space<vmem>>, vector<72x256xf32>,
    %c0_25 = arith.constant 0 : index
    %c0_26 = arith.constant 0 : index
    %29 = vector.load %arg15[%c0_25, %c0_26] : memref<72x256xf32, #tpu.memory_space<vmem>>, vector<70x256xf32>
    %30 = arith.truncf %29 : vector<70x256xf32> to vector<70x256xbf16>
    %c0_27 = arith.constant 0 : index
    %c0_28 = arith.constant 0 : index
    %c0_29 = arith.constant 0 : index
    %31 = vector.load %arg4[%c0_27, %c0_28, %c0_29] : memref<3x256x512xbf16, #tpu.memory_space<vmem>>, vector<1x256x512xbf16>
    %32 = vector.shape_cast %31 : vector<1x256x512xbf16> to vector<256x512xbf16>
    %cst_30 = arith.constant dense<0.000000e+00> : vector<70x512xf32>
    %33 = tpu.matmul %30, %32, %cst_30 {dimension_numbers = #tpu.dot_dimension_numbers<[1], [0], [0], [1], [0, 0, 1, 1], [], []>} : vector<70x256xbf16>, vector<256x512xbf16>, vector<70x512xf32> -> vector<70x512xf32>
    %c1_31 = arith.constant 1 : index
    %c0_32 = arith.constant 0 : index
    %34 = vector.load %arg15[%c1_31, %c0_32] : memref<72x256xf32, #tpu.memory_space<vmem>>, vector<70x256xf32>
    %35 = arith.truncf %34 : vector<70x256xf32> to vector<70x256xbf16>
    %c1_33 = arith.constant 1 : index
    %c0_34 = arith.constant 0 : index
    %c0_35 = arith.constant 0 : index
    %36 = vector.load %arg4[%c1_33, %c0_34, %c0_35] : memref<3x256x512xbf16, #tpu.memory_space<vmem>>, vector<1x256x512xbf16>
    %37 = vector.shape_cast %36 : vector<1x256x512xbf16> to vector<256x512xbf16>
    %cst_36 = arith.constant dense<0.000000e+00> : vector<70x512xf32>
    %38 = tpu.matmul %35, %37, %cst_36 {dimension_numbers = #tpu.dot_dimension_numbers<[1], [0], [0], [1], [0, 0, 1, 1], [], []>} : vector<70x256xbf16>, vector<256x512xbf16>, vector<70x512xf32> -> vector<70x512xf32>
    %39 = arith.addf %33, %38 : vector<70x512xf32>
    %c2_37 = arith.constant 2 : index
    %c0_38 = arith.constant 0 : index
    %40 = vector.load %arg15[%c2_37, %c0_38] : memref<72x256xf32, #tpu.memory_space<vmem>>, vector<70x256xf32>
    %41 = arith.truncf %40 : vector<70x256xf32> to vector<70x256xbf16>
    %c2_39 = arith.constant 2 : index
    %c0_40 = arith.constant 0 : index
    %c0_41 = arith.constant 0 : index
    %42 = vector.load %arg4[%c2_39, %c0_40, %c0_41] : memref<3x256x512xbf16, #tpu.memory_space<vmem>>, vector<1x256x512xbf16>
    %43 = vector.shape_cast %42 : vector<1x256x512xbf16> to vector<256x512xbf16>
    %cst_42 = arith.constant dense<0.000000e+00> : vector<70x512xf32>
    %44 = tpu.matmul %41, %43, %cst_42 {dimension_numbers = #tpu.dot_dimension_numbers<[1], [0], [0], [1], [0, 0, 1, 1], [], []>} : vector<70x256xbf16>, vector<256x512xbf16>, vector<70x512xf32> -> vector<70x512xf32>
    %45 = arith.addf %39, %44 : vector<70x512xf32>
    %c0_43 = arith.constant 0 : index
    %c0_44 = arith.constant 0 : index
    %46 = vector.load %arg5[%c0_43, %c0_44] : memref<1x512xf32, #tpu.memory_space<vmem>>, vector<1x512xf32>
    %47 = vector.broadcast %46 : vector<1x512xf32> to vector<70x512xf32>
    %48 = arith.addf %45, %47 : vector<70x512xf32>
    %cst_45 = arith.constant 0.000000e+00 : f32
    %49 = vector.broadcast %cst_45 : f32 to vector<70x512xf32>
    %50 = arith.maximumf %48, %49 : vector<70x512xf32>
    %51 = vector.extract_strided_slice %50 {offsets = [0, 0], sizes = [70, 256], strides = [1, 1]} : vector<70x512xf32> to vector<70x256xf32>
    %52 = vector.extract_strided_slice %50 {offsets = [0, 256], sizes = [70, 256], strides = [1, 1]} : vector<70x512xf32> to vector<70x256xf32>
    %53 = arith.maximumf %51, %52 : vector<70x256xf32>
    %54 = arith.truncf %53 : vector<70x256xf32> to vector<70x256xbf16>
    %c0_46 = arith.constant 0 : index
    %c0_47 = arith.constant 0 : index
    %c0_48 = arith.constant 0 : index
    %55 = vector.load %arg11[%c0_46, %c0_47, %c0_48] : memref<2x40x70xbf16, #tpu.memory_space<vmem>>, vector<1x40x70xbf16>
    %56 = vector.shape_cast %55 : vector<1x40x70xbf16> to vector<40x70xbf16>
    %cst_49 = arith.constant dense<0.000000e+00> : vector<40x256xf32>
    %57 = tpu.matmul %56, %54, %cst_49 {dimension_numbers = #tpu.dot_dimension_numbers<[1], [0], [0], [1], [0, 0, 1, 1], [], []>} : vector<40x70xbf16>, vector<70x256xbf16>, vector<40x256xf32> -> vector<40x256xf32>
    %c1_50 = arith.constant 1 : index
    %c0_51 = arith.constant 0 : index
    %c0_52 = arith.constant 0 : index
    %58 = vector.load %arg11[%c1_50, %c0_51, %c0_52] : memref<2x40x70xbf16, #tpu.memory_space<vmem>>, vector<1x40x70xbf16>
    %59 = vector.shape_cast %58 : vector<1x40x70xbf16> to vector<40x70xbf16>
    %cst_53 = arith.constant dense<0.000000e+00> : vector<40x256xf32>
    %60 = tpu.matmul %59, %54, %cst_53 {dimension_numbers = #tpu.dot_dimension_numbers<[1], [0], [0], [1], [0, 0, 1, 1], [], []>} : vector<40x70xbf16>, vector<70x256xbf16>, vector<40x256xf32> -> vector<40x256xf32>
    %61 = arith.maximumf %57, %60 : vector<40x256xf32>
    %c0_54 = arith.constant 0 : index
    %c0_55 = arith.constant 0 : index
    %62 = vector.load %arg16[%c0_54, %c0_55] : memref<40x256xf32, #tpu.memory_space<vmem>>, vector<40x256xf32>
    tpu.vector_store %arg16[%c0_54, %c0_55], %61 {strides = array<i32>} : memref<40x256xf32, #tpu.memory_space<vmem>>, vector<40x256xf32>,
    %c0_56 = arith.constant 0 : index
    %c0_57 = arith.constant 0 : index
    %63 = vector.load %arg16[%c0_56, %c0_57] : memref<40x256xf32, #tpu.memory_space<vmem>>, vector<38x256xf32>
    %64 = arith.truncf %63 : vector<38x256xf32> to vector<38x256xbf16>
    %c0_58 = arith.constant 0 : index
    %c0_59 = arith.constant 0 : index
    %c0_60 = arith.constant 0 : index
    %65 = vector.load %arg6[%c0_58, %c0_59, %c0_60] : memref<3x256x512xbf16, #tpu.memory_space<vmem>>, vector<1x256x512xbf16>
    %66 = vector.shape_cast %65 : vector<1x256x512xbf16> to vector<256x512xbf16>
    %cst_61 = arith.constant dense<0.000000e+00> : vector<38x512xf32>
    %67 = tpu.matmul %64, %66, %cst_61 {dimension_numbers = #tpu.dot_dimension_numbers<[1], [0], [0], [1], [0, 0, 1, 1], [], []>} : vector<38x256xbf16>, vector<256x512xbf16>, vector<38x512xf32> -> vector<38x512xf32>
    %c1_62 = arith.constant 1 : index
    %c0_63 = arith.constant 0 : index
    %68 = vector.load %arg16[%c1_62, %c0_63] : memref<40x256xf32, #tpu.memory_space<vmem>>, vector<38x256xf32>
    %69 = arith.truncf %68 : vector<38x256xf32> to vector<38x256xbf16>
    %c1_64 = arith.constant 1 : index
    %c0_65 = arith.constant 0 : index
    %c0_66 = arith.constant 0 : index
    %70 = vector.load %arg6[%c1_64, %c0_65, %c0_66] : memref<3x256x512xbf16, #tpu.memory_space<vmem>>, vector<1x256x512xbf16>
    %71 = vector.shape_cast %70 : vector<1x256x512xbf16> to vector<256x512xbf16>
    %cst_67 = arith.constant dense<0.000000e+00> : vector<38x512xf32>
    %72 = tpu.matmul %69, %71, %cst_67 {dimension_numbers = #tpu.dot_dimension_numbers<[1], [0], [0], [1], [0, 0, 1, 1], [], []>} : vector<38x256xbf16>, vector<256x512xbf16>, vector<38x512xf32> -> vector<38x512xf32>
    %73 = arith.addf %67, %72 : vector<38x512xf32>
    %c2_68 = arith.constant 2 : index
    %c0_69 = arith.constant 0 : index
    %74 = vector.load %arg16[%c2_68, %c0_69] : memref<40x256xf32, #tpu.memory_space<vmem>>, vector<38x256xf32>
    %75 = arith.truncf %74 : vector<38x256xf32> to vector<38x256xbf16>
    %c2_70 = arith.constant 2 : index
    %c0_71 = arith.constant 0 : index
    %c0_72 = arith.constant 0 : index
    %76 = vector.load %arg6[%c2_70, %c0_71, %c0_72] : memref<3x256x512xbf16, #tpu.memory_space<vmem>>, vector<1x256x512xbf16>
    %77 = vector.shape_cast %76 : vector<1x256x512xbf16> to vector<256x512xbf16>
    %cst_73 = arith.constant dense<0.000000e+00> : vector<38x512xf32>
    %78 = tpu.matmul %75, %77, %cst_73 {dimension_numbers = #tpu.dot_dimension_numbers<[1], [0], [0], [1], [0, 0, 1, 1], [], []>} : vector<38x256xbf16>, vector<256x512xbf16>, vector<38x512xf32> -> vector<38x512xf32>
    %79 = arith.addf %73, %78 : vector<38x512xf32>
    %c0_74 = arith.constant 0 : index
    %c0_75 = arith.constant 0 : index
    %80 = vector.load %arg7[%c0_74, %c0_75] : memref<1x512xf32, #tpu.memory_space<vmem>>, vector<1x512xf32>
    %81 = vector.broadcast %80 : vector<1x512xf32> to vector<38x512xf32>
    %82 = arith.addf %79, %81 : vector<38x512xf32>
    %cst_76 = arith.constant 0.000000e+00 : f32
    %83 = vector.broadcast %cst_76 : f32 to vector<38x512xf32>
    %84 = arith.maximumf %82, %83 : vector<38x512xf32>
    %c0_77 = arith.constant 0 : index
    %c0_78 = arith.constant 0 : index
    %85 = vector.load %arg12[%c0_77, %c0_78] : memref<40x38xbf16, #tpu.memory_space<vmem>>, vector<40x38xbf16>
    %86 = arith.truncf %84 : vector<38x512xf32> to vector<38x512xbf16>
    %cst_79 = arith.constant dense<0.000000e+00> : vector<40x512xf32>
    %87 = tpu.matmul %85, %86, %cst_79 {dimension_numbers = #tpu.dot_dimension_numbers<[1], [0], [0], [1], [0, 0, 1, 1], [], []>} : vector<40x38xbf16>, vector<38x512xbf16>, vector<40x512xf32> -> vector<40x512xf32>
    %c0_80 = arith.constant 0 : index
    %c0_81 = arith.constant 0 : index
    %88 = vector.load %arg17[%c0_80, %c0_81] : memref<40x512xf32, #tpu.memory_space<vmem>>, vector<40x512xf32>
    tpu.vector_store %arg17[%c0_80, %c0_81], %87 {strides = array<i32>} : memref<40x512xf32, #tpu.memory_space<vmem>>, vector<40x512xf32>,
    %c0_82 = arith.constant 0 : index
    %c0_83 = arith.constant 0 : index
    %89 = vector.load %arg17[%c0_82, %c0_83] : memref<40x512xf32, #tpu.memory_space<vmem>>, vector<38x512xf32>
    %90 = arith.truncf %89 : vector<38x512xf32> to vector<38x512xbf16>
    %c0_84 = arith.constant 0 : index
    %c0_85 = arith.constant 0 : index
    %c0_86 = arith.constant 0 : index
    %91 = vector.load %arg8[%c0_84, %c0_85, %c0_86] : memref<3x512x1024xbf16, #tpu.memory_space<vmem>>, vector<1x512x1024xbf16>
    %92 = vector.shape_cast %91 : vector<1x512x1024xbf16> to vector<512x1024xbf16>
    %cst_87 = arith.constant dense<0.000000e+00> : vector<38x1024xf32>
    %93 = tpu.matmul %90, %92, %cst_87 {dimension_numbers = #tpu.dot_dimension_numbers<[1], [0], [0], [1], [0, 0, 1, 1], [], []>} : vector<38x512xbf16>, vector<512x1024xbf16>, vector<38x1024xf32> -> vector<38x1024xf32>
    %c1_88 = arith.constant 1 : index
    %c0_89 = arith.constant 0 : index
    %94 = vector.load %arg17[%c1_88, %c0_89] : memref<40x512xf32, #tpu.memory_space<vmem>>, vector<38x512xf32>
    %95 = arith.truncf %94 : vector<38x512xf32> to vector<38x512xbf16>
    %c1_90 = arith.constant 1 : index
    %c0_91 = arith.constant 0 : index
    %c0_92 = arith.constant 0 : index
    %96 = vector.load %arg8[%c1_90, %c0_91, %c0_92] : memref<3x512x1024xbf16, #tpu.memory_space<vmem>>, vector<1x512x1024xbf16>
    %97 = vector.shape_cast %96 : vector<1x512x1024xbf16> to vector<512x1024xbf16>
    %cst_93 = arith.constant dense<0.000000e+00> : vector<38x1024xf32>
    %98 = tpu.matmul %95, %97, %cst_93 {dimension_numbers = #tpu.dot_dimension_numbers<[1], [0], [0], [1], [0, 0, 1, 1], [], []>} : vector<38x512xbf16>, vector<512x1024xbf16>, vector<38x1024xf32> -> vector<38x1024xf32>
    %99 = arith.addf %93, %98 : vector<38x1024xf32>
    %c2_94 = arith.constant 2 : index
    %c0_95 = arith.constant 0 : index
    %100 = vector.load %arg17[%c2_94, %c0_95] : memref<40x512xf32, #tpu.memory_space<vmem>>, vector<38x512xf32>
    %101 = arith.truncf %100 : vector<38x512xf32> to vector<38x512xbf16>
    %c2_96 = arith.constant 2 : index
    %c0_97 = arith.constant 0 : index
    %c0_98 = arith.constant 0 : index
    %102 = vector.load %arg8[%c2_96, %c0_97, %c0_98] : memref<3x512x1024xbf16, #tpu.memory_space<vmem>>, vector<1x512x1024xbf16>
    %103 = vector.shape_cast %102 : vector<1x512x1024xbf16> to vector<512x1024xbf16>
    %cst_99 = arith.constant dense<0.000000e+00> : vector<38x1024xf32>
    %104 = tpu.matmul %101, %103, %cst_99 {dimension_numbers = #tpu.dot_dimension_numbers<[1], [0], [0], [1], [0, 0, 1, 1], [], []>} : vector<38x512xbf16>, vector<512x1024xbf16>, vector<38x1024xf32> -> vector<38x1024xf32>
    %105 = arith.addf %99, %104 : vector<38x1024xf32>
    %c0_100 = arith.constant 0 : index
    %c0_101 = arith.constant 0 : index
    %106 = vector.load %arg9[%c0_100, %c0_101] : memref<1x1024xf32, #tpu.memory_space<vmem>>, vector<1x1024xf32>
    %107 = vector.broadcast %106 : vector<1x1024xf32> to vector<38x1024xf32>
    %108 = arith.addf %105, %107 : vector<38x1024xf32>
    %cst_102 = arith.constant 0.000000e+00 : f32
    %109 = vector.broadcast %cst_102 : f32 to vector<38x1024xf32>
    %110 = arith.maximumf %108, %109 : vector<38x1024xf32>
    %111 = vector.extract_strided_slice %110 {offsets = [0, 0], sizes = [38, 512], strides = [1, 1]} : vector<38x1024xf32> to vector<38x512xf32>
    %112 = vector.extract_strided_slice %110 {offsets = [0, 512], sizes = [38, 512], strides = [1, 1]} : vector<38x1024xf32> to vector<38x512xf32>
    %113 = arith.maximumf %111, %112 : vector<38x512xf32>
    %114 = arith.truncf %113 : vector<38x512xf32> to vector<38x512xbf16>
    %c0_103 = arith.constant 0 : index
    %c0_104 = arith.constant 0 : index
    %c0_105 = arith.constant 0 : index
    %115 = vector.load %arg13[%c0_103, %c0_104, %c0_105] : memref<2x16x38xbf16, #tpu.memory_space<vmem>>, vector<1x16x38xbf16>
    %116 = vector.shape_cast %115 : vector<1x16x38xbf16> to vector<16x38xbf16>
    %cst_106 = arith.constant dense<0.000000e+00> : vector<16x512xf32>
    %117 = tpu.matmul %116, %114, %cst_106 {dimension_numbers = #tpu.dot_dimension_numbers<[1], [0], [0], [1], [0, 0, 1, 1], [], []>} : vector<16x38xbf16>, vector<38x512xbf16>, vector<16x512xf32> -> vector<16x512xf32>
    %c1_107 = arith.constant 1 : index
    %c0_108 = arith.constant 0 : index
    %c0_109 = arith.constant 0 : index
    %118 = vector.load %arg13[%c1_107, %c0_108, %c0_109] : memref<2x16x38xbf16, #tpu.memory_space<vmem>>, vector<1x16x38xbf16>
    %119 = vector.shape_cast %118 : vector<1x16x38xbf16> to vector<16x38xbf16>
    %cst_110 = arith.constant dense<0.000000e+00> : vector<16x512xf32>
    %120 = tpu.matmul %119, %114, %cst_110 {dimension_numbers = #tpu.dot_dimension_numbers<[1], [0], [0], [1], [0, 0, 1, 1], [], []>} : vector<16x38xbf16>, vector<38x512xbf16>, vector<16x512xf32> -> vector<16x512xf32>
    %121 = arith.maximumf %117, %120 : vector<16x512xf32>
    %c0_111 = arith.constant 0 : index
    %c0_112 = arith.constant 0 : index
    %c0_113 = arith.constant 0 : index
    %122 = vector.load %arg14[%c0_111, %c0_112, %c0_113] : memref<1x16x512xf32, #tpu.memory_space<vmem>>, vector<1x16x512xf32>
    %123 = vector.shape_cast %122 : vector<1x16x512xf32> to vector<16x512xf32>
    %124 = vector.shape_cast %121 : vector<16x512xf32> to vector<1x16x512xf32>
    tpu.vector_store %arg14[%c0_111, %c0_112, %c0_113], %124 {strides = array<i32>} : memref<1x16x512xf32, #tpu.memory_space<vmem>>, vector<1x16x512xf32>,
    return
  }
  func.func @transform_0(%arg0: i32) -> (i32, i32, i32) {
    %c0_i32 = arith.constant 0 : i32
    %c0_i32_0 = arith.constant 0 : i32
    %c0_i32_1 = arith.constant 0 : i32
    return %arg0, %c0_i32, %c0_i32_0 : i32, i32, i32
  }
  func.func @transform_1(%arg0: i32) -> (i32, i32, i32) {
    %c0_i32 = arith.constant 0 : i32
    %c0_i32_0 = arith.constant 0 : i32
    %c0_i32_1 = arith.constant 0 : i32
    %c0_i32_2 = arith.constant 0 : i32
    return %c0_i32, %c0_i32_0, %c0_i32_1 : i32, i32, i32
  }
  func.func @transform_2(%arg0: i32) -> (i32, i32) {
    %c0_i32 = arith.constant 0 : i32
    %c0_i32_0 = arith.constant 0 : i32
    %c0_i32_1 = arith.constant 0 : i32
    return %c0_i32, %c0_i32_0 : i32, i32
  }
  func.func @transform_3(%arg0: i32) -> (i32, i32, i32) {
    %c0_i32 = arith.constant 0 : i32
    %c0_i32_0 = arith.constant 0 : i32
    %c0_i32_1 = arith.constant 0 : i32
    %c0_i32_2 = arith.constant 0 : i32
    return %c0_i32, %c0_i32_0, %c0_i32_1 : i32, i32, i32
  }
  func.func @transform_4(%arg0: i32) -> (i32, i32) {
    %c0_i32 = arith.constant 0 : i32
    %c0_i32_0 = arith.constant 0 : i32
    %c0_i32_1 = arith.constant 0 : i32
    return %c0_i32, %c0_i32_0 : i32, i32
  }
  func.func @transform_5(%arg0: i32) -> (i32, i32, i32) {
    %c0_i32 = arith.constant 0 : i32
    %c0_i32_0 = arith.constant 0 : i32
    %c0_i32_1 = arith.constant 0 : i32
    %c0_i32_2 = arith.constant 0 : i32
    return %c0_i32, %c0_i32_0, %c0_i32_1 : i32, i32, i32
  }
  func.func @transform_6(%arg0: i32) -> (i32, i32) {
    %c0_i32 = arith.constant 0 : i32
    %c0_i32_0 = arith.constant 0 : i32
    %c0_i32_1 = arith.constant 0 : i32
    return %c0_i32, %c0_i32_0 : i32, i32
  }
  func.func @transform_7(%arg0: i32) -> (i32, i32, i32) {
    %c0_i32 = arith.constant 0 : i32
    %c0_i32_0 = arith.constant 0 : i32
    %c0_i32_1 = arith.constant 0 : i32
    %c0_i32_2 = arith.constant 0 : i32
    return %c0_i32, %c0_i32_0, %c0_i32_1 : i32, i32, i32
  }
  func.func @transform_8(%arg0: i32) -> (i32, i32) {
    %c0_i32 = arith.constant 0 : i32
    %c0_i32_0 = arith.constant 0 : i32
    %c0_i32_1 = arith.constant 0 : i32
    return %c0_i32, %c0_i32_0 : i32, i32
  }
  func.func @transform_9(%arg0: i32) -> (i32, i32) {
    %c0_i32 = arith.constant 0 : i32
    %c0_i32_0 = arith.constant 0 : i32
    %c0_i32_1 = arith.constant 0 : i32
    return %c0_i32, %c0_i32_0 : i32, i32
  }
  func.func @transform_10(%arg0: i32) -> (i32, i32, i32) {
    %c0_i32 = arith.constant 0 : i32
    %c0_i32_0 = arith.constant 0 : i32
    %c0_i32_1 = arith.constant 0 : i32
    %c0_i32_2 = arith.constant 0 : i32
    return %c0_i32, %c0_i32_0, %c0_i32_1 : i32, i32, i32
  }
  func.func @transform_11(%arg0: i32) -> (i32, i32) {
    %c0_i32 = arith.constant 0 : i32
    %c0_i32_0 = arith.constant 0 : i32
    %c0_i32_1 = arith.constant 0 : i32
    return %c0_i32, %c0_i32_0 : i32, i32
  }
  func.func @transform_12(%arg0: i32) -> (i32, i32, i32) {
    %c0_i32 = arith.constant 0 : i32
    %c0_i32_0 = arith.constant 0 : i32
    %c0_i32_1 = arith.constant 0 : i32
    %c0_i32_2 = arith.constant 0 : i32
    return %c0_i32, %c0_i32_0, %c0_i32_1 : i32, i32, i32
  }
  func.func @transform_13(%arg0: i32) -> (i32, i32, i32) {
    %c0_i32 = arith.constant 0 : i32
    %c0_i32_0 = arith.constant 0 : i32
    %c0_i32_1 = arith.constant 0 : i32
    return %arg0, %c0_i32, %c0_i32_0 : i32, i32, i32
  }
}

</mosaic_0001>

<bundles_post_ra>
// kernel: encoder_forward.1
= control target key start
LH: loop header
LB: loop body
LE: loop exit
PB: predicated region body
PF: predicated region fallthrough
CT: control target
= control target key end

     0   :  { %s16459_s0 = inlined_call_operand.vmem [shape: f32[2,72,48], index: 0, kind: input, shape index: {}]   ;;  %s16460_s1 = inlined_call_operand.hbm [shape: bf16[3,48,256], index: 1, kind: input, shape index: {}]   ;;  %s16461_s2 = inlined_call_operand.hbm [shape: f32[1,256], index: 2, kind: input, shape index: {}]   ;;  %s16462_s3 = inlined_call_operand.hbm [shape: bf16[3,256,512], index: 3, kind: input, shape index: {}]   ;;  %s16463_s4 = inlined_call_operand.hbm [shape: f32[1,512], index: 4, kind: input, shape index: {}]   ;;  %s16464_s5 = inlined_call_operand.hbm [shape: bf16[3,256,512], index: 5, kind: input, shape index: {}]   ;;  %s16465_s6 = inlined_call_operand.hbm [shape: f32[1,512], index: 6, kind: input, shape index: {}]   ;;  %s16466_s7 = inlined_call_operand.hbm [shape: bf16[3,512,1024], index: 7, kind: input, shape index: {}]   ;;  %s16467_s8 = inlined_call_operand.hbm [shape: f32[1,1024], index: 8, kind: input, shape index: {}]   ;;  %s16468_s9 = inlined_call_operand.hbm [shape: bf16[72,70], index: 9, kind: input, shape index: {}]   ;;  %s16469_s10 = inlined_call_operand.hbm [shape: bf16[2,40,70], index: 10, kind: input, shape index: {}]   ;;  %s16470_s11 = inlined_call_operand.hbm [shape: bf16[40,38], index: 11, kind: input, shape index: {}]   ;;  %s16471_s12 = inlined_call_operand.hbm [shape: bf16[2,16,38], index: 12, kind: input, shape index: {}]   ;;  %s16472_s13 = inlined_call_operand.vmem [shape: f32[2,16,512], index: 13, kind: output, shape index: {}]  }
   0x1   :  { %16480 = sst [smem:[#allocation32_spill]] %s16461_s2 }
   0x2   :  { %18 = vsyncpa [#allocation6], 0 }
   0x3   :  { %19 = vsyncpa [#allocation8], 0 }
   0x4   :  { %20 = vsyncpa [#allocation11], 0 }
   0x5   :  { %21 = vsyncpa [#allocation14], 0 }
   0x6   :  { %22 = vsyncpa [#allocation17], 0 }
   0x7   :  { %23 = vsyncpa [#allocation20], 0 }
   0x8   :  { %24 = vsyncpa [#allocation23], 0  ;;  %s15017_s25 = smov 0  }
   0x9 LB: > { %16481 = sst [smem:[#allocation31_spill]] %s14924_s25  ;;  %s14926_s26 = smov [#allocation7]   ;;  %s14924_s25 = sphi %s15017_s25, %s30_s25  }
   0xa   : > { %s365_s27 = sshll.u32 %s14926_s26, 4  ;;  %s15023_s28 = sadd.s32 4294967295, %s14924_s25   ;;  %s15028_s27 = int_to_ptr.vmem [resolvable:$true] %s365_s27 }
   0xb   : > { %p12230_p0 = scmp.ge.s32.totalorder %s14924_s25, 1  ;;  %p339_p1 = scmp.lt.s32.totalorder %s14924_s25, 3 }
   0xc   : > { %p16474_p2 = scmp.eq.s32.totalorder %s15023_s28, 0  ;;  %s14927_s30 = smov [#allocation10]  }
   0xd   : > { %p15030_p3 = pnand %p12230_p0, %p339_p1  ;;  %s389_s14 = sshll.u32 %s14927_s30, 4  ;;  %s15036_s14 = int_to_ptr.vmem [resolvable:$true] %s389_s14 }
   0xe   : > { %s14928_s15 = smov [#allocation13]   ;;  %s14929_s18 = smov [#allocation16]  }
   0xf   : > { %s16482_s29 = scalar_select %p15030_p3, 1, 0 }
  0x10   : > { %p13837_p4 = pneg %p15030_p3  ;;  %s413_s16 = sshll.u32 %s14928_s15, 4  ;;  %s15044_s16 = int_to_ptr.vmem [resolvable:$true] %s413_s16 }
  0x11   : > { %s437_s19 = sshll.u32 %s14929_s18, 4  ;;  %s16484_s2 = sld [smem:[#allocation32_spill]]  ;;  %s15046_s19 = int_to_ptr.vmem [resolvable:$true] %s437_s19 }
  0x12   : > { %p15040_p5 = pnand %p16474_p2, %p13837_p4 }
  0x14   : > { %p15056_p7 = pneg %p15040_p5 }
  0x17   : > { %s14554_s22 = scalar_lea.hbm %s16484_s2, 32 }
  0x18   : > { %p14555_p6 = scmp.ne.s32.totalorder %s16484_s2, %s14554_s22  ;;  %p14561_p10 = scmp.lt.u32.totalorder %s14554_s22, %s16484_s2 }
  0x1a   : > { %p14557_p8 = pnand %p15056_p7, %p14555_p6 }
  0x1c   : > { %p14558_p9 = pneg %p14557_p8 }
  0x1e   : > { %p14563_p11 = pnand %p14561_p10, %p14558_p9 }
  0x20   : > { %14566 = shalt.err (!%p14563_p11)
}
  0x21   : > { %s14567_s18 = scalar_lea.vmem %s15028_s27, 32  ;;  %p14575_p1 = scmp.lt.s32.totalorder %s15028_s27, %s15028_s27 }
  0x22   : > { %p14568_p12 = scmp.ne.s32.totalorder %s15028_s27, %s14567_s18  ;;  %p14576_p4 = scmp.lt.s32.totalorder %s14567_s18, %s14567_s18 }
  0x24   : > { %p14570_p13 = pnand %p14568_p12, %p15056_p7  ;;  %p14577_p6 = por %p14576_p4, %p14575_p1 }
  0x26   : > { %p14571_p0 = pneg %p14570_p13 }
  0x28   : > { %p14578_p8 = pnand %p14577_p6, %p14571_p0 }
  0x2a   : > { %14581 = shalt.err (!%p14578_p8)
}
  0x2b   : > { %13843 = dma.hbm_to_vmem [thread:$0]  (!%p15040_p5), %s16484_s2, 32, %s15028_s27, [#allocation8]  }
  0x2c   : > { %s14582_s24 = scalar_lea.hbm %s16463_s4, 64 }
  0x2d   : > { %p14583_p9 = scmp.ne.s32.totalorder %s16463_s4, %s14582_s24  ;;  %p14589_p12 = scmp.lt.u32.totalorder %s14582_s24, %s16463_s4 }
  0x2f   : > { %p14585_p10 = pnand %p14583_p9, %p15056_p7 }
  0x31   : > { %p14586_p11 = pneg %p14585_p10 }
  0x33   : > { %p14591_p13 = pnand %p14589_p12, %p14586_p11 }
  0x35   : > { %14594 = shalt.err (!%p14591_p13)
}
  0x36   : > { %s14595_s27 = scalar_lea.vmem %s15036_s14, 64  ;;  %p14603_p6 = scmp.lt.s32.totalorder %s15036_s14, %s15036_s14 }
  0x37   : > { %p14596_p0 = scmp.ne.s32.totalorder %s15036_s14, %s14595_s27  ;;  %p14604_p8 = scmp.lt.s32.totalorder %s14595_s27, %s14595_s27 }
  0x39   : > { %p14598_p1 = pnand %p14596_p0, %p15056_p7  ;;  %p14605_p9 = por %p14604_p8, %p14603_p6 }
  0x3b   : > { %p14599_p4 = pneg %p14598_p1 }
  0x3d   : > { %p14606_p10 = pnand %p14605_p9, %p14599_p4 }
  0x3f   : > { %14609 = shalt.err (!%p14606_p10)
}
  0x40   : > { %13849 = dma.hbm_to_vmem [thread:$0]  (!%p15040_p5), %s16463_s4, 64, %s15036_s14, [#allocation11]  }
  0x41   : > { %s14610_s23 = scalar_lea.hbm %s16465_s6, 64 }
  0x42   : > { %p14611_p11 = scmp.ne.s32.totalorder %s16465_s6, %s14610_s23  ;;  %p14617_p0 = scmp.lt.u32.totalorder %s14610_s23, %s16465_s6 }
  0x44   : > { %p14613_p12 = pnand %p14611_p11, %p15056_p7 }
  0x46   : > { %p14614_p13 = pneg %p14613_p12 }
  0x48   : > { %p14619_p1 = pnand %p14617_p0, %p14614_p13 }
  0x4a   : > { %14622 = shalt.err (!%p14619_p1)
}
  0x4b   : > { %s14623_s14 = scalar_lea.vmem %s15044_s16, 64  ;;  %p14631_p9 = scmp.lt.s32.totalorder %s15044_s16, %s15044_s16 }
  0x4c   : > { %p14624_p4 = scmp.ne.s32.totalorder %s15044_s16, %s14623_s14  ;;  %p14632_p10 = scmp.lt.s32.totalorder %s14623_s14, %s14623_s14 }
  0x4e   : > { %p14626_p6 = pnand %p14624_p4, %p15056_p7  ;;  %p14633_p11 = por %p14632_p10, %p14631_p9 }
  0x50   : > { %p14627_p8 = pneg %p14626_p6 }
  0x52   : > { %p14634_p12 = pnand %p14633_p11, %p14627_p8 }
  0x54   : > { %14637 = shalt.err (!%p14634_p12)
}
  0x55   : > { %13855 = dma.hbm_to_vmem [thread:$0]  (!%p15040_p5), %s16465_s6, 64, %s15044_s16, [#allocation14]  }
  0x56   : > { %s14638_s22 = scalar_lea.hbm %s16467_s8, 128 }
  0x57   : > { %p14639_p13 = scmp.ne.s32.totalorder %s16467_s8, %s14638_s22  ;;  %p14645_p4 = scmp.lt.u32.totalorder %s14638_s22, %s16467_s8 }
  0x59   : > { %p14641_p0 = pnand %p14639_p13, %p15056_p7 }
  0x5b   : > { %p14642_p1 = pneg %p14641_p0 }
  0x5d   : > { %p14647_p6 = pnand %p14645_p4, %p14642_p1 }
  0x5f   : > { %14650 = shalt.err (!%p14647_p6)
}
  0x60   : > { %s14651_s16 = scalar_lea.vmem %s15046_s19, 128  ;;  %p14659_p11 = scmp.lt.s32.totalorder %s15046_s19, %s15046_s19 }
  0x61   : > { %p14652_p8 = scmp.ne.s32.totalorder %s15046_s19, %s14651_s16  ;;  %p14660_p12 = scmp.lt.s32.totalorder %s14651_s16, %s14651_s16 }
  0x63   : > { %p14654_p9 = pnand %p14652_p8, %p15056_p7  ;;  %p14661_p13 = por %p14660_p12, %p14659_p11 }
  0x65   : > { %p14655_p10 = pneg %p14654_p9 }
  0x67   : > { %p14662_p0 = pnand %p14661_p13, %p14655_p10 }
  0x69   : > { %14665 = shalt.err (!%p14662_p0)
}
  0x6a   : > { %13861 = dma.hbm_to_vmem [thread:$0]  (!%p15040_p5), %s16467_s8, 128, %s15046_s19, [#allocation17]  }
  0x6b   : > { %s14930_s27 = smov [#allocation19]   ;;  %s14931_s20 = smov [#allocation5]  }
  0x6c   : > { %s460_s25 = sshll.u32 %s14930_s27, 4  ;;  %s351_s21 = sshll.u32 %s14931_s20, 4  ;;  %s461_s25 = int_to_ptr.vmem [resolvable:$true] %s460_s25  ;;  %s352_s21 = int_to_ptr.vmem [resolvable:$true] %s351_s21 }
  0x6d   : > { %s14666_s24 = scalar_lea.hbm %s16469_s10, 640 }
  0x6e   : > { %p14667_p1 = scmp.ne.s32.totalorder %s16469_s10, %s14666_s24  ;;  %p14673_p8 = scmp.lt.u32.totalorder %s14666_s24, %s16469_s10 }
  0x70   : > { %p14669_p4 = pnand %p14667_p1, %p15056_p7 }
  0x72   : > { %p14670_p6 = pneg %p14669_p4 }
  0x74   : > { %p14675_p9 = pnand %p14673_p8, %p14670_p6 }
  0x76   : > { %14678 = shalt.err (!%p14675_p9)
}
  0x77   : > { %s14679_s19 = scalar_lea.vmem %s461_s25, 640  ;;  %p14687_p13 = scmp.lt.s32.totalorder %s461_s25, %s461_s25 }
  0x78   : > { %p14680_p10 = scmp.ne.s32.totalorder %s461_s25, %s14679_s19  ;;  %p14688_p0 = scmp.lt.s32.totalorder %s14679_s19, %s14679_s19 }
  0x7a   : > { %p14682_p11 = pnand %p14680_p10, %p15056_p7  ;;  %p14689_p2 = por %p14688_p0, %p14687_p13 }
  0x7c   : > { %p14683_p12 = pneg %p14682_p11 }
  0x7e   : > { %p14690_p3 = pnand %p14689_p2, %p14683_p12 }
  0x80   : > { %14693 = shalt.err (!%p14690_p3)
}
  0x81   : > { %s16476_s14 = smov 64   ;;  %s16478_s27 = smov 4  }
  0x82   : > { %13867 = dma.hbm_to_vmem [thread:$0]  (!%p15040_p5), %s16469_s10, 640, %s461_s25, [#allocation20], %s16476_s14, %s16476_s14, %s16478_s27  }
  0x83   : > { %s14694_s30 = scalar_lea.hbm %s16460_s1, 2304 }
  0x84   : > { %p14695_p2 = scmp.ne.s32.totalorder %s16460_s1, %s14694_s30  ;;  %p14701_p4 = scmp.lt.u32.totalorder %s14694_s30, %s16460_s1 }
  0x86   : > { %p14697_p3 = pnand %p14695_p2, %p15056_p7 }
  0x88   : > { %p14698_p1 = pneg %p14697_p3 }
  0x8a   : > { %p14703_p6 = pnand %p14701_p4, %p14698_p1 }
  0x8c   : > { %14706 = shalt.err (!%p14703_p6)
}
  0x8d   : > { %s14707_s20 = scalar_lea.vmem %s352_s21, 2304  ;;  %p14715_p11 = scmp.lt.s32.totalorder %s352_s21, %s352_s21 }
  0x8e   : > { %p14708_p8 = scmp.ne.s32.totalorder %s352_s21, %s14707_s20  ;;  %p14716_p12 = scmp.lt.s32.totalorder %s14707_s20, %s14707_s20 }
  0x90   : > { %p14710_p9 = pnand %p14708_p8, %p15056_p7  ;;  %p14717_p13 = por %p14716_p12, %p14715_p11 }
  0x92   : > { %p14711_p10 = pneg %p14710_p9 }
  0x94   : > { %p14718_p0 = pnand %p14717_p13, %p14711_p10 }
  0x96   : > { %14721 = shalt.err (!%p14718_p0)
}
  0x97   : > { %s14934_s25 = smov 128   ;;  %s14935_s22 = smov 8  }
  0x98   : > { %13840 = dma.hbm_to_vmem [thread:$0]  (!%p15040_p5), %s16460_s1, 2304, %s352_s21, [#allocation6], %s14934_s25, %s14934_s25, %s14935_s22  }
  0x99   : > { %s14936_s30 = smov [#allocation9]   ;;  %s14722_s19 = scalar_lea.hbm %s16462_s3, 24576 }
  0x9a   : > { %s375_s15 = sshll.u32 %s14936_s30, 4  ;;  %p14723_p2 = scmp.ne.s32.totalorder %s16462_s3, %s14722_s19  ;;  %s376_s15 = int_to_ptr.vmem [resolvable:$true] %s375_s15 }
  0x9b   : > { %p14729_p4 = scmp.lt.u32.totalorder %s14722_s19, %s16462_s3 }
  0x9c   : > { %p14725_p3 = pnand %p14723_p2, %p15056_p7 }
  0x9e   : > { %p14726_p1 = pneg %p14725_p3 }
  0xa0   : > { %p14731_p6 = pnand %p14729_p4, %p14726_p1 }
  0xa2   : > { %14734 = shalt.err (!%p14731_p6)
}
  0xa3   : > { %s14735_s21 = scalar_lea.vmem %s376_s15, 24576  ;;  %p14743_p11 = scmp.lt.s32.totalorder %s376_s15, %s376_s15 }
  0xa4   : > { %p14736_p8 = scmp.ne.s32.totalorder %s376_s15, %s14735_s21  ;;  %p14744_p12 = scmp.lt.s32.totalorder %s14735_s21, %s14735_s21 }
  0xa6   : > { %p14738_p9 = pnand %p14736_p8, %p15056_p7  ;;  %p14745_p13 = por %p14744_p12, %p14743_p11 }
  0xa8   : > { %p14739_p10 = pneg %p14738_p9 }
  0xaa   : > { %p14746_p0 = pnand %p14745_p13, %p14739_p10 }
  0xac   : > { %14749 = shalt.err (!%p14746_p0)
}
  0xad   : > { %s14937_s14 = smov 256   ;;  %s14938_s25 = smov 16  }
  0xae   : > { %13846 = dma.hbm_to_vmem [thread:$0]  (!%p15040_p5), %s16462_s3, 24576, %s376_s15, [#allocation8], %s14937_s14, %s14937_s14, %s14938_s25  }
  0xaf   : > { %s14939_s22 = smov [#allocation12]   ;;  %s14940_s24 = smov [#allocation15]  }
  0xb0   : > { %s399_s23 = sshll.u32 %s14939_s22, 4  ;;  %s423_s30 = sshll.u32 %s14940_s24, 4  ;;  %s400_s23 = int_to_ptr.vmem [resolvable:$true] %s399_s23  ;;  %s15203_s30 = int_to_ptr.vmem [resolvable:$true] %s423_s30 }
  0xb1   : > { %s14750_s19 = scalar_lea.hbm %s16464_s5, 24576 }
  0xb2   : > { %p14751_p2 = scmp.ne.s32.totalorder %s16464_s5, %s14750_s19  ;;  %p14757_p4 = scmp.lt.u32.totalorder %s14750_s19, %s16464_s5 }
  0xb4   : > { %p14753_p3 = pnand %p14751_p2, %p15056_p7 }
  0xb6   : > { %p14754_p1 = pneg %p14753_p3 }
  0xb8   : > { %p14759_p6 = pnand %p14757_p4, %p14754_p1 }
  0xba   : > { %14762 = shalt.err (!%p14759_p6)
}
  0xbb   : > { %s14763_s27 = scalar_lea.vmem %s400_s23, 24576  ;;  %p14771_p11 = scmp.lt.s32.totalorder %s400_s23, %s400_s23 }
  0xbc   : > { %p14764_p8 = scmp.ne.s32.totalorder %s400_s23, %s14763_s27  ;;  %p14772_p12 = scmp.lt.s32.totalorder %s14763_s27, %s14763_s27 }
  0xbe   : > { %p14766_p9 = pnand %p14764_p8, %p15056_p7  ;;  %p14773_p13 = por %p14772_p12, %p14771_p11 }
  0xc0   : > { %p14767_p10 = pneg %p14766_p9 }
  0xc2   : > { %p14774_p0 = pnand %p14773_p13, %p14767_p10 }
  0xc4   : > { %14777 = shalt.err (!%p14774_p0)
}
  0xc5   : > { %13852 = dma.hbm_to_vmem [thread:$0]  (!%p15040_p5), %s16464_s5, 24576, %s400_s23, [#allocation11], %s14937_s14, %s14937_s14, %s14938_s25  }
  0xc6   : > { %s14778_s19 = scalar_lea.hbm %s16466_s7, 98304 }
  0xc7   : > { %p14779_p2 = scmp.ne.s32.totalorder %s16466_s7, %s14778_s19  ;;  %p14785_p4 = scmp.lt.u32.totalorder %s14778_s19, %s16466_s7 }
  0xc9   : > { %p14781_p3 = pnand %p14779_p2, %p15056_p7 }
  0xcb   : > { %p14782_p1 = pneg %p14781_p3 }
  0xcd   : > { %p14787_p6 = pnand %p14785_p4, %p14782_p1 }
  0xcf   : > { %14790 = shalt.err (!%p14787_p6)
}
  0xd0   : > { %s14791_s14 = scalar_lea.vmem %s15203_s30, 98304  ;;  %p14799_p11 = scmp.lt.s32.totalorder %s15203_s30, %s15203_s30 }
  0xd1   : > { %p14792_p8 = scmp.ne.s32.totalorder %s15203_s30, %s14791_s14  ;;  %p14800_p12 = scmp.lt.s32.totalorder %s14791_s14, %s14791_s14 }
  0xd3   : > { %p14794_p9 = pnand %p14792_p8, %p15056_p7  ;;  %p14801_p13 = por %p14800_p12, %p14799_p11 }
  0xd5   : > { %p14795_p10 = pneg %p14794_p9 }
  0xd7   : > { %p14802_p0 = pnand %p14801_p13, %p14795_p10 }
  0xd9   : > { %14805 = shalt.err (!%p14802_p0)
}
  0xda   : > { %s14941_s25 = smov 512   ;;  %s14942_s23 = smov 32  }
  0xdb   : > { %13858 = dma.hbm_to_vmem [thread:$0]  (!%p15040_p5), %s16466_s7, 98304, %s15203_s30, [#allocation14], %s14941_s25, %s14941_s25, %s14942_s23  }
  0xdc   : > { %s14943_s24 = smov [#allocation18]   ;;  %s14944_s18 = smov [#allocation21]  }
  0xdd   : > { %s447_s16 = sshll.u32 %s14943_s24, 4  ;;  %s473_s19 = sshll.u32 %s14944_s18, 4  ;;  %s448_s16 = int_to_ptr.vmem [resolvable:$true] %s447_s16  ;;  %s15246_s19 = int_to_ptr.vmem [resolvable:$true] %s473_s19 }
  0xde   : > { %s14806_s2 = scalar_lea.hbm %s16468_s9, 576 }
  0xdf   : > { %p14807_p2 = scmp.ne.s32.totalorder %s16468_s9, %s14806_s2  ;;  %p14813_p4 = scmp.lt.u32.totalorder %s14806_s2, %s16468_s9 }
  0xe1   : > { %p14809_p3 = pnand %p14807_p2, %p15056_p7 }
  0xe3   : > { %p14810_p1 = pneg %p14809_p3 }
  0xe5   : > { %p14815_p6 = pnand %p14813_p4, %p14810_p1 }
  0xe7   : > { %14818 = shalt.err (!%p14815_p6)
}
  0xe8   : > { %s14819_s25 = scalar_lea.vmem %s448_s16, 576  ;;  %p14827_p11 = scmp.lt.s32.totalorder %s448_s16, %s448_s16 }
  0xe9   : > { %p14820_p8 = scmp.ne.s32.totalorder %s448_s16, %s14819_s25  ;;  %p14828_p12 = scmp.lt.s32.totalorder %s14819_s25, %s14819_s25 }
  0xeb   : > { %p14822_p9 = pnand %p14820_p8, %p15056_p7  ;;  %p14829_p13 = por %p14828_p12, %p14827_p11 }
  0xed   : > { %p14823_p10 = pneg %p14822_p9 }
  0xef   : > { %p14830_p0 = pnand %p14829_p13, %p14823_p10 }
  0xf1   : > { %14833 = shalt.err (!%p14830_p0)
}
  0xf2   : > { %s16486_s23 = smov 4   ;;  %s16487_s22 = smov 64  }
  0xf3   : > { %13864 = dma.hbm_to_vmem [thread:$0]  (!%p15040_p5), %s16468_s9, 576, %s448_s16, [#allocation17], %s16487_s22, %s16487_s22, %s16486_s23  }
  0xf4   : > { %s14834_s2 = scalar_lea.hbm %s16470_s11, 320 }
  0xf5   : > { %p14835_p2 = scmp.ne.s32.totalorder %s16470_s11, %s14834_s2  ;;  %p14841_p4 = scmp.lt.u32.totalorder %s14834_s2, %s16470_s11 }
  0xf7   : > { %p14837_p3 = pnand %p14835_p2, %p15056_p7 }
  0xf9   : > { %p14838_p1 = pneg %p14837_p3 }
  0xfb   : > { %p14843_p6 = pnand %p14841_p4, %p14838_p1 }
  0xfd   : > { %14846 = shalt.err (!%p14843_p6)
}
  0xfe   : > { %s14847_s16 = scalar_lea.vmem %s15246_s19, 320  ;;  %p14855_p11 = scmp.lt.s32.totalorder %s15246_s19, %s15246_s19 }
  0xff   : > { %p14848_p8 = scmp.ne.s32.totalorder %s15246_s19, %s14847_s16  ;;  %p14856_p12 = scmp.lt.s32.totalorder %s14847_s16, %s14847_s16 }
 0x101   : > { %p14850_p9 = pnand %p14848_p8, %p15056_p7  ;;  %p14857_p13 = por %p14856_p12, %p14855_p11 }
 0x103   : > { %p14851_p10 = pneg %p14850_p9 }
 0x105   : > { %p14858_p0 = pnand %p14857_p13, %p14851_p10 }
 0x107   : > { %14861 = shalt.err (!%p14858_p0)
}
 0x108   : > { %13870 = dma.hbm_to_vmem [thread:$0]  (!%p15040_p5), %s16470_s11, 320, %s15246_s19, [#allocation20], %s16487_s22, %s16487_s22, %s16486_s23  }
 0x109   : > { %s14945_s18 = smov [#allocation22]   ;;  %s14862_s15 = scalar_lea.hbm %s16471_s12, 256 }
 0x10a   : > { %s486_s20 = sshll.u32 %s14945_s18, 4  ;;  %p14863_p2 = scmp.ne.s32.totalorder %s16471_s12, %s14862_s15  ;;  %s487_s20 = int_to_ptr.vmem [resolvable:$true] %s486_s20 }
 0x10b   : > { %p14869_p4 = scmp.lt.u32.totalorder %s14862_s15, %s16471_s12 }
 0x10c   : > { %p14865_p3 = pnand %p14863_p2, %p15056_p7 }
 0x10e   : > { %p14866_p1 = pneg %p14865_p3 }
 0x110   : > { %p14871_p6 = pnand %p14869_p4, %p14866_p1 }
 0x112   : > { %14874 = shalt.err (!%p14871_p6)
}
 0x113   : > { %s14875_s19 = scalar_lea.vmem %s487_s20, 256  ;;  %p14883_p11 = scmp.lt.s32.totalorder %s487_s20, %s487_s20 }
 0x114   : > { %p14876_p8 = scmp.ne.s32.totalorder %s487_s20, %s14875_s19  ;;  %p14884_p12 = scmp.lt.s32.totalorder %s14875_s19, %s14875_s19 }
 0x116   : > { %p14878_p9 = pnand %p14876_p8, %p15056_p7  ;;  %p14885_p13 = por %p14884_p12, %p14883_p11 }
 0x118   : > { %p14879_p10 = pneg %p14878_p9 }
 0x11a   : > { %p14886_p0 = pnand %p14885_p13, %p14879_p10 }
 0x11c   : > { %14889 = shalt.err (!%p14886_p0)
}
 0x11d   : > { %13873 = dma.hbm_to_vmem [thread:$0]  (!%p15040_p5), %s16471_s12, 256, %s487_s20, [#allocation23], %s16487_s22, %s16487_s22, %s16486_s23  }
 0x11e   : > { %p16488_p2 = scmp.ne.s32.totalorder %s16482_s29, 0 }
 0x11f   : > { %p16489_p7 = scmp.eq.s32.totalorder (!%p16488_p2), %s15023_s28, 0 }
 0x120   : > { %510 = sbr.rel (%p16488_p2) target bundleno = 3667 (0xe53), region = 72 }
 0x127   : > { %14895 = dma.done.wait (%p16489_p7), [#allocation6], 2304   ;;  %p16490_p3 = pmov %p16489_p7 }
 0x129   : > { %14897 = vsyncadd (%p16490_p3), [#allocation6], 4294964992  ;;  %p16491_p1 = pmov %p16490_p3 }
 0x12b   : > { %14899 = dma.done.wait (%p16491_p1), [#allocation8], 24608   ;;  %p16492_p4 = pmov %p16491_p1 }
 0x12c   : > { %p16493_p6 = pmov %p16491_p1 }
 0x12d   : > { %14901 = vsyncadd (%p16492_p4), [#allocation8], 4294942688 }
 0x12e   : > { %14903 = dma.done.wait (%p16493_p6), [#allocation11], 24640   ;;  %p16494_p5 = pmov %p16491_p1 }
 0x12f   : > { %p16495_p8 = pmov %p16491_p1 }
 0x130   : > { %14905 = vsyncadd (%p16494_p5), [#allocation11], 4294942656 }
 0x131   : > { %14907 = dma.done.wait (%p16495_p8), [#allocation14], 98368   ;;  %p16496_p9 = pmov %p16491_p1 }
 0x132   : > { %p16497_p10 = pmov %p16491_p1 }
 0x133   : > { %14909 = vsyncadd (%p16496_p9), [#allocation14], 4294868928 }
 0x134   : > { %14911 = dma.done.wait (%p16497_p10), [#allocation17], 704   ;;  %p16498_p11 = pmov %p16491_p1 }
 0x135   : > { %p16499_p12 = pmov %p16491_p1 }
 0x136   : > { %14913 = vsyncadd (%p16498_p11), [#allocation17], 4294966592 }
 0x137   : > { %14915 = dma.done.wait (%p16499_p12), [#allocation20], 960   ;;  %p16500_p13 = pmov %p16491_p1 }
 0x138   : > { %p16501_p0 = pmov %p16491_p1 }
 0x139   : > { %14917 = vsyncadd (%p16500_p13), [#allocation20], 4294966336 }
 0x13a   : > { %14919 = dma.done.wait (%p16501_p0), [#allocation23], 256   ;;  %p16502_p2 = pmov %p16501_p0 }
 0x13b   : > { %p598_p7 = scmp.lt.s32.totalorder %s15023_s28, 1  ;;  %v14946_v0 = vmov 0   ;;  %v13927_v1 = vld [vmem:[#allocation5 + $0x34] ss:$8 sps:$4 sm:$0xff]   ;;  %v13929_v2 = vld [vmem:[#allocation5 + $0x30] ss:$8 sps:$4 sm:$0xff]  }
 0x13c   : > { %14921 = vsyncadd (%p16502_p2), [#allocation23], 4294967040  ;;  %728 = vmatprep.mubr.bf16.mxu0 %v14946_v0  ;;  %1031 = vmatprep.mubr.bf16.mxu1 %v14946_v0  ;;  %v13930_v3 = vld [vmem:[#allocation5 + $0x44] ss:$8 sps:$4 sm:$0xff]   ;;  %v13932_v4 = vld [vmem:[#allocation5 + $0x40] ss:$8 sps:$4 sm:$0xff]  }
 0x13d   : > { %s16505_s28 = smov (!%p598_p7, %s15023_s28), 1  ;;  %696 = vmatprep.subr.bf16.mxu0 %v13927_v1  ;;  %v13933_v5 = vld [vmem:[#allocation5 + $0x54] ss:$8 sps:$4 sm:$0xff]   ;;  %v13935_v6 = vld [vmem:[#allocation5 + $0x50] ss:$8 sps:$4 sm:$0xff]   ;;  %vm680_vm0 = vcmask 392192  }
 0x13e   : > { %s13788_s29 = smul.u32 72, %s16505_s28  ;;  %697 = vmatpush1.bf16.msra.mxu0 %v13929_v2  ;;  %v13938_v9 = vld [vmem:[#allocation5 + $0x4] ss:$8 sps:$4 sm:$0xff]   ;;  %v13936_v11 = vld [vmem:[#allocation5] ss:$8 sps:$4 sm:$0xff]   ;;  %vm1174_vm1 = vcmask 1042432  }
 0x13f   : > { %698 = vmatprep.subr.bf16.mxu0 %v13930_v3  ;;  %v13941_v12 = vld [vmem:[#allocation5 + $0x14] ss:$8 sps:$4 sm:$0xff]   ;;  %v13945_v14 = vld [vmem:[#allocation5 + $0x64] ss:$8 sps:$4 sm:$0xff]   ;;  %v13947_v15 = vld [vmem:[#allocation5 + $0x60] ss:$8 sps:$4 sm:$0xff]  }
 0x140   : > { %s15356_s23 = scalar_lea.vmem %s16459_s0, %s13788_s29  ;;  %v13939_v17 = vld [vmem:[#allocation5 + $0x10] ss:$8 sps:$4 sm:$0xff]   ;;  %v13948_v18 = vld [vmem:[#allocation5 + $0x74] ss:$8 sps:$4 sm:$0xff]   ;;  %v13944_v19 = vld [vmem:[#allocation5 + $0x24] ss:$8 sps:$4 sm:$0xff]   ;;  %13494 = vmatprep.subr.bf16.mxu1 %v13945_v14 }
 0x141   : > { %v629_v7 = vld [vmem:[%s15356_s23 + $0x1] sm:$0xff]  ;;  %v630_v8 = vld [vmem:[%s15356_s23 + $0x9] sm:$0xff]  ;;  %v631_v13 = vld [vmem:[%s15356_s23 + $0x11] sm:$0xff]  ;;  %13497 = vmatpush1.bf16.msra.mxu1 %v13947_v15  ;;  %vm1158_vm2 = vcmask 572416   ;;  %vm1445_vm3 = vsmask.f32 7424 }
 0x142   : > { %699 = vmatpush1.bf16.msra.mxu0 %v13932_v4  ;;  %v638_v10 = vpack.c.bf16 %v630_v8, %v629_v7  ;;  %v632_v16 = vld [vmem:[%s15356_s23 + $0x19] sm:$0xff]  ;;  %13495 = vmatprep.subr.bf16.mxu1 %v13948_v18  ;;  %v13951_v22 = vld [vmem:[#allocation5 + $0x84] ss:$8 sps:$4 sm:$0xff]   ;;  %v635_v32 = vld [vmem:[%s15356_s23 + $0x31] sm:$0xff]  ;;  %vm2581_vm4 = vcmask 1046528   ;;  %vm5191_vm5 = vcmask 310272  }
 0x143   : > { %700 = vmatprep.subr.bf16.mxu0 %v13933_v5  ;;  %v13950_v20 = vld [vmem:[#allocation5 + $0x70] ss:$8 sps:$4 sm:$0xff]   ;;  %v639_v21 = vpack.c.bf16 %v632_v16, %v631_v13  ;;  %v13942_v23 = vld [vmem:[#allocation5 + $0x20] ss:$8 sps:$4 sm:$0xff]   ;;  %s13493_s22 = sshll.u32 %s16505_s28, 6 }
 0x144   : > { %v13953_v24 = vld [vmem:[#allocation5 + $0x80] ss:$8 sps:$4 sm:$0xff]   ;;  %v909_v25 = vld [vmem:[%s15356_s23 + $0x32] sm:$0xff]  ;;  %v1068_v13 = vld [vmem:[#allocation7] sm:$0x3]  ;;  %s607_s21 = scalar_lea.vmem %s16472_s13, %s13493_s22 }
 0x145   : > { %v910_v26 = vld [vmem:[%s15356_s23 + $0x3a] sm:$0xff]  ;;  %v634_v28 = vld [vmem:[%s15356_s23 + $0x29] sm:$0xff]  ;;  %13498 = vmatpush1.bf16.msra.mxu1 %v13950_v20  ;;  %v911_v31 = vld [vmem:[%s15356_s23 + $0x42] sm:$0x3f] }
 0x146   : > { %701 = vmatpush1.bf16.msra.mxu0 %v13935_v6  ;;  %v633_v27 = vld [vmem:[%s15356_s23 + $0x21] sm:$0xff]  ;;  %13496 = vmatprep.subr.bf16.mxu1 %v13951_v22  ;;  %v915_v29 = vpack.c.bf16 %v910_v26, %v909_v25  ;;  %v636_v33 = vld [vmem:[%s15356_s23 + $0x39] sm:$0xff]  ;;  %v916_v34 = vpack.c.bf16 %v911_v31, %v911_v31  ;;  %v611_v41 = vld [vmem:[%s15356_s23 + $0x10] sm:$0xff] }
 0x147   : > { %822 = vmatprep.subr.bf16.mxu0 %v13938_v9  ;;  %v640_v30 = vpack.c.bf16 %v634_v28, %v633_v27  ;;  %v641_v35 = vpack.c.bf16 %v636_v33, %v635_v32  ;;  %v637_v36 = vld [vmem:[%s15356_s23 + $0x41] sm:$0x3f]  ;;  %v610_v39 = vld [vmem:[%s15356_s23 + $0x8] sm:$0xff]  ;;  %v612_v42 = vld [vmem:[%s15356_s23 + $0x18] sm:$0xff] }
 0x148   : > { %v642_v37 = vpack.c.bf16 %v637_v36, %v637_v36  ;;  %v609_v38 = vld [vmem:[%s15356_s23] sm:$0xff]  ;;  %v619_v43 = vpack.c.bf16 %v612_v42, %v611_v41  ;;  %v614_v45 = vld [vmem:[%s15356_s23 + $0x28] sm:$0xff]  ;;  %v615_v47 = vld [vmem:[%s15356_s23 + $0x30] sm:$0xff] }
 0x149   : > { %12266 = vmatmul.mubr.msk.bf16.vlgmr.msra.gmra.mrb[0].mxu0 %vm680_vm0, %v638_v10  ;;  %13499 = vmatpush1.bf16.msra.mxu1 %v13953_v24  ;;  %v618_v40 = vpack.c.bf16 %v610_v39, %v609_v38  ;;  %v613_v44 = vld [vmem:[%s15356_s23 + $0x20] sm:$0xff]  ;;  %v616_v48 = vld [vmem:[%s15356_s23 + $0x38] sm:$0xff]  ;;  %v904_v53 = vld [vmem:[%s15356_s23 + $0xa] sm:$0xff]  ;;  %v1070_v10 = vlaneseq }
 0x14a   : > { %738 = vmatprep.mubr.bf16.mxu0 %v14946_v0  ;;  %823 = vmatpush1.bf16.msra.mxu0 %v13936_v11  ;;  %v620_v46 = vpack.c.bf16 %v614_v45, %v613_v44  ;;  %v621_v49 = vpack.c.bf16 %v616_v48, %v615_v47  ;;  %v617_v50 = vld [vmem:[%s15356_s23 + $0x40] sm:$0x3f]  ;;  %v905_v55 = vld [vmem:[%s15356_s23 + $0x12] sm:$0xff]  ;;  %v908_v59 = vld [vmem:[%s15356_s23 + $0x2a] sm:$0xff] }
 0x14b   : > { %824 = vmatprep.subr.bf16.mxu0 %v13941_v12  ;;  %v622_v51 = vpack.c.bf16 %v617_v50, %v617_v50  ;;  %v903_v52 = vld [vmem:[%s15356_s23 + $0x2] sm:$0xff]  ;;  %v906_v56 = vld [vmem:[%s15356_s23 + $0x1a] sm:$0xff]  ;;  %v15415_v11 = vshrl.u32 %v1070_v10, 7 }
 0x14c   : > { %12291 = vmatmul.mubr.msk.bf16.vlgmr.msra.gmra.mrb[0].mxu1 %vm680_vm0, %v915_v29  ;;  %v912_v54 = vpack.c.bf16 %v904_v53, %v903_v52  ;;  %v913_v57 = vpack.c.bf16 %v906_v56, %v905_v55  ;;  %v907_v58 = vld [vmem:[%s15356_s23 + $0x22] sm:$0xff] }
 0x14d   : > { %1041 = vmatprep.mubr.bf16.mxu1 %v14946_v0  ;;  %v914_v60 = vpack.c.bf16 %v908_v59, %v907_v58  ;;  %v15418_v12 = vsub.s32 0, %v15415_v11 }
 0x14e   : > { %825 = vmatpush1.bf16.msra.mxu0 %v13939_v17 }
 0x14f   : > { %826 = vmatprep.subr.bf16.mxu0 %v13944_v19 }
 0x151   : > { %12267 = vmatmul.mubr.msk.bf16.gmra.mrb[4].mxu0 %vm680_vm0, %v639_v21 }
 0x152   : > { %748 = vmatprep.mubr.bf16.mxu0 %v14946_v0  ;;  %827 = vmatpush1.bf16.msra.mxu0 %v13942_v23 }
 0x153   : > { %969 = vmatprep.subr.bf16.mxu0 %v13945_v14  ;;  %v15421_v14 = vsub.s32 1, %v15415_v11 }
 0x154   : > { %12292 = vmatmul.mubr.msk.bf16.gmra.mrb[4].mxu1 %vm680_vm0, %v916_v34 }
 0x155   : > { %1213 = vmatprep.mubr.bf16.mxu1 %v14946_v0  ;;  %v15427_v17 = vrot.slane %v1068_v13, %v15421_v14 }
 0x159   : > { %12268 = vmatmul.mubr.msk.bf16.gmra.mrb[8].mxu0 %vm680_vm0, %v640_v30 }
 0x15a   : > { %758 = vmatprep.mubr.bf16.mxu0 %v14946_v0 }
 0x161   : > { %12269 = vmatmul.mubr.msk.bf16.gmra.mrb[12].mxu0 %vm680_vm0, %v641_v35 }
 0x162   : > { %768 = vmatprep.mubr.bf16.mxu0 %v14946_v0 }
 0x169   : > { %12270 = vmatmul.mubr.msk.bf16.gmra.mrb[16].mxu0 %vm680_vm0, %v642_v37 }
 0x16a   : > { %854 = vmatprep.mubr.bf16.mxu0 %v14946_v0 }
 0x171   : > { %12277 = vmatmul.mubr.msk.bf16.vlgmr.msra.gmra.mrb[0].mxu0 %vm680_vm0, %v618_v40 }
 0x172   : > { %864 = vmatprep.mubr.bf16.mxu0 %v14946_v0  ;;  %970 = vmatpush1.bf16.msra.mxu0 %v13947_v15  ;;  %v15424_v15 = vrot.slane %v1068_v13, %v15418_v12 }
 0x173   : > { %971 = vmatprep.subr.bf16.mxu0 %v13948_v18 }
 0x176   : > { %972 = vmatpush1.bf16.msra.mxu0 %v13950_v20 }
 0x177   : > { %973 = vmatprep.subr.bf16.mxu0 %v13951_v22 }
 0x179   : > { %12278 = vmatmul.mubr.msk.bf16.gmra.mrb[4].mxu0 %vm680_vm0, %v619_v43 }
 0x17a   : > { %874 = vmatprep.mubr.bf16.mxu0 %v14946_v0  ;;  %974 = vmatpush1.bf16.msra.mxu0 %v13953_v24 }
 0x181   : > { %12279 = vmatmul.mubr.msk.bf16.gmra.mrb[8].mxu0 %vm680_vm0, %v620_v46 }
 0x182   : > { %884 = vmatprep.mubr.bf16.mxu0 %v14946_v0 }
 0x189   : > { %12280 = vmatmul.mubr.msk.bf16.gmra.mrb[12].mxu0 %vm680_vm0, %v621_v49 }
 0x18a   : > { %894 = vmatprep.mubr.bf16.mxu0 %v14946_v0 }
 0x191   : > { %12281 = vmatmul.mubr.msk.bf16.gmra.mrb[20].mxu0 %vm680_vm0, %v622_v51 }
 0x192   : > { %1001 = vmatprep.mubr.bf16.mxu0 %v14946_v0 }
 0x199   : > { %12288 = vmatmul.mubr.msk.bf16.vlgmr.msra.gmra.mrb[0].mxu0 %vm680_vm0, %v912_v54 }
 0x19a   : > { %1011 = vmatprep.mubr.bf16.mxu0 %v14946_v0 }
 0x1a1   : > { %12289 = vmatmul.mubr.msk.bf16.gmra.mrb[4].mxu0 %vm680_vm0, %v913_v57 }
 0x1a2   : > { %1021 = vmatprep.mubr.bf16.mxu0 %v14946_v0 }
 0x1a9   : > { %12290 = vmatmul.mubr.msk.bf16.gmra.mrb[8].mxu0 %vm680_vm0, %v914_v60 }
 0x1aa   : > { %3315 = vmatprep.mubr.bf16.mxu0 %v14946_v0 }
 0x21f   : > { %v1033_v61 = vpop.f32.mrb[0].mxu1 }
 0x220   : > { %v1035_v62 = vpop.f32.mrb[1].mxu1 }
 0x221   : > { %v1037_v63 = vpop.f32.mrb[2].mxu1 }
 0x222   : > { %v1039_v1 = vpop.f32.mrb[3].mxu1 }
 0x227   : > { %v1043_v2 = vpop.f32.mrb[4].mxu1 }
 0x228   : > { %v1045_v3 = vpop.f32.mrb[5].mxu1 }
 0x229   : > { %v1047_v4 = vpop.f32.mrb[6].mxu1 }
 0x22a   : > { %v1048_v5 = vpop.f32.mrb[7].mxu1 }
 0x23c   : > { %v770_v6 = vpop.f32.mrb[16].mxu0 }
 0x23d   : > { %v772_v7 = vpop.f32.mrb[17].mxu0 }
 0x23e   : > { %v774_v8 = vpop.f32.mrb[18].mxu0 }
 0x23f   : > { %v775_v9 = vpop.f32.mrb[19].mxu0 }
 0x25c   : > { %v886_v16 = vpop.f32.mrb[12].mxu0 }
 0x25d   : > { %v13500_v18 = vadd.f32 %v1033_v61, %v886_v16  ;;  %v888_v19 = vpop.f32.mrb[13].mxu0 }
 0x25e   : > { %v13501_v20 = vadd.f32 %v1035_v62, %v888_v19  ;;  %v890_v21 = vpop.f32.mrb[14].mxu0 }
 0x25f   : > { %v1092_v22 = vadd.f32 %v13500_v18, %v15424_v15  ;;  %v13502_v23 = vadd.f32 %v1037_v63, %v890_v21  ;;  %v892_v24 = vpop.f32.mrb[15].mxu0 }
 0x260   : > { %v1093_v25 = vadd.f32 %v13501_v20, %v15427_v17  ;;  %v13503_v26 = vadd.f32 %v1039_v1, %v892_v24 }
 0x261   : > { %v1094_v27 = vadd.f32 %v13502_v23, %v15424_v15  ;;  %v1110_v29 = vmax.f32 %v1092_v22, 0.0 }
 0x262   : > { %v1095_v28 = vadd.f32 %v13503_v26, %v15427_v17  ;;  %v1111_v31 = vmax.f32 %v1093_v25, 0.0 }
 0x263   : > { %v1112_v30 = vmax.f32 %v1094_v27, 0.0 }
 0x264   : > { %v1113_v32 = vmax.f32 %v1095_v28, 0.0  ;;  %v896_v33 = vpop.f32.mrb[20].mxu0 }
 0x265   : > { %v15433_v34 = vpack.c.bf16 %v1112_v30, %v1110_v29  ;;  %v897_v35 = vadd.f32 %v896_v33, %v770_v6  ;;  %v898_v36 = vpop.f32.mrb[21].mxu0  ;;  %v13961_v33 = vld [vmem:[#allocation9 + $0x204] ss:$16 sps:$4 sm:$0xff]  }
 0x266   : > { %v899_v37 = vadd.f32 %v898_v36, %v772_v7  ;;  %v900_v38 = vpop.f32.mrb[22].mxu0  ;;  %v1132_v39 = vpack.c.bf16 %v1113_v32, %v1111_v31  ;;  %v13964_v36 = vld [vmem:[#allocation9 + $0x224] ss:$16 sps:$4 sm:$0xff]  }
 0x267   : > { %v1066_v40 = vadd.f32 %v1043_v2, %v897_v35  ;;  %v901_v41 = vpop.f32.mrb[23].mxu0  ;;  %v13959_v35 = vld [vmem:[#allocation9 + $0x200] ss:$16 sps:$4 sm:$0xff]   ;;  %v13955_v38 = vld [vmem:[#allocation18 + $0x8] sm:$0xff]  }
 0x268   : > { %v1067_v42 = vadd.f32 %v1045_v3, %v899_v37  ;;  %v13962_v37 = vld [vmem:[#allocation9 + $0x220] ss:$16 sps:$4 sm:$0xff]  }
 0x269   : > { %v1096_v23 = vadd.f32 %v15424_v15, %v1066_v40  ;;  %v13970_v40 = vld [vmem:[#allocation9 + $0x264] ss:$16 sps:$4 sm:$0xff]   ;;  %v13968_v41 = vld [vmem:[#allocation9 + $0x260] ss:$16 sps:$4 sm:$0xff]  }
 0x26a   : > { %v1097_v24 = vadd.f32 %v15427_v17, %v1067_v42  ;;  %v13973_v42 = vld [vmem:[#allocation9 + $0x284] ss:$16 sps:$4 sm:$0xff]  }
 0x26b   : > { %v1114_v29 = vmax.f32 %v1096_v23, 0.0 }
 0x26c   : > { %v1003_v43 = vpop.f32.mrb[0].mxu0  ;;  %v1115_v30 = vmax.f32 %v1097_v24, 0.0 }
 0x26d   : > { %v1080_v44 = vadd.f32 %v15424_v15, %v1003_v43  ;;  %v1005_v45 = vpop.f32.mrb[1].mxu0  ;;  %v1133_v31 = vpack.c.bf16 %v1114_v29, %v1114_v29  ;;  %v13956_v43 = vld [vmem:[#allocation18 + $0x10] sm:$0xff]  }
 0x26e   : > { %v1081_v46 = vadd.f32 %v15427_v17, %v1005_v45  ;;  %v1007_v47 = vpop.f32.mrb[2].mxu0  ;;  %v1134_v32 = vpack.c.bf16 %v1115_v30, %v1115_v30  ;;  %v13976_v45 = vld [vmem:[#allocation9 + $0x2a4] ss:$16 sps:$4 sm:$0xff]  }
 0x26f   : > { %v1082_v48 = vadd.f32 %v15424_v15, %v1007_v47  ;;  %v1009_v49 = vpop.f32.mrb[3].mxu0  ;;  %v1098_v51 = vmax.f32 %v1080_v44, 0.0  ;;  %v13971_v44 = vld [vmem:[#allocation9 + $0x280] ss:$16 sps:$4 sm:$0xff]   ;;  %v13979_v47 = vld [vmem:[#allocation9 + $0x2c4] ss:$16 sps:$4 sm:$0xff]  }
 0x270   : > { %v1083_v50 = vadd.f32 %v15427_v17, %v1009_v49  ;;  %v1099_v53 = vmax.f32 %v1081_v46, 0.0  ;;  %v13974_v46 = vld [vmem:[#allocation9 + $0x2a0] ss:$16 sps:$4 sm:$0xff]  }
 0x271   : > { %v1100_v52 = vmax.f32 %v1082_v48, 0.0  ;;  %v13957_v48 = vld [vmem:[#allocation18 + $0x18] sm:$0xff]   ;;  %v13977_v49 = vld [vmem:[#allocation9 + $0x2c0] ss:$16 sps:$4 sm:$0xff]  }
 0x272   : > { %v1101_v54 = vmax.f32 %v1083_v50, 0.0  ;;  %v13982_v50 = vld [vmem:[#allocation9 + $0x2e4] ss:$16 sps:$4 sm:$0xff]  }
 0x273   : > { %v1125_v55 = vpack.c.bf16 %v1100_v52, %v1098_v51  ;;  %v13980_v51 = vld [vmem:[#allocation9 + $0x2e0] ss:$16 sps:$4 sm:$0xff]   ;;  %v13985_v52 = vld [vmem:[#allocation9 + $0x304] ss:$16 sps:$4 sm:$0xff]  }
 0x274   : > { %v1126_v56 = vpack.c.bf16 %v1101_v54, %v1099_v53  ;;  %v1013_v57 = vpop.f32.mrb[4].mxu0  ;;  %v13958_v53 = vld [vmem:[#allocation18 + $0x20] ss:$0 sps:$4 sm:$0xff]  }
 0x275   : > { %v1084_v58 = vadd.f32 %v15424_v15, %v1013_v57  ;;  %v1015_v59 = vpop.f32.mrb[5].mxu0  ;;  %v13983_v54 = vld [vmem:[#allocation9 + $0x300] ss:$16 sps:$4 sm:$0xff]   ;;  %v13991_v57 = vld [vmem:[#allocation9 + $0x344] ss:$16 sps:$4 sm:$0xff]  }
 0x276   : > { %v1085_v60 = vadd.f32 %v15427_v17, %v1015_v59  ;;  %v1017_v61 = vpop.f32.mrb[6].mxu0  ;;  %1181 = vmatprep.subr.bf16.mxu1 %v1126_v56  ;;  %v13986_v56 = vld [vmem:[#allocation9 + $0x320] ss:$16 sps:$4 sm:$0xff]   ;;  %v13994_v59 = vld [vmem:[#allocation9 + $0x364] ss:$16 sps:$4 sm:$0xff]  }
 0x277   : > { %v1086_v62 = vadd.f32 %v15424_v15, %v1017_v61  ;;  %v1019_v63 = vpop.f32.mrb[7].mxu0  ;;  %1182 = vmatpush1.bf16.msra.mxu1 %v1125_v55  ;;  %v1102_v2 = vmax.f32 %v1084_v58, 0.0  ;;  %v13988_v55 = vld [vmem:[#allocation9 + $0x324] ss:$16 sps:$4 sm:$0xff]   ;;  %v13989_v58 = vld [vmem:[#allocation9 + $0x340] ss:$16 sps:$4 sm:$0xff]  }
 0x278   : > { %v1087_v1 = vadd.f32 %v15427_v17, %v1019_v63  ;;  %v1103_v4 = vmax.f32 %v1085_v60, 0.0  ;;  %v13992_v60 = vld [vmem:[#allocation9 + $0x360] ss:$16 sps:$4 sm:$0xff]   ;;  %v13997_v61 = vld [vmem:[#allocation9 + $0x384] ss:$16 sps:$4 sm:$0xff]  }
 0x279   : > { %v1104_v3 = vmax.f32 %v1086_v62, 0.0  ;;  %v13995_v62 = vld [vmem:[#allocation9 + $0x380] ss:$16 sps:$4 sm:$0xff]   ;;  %v14000_v63 = vld [vmem:[#allocation9 + $0x3a4] ss:$16 sps:$4 sm:$0xff]  }
 0x27a   : > { %v1105_v5 = vmax.f32 %v1087_v1, 0.0  ;;  %v13998_v1 = vld [vmem:[#allocation9 + $0x3a0] ss:$16 sps:$4 sm:$0xff]  }
 0x27b   : > { %v1127_v6 = vpack.c.bf16 %v1104_v3, %v1102_v2  ;;  %v14003_v2 = vld [vmem:[#allocation9 + $0x3c4] ss:$16 sps:$4 sm:$0xff]   ;;  %v14001_v3 = vld [vmem:[#allocation9 + $0x3c0] ss:$16 sps:$4 sm:$0xff]  }
 0x27c   : > { %v1128_v7 = vpack.c.bf16 %v1105_v5, %v1103_v4  ;;  %v1023_v8 = vpop.f32.mrb[8].mxu0  ;;  %v14006_v4 = vld [vmem:[#allocation9 + $0x3e4] ss:$16 sps:$4 sm:$0xff]   ;;  %v14004_v5 = vld [vmem:[#allocation9 + $0x3e0] ss:$16 sps:$4 sm:$0xff]  }
 0x27d   : > { %v1088_v9 = vadd.f32 %v15424_v15, %v1023_v8  ;;  %v1025_v10 = vpop.f32.mrb[9].mxu0 }
 0x27e   : > { %v1089_v13 = vadd.f32 %v15427_v17, %v1025_v10  ;;  %v1027_v16 = vpop.f32.mrb[10].mxu0  ;;  %1183 = vmatprep.subr.bf16.mxu1 %v1128_v7 }
 0x27f   : > { %v1090_v18 = vadd.f32 %v15424_v15, %v1027_v16  ;;  %v1029_v19 = vpop.f32.mrb[11].mxu0  ;;  %1184 = vmatpush1.bf16.msra.mxu1 %v1127_v6  ;;  %v1106_v21 = vmax.f32 %v1088_v9, 0.0  ;;  %v1176_v15 = vsel %vm1174_vm1, %v1133_v31, 0  ;;  %v14009_v6 = vld [vmem:[#allocation9 + $0x20c] ss:$16 sps:$4 sm:$0xff]  }
 0x280   : > { %v1091_v20 = vadd.f32 %v15427_v17, %v1029_v19  ;;  %v1107_v25 = vmax.f32 %v1089_v13, 0.0  ;;  %v13954_v17 = vld [vmem:[#allocation18] sm:$0xff]  }
 0x281   : > { %v1108_v22 = vmax.f32 %v1090_v18, 0.0 }
 0x282   : > { %v1109_v26 = vmax.f32 %v1091_v20, 0.0 }
 0x283   : > { %v1129_v27 = vpack.c.bf16 %v1108_v22, %v1106_v21 }
 0x284   : > { %v1130_v28 = vpack.c.bf16 %v1109_v26, %v1107_v25 }
 0x286   : > { %1185 = vmatprep.subr.bf16.mxu1 %v1130_v28 }
 0x287   : > { %1186 = vmatpush1.bf16.msra.mxu1 %v1129_v27 }
 0x288   : > { %1187 = vmatprep.subr.bf16.mxu1 %v1132_v39  ;;  %v13965_v39 = vld [vmem:[#allocation9 + $0x240] ss:$16 sps:$4 sm:$0xff]  }
 0x28b   : > { %1188 = vmatpush1.bf16.msra.mxu1 %v15433_v34  ;;  %v13967_v34 = vld [vmem:[#allocation9 + $0x244] ss:$16 sps:$4 sm:$0xff]  }
 0x28c   : > { %12298 = vmatprep.subr.msk.bf16.mxu1 %vm1174_vm1, %v1134_v32 }
 0x28f   : > { %1190 = vmatpush1.bf16.msra.mxu1 %v1176_v15 }
 0x290   : > { %1854 = vmatprep.subr.bf16.mxu1 %v13961_v33 }
 0x292   : > { %12299 = vmatmul.mubr.msk.bf16.vlgmr.msra.gmra.mrb[8].mxu1 %vm1158_vm2, %v13954_v17 }
 0x293   : > { %1223 = vmatprep.mubr.bf16.mxu1 %v14946_v0  ;;  %1855 = vmatpush1.bf16.msra.mxu1 %v13959_v35 }
 0x294   : > { %1856 = vmatprep.subr.bf16.mxu1 %v13964_v36 }
 0x297   : > { %1857 = vmatpush1.bf16.msra.mxu1 %v13962_v37 }
 0x298   : > { %1858 = vmatprep.subr.bf16.mxu1 %v13967_v34 }
 0x29a   : > { %12300 = vmatmul.mubr.msk.bf16.gmra.mrb[12].mxu1 %vm1158_vm2, %v13955_v38 }
 0x29b   : > { %1233 = vmatprep.mubr.bf16.mxu1 %v14946_v0  ;;  %1859 = vmatpush1.bf16.msra.mxu1 %v13965_v39 }
 0x29c   : > { %1860 = vmatprep.subr.bf16.mxu1 %v13970_v40  ;;  %v14007_v40 = vld [vmem:[#allocation9 + $0x208] ss:$16 sps:$4 sm:$0xff]  }
 0x29f   : > { %1861 = vmatpush1.bf16.msra.mxu1 %v13968_v41 }
 0x2a0   : > { %1862 = vmatprep.subr.bf16.mxu1 %v13973_v42 }
 0x2a2   : > { %12301 = vmatmul.mubr.msk.bf16.gmra.mrb[16].mxu1 %vm1158_vm2, %v13956_v43  ;;  %v14012_v43 = vld [vmem:[#allocation9 + $0x22c] ss:$16 sps:$4 sm:$0xff]  }
 0x2a3   : > { %1243 = vmatprep.mubr.bf16.mxu1 %v14946_v0  ;;  %1863 = vmatpush1.bf16.msra.mxu1 %v13971_v44 }
 0x2a4   : > { %1864 = vmatprep.subr.bf16.mxu1 %v13976_v45 }
 0x2a7   : > { %1865 = vmatpush1.bf16.msra.mxu1 %v13974_v46 }
 0x2a8   : > { %1866 = vmatprep.subr.bf16.mxu1 %v13979_v47 }
 0x2aa   : > { %12302 = vmatmul.mubr.msk.bf16.gmra.mrb[20].mxu1 %vm1158_vm2, %v13957_v48  ;;  %v14010_v48 = vld [vmem:[#allocation9 + $0x228] ss:$16 sps:$4 sm:$0xff]  }
 0x2ab   : > { %1253 = vmatprep.mubr.bf16.mxu1 %v14946_v0  ;;  %1867 = vmatpush1.bf16.msra.mxu1 %v13977_v49 }
 0x2ac   : > { %1868 = vmatprep.subr.bf16.mxu1 %v13982_v50 }
 0x2af   : > { %1869 = vmatpush1.bf16.msra.mxu1 %v13980_v51 }
 0x2b0   : > { %1870 = vmatprep.subr.bf16.mxu1 %v13985_v52  ;;  %v14015_v52 = vld [vmem:[#allocation9 + $0x24c] ss:$16 sps:$4 sm:$0xff]  }
 0x2b2   : > { %12303 = vmatmul.mubr.msk.bf16.gmra.mrb[24].mxu1 %vm1158_vm2, %v13958_v53 }
 0x2b3   : > { %1871 = vmatpush1.bf16.msra.mxu1 %v13983_v54 }
 0x2b4   : > { %1872 = vmatprep.subr.bf16.mxu1 %v13988_v55 }
 0x2b7   : > { %1873 = vmatpush1.bf16.msra.mxu1 %v13986_v56 }
 0x2b8   : > { %1874 = vmatprep.subr.bf16.mxu1 %v13991_v57 }
 0x2bb   : > { %1875 = vmatpush1.bf16.msra.mxu1 %v13989_v58 }
 0x2bc   : > { %1876 = vmatprep.subr.bf16.mxu1 %v13994_v59  ;;  %v14013_v59 = vld [vmem:[#allocation9 + $0x248] ss:$16 sps:$4 sm:$0xff]  }
 0x2bf   : > { %1877 = vmatpush1.bf16.msra.mxu1 %v13992_v60 }
 0x2c0   : > { %1878 = vmatprep.subr.bf16.mxu1 %v13997_v61 }
 0x2c3   : > { %1879 = vmatpush1.bf16.msra.mxu1 %v13995_v62 }
 0x2c4   : > { %1880 = vmatprep.subr.bf16.mxu1 %v14000_v63 }
 0x2c7   : > { %1881 = vmatpush1.bf16.msra.mxu1 %v13998_v1  ;;  %v14018_v1 = vld [vmem:[#allocation9 + $0x26c] ss:$16 sps:$4 sm:$0xff]  }
 0x2c8   : > { %1882 = vmatprep.subr.bf16.mxu1 %v14003_v2 }
 0x2cb   : > { %1883 = vmatpush1.bf16.msra.mxu1 %v14001_v3 }
 0x2cc   : > { %1884 = vmatprep.subr.bf16.mxu1 %v14006_v4 }
 0x2cf   : > { %1885 = vmatpush1.bf16.msra.mxu1 %v14004_v5 }
 0x2d0   : > { %1935 = vmatprep.subr.bf16.mxu1 %v14009_v6 }
 0x365   : > { %v1215_v7 = vpop.f32.mrb[8].mxu1 }
 0x366   : > { %1262 = vst [vmem:[#allocation2] sm:$0xff] %v1215_v7  ;;  %v1217_v8 = vpop.f32.mrb[9].mxu1 }
 0x367   : > { %1263 = vst [vmem:[#allocation2 + $0x8] sm:$0xff] %v1217_v8  ;;  %v15461_v9 = vpop.f32.mrb[10].mxu1 }
 0x368   : > { %v15463_v10 = vpop.f32.mrb[11].mxu1  ;;  %v15466_v13 = vpack.c.bf16 %v15461_v9, %v1215_v7  ;;  %v14016_v7 = vld [vmem:[#allocation9 + $0x268] ss:$16 sps:$4 sm:$0xff]  }
 0x369   : > { %v15469_v16 = vpack.c.bf16 %v15463_v10, %v1217_v8 }
 0x36d   : > { %v1225_v18 = vpop.f32.mrb[12].mxu1  ;;  %v1372_v19 = vld [vmem:[#allocation2] sm:$0xfe] }
 0x36e   : > { %v1227_v20 = vpop.f32.mrb[13].mxu1  ;;  %v1373_v21 = vld [vmem:[#allocation2 + $0x8] sm:$0xfe]  ;;  %v1376_v22 = vpack.c.bf16 %v15461_v9, %v1372_v19 }
 0x36f   : > { %v1229_v23 = vpop.f32.mrb[14].mxu1  ;;  %v1377_v24 = vpack.c.bf16 %v15463_v10, %v1373_v21  ;;  %v14021_v21 = vld [vmem:[#allocation9 + $0x28c] ss:$16 sps:$4 sm:$0xff]  }
 0x370   : > { %v1231_v25 = vpop.f32.mrb[15].mxu1  ;;  %v15473_v26 = vpack.c.bf16 %v1229_v23, %v1225_v18  ;;  %v1449_v27 = vshll.u32 %v1376_v22, 16  ;;  %v1447_v30 = vshrl.u32 %v1376_v22, 16 }
 0x371   : > { %v15475_v28 = vpack.c.bf16 %v1231_v25, %v1227_v20  ;;  %v1461_v29 = vshll.u32 %v1377_v24, 16  ;;  %v1459_v33 = vshrl.u32 %v1377_v24, 16 }
 0x372   : > { %v1451_v31 = vrot.slane %v1449_v27, 1  ;;  %v1454_v32 = vshll.u32 %v15473_v26, 16  ;;  %v1470_v53 = vshrl.u32 %v15473_v26, 16  ;;  %v14019_v27 = vld [vmem:[#allocation9 + $0x288] ss:$16 sps:$4 sm:$0xff]  }
 0x373   : > { %v1463_v15 = vrot.slane %v1461_v29, 1  ;;  %v1466_v17 = vshll.u32 %v15475_v28, 16  ;;  %v1478_v50 = vshrl.u32 %v15475_v28, 16 }
 0x374   : > { %v1452_v35 = vor.u32 %v1451_v31, %v1447_v30  ;;  %v1456_v36 = vrot.slane %v1454_v32, 1  ;;  %v14024_v31 = vld [vmem:[#allocation9 + $0x2ac] ss:$16 sps:$4 sm:$0xff]  }
 0x375   : > { %v1235_v37 = vpop.f32.mrb[16].mxu1  ;;  %v1464_v34 = vor.u32 %v1463_v15, %v1459_v33  ;;  %v1468_v38 = vrot.slane %v1466_v17, 1  ;;  %v14022_v15 = vld [vmem:[#allocation9 + $0x2a8] ss:$16 sps:$4 sm:$0xff]   ;;  %v14027_v17 = vld [vmem:[#allocation9 + $0x2cc] ss:$16 sps:$4 sm:$0xff]  }
 0x376   : > { %v1237_v39 = vpop.f32.mrb[17].mxu1  ;;  %v15484_v45 = vsel %vm1445_vm3, %v1452_v35, %v1456_v36  ;;  %v1472_v60 = vor.u32 %v1470_v53, %v1456_v36 }
 0x377   : > { %v1239_v41 = vpop.f32.mrb[18].mxu1  ;;  %v15480_v42 = vsel %vm1445_vm3, %v1464_v34, %v1468_v38  ;;  %v1480_v56 = vor.u32 %v1478_v50, %v1468_v38  ;;  %v14025_v38 = vld [vmem:[#allocation9 + $0x2c8] ss:$16 sps:$4 sm:$0xff]  }
 0x378   : > { %v1241_v44 = vpop.f32.mrb[19].mxu1  ;;  %1886 = vmatprep.mubr.bf16.mxu1 %v15480_v42  ;;  %v15486_v46 = vpack.c.bf16 %v1239_v41, %v1235_v37  ;;  %v14030_v41 = vld [vmem:[#allocation9 + $0x2ec] ss:$16 sps:$4 sm:$0xff]  }
 0x379   : > { %1887 = vmatmul.mubr.bf16.vlgmr.msra.gmra.mrb[28].mxu1 %v15484_v45  ;;  %v15489_v47 = vpack.c.bf16 %v1241_v44, %v1237_v39 }
 0x37a   : > { %1936 = vmatpush1.bf16.msra.mxu1 %v14007_v40  ;;  %v1474_v49 = vshll.u32 %v15486_v46, 16  ;;  %v1486_v61 = vshrl.u32 %v15486_v46, 16 }
 0x37b   : > { %1937 = vmatprep.subr.bf16.mxu1 %v14012_v43  ;;  %v1482_v51 = vshll.u32 %v15489_v47, 16  ;;  %v1494_v2 = vshrl.u32 %v15489_v47, 16 }
 0x37c   : > { %v1476_v54 = vrot.slane %v1474_v49, 1 }
 0x37d   : > { %v1245_v55 = vpop.f32.mrb[20].mxu1  ;;  %v1484_v57 = vrot.slane %v1482_v51, 1 }
 0x37e   : > { %v1247_v58 = vpop.f32.mrb[21].mxu1  ;;  %1938 = vmatpush1.bf16.msra.mxu1 %v14010_v48  ;;  %v15502_v4 = vsel %vm1445_vm3, %v1472_v60, %v1476_v54  ;;  %v1488_v8 = vor.u32 %v1486_v61, %v1476_v54  ;;  %v14033_v54 = vld [vmem:[#allocation9 + $0x30c] ss:$16 sps:$4 sm:$0xff]   ;;  %v14034_v61 = vld [vmem:[#allocation9 + $0x328] ss:$16 sps:$4 sm:$0xff]  }
 0x37f   : > { %v1249_v62 = vpop.f32.mrb[22].mxu1  ;;  %v15497_v63 = vsel %vm1445_vm3, %v1480_v56, %v1484_v57  ;;  %1939 = vmatprep.subr.bf16.mxu1 %v14015_v52  ;;  %v1496_v19 = vor.u32 %v1494_v2, %v1484_v57  ;;  %v14028_v52 = vld [vmem:[#allocation9 + $0x2e8] ss:$16 sps:$4 sm:$0xff]   ;;  %v14036_v60 = vld [vmem:[#allocation9 + $0x32c] ss:$16 sps:$4 sm:$0xff]  }
 0x380   : > { %v1251_v3 = vpop.f32.mrb[23].mxu1  ;;  %1896 = vmatprep.mubr.bf16.mxu1 %v15497_v63  ;;  %v15504_v5 = vpack.c.bf16 %v1249_v62, %v1245_v55  ;;  %v14037_v2 = vld [vmem:[#allocation9 + $0x348] ss:$16 sps:$4 sm:$0xff]  }
 0x381   : > { %1897 = vmatmul.mubr.bf16.gmra.mrb[32].mxu1 %v15502_v4  ;;  %v15507_v6 = vpack.c.bf16 %v1251_v3, %v1247_v58  ;;  %v14031_v58 = vld [vmem:[#allocation9 + $0x308] ss:$16 sps:$4 sm:$0xff]   ;;  %v14042_v3 = vld [vmem:[#allocation9 + $0x36c] ss:$16 sps:$4 sm:$0xff]  }
 0x382   : > { %1940 = vmatpush1.bf16.msra.mxu1 %v14013_v59  ;;  %v1490_v18 = vshll.u32 %v15504_v5, 16  ;;  %v1502_v35 = vshrl.u32 %v15504_v5, 16 }
 0x383   : > { %1941 = vmatprep.subr.bf16.mxu1 %v14018_v1  ;;  %v1498_v20 = vshll.u32 %v15507_v6, 16  ;;  %v1510_v36 = vshrl.u32 %v15507_v6, 16  ;;  %v14039_v1 = vld [vmem:[#allocation9 + $0x34c] ss:$16 sps:$4 sm:$0xff]  }
 0x384   : > { %v1492_v22 = vrot.slane %v1490_v18, 1  ;;  %v14043_v18 = vld [vmem:[#allocation9 + $0x388] ss:$16 sps:$4 sm:$0xff]  }
 0x385   : > { %v1255_v23 = vpop.f32.mrb[24].mxu1  ;;  %v1500_v24 = vrot.slane %v1498_v20, 1  ;;  %v14046_v20 = vld [vmem:[#allocation9 + $0x3a8] ss:$16 sps:$4 sm:$0xff]  }
 0x386   : > { %1278 = vst [vmem:[#allocation2 + $0x80] sm:$0xff] %v1255_v23  ;;  %v1257_v25 = vpop.f32.mrb[25].mxu1  ;;  %1942 = vmatpush1.bf16.msra.mxu1 %v14016_v7  ;;  %v15512_v29 = vsel %vm1445_vm3, %v1488_v8, %v1492_v22  ;;  %v1504_v43 = vor.u32 %v1502_v35, %v1492_v22  ;;  %v14040_v7 = vld [vmem:[#allocation9 + $0x368] ss:$16 sps:$4 sm:$0xff]   ;;  %v14045_v8 = vld [vmem:[#allocation9 + $0x38c] ss:$16 sps:$4 sm:$0xff]  }
 0x387   : > { %1279 = vst [vmem:[#allocation2 + $0x88] sm:$0xff] %v1257_v25  ;;  %v15515_v30 = vsel %vm1445_vm3, %v1496_v19, %v1500_v24  ;;  %1943 = vmatprep.subr.bf16.mxu1 %v14021_v21  ;;  %v1259_v32 = vpop.f32.mrb[26].mxu1  ;;  %v1512_v48 = vor.u32 %v1510_v36, %v1500_v24  ;;  %v14048_v19 = vld [vmem:[#allocation9 + $0x3ac] ss:$16 sps:$4 sm:$0xff]   ;;  %v14049_v22 = vld [vmem:[#allocation9 + $0x3c8] ss:$16 sps:$4 sm:$0xff]  }
 0x388   : > { %1906 = vmatprep.mubr.bf16.mxu1 %v15515_v30  ;;  %v1260_v33 = vpop.f32.mrb[27].mxu1  ;;  %v14051_v21 = vld [vmem:[#allocation9 + $0x3cc] ss:$16 sps:$4 sm:$0xff]   ;;  %v14052_v24 = vld [vmem:[#allocation9 + $0x3e8] ss:$16 sps:$4 sm:$0xff]  }
 0x389   : > { %1907 = vmatmul.mubr.bf16.gmra.mrb[36].mxu1 %v15512_v29  ;;  %v14054_v23 = vld [vmem:[#allocation9 + $0x3ec] ss:$16 sps:$4 sm:$0xff]   ;;  %v14055_v25 = vld [vmem:[#allocation9] ss:$16 sps:$4 sm:$0xff]   ;;  %v14063_v32 = vld [vmem:[#allocation9 + $0x44] ss:$16 sps:$4 sm:$0xff]  }
 0x38a   : > { %1944 = vmatpush1.bf16.msra.mxu1 %v14019_v27  ;;  %v14060_v27 = vld [vmem:[#allocation9 + $0x24] ss:$16 sps:$4 sm:$0xff]   ;;  %v14061_v33 = vld [vmem:[#allocation9 + $0x40] ss:$16 sps:$4 sm:$0xff]  }
 0x38b   : > { %1945 = vmatprep.subr.bf16.mxu1 %v14024_v31  ;;  %v14058_v31 = vld [vmem:[#allocation9 + $0x20] ss:$16 sps:$4 sm:$0xff]   ;;  %v14069_v35 = vld [vmem:[#allocation9 + $0x84] ss:$16 sps:$4 sm:$0xff]  }
 0x38c   : > { %v14070_v36 = vld [vmem:[#allocation9 + $0xa0] ss:$16 sps:$4 sm:$0xff]  }
 0x38d   : > { %v1374_v37 = vld [vmem:[#allocation2 + $0x80] sm:$0x7f] }
 0x38e   : > { %1946 = vmatpush1.bf16.msra.mxu1 %v14022_v15  ;;  %v1375_v34 = vld [vmem:[#allocation2 + $0x88] sm:$0x7f]  ;;  %v1378_v39 = vpack.c.bf16 %v1374_v37, %v1374_v37 }
 0x38f   : > { %v1379_v40 = vpack.c.bf16 %v1375_v34, %v1375_v34  ;;  %1947 = vmatprep.subr.bf16.mxu1 %v14027_v17  ;;  %v14066_v15 = vld [vmem:[#allocation9 + $0x64] ss:$16 sps:$4 sm:$0xff]   ;;  %v14064_v17 = vld [vmem:[#allocation9 + $0x60] ss:$16 sps:$4 sm:$0xff]  }
 0x390   : > { %v1506_v44 = vshll.u32 %v1378_v39, 16  ;;  %v1518_v59 = vshrl.u32 %v1378_v39, 16  ;;  %v14075_v37 = vld [vmem:[#allocation9 + $0xc4] ss:$16 sps:$4 sm:$0xff]   ;;  %v14076_v34 = vld [vmem:[#allocation9 + $0xe0] ss:$16 sps:$4 sm:$0xff]  }
 0x391   : > { %v1514_v49 = vshll.u32 %v1379_v40, 16  ;;  %v1521_v50 = vshrl.u32 %v1379_v40, 16  ;;  %v14084_v39 = vld [vmem:[#allocation9 + $0x124] ss:$16 sps:$4 sm:$0xff]   ;;  %v14082_v40 = vld [vmem:[#allocation9 + $0x120] ss:$16 sps:$4 sm:$0xff]  }
 0x392   : > { %v1508_v51 = vrot.slane %v1506_v44, 1  ;;  %1948 = vmatpush1.bf16.msra.mxu1 %v14025_v38  ;;  %v14081_v38 = vld [vmem:[#allocation9 + $0x104] ss:$16 sps:$4 sm:$0xff]  }
 0x393   : > { %v1516_v53 = vrot.slane %v1514_v49, 1  ;;  %1949 = vmatprep.subr.bf16.mxu1 %v14030_v41  ;;  %v14087_v41 = vld [vmem:[#allocation9 + $0x144] ss:$16 sps:$4 sm:$0xff]  }
 0x394   : > { %v15522_v55 = vsel %vm1445_vm3, %v1504_v43, %v1508_v51  ;;  %v15532_v62 = vor.u32 %v1518_v59, %v1508_v51  ;;  %v14085_v43 = vld [vmem:[#allocation9 + $0x140] ss:$16 sps:$4 sm:$0xff]   ;;  %v14090_v44 = vld [vmem:[#allocation9 + $0x164] ss:$16 sps:$4 sm:$0xff]   ;;  %v14108_v59 = vld [vmem:[#allocation9 + $0x2c] ss:$16 sps:$4 sm:$0xff]  }
 0x395   : > { %v15525_v56 = vsel %vm1445_vm3, %v1512_v48, %v1516_v53  ;;  %v15527_v57 = vor.u32 %v1521_v50, %v1516_v53  ;;  %v14088_v48 = vld [vmem:[#allocation9 + $0x160] ss:$16 sps:$4 sm:$0xff]   ;;  %v14093_v49 = vld [vmem:[#allocation9 + $0x184] ss:$16 sps:$4 sm:$0xff]  }
 0x396   : > { %1916 = vmatprep.mubr.bf16.mxu1 %v15525_v56  ;;  %1950 = vmatpush1.bf16.msra.mxu1 %v14028_v52  ;;  %v14091_v50 = vld [vmem:[#allocation9 + $0x180] ss:$16 sps:$4 sm:$0xff]   ;;  %v14096_v51 = vld [vmem:[#allocation9 + $0x1a4] ss:$16 sps:$4 sm:$0xff]  }
 0x397   : > { %1917 = vmatmul.mubr.bf16.gmra.mrb[40].mxu1 %v15522_v55  ;;  %1951 = vmatprep.subr.bf16.mxu1 %v14033_v54  ;;  %v14094_v52 = vld [vmem:[#allocation9 + $0x1a0] ss:$16 sps:$4 sm:$0xff]   ;;  %v14099_v53 = vld [vmem:[#allocation9 + $0x1c4] ss:$16 sps:$4 sm:$0xff]  }
 0x398   : > { %1926 = vmatprep.mubr.bf16.mxu1 %v15527_v57  ;;  %v14097_v54 = vld [vmem:[#allocation9 + $0x1c0] ss:$16 sps:$4 sm:$0xff]  }
 0x39a   : > { %1952 = vmatpush1.bf16.msra.mxu1 %v14031_v58  ;;  %v14103_v58 = vld [vmem:[#allocation9 + $0x8] ss:$16 sps:$4 sm:$0xff]  }
 0x39b   : > { %1953 = vmatprep.subr.bf16.mxu1 %v14036_v60  ;;  %v14106_v60 = vld [vmem:[#allocation9 + $0x28] ss:$16 sps:$4 sm:$0xff]  }
 0x39e   : > { %1954 = vmatpush1.bf16.msra.mxu1 %v14034_v61  ;;  %v14111_v61 = vld [vmem:[#allocation9 + $0x4c] ss:$16 sps:$4 sm:$0xff]  }
 0x39f   : > { %1927 = vmatmul.mubr.bf16.gmra.mrb[44].mxu1 %v15532_v62  ;;  %1955 = vmatprep.subr.bf16.mxu1 %v14039_v1  ;;  %v14114_v1 = vld [vmem:[#allocation9 + $0x6c] ss:$16 sps:$4 sm:$0xff]  }
 0x3a0   : > { %1967 = vmatprep.mubr.bf16.mxu1 %v15480_v42  ;;  %v14057_v42 = vld [vmem:[#allocation9 + $0x4] ss:$16 sps:$4 sm:$0xff]  }
 0x3a2   : > { %1956 = vmatpush1.bf16.msra.mxu1 %v14037_v2  ;;  %v14112_v2 = vld [vmem:[#allocation9 + $0x68] ss:$16 sps:$4 sm:$0xff]  }
 0x3a3   : > { %1957 = vmatprep.subr.bf16.mxu1 %v14042_v3  ;;  %v14117_v3 = vld [vmem:[#allocation9 + $0x8c] ss:$16 sps:$4 sm:$0xff]  }
 0x3a6   : > { %1958 = vmatpush1.bf16.msra.mxu1 %v14040_v7  ;;  %v14115_v7 = vld [vmem:[#allocation9 + $0x88] ss:$16 sps:$4 sm:$0xff]  }
 0x3a7   : > { %1959 = vmatprep.subr.bf16.mxu1 %v14045_v8  ;;  %v14120_v8 = vld [vmem:[#allocation9 + $0xac] ss:$16 sps:$4 sm:$0xff]  }
 0x3aa   : > { %1960 = vmatpush1.bf16.msra.mxu1 %v14043_v18  ;;  %v14118_v18 = vld [vmem:[#allocation9 + $0xa8] ss:$16 sps:$4 sm:$0xff]  }
 0x3ab   : > { %1961 = vmatprep.subr.bf16.mxu1 %v14048_v19  ;;  %v14123_v19 = vld [vmem:[#allocation9 + $0xcc] ss:$16 sps:$4 sm:$0xff]  }
 0x3ae   : > { %1962 = vmatpush1.bf16.msra.mxu1 %v14046_v20  ;;  %v1297_v20 = vld [vmem:[#allocation2 + $0x88] sm:$0x3f] }
 0x3af   : > { %1963 = vmatprep.subr.bf16.mxu1 %v14051_v21  ;;  %v14121_v21 = vld [vmem:[#allocation9 + $0xc8] ss:$16 sps:$4 sm:$0xff]  }
 0x3b2   : > { %1964 = vmatpush1.bf16.msra.mxu1 %v14049_v22  ;;  %v14126_v22 = vld [vmem:[#allocation9 + $0xec] ss:$16 sps:$4 sm:$0xff]  }
 0x3b3   : > { %1965 = vmatprep.subr.bf16.mxu1 %v14054_v23  ;;  %v15552_v23 = vpack.c.bf16 %v1297_v20, %v1297_v20  ;;  %v14192_v20 = vld [vmem:[#allocation9 + $0x5a4] ss:$16 sps:$4 sm:$0xff]  }
 0x3b6   : > { %1966 = vmatpush1.bf16.msra.mxu1 %v14052_v24  ;;  %v14124_v24 = vld [vmem:[#allocation9 + $0xe8] ss:$16 sps:$4 sm:$0xff]  }
 0x3b7   : > { %2336 = vmatprep.subr.bf16.mxu1 %v14057_v42  ;;  %v14129_v42 = vld [vmem:[#allocation9 + $0x10c] ss:$16 sps:$4 sm:$0xff]  }
 0x3b9   : > { %1968 = vmatmul.mubr.bf16.vlgmr.msra.gmra.mrb[48].mxu1 %v15484_v45  ;;  %v14067_v45 = vld [vmem:[#allocation9 + $0x80] ss:$16 sps:$4 sm:$0xff]  }
 0x3ba   : > { %1977 = vmatprep.mubr.bf16.mxu1 %v15497_v63  ;;  %2337 = vmatpush1.bf16.msra.mxu1 %v14055_v25  ;;  %v14072_v63 = vld [vmem:[#allocation9 + $0xa4] ss:$16 sps:$4 sm:$0xff]   ;;  %v1296_v25 = vld [vmem:[#allocation2 + $0x80] sm:$0x3f] }
 0x3bb   : > { %2338 = vmatprep.subr.bf16.mxu1 %v14060_v27  ;;  %v14127_v27 = vld [vmem:[#allocation9 + $0x108] ss:$16 sps:$4 sm:$0xff]  }
 0x3be   : > { %2339 = vmatpush1.bf16.msra.mxu1 %v14058_v31  ;;  %v15556_v31 = vpack.c.bf16 %v1296_v25, %v1296_v25  ;;  %v14196_v25 = vld [vmem:[#allocation9 + $0x5e0] ss:$16 sps:$4 sm:$0xff]  }
 0x3bf   : > { %2340 = vmatprep.subr.bf16.mxu1 %v14063_v32  ;;  %v14132_v32 = vld [vmem:[#allocation9 + $0x12c] ss:$16 sps:$4 sm:$0xff]  }
 0x3c1   : > { %1978 = vmatmul.mubr.bf16.gmra.mrb[52].mxu1 %v15502_v4  ;;  %v14073_v4 = vld [vmem:[#allocation9 + $0xc0] ss:$16 sps:$4 sm:$0xff]  }
 0x3c2   : > { %1987 = vmatprep.mubr.bf16.mxu1 %v15515_v30  ;;  %2341 = vmatpush1.bf16.msra.mxu1 %v14061_v33  ;;  %v14078_v30 = vld [vmem:[#allocation9 + $0xe4] ss:$16 sps:$4 sm:$0xff]   ;;  %v14130_v33 = vld [vmem:[#allocation9 + $0x128] ss:$16 sps:$4 sm:$0xff]  }
 0x3c3   : > { %2342 = vmatprep.subr.bf16.mxu1 %v14066_v15  ;;  %v14135_v15 = vld [vmem:[#allocation9 + $0x14c] ss:$16 sps:$4 sm:$0xff]  }
 0x3c6   : > { %2343 = vmatpush1.bf16.msra.mxu1 %v14064_v17  ;;  %v14133_v17 = vld [vmem:[#allocation9 + $0x148] ss:$16 sps:$4 sm:$0xff]  }
 0x3c7   : > { %2344 = vmatprep.subr.bf16.mxu1 %v14069_v35  ;;  %v14138_v35 = vld [vmem:[#allocation9 + $0x16c] ss:$16 sps:$4 sm:$0xff]  }
 0x3c9   : > { %1988 = vmatmul.mubr.bf16.gmra.mrb[56].mxu1 %v15512_v29  ;;  %v14079_v29 = vld [vmem:[#allocation9 + $0x100] ss:$16 sps:$4 sm:$0xff]  }
 0x3ca   : > { %1997 = vmatprep.mubr.bf16.mxu1 %v15525_v56  ;;  %2345 = vmatpush1.bf16.msra.mxu1 %v14067_v45  ;;  %v14100_v56 = vld [vmem:[#allocation9 + $0x1e0] ss:$16 sps:$4 sm:$0xff]   ;;  %v14136_v45 = vld [vmem:[#allocation9 + $0x168] ss:$16 sps:$4 sm:$0xff]  }
 0x3cb   : > { %2346 = vmatprep.subr.bf16.mxu1 %v14072_v63  ;;  %v14141_v63 = vld [vmem:[#allocation9 + $0x18c] ss:$16 sps:$4 sm:$0xff]  }
 0x3ce   : > { %2347 = vmatpush1.bf16.msra.mxu1 %v14070_v36  ;;  %v14139_v36 = vld [vmem:[#allocation9 + $0x188] ss:$16 sps:$4 sm:$0xff]  }
 0x3cf   : > { %2348 = vmatprep.subr.bf16.mxu1 %v14075_v37  ;;  %v14144_v37 = vld [vmem:[#allocation9 + $0x1ac] ss:$16 sps:$4 sm:$0xff]  }
 0x3d1   : > { %1998 = vmatmul.mubr.bf16.gmra.mrb[60].mxu1 %v15522_v55  ;;  %v14102_v55 = vld [vmem:[#allocation9 + $0x1e4] ss:$16 sps:$4 sm:$0xff]  }
 0x3d2   : > { %2007 = vmatprep.mubr.bf16.mxu1 %v15527_v57  ;;  %2349 = vmatpush1.bf16.msra.mxu1 %v14073_v4  ;;  %v14105_v57 = vld [vmem:[#allocation9 + $0xc] ss:$16 sps:$4 sm:$0xff]   ;;  %v14142_v4 = vld [vmem:[#allocation9 + $0x1a8] ss:$16 sps:$4 sm:$0xff]  }
 0x3d3   : > { %2350 = vmatprep.subr.bf16.mxu1 %v14078_v30  ;;  %v14147_v30 = vld [vmem:[#allocation9 + $0x1cc] ss:$16 sps:$4 sm:$0xff]  }
 0x3d6   : > { %2351 = vmatpush1.bf16.msra.mxu1 %v14076_v34  ;;  %v14150_v34 = vld [vmem:[#allocation9 + $0x1ec] ss:$16 sps:$4 sm:$0xff]  }
 0x3d7   : > { %2352 = vmatprep.subr.bf16.mxu1 %v14081_v38  ;;  %v14148_v38 = vld [vmem:[#allocation9 + $0x1e8] ss:$16 sps:$4 sm:$0xff]  }
 0x3d9   : > { %2008 = vmatmul.mubr.bf16.gmra.mrb[64].mxu1 %v15532_v62  ;;  %v14109_v62 = vld [vmem:[#allocation9 + $0x48] ss:$16 sps:$4 sm:$0xff]  }
 0x3da   : > { %2353 = vmatpush1.bf16.msra.mxu1 %v14079_v29  ;;  %2368 = vmatprep.mubr.bf16.mxu1 %v15469_v16  ;;  %v14153_v29 = vld [vmem:[#allocation9 + $0x404] ss:$16 sps:$4 sm:$0xff]  }
 0x3db   : > { %2354 = vmatprep.subr.bf16.mxu1 %v14084_v39  ;;  %v14151_v39 = vld [vmem:[#allocation9 + $0x400] ss:$16 sps:$4 sm:$0xff]  }
 0x3de   : > { %2355 = vmatpush1.bf16.msra.mxu1 %v14082_v40  ;;  %v14156_v40 = vld [vmem:[#allocation9 + $0x424] ss:$16 sps:$4 sm:$0xff]  }
 0x3df   : > { %2356 = vmatprep.subr.bf16.mxu1 %v14087_v41  ;;  %v14154_v41 = vld [vmem:[#allocation9 + $0x420] ss:$16 sps:$4 sm:$0xff]  }
 0x3e2   : > { %2357 = vmatpush1.bf16.msra.mxu1 %v14085_v43  ;;  %v14159_v43 = vld [vmem:[#allocation9 + $0x444] ss:$16 sps:$4 sm:$0xff]  }
 0x3e3   : > { %2358 = vmatprep.subr.bf16.mxu1 %v14090_v44  ;;  %v14157_v44 = vld [vmem:[#allocation9 + $0x440] ss:$16 sps:$4 sm:$0xff]  }
 0x3e6   : > { %2359 = vmatpush1.bf16.msra.mxu1 %v14088_v48  ;;  %v14162_v48 = vld [vmem:[#allocation9 + $0x464] ss:$16 sps:$4 sm:$0xff]  }
 0x3e7   : > { %2360 = vmatprep.subr.bf16.mxu1 %v14093_v49  ;;  %v14160_v49 = vld [vmem:[#allocation9 + $0x460] ss:$16 sps:$4 sm:$0xff]  }
 0x3ea   : > { %2361 = vmatpush1.bf16.msra.mxu1 %v14091_v50  ;;  %v14165_v50 = vld [vmem:[#allocation9 + $0x484] ss:$16 sps:$4 sm:$0xff]  }
 0x3eb   : > { %2362 = vmatprep.subr.bf16.mxu1 %v14096_v51  ;;  %v14168_v51 = vld [vmem:[#allocation9 + $0x4a4] ss:$16 sps:$4 sm:$0xff]  }
 0x3ee   : > { %2363 = vmatpush1.bf16.msra.mxu1 %v14094_v52  ;;  %v14166_v52 = vld [vmem:[#allocation9 + $0x4a0] ss:$16 sps:$4 sm:$0xff]  }
 0x3ef   : > { %2364 = vmatprep.subr.bf16.mxu1 %v14099_v53  ;;  %v14171_v53 = vld [vmem:[#allocation9 + $0x4c4] ss:$16 sps:$4 sm:$0xff]  }
 0x3f2   : > { %2365 = vmatpush1.bf16.msra.mxu1 %v14097_v54  ;;  %v14169_v54 = vld [vmem:[#allocation9 + $0x4c0] ss:$16 sps:$4 sm:$0xff]  }
 0x3f3   : > { %2366 = vmatprep.subr.bf16.mxu1 %v14102_v55  ;;  %v14174_v55 = vld [vmem:[#allocation9 + $0x4e4] ss:$16 sps:$4 sm:$0xff]  }
 0x3f6   : > { %2367 = vmatpush1.bf16.msra.mxu1 %v14100_v56  ;;  %v2499_v56 = vld [vmem:[#allocation2 + $0x8] sm:$0xfc] }
 0x3f7   : > { %2417 = vmatprep.subr.bf16.mxu1 %v14105_v57  ;;  %v14172_v57 = vld [vmem:[#allocation9 + $0x4e0] ss:$16 sps:$4 sm:$0xff]  }
 0x3f9   : > { %2369 = vmatmul.mubr.bf16.vlgmr.msra.gmra.mrb[28].mxu1 %v15466_v13 }
 0x3fa   : > { %2378 = vmatprep.mubr.bf16.mxu1 %v15475_v28  ;;  %2418 = vmatpush1.bf16.msra.mxu1 %v14103_v58  ;;  %v14177_v58 = vld [vmem:[#allocation9 + $0x504] ss:$16 sps:$4 sm:$0xff]  }
 0x3fb   : > { %2419 = vmatprep.subr.bf16.mxu1 %v14108_v59  ;;  %v2503_v59 = vpack.c.bf16 %v15463_v10, %v2499_v56  ;;  %v14181_v10 = vld [vmem:[#allocation9 + $0x540] ss:$16 sps:$4 sm:$0xff]   ;;  %v14222_v56 = vld [vmem:[#allocation9 + $0x4ec] ss:$16 sps:$4 sm:$0xff]  }
 0x3fe   : > { %2420 = vmatpush1.bf16.msra.mxu1 %v14106_v60  ;;  %v2586_v60 = vrot.slane %v15475_v28, 1 }
 0x3ff   : > { %2421 = vmatprep.subr.bf16.mxu1 %v14111_v61  ;;  %v14175_v61 = vld [vmem:[#allocation9 + $0x500] ss:$16 sps:$4 sm:$0xff]  }
 0x401   : > { %2379 = vmatmul.mubr.bf16.gmra.mrb[32].mxu1 %v15473_v26 }
 0x402   : > { %2388 = vmatprep.mubr.bf16.mxu1 %v15489_v47  ;;  %2422 = vmatpush1.bf16.msra.mxu1 %v14109_v62  ;;  %v2585_v62 = vrot.slane %v2503_v59, 1  ;;  %v14225_v59 = vld [vmem:[#allocation9 + $0x50c] ss:$16 sps:$4 sm:$0xff]  }
 0x403   : > { %2423 = vmatprep.subr.bf16.mxu1 %v14114_v1  ;;  %v14180_v1 = vld [vmem:[#allocation9 + $0x524] ss:$16 sps:$4 sm:$0xff]  }
 0x406   : > { %2424 = vmatpush1.bf16.msra.mxu1 %v14112_v2  ;;  %v15572_v2 = vsel %vm2581_vm4, %v2585_v62, %v2586_v60  ;;  %v14226_v62 = vld [vmem:[#allocation9 + $0x528] ss:$16 sps:$4 sm:$0xff]  }
 0x407   : > { %2425 = vmatprep.subr.bf16.mxu1 %v14117_v3  ;;  %v14178_v3 = vld [vmem:[#allocation9 + $0x520] ss:$16 sps:$4 sm:$0xff]  }
 0x409   : > { %2389 = vmatmul.mubr.bf16.gmra.mrb[36].mxu1 %v15486_v46 }
 0x40a   : > { %2398 = vmatprep.mubr.bf16.mxu1 %v15507_v6  ;;  %2426 = vmatpush1.bf16.msra.mxu1 %v14115_v7  ;;  %v14183_v7 = vld [vmem:[#allocation9 + $0x544] ss:$16 sps:$4 sm:$0xff]  }
 0x40b   : > { %2427 = vmatprep.subr.bf16.mxu1 %v14120_v8  ;;  %v14184_v8 = vld [vmem:[#allocation9 + $0x560] ss:$16 sps:$4 sm:$0xff]  }
 0x40e   : > { %2428 = vmatpush1.bf16.msra.mxu1 %v14118_v18  ;;  %v14189_v18 = vld [vmem:[#allocation9 + $0x584] ss:$16 sps:$4 sm:$0xff]  }
 0x40f   : > { %2429 = vmatprep.subr.bf16.mxu1 %v14123_v19  ;;  %v14187_v19 = vld [vmem:[#allocation9 + $0x580] ss:$16 sps:$4 sm:$0xff]  }
 0x411   : > { %2399 = vmatmul.mubr.bf16.gmra.mrb[40].mxu1 %v15504_v5 }
 0x412   : > { %2408 = vmatprep.mubr.bf16.mxu1 %v15552_v23  ;;  %2430 = vmatpush1.bf16.msra.mxu1 %v14121_v21  ;;  %v14190_v21 = vld [vmem:[#allocation9 + $0x5a0] ss:$16 sps:$4 sm:$0xff]  }
 0x413   : > { %2431 = vmatprep.subr.bf16.mxu1 %v14126_v22  ;;  %v14195_v22 = vld [vmem:[#allocation9 + $0x5c4] ss:$16 sps:$4 sm:$0xff]  }
 0x416   : > { %2432 = vmatpush1.bf16.msra.mxu1 %v14124_v24  ;;  %v14198_v24 = vld [vmem:[#allocation9 + $0x5e4] ss:$16 sps:$4 sm:$0xff]  }
 0x417   : > { %2433 = vmatprep.subr.bf16.mxu1 %v14129_v42  ;;  %v2498_v42 = vld [vmem:[#allocation2] sm:$0xfc] }
 0x419   : > { %2409 = vmatmul.mubr.bf16.gmra.mrb[68].mxu1 %v15556_v31 }
 0x41a   : > { %2434 = vmatpush1.bf16.msra.mxu1 %v14127_v27  ;;  %2449 = vmatprep.mubr.bf16.mxu1 %v15469_v16  ;;  %v14145_v16 = vld [vmem:[#allocation9 + $0x1c8] ss:$16 sps:$4 sm:$0xff]  }
 0x41b   : > { %2435 = vmatprep.subr.bf16.mxu1 %v14132_v32 }
 0x41e   : > { %2436 = vmatpush1.bf16.msra.mxu1 %v14130_v33  ;;  %v14201_v33 = vld [vmem:[#allocation9 + $0x40c] ss:$16 sps:$4 sm:$0xff]  }
 0x41f   : > { %2437 = vmatprep.subr.bf16.mxu1 %v14135_v15 }
 0x422   : > { %2438 = vmatpush1.bf16.msra.mxu1 %v14133_v17  ;;  %v2583_v17 = vrot.slane %v15473_v26, 1 }
 0x423   : > { %2439 = vmatprep.subr.bf16.mxu1 %v14138_v35 }
 0x426   : > { %2440 = vmatpush1.bf16.msra.mxu1 %v14136_v45  ;;  %v2590_v45 = vrot.slane %v15489_v47, 1 }
 0x427   : > { %2441 = vmatprep.subr.bf16.mxu1 %v14141_v63 }
 0x42a   : > { %2442 = vmatpush1.bf16.msra.mxu1 %v14139_v36  ;;  %v14199_v36 = vld [vmem:[#allocation9 + $0x408] ss:$16 sps:$4 sm:$0xff]  }
 0x42b   : > { %2443 = vmatprep.subr.bf16.mxu1 %v14144_v37  ;;  %v14204_v37 = vld [vmem:[#allocation9 + $0x42c] ss:$16 sps:$4 sm:$0xff]  }
 0x42e   : > { %2444 = vmatpush1.bf16.msra.mxu1 %v14142_v4 }
 0x42f   : > { %2445 = vmatprep.subr.bf16.mxu1 %v14147_v30  ;;  %v14207_v30 = vld [vmem:[#allocation9 + $0x44c] ss:$16 sps:$4 sm:$0xff]  }
 0x432   : > { %2446 = vmatpush1.bf16.msra.mxu1 %v14145_v16  ;;  %v2594_v16 = vrot.slane %v15507_v6, 1 }
 0x433   : > { %2447 = vmatprep.subr.bf16.mxu1 %v14150_v34  ;;  %v14205_v34 = vld [vmem:[#allocation9 + $0x448] ss:$16 sps:$4 sm:$0xff]  }
 0x436   : > { %2448 = vmatpush1.bf16.msra.mxu1 %v14148_v38  ;;  %v2501_v38 = vld [vmem:[#allocation2 + $0x88] sm:$0xff] }
 0x437   : > { %2930 = vmatprep.subr.bf16.mxu1 %v14153_v29  ;;  %v14210_v29 = vld [vmem:[#allocation9 + $0x46c] ss:$16 sps:$4 sm:$0xff]  }
 0x439   : > { %2450 = vmatmul.mubr.bf16.vlgmr.msra.gmra.mrb[48].mxu1 %v15466_v13  ;;  %v14163_v13 = vld [vmem:[#allocation9 + $0x480] ss:$16 sps:$4 sm:$0xff]  }
 0x43a   : > { %2459 = vmatprep.mubr.bf16.mxu1 %v15475_v28  ;;  %2931 = vmatpush1.bf16.msra.mxu1 %v14151_v39  ;;  %v14186_v28 = vld [vmem:[#allocation9 + $0x564] ss:$16 sps:$4 sm:$0xff]  }
 0x43b   : > { %2932 = vmatprep.subr.bf16.mxu1 %v14156_v40  ;;  %v15597_v40 = vsel %vm2581_vm4, %v2590_v45, %v2594_v16 }
 0x43e   : > { %2933 = vmatpush1.bf16.msra.mxu1 %v14154_v41  ;;  %v2505_v41 = vpack.c.bf16 %v2501_v38, %v2501_v38 }
 0x43f   : > { %2934 = vmatprep.subr.bf16.mxu1 %v14159_v43  ;;  %v2592_v43 = vrot.slane %v15504_v5, 1 }
 0x441   : > { %2460 = vmatmul.mubr.bf16.gmra.mrb[52].mxu1 %v15473_v26  ;;  %v14202_v26 = vld [vmem:[#allocation9 + $0x428] ss:$16 sps:$4 sm:$0xff]  }
 0x442   : > { %2469 = vmatprep.mubr.bf16.mxu1 %v15489_v47  ;;  %2935 = vmatpush1.bf16.msra.mxu1 %v14157_v44  ;;  %v2588_v47 = vrot.slane %v15486_v46, 1  ;;  %v15601_v44 = vrot.slane %v2505_v41, 1 }
 0x443   : > { %2936 = vmatprep.subr.bf16.mxu1 %v14162_v48  ;;  %v2500_v48 = vld [vmem:[#allocation2 + $0x80] sm:$0xff] }
 0x444   : > { %v15593_v39 = vsel %vm2581_vm4, %v2583_v17, %v2588_v47 }
 0x446   : > { %2937 = vmatpush1.bf16.msra.mxu1 %v14160_v49  ;;  %v14211_v49 = vld [vmem:[#allocation9 + $0x488] ss:$16 sps:$4 sm:$0xff]  }
 0x447   : > { %2938 = vmatprep.subr.bf16.mxu1 %v14165_v50  ;;  %v14216_v50 = vld [vmem:[#allocation9 + $0x4ac] ss:$16 sps:$4 sm:$0xff]  }
 0x449   : > { %2470 = vmatmul.mubr.bf16.gmra.mrb[56].mxu1 %v15486_v46  ;;  %v14208_v46 = vld [vmem:[#allocation9 + $0x468] ss:$16 sps:$4 sm:$0xff]  }
 0x44a   : > { %2479 = vmatprep.mubr.bf16.mxu1 %v15507_v6  ;;  %2939 = vmatpush1.bf16.msra.mxu1 %v14163_v13  ;;  %v14213_v6 = vld [vmem:[#allocation9 + $0x48c] ss:$16 sps:$4 sm:$0xff]   ;;  %v2593_v13 = vsel %vm2581_vm4, %v2588_v47, %v2592_v43 }
 0x44b   : > { %2940 = vmatprep.subr.bf16.mxu1 %v14168_v51  ;;  %v2504_v51 = vpack.c.bf16 %v2500_v48, %v2500_v48 }
 0x44e   : > { %2941 = vmatpush1.bf16.msra.mxu1 %v14166_v52  ;;  %v2599_v52 = vsel %vm2581_vm4, %v2594_v16, %v15601_v44 }
 0x44f   : > { %2942 = vmatprep.subr.bf16.mxu1 %v14171_v53  ;;  %v14214_v53 = vld [vmem:[#allocation9 + $0x4a8] ss:$16 sps:$4 sm:$0xff]  }
 0x451   : > { %2480 = vmatmul.mubr.bf16.gmra.mrb[60].mxu1 %v15504_v5  ;;  %v2596_v5 = vrot.slane %v2504_v51, 1 }
 0x452   : > { %2489 = vmatprep.mubr.bf16.mxu1 %v15552_v23  ;;  %2943 = vmatpush1.bf16.msra.mxu1 %v14169_v54  ;;  %v14193_v23 = vld [vmem:[#allocation9 + $0x5c0] ss:$16 sps:$4 sm:$0xff]   ;;  %v14219_v54 = vld [vmem:[#allocation9 + $0x4cc] ss:$16 sps:$4 sm:$0xff]  }
 0x453   : > { %2944 = vmatprep.subr.bf16.mxu1 %v14174_v55  ;;  %v14217_v55 = vld [vmem:[#allocation9 + $0x4c8] ss:$16 sps:$4 sm:$0xff]  }
 0x456   : > { %2945 = vmatpush1.bf16.msra.mxu1 %v14172_v57  ;;  %v2597_v57 = vsel %vm2581_vm4, %v2592_v43, %v2596_v5 }
 0x457   : > { %2946 = vmatprep.subr.bf16.mxu1 %v14177_v58  ;;  %v14220_v58 = vld [vmem:[#allocation9 + $0x4e8] ss:$16 sps:$4 sm:$0xff]  }
 0x459   : > { %2490 = vmatmul.mubr.bf16.gmra.mrb[72].mxu1 %v15556_v31  ;;  %v2502_v31 = vpack.c.bf16 %v15461_v9, %v2498_v42  ;;  %v15587_v9 = vsel %vm2581_vm4, %v2586_v60, %v2590_v45  ;;  %v14223_v60 = vld [vmem:[#allocation9 + $0x508] ss:$16 sps:$4 sm:$0xff]   ;;  %v14246_v42 = vld [vmem:[#allocation9 + $0x5ec] ss:$16 sps:$4 sm:$0xff]  }
 0x45a   : > { %2947 = vmatpush1.bf16.msra.mxu1 %v14175_v61  ;;  %2962 = vmatprep.mubr.bf16.mxu1 %v15572_v2  ;;  %v14228_v61 = vld [vmem:[#allocation9 + $0x52c] ss:$16 sps:$4 sm:$0xff]  }
 0x45b   : > { %2948 = vmatprep.subr.bf16.mxu1 %v14180_v1  ;;  %v2582_v63 = vrot.slane %v2502_v31, 1  ;;  %v14231_v1 = vld [vmem:[#allocation9 + $0x54c] ss:$16 sps:$4 sm:$0xff]  }
 0x45d   : > { %v15583_v4 = vsel %vm2581_vm4, %v2582_v63, %v2583_v17 }
 0x45e   : > { %2949 = vmatpush1.bf16.msra.mxu1 %v14178_v3  ;;  %v14229_v3 = vld [vmem:[#allocation9 + $0x548] ss:$16 sps:$4 sm:$0xff]  }
 0x45f   : > { %2950 = vmatprep.subr.bf16.mxu1 %v14183_v7  ;;  %v14234_v7 = vld [vmem:[#allocation9 + $0x56c] ss:$16 sps:$4 sm:$0xff]  }
 0x462   : > { %2951 = vmatpush1.bf16.msra.mxu1 %v14181_v10  ;;  %v14232_v10 = vld [vmem:[#allocation9 + $0x568] ss:$16 sps:$4 sm:$0xff]  }
 0x463   : > { %2952 = vmatprep.subr.bf16.mxu1 %v14186_v28  ;;  %v14237_v28 = vld [vmem:[#allocation9 + $0x58c] ss:$16 sps:$4 sm:$0xff]  }
 0x466   : > { %2953 = vmatpush1.bf16.msra.mxu1 %v14184_v8  ;;  %v14235_v8 = vld [vmem:[#allocation9 + $0x588] ss:$16 sps:$4 sm:$0xff]  }
 0x467   : > { %2954 = vmatprep.subr.bf16.mxu1 %v14189_v18  ;;  %v14240_v18 = vld [vmem:[#allocation9 + $0x5ac] ss:$16 sps:$4 sm:$0xff]  }
 0x46a   : > { %2955 = vmatpush1.bf16.msra.mxu1 %v14187_v19  ;;  %v14238_v19 = vld [vmem:[#allocation9 + $0x5a8] ss:$16 sps:$4 sm:$0xff]  }
 0x46b   : > { %2956 = vmatprep.subr.bf16.mxu1 %v14192_v20  ;;  %v14243_v20 = vld [vmem:[#allocation9 + $0x5cc] ss:$16 sps:$4 sm:$0xff]  }
 0x46e   : > { %2957 = vmatpush1.bf16.msra.mxu1 %v14190_v21 }
 0x46f   : > { %2958 = vmatprep.subr.bf16.mxu1 %v14195_v22 }
 0x472   : > { %2959 = vmatpush1.bf16.msra.mxu1 %v14193_v23  ;;  %v15575_v27 = vpop.f32.mrb[44].mxu1  ;;  %v14241_v23 = vld [vmem:[#allocation9 + $0x5c8] ss:$16 sps:$4 sm:$0xff]  }
 0x473   : > { %2960 = vmatprep.subr.bf16.mxu1 %v14198_v24  ;;  %v15578_v32 = vpop.f32.mrb[45].mxu1 }
 0x474   : > { %v1932_v15 = vpop.f32.mrb[46].mxu1 }
 0x475   : > { %v1933_v35 = vpop.f32.mrb[47].mxu1 }
 0x476   : > { %2961 = vmatpush1.bf16.msra.mxu1 %v14196_v25  ;;  %v14244_v25 = vld [vmem:[#allocation9 + $0x5e8] ss:$16 sps:$4 sm:$0xff]  }
 0x477   : > { %3011 = vmatprep.subr.bf16.mxu1 %v14201_v33 }
 0x479   : > { %2963 = vmatmul.mubr.bf16.vlgmr.msra.gmra.mrb[28].mxu1 %v15583_v4 }
 0x47a   : > { %2972 = vmatprep.mubr.bf16.mxu1 %v15587_v9  ;;  %3012 = vmatpush1.bf16.msra.mxu1 %v14199_v36 }
 0x47b   : > { %3013 = vmatprep.subr.bf16.mxu1 %v14204_v37 }
 0x47e   : > { %3014 = vmatpush1.bf16.msra.mxu1 %v14202_v26 }
 0x47f   : > { %3015 = vmatprep.subr.bf16.mxu1 %v14207_v30 }
 0x481   : > { %2973 = vmatmul.mubr.bf16.gmra.mrb[32].mxu1 %v15593_v39 }
 0x482   : > { %2982 = vmatprep.mubr.bf16.mxu1 %v15597_v40  ;;  %3016 = vmatpush1.bf16.msra.mxu1 %v14205_v34 }
 0x483   : > { %3017 = vmatprep.subr.bf16.mxu1 %v14210_v29 }
 0x486   : > { %3018 = vmatpush1.bf16.msra.mxu1 %v14208_v46 }
 0x487   : > { %3019 = vmatprep.subr.bf16.mxu1 %v14213_v6 }
 0x489   : > { %2983 = vmatmul.mubr.bf16.gmra.mrb[36].mxu1 %v2593_v13 }
 0x48a   : > { %2992 = vmatprep.mubr.bf16.mxu1 %v2599_v52  ;;  %3020 = vmatpush1.bf16.msra.mxu1 %v14211_v49 }
 0x48b   : > { %3021 = vmatprep.subr.bf16.mxu1 %v14216_v50 }
 0x48e   : > { %3022 = vmatpush1.bf16.msra.mxu1 %v14214_v53 }
 0x48f   : > { %3023 = vmatprep.subr.bf16.mxu1 %v14219_v54  ;;  %v3128_v54 = vld [vmem:[#allocation10] sm:$0xf] }
 0x491   : > { %2993 = vmatmul.mubr.bf16.gmra.mrb[40].mxu1 %v2597_v57 }
 0x492   : > { %3002 = vmatprep.mubr.bf16.mxu1 %v15601_v44  ;;  %3024 = vmatpush1.bf16.msra.mxu1 %v14217_v55  ;;  %v15645_v55 = vsub.s32 3, %v15415_v11 }
 0x493   : > { %3025 = vmatprep.subr.bf16.mxu1 %v14222_v56  ;;  %v15648_v56 = vrot.slane %v3128_v54, %v15418_v12 }
 0x496   : > { %3026 = vmatpush1.bf16.msra.mxu1 %v14220_v58 }
 0x497   : > { %3027 = vmatprep.subr.bf16.mxu1 %v14225_v59  ;;  %v15657_v59 = vrot.slane %v3128_v54, %v15645_v55 }
 0x499   : > { %3003 = vmatmul.mubr.bf16.gmra.mrb[76].mxu1 %v2596_v5 }
 0x49a   : > { %3028 = vmatpush1.bf16.msra.mxu1 %v14223_v60  ;;  %3043 = vmatprep.mubr.bf16.mxu1 %v15572_v2 }
 0x49b   : > { %3029 = vmatprep.subr.bf16.mxu1 %v14228_v61 }
 0x49e   : > { %3030 = vmatpush1.bf16.msra.mxu1 %v14226_v62 }
 0x49f   : > { %3031 = vmatprep.subr.bf16.mxu1 %v14231_v1 }
 0x4a2   : > { %3032 = vmatpush1.bf16.msra.mxu1 %v14229_v3 }
 0x4a3   : > { %3033 = vmatprep.subr.bf16.mxu1 %v14234_v7 }
 0x4a6   : > { %3034 = vmatpush1.bf16.msra.mxu1 %v14232_v10 }
 0x4a7   : > { %3035 = vmatprep.subr.bf16.mxu1 %v14237_v28 }
 0x4aa   : > { %3036 = vmatpush1.bf16.msra.mxu1 %v14235_v8 }
 0x4ab   : > { %3037 = vmatprep.subr.bf16.mxu1 %v14240_v18 }
 0x4ac   : > { %v2009_v2 = vpop.f32.mrb[64].mxu1 }
 0x4ad   : > { %v2011_v21 = vpop.f32.mrb[65].mxu1 }
 0x4ae   : > { %v2013_v22 = vpop.f32.mrb[66].mxu1  ;;  %3038 = vmatpush1.bf16.msra.mxu1 %v14238_v19 }
 0x4af   : > { %v2014_v24 = vpop.f32.mrb[67].mxu1  ;;  %3039 = vmatprep.subr.bf16.mxu1 %v14243_v20 }
 0x4b2   : > { %3040 = vmatpush1.bf16.msra.mxu1 %v14241_v23 }
 0x4b3   : > { %3041 = vmatprep.subr.bf16.mxu1 %v14246_v42 }
 0x4b6   : > { %3042 = vmatpush1.bf16.msra.mxu1 %v14244_v25 }
 0x4b9   : > { %3044 = vmatmul.mubr.bf16.vlgmr.msra.gmra.mrb[48].mxu1 %v15583_v4 }
 0x4ba   : > { %3053 = vmatprep.mubr.bf16.mxu1 %v15587_v9 }
 0x4c1   : > { %3054 = vmatmul.mubr.bf16.gmra.mrb[52].mxu1 %v15593_v39 }
 0x4c2   : > { %3063 = vmatprep.mubr.bf16.mxu1 %v15597_v40 }
 0x4c9   : > { %3064 = vmatmul.mubr.bf16.gmra.mrb[56].mxu1 %v2593_v13 }
 0x4ca   : > { %3073 = vmatprep.mubr.bf16.mxu1 %v2599_v52 }
 0x4d1   : > { %3074 = vmatmul.mubr.bf16.gmra.mrb[60].mxu1 %v2597_v57  ;;  %v15651_v57 = vrot.slane %v3128_v54, %v15421_v14 }
 0x4d2   : > { %3083 = vmatprep.mubr.bf16.mxu1 %v15601_v44 }
 0x4d9   : > { %3084 = vmatmul.mubr.bf16.gmra.mrb[80].mxu1 %v2596_v5  ;;  %v15642_v5 = vsub.s32 2, %v15415_v11 }
 0x4da   : > { %5245 = vmatprep.mubr.bf16.mxu1 %v14946_v0 }
 0x4db   : > { %v15654_v58 = vrot.slane %v3128_v54, %v15642_v5 }
 0x4ec   : > { %v2410_v31 = vpop.f32.mrb[68].mxu1 }
 0x4ed   : > { %v2411_v33 = vadd.f32 %v2410_v31, %v15575_v27  ;;  %v2412_v15 = vpop.f32.mrb[69].mxu1 }
 0x4ee   : > { %v2413_v17 = vadd.f32 %v2412_v15, %v15578_v32  ;;  %v2414_v35 = vpop.f32.mrb[70].mxu1 }
 0x4ef   : > { %v2415_v45 = vpop.f32.mrb[71].mxu1 }
 0x52c   : > { %v2491_v63 = vpop.f32.mrb[72].mxu1 }
 0x52d   : > { %v15617_v36 = vadd.f32 %v2491_v63, %v2009_v2  ;;  %v2493_v37 = vpop.f32.mrb[73].mxu1 }
 0x52e   : > { %v15619_v4 = vadd.f32 %v2493_v37, %v2011_v21  ;;  %v2495_v9 = vpop.f32.mrb[74].mxu1 }
 0x52f   : > { %v2496_v26 = vpop.f32.mrb[75].mxu1 }
 0x54c   : > { %v2964_v30 = vpop.f32.mrb[28].mxu1 }
 0x54d   : > { %v2966_v47 = vpop.f32.mrb[29].mxu1  ;;  %v3150_v60 = vadd.f32 %v15648_v56, %v2964_v30 }
 0x54e   : > { %v2968_v16 = vpop.f32.mrb[30].mxu1  ;;  %v3151_v61 = vadd.f32 %v15651_v57, %v2966_v47 }
 0x54f   : > { %v2970_v34 = vpop.f32.mrb[31].mxu1  ;;  %v3154_v1 = vadd.f32 %v15648_v56, %v2968_v16  ;;  %v3186_v18 = vmax.f32 %v3150_v60, 0.0 }
 0x550   : > { %v3155_v10 = vadd.f32 %v15651_v57, %v2970_v34  ;;  %v3187_v21 = vmax.f32 %v3151_v61, 0.0 }
 0x551   : > { %v3190_v24 = vmax.f32 %v3154_v1, 0.0 }
 0x552   : > { %v3191_v31 = vmax.f32 %v3155_v10, 0.0 }
 0x554   : > { %v2974_v38 = vpop.f32.mrb[32].mxu1 }
 0x555   : > { %v2976_v29 = vpop.f32.mrb[33].mxu1 }
 0x556   : > { %v2978_v27 = vpop.f32.mrb[34].mxu1  ;;  %v3159_v45 = vadd.f32 %v15651_v57, %v2976_v29 }
 0x557   : > { %v2980_v39 = vpop.f32.mrb[35].mxu1  ;;  %v3162_v9 = vadd.f32 %v15648_v56, %v2978_v27 }
 0x558   : > { %v3163_v16 = vadd.f32 %v15651_v57, %v2980_v39  ;;  %v3195_v54 = vmax.f32 %v3159_v45, 0.0 }
 0x559   : > { %v3198_v61 = vmax.f32 %v3162_v9, 0.0 }
 0x55a   : > { %v3199_v39 = vmax.f32 %v3163_v16, 0.0 }
 0x55c   : > { %v15621_v40 = vpop.f32.mrb[36].mxu1 }
 0x55d   : > { %v15623_v32 = vpop.f32.mrb[37].mxu1  ;;  %v3166_v10 = vadd.f32 %v15648_v56, %v15621_v40 }
 0x55e   : > { %v15625_v41 = vpop.f32.mrb[38].mxu1 }
 0x55f   : > { %v15627_v46 = vpop.f32.mrb[39].mxu1 }
 0x564   : > { %v15629_v6 = vpop.f32.mrb[40].mxu1 }
 0x565   : > { %v15631_v43 = vpop.f32.mrb[41].mxu1 }
 0x566   : > { %v15633_v44 = vpop.f32.mrb[42].mxu1  ;;  %v3175_v16 = vadd.f32 %v15651_v57, %v15631_v43 }
 0x567   : > { %v15635_v48 = vpop.f32.mrb[43].mxu1 }
 0x56c   : > { %v3004_v49 = vpop.f32.mrb[76].mxu1 }
 0x56d   : > { %v15637_v50 = vadd.f32 %v3004_v49, %v2411_v33  ;;  %v3006_v13 = vpop.f32.mrb[77].mxu1 }
 0x56e   : > { %v15639_v51 = vadd.f32 %v3006_v13, %v2413_v17  ;;  %v3008_v52 = vpop.f32.mrb[78].mxu1  ;;  %v3158_v17 = vadd.f32 %v15648_v56, %v2974_v38 }
 0x56f   : > { %v3009_v53 = vpop.f32.mrb[79].mxu1 }
 0x570   : > { %v3194_v38 = vmax.f32 %v3158_v17, 0.0 }
 0x58c   : > { %v3045_v62 = vpop.f32.mrb[48].mxu1 }
 0x58d   : > { %v3152_v3 = vadd.f32 %v15654_v58, %v3045_v62  ;;  %v3047_v7 = vpop.f32.mrb[49].mxu1 }
 0x58e   : > { %v3153_v28 = vadd.f32 %v15657_v59, %v3047_v7  ;;  %v3049_v8 = vpop.f32.mrb[50].mxu1 }
 0x58f   : > { %v3188_v19 = vmax.f32 %v3152_v3, 0.0  ;;  %v3156_v20 = vadd.f32 %v15654_v58, %v3049_v8  ;;  %v3051_v2 = vpop.f32.mrb[51].mxu1  ;;  %v3167_v8 = vadd.f32 %v15651_v57, %v15623_v32 }
 0x590   : > { %v3189_v22 = vmax.f32 %v3153_v28, 0.0  ;;  %v3157_v23 = vadd.f32 %v15657_v59, %v3051_v2 }
 0x591   : > { %v3222_v42 = vmax.f32 %v3186_v18, %v3188_v19  ;;  %v3192_v25 = vmax.f32 %v3156_v20, 0.0  ;;  %v3170_v20 = vadd.f32 %v15648_v56, %v15625_v41 }
 0x592   : > { %v3223_v33 = vmax.f32 %v3187_v21, %v3189_v22  ;;  %v3193_v15 = vmax.f32 %v3157_v23, 0.0  ;;  %v3171_v23 = vadd.f32 %v15651_v57, %v15627_v46 }
 0x593   : > { %v3224_v35 = vmax.f32 %v3190_v24, %v3192_v25  ;;  %v3202_v25 = vmax.f32 %v3166_v10, 0.0 }
 0x594   : > { %v3225_v63 = vmax.f32 %v3191_v31, %v3193_v15  ;;  %v3055_v37 = vpop.f32.mrb[52].mxu1  ;;  %v3203_v15 = vmax.f32 %v3167_v8, 0.0  ;;  %v3207_v46 = vmax.f32 %v3171_v23, 0.0 }
 0x595   : > { %v15670_v26 = vpack.c.bf16 %v3224_v35, %v3222_v42  ;;  %v3160_v30 = vadd.f32 %v15654_v58, %v3055_v37  ;;  %v3057_v47 = vpop.f32.mrb[53].mxu1  ;;  %v3206_v35 = vmax.f32 %v3170_v20, 0.0 }
 0x596   : > { %v3161_v34 = vadd.f32 %v15657_v59, %v3057_v47  ;;  %v3059_v49 = vpop.f32.mrb[54].mxu1  ;;  %v15675_v13 = vpack.c.bf16 %v3225_v63, %v3223_v33 }
 0x597   : > { %v3196_v52 = vmax.f32 %v3160_v30, 0.0  ;;  %v3164_v29 = vadd.f32 %v15654_v58, %v3059_v49  ;;  %v3061_v53 = vpop.f32.mrb[55].mxu1  ;;  %v3174_v30 = vadd.f32 %v15648_v56, %v15629_v6 }
 0x598   : > { %v3197_v60 = vmax.f32 %v3161_v34, 0.0  ;;  %v3165_v27 = vadd.f32 %v15657_v59, %v3061_v53  ;;  %3283 = vmatprep.subr.bf16.mxu0 %v15675_v13 }
 0x599   : > { %v3226_v62 = vmax.f32 %v3194_v38, %v3196_v52  ;;  %v3200_v1 = vmax.f32 %v3164_v29, 0.0  ;;  %3284 = vmatpush1.bf16.msra.mxu0 %v15670_v26  ;;  %v3178_v38 = vadd.f32 %v15648_v56, %v15633_v44 }
 0x59a   : > { %v3227_v3 = vmax.f32 %v3195_v54, %v3197_v60  ;;  %v3201_v7 = vmax.f32 %v3165_v27, 0.0  ;;  %v3179_v54 = vadd.f32 %v15651_v57, %v15635_v48 }
 0x59b   : > { %v3228_v28 = vmax.f32 %v3198_v61, %v3200_v1  ;;  %v3210_v61 = vmax.f32 %v3174_v30, 0.0  ;;  %v14251_v30 = vld [vmem:[#allocation19 + $0x1c] sm:$0xff]  }
 0x59c   : > { %v3229_v18 = vmax.f32 %v3199_v39, %v3201_v7  ;;  %v3065_v19 = vpop.f32.mrb[56].mxu1  ;;  %v3211_v39 = vmax.f32 %v3175_v16, 0.0  ;;  %v3214_v7 = vmax.f32 %v3178_v38, 0.0  ;;  %v3215_v8 = vmax.f32 %v3179_v54, 0.0  ;;  %v14252_v16 = vld [vmem:[#allocation19 + $0x24] ss:$0 sps:$4 sm:$0xff]  }
 0x59d   : > { %v15687_v2 = vpack.c.bf16 %v3228_v28, %v3226_v62  ;;  %v3168_v21 = vadd.f32 %v15654_v58, %v3065_v19  ;;  %v3067_v22 = vpop.f32.mrb[57].mxu1  ;;  %v14267_v38 = vld [vmem:[#allocation12 + $0x284] ss:$16 sps:$4 sm:$0xff]  }
 0x59e   : > { %v3169_v24 = vadd.f32 %v15657_v59, %v3067_v22  ;;  %v3069_v40 = vpop.f32.mrb[58].mxu1  ;;  %v15693_v42 = vpack.c.bf16 %v3229_v18, %v3227_v3  ;;  %v3182_v22 = vadd.f32 %v15648_v56, %v15637_v50  ;;  %v14273_v54 = vld [vmem:[#allocation12 + $0x2c4] ss:$16 sps:$4 sm:$0xff]  }
 0x59f   : > { %v3204_v32 = vmax.f32 %v3168_v21, 0.0  ;;  %v3172_v31 = vadd.f32 %v15654_v58, %v3069_v40  ;;  %v3071_v33 = vpop.f32.mrb[59].mxu1 }
 0x5a0   : > { %v3205_v41 = vmax.f32 %v3169_v24, 0.0  ;;  %v3173_v17 = vadd.f32 %v15657_v59, %v3071_v33  ;;  %3285 = vmatprep.subr.bf16.mxu0 %v15693_v42 }
 0x5a1   : > { %v3230_v45 = vmax.f32 %v3202_v25, %v3204_v32  ;;  %v3208_v63 = vmax.f32 %v3172_v31, 0.0  ;;  %3286 = vmatpush1.bf16.msra.mxu0 %v15687_v2  ;;  %v3183_v25 = vadd.f32 %v15651_v57, %v15639_v51  ;;  %v14248_v57 = vld [vmem:[#allocation19 + $0x8] sm:$0xff]  }
 0x5a2   : > { %v3231_v37 = vmax.f32 %v3203_v15, %v3205_v41  ;;  %v3209_v9 = vmax.f32 %v3173_v17, 0.0 }
 0x5a3   : > { %v3232_v47 = vmax.f32 %v3206_v35, %v3208_v63  ;;  %v3218_v35 = vmax.f32 %v3182_v22, 0.0  ;;  %v3219_v50 = vmax.f32 %v3183_v25, 0.0  ;;  %v14303_v22 = vld [vmem:[#allocation12 + $0x20c] ss:$16 sps:$4 sm:$0xff]  }
 0x5a4   : > { %v3233_v34 = vmax.f32 %v3207_v46, %v3209_v9  ;;  %v3075_v49 = vpop.f32.mrb[60].mxu1  ;;  %v14261_v9 = vld [vmem:[#allocation12 + $0x244] ss:$16 sps:$4 sm:$0xff]  }
 0x5a5   : > { %v3244_v52 = vpack.c.bf16 %v3232_v47, %v3230_v45  ;;  %v3176_v29 = vadd.f32 %v15654_v58, %v3075_v49  ;;  %v3077_v53 = vpop.f32.mrb[61].mxu1  ;;  %v14259_v47 = vld [vmem:[#allocation12 + $0x240] ss:$16 sps:$4 sm:$0xff]  }
 0x5a6   : > { %v3177_v60 = vadd.f32 %v15657_v59, %v3077_v53  ;;  %v3079_v27 = vpop.f32.mrb[62].mxu1  ;;  %v3245_v6 = vpack.c.bf16 %v3233_v34, %v3231_v37  ;;  %v14264_v34 = vld [vmem:[#allocation12 + $0x264] ss:$16 sps:$4 sm:$0xff]   ;;  %v14262_v49 = vld [vmem:[#allocation12 + $0x260] ss:$16 sps:$4 sm:$0xff]  }
 0x5a7   : > { %v3212_v62 = vmax.f32 %v3176_v29, 0.0  ;;  %v3180_v43 = vadd.f32 %v15654_v58, %v3079_v27  ;;  %v3081_v1 = vpop.f32.mrb[63].mxu1  ;;  %v14270_v29 = vld [vmem:[#allocation12 + $0x2a4] ss:$16 sps:$4 sm:$0xff]   ;;  %v14268_v53 = vld [vmem:[#allocation12 + $0x2a0] ss:$16 sps:$4 sm:$0xff]  }
 0x5a8   : > { %v3213_v3 = vmax.f32 %v3177_v60, 0.0  ;;  %v3181_v44 = vadd.f32 %v15657_v59, %v3081_v1  ;;  %3287 = vmatprep.subr.bf16.mxu0 %v3245_v6  ;;  %v14271_v60 = vld [vmem:[#allocation12 + $0x2c0] ss:$16 sps:$4 sm:$0xff]   ;;  %v14276_v27 = vld [vmem:[#allocation12 + $0x2e4] ss:$16 sps:$4 sm:$0xff]  }
 0x5a9   : > { %v3234_v10 = vmax.f32 %v3210_v61, %v3212_v62  ;;  %v3216_v28 = vmax.f32 %v3180_v43, 0.0  ;;  %3288 = vmatpush1.bf16.msra.mxu0 %v3244_v52  ;;  %v14279_v61 = vld [vmem:[#allocation12 + $0x304] ss:$16 sps:$4 sm:$0xff]   ;;  %v14277_v62 = vld [vmem:[#allocation12 + $0x300] ss:$16 sps:$4 sm:$0xff]  }
 0x5aa   : > { %v3235_v48 = vmax.f32 %v3211_v39, %v3213_v3  ;;  %v3217_v18 = vmax.f32 %v3181_v44, 0.0  ;;  %v14282_v43 = vld [vmem:[#allocation12 + $0x324] ss:$16 sps:$4 sm:$0xff]   ;;  %v14280_v1 = vld [vmem:[#allocation12 + $0x320] ss:$16 sps:$4 sm:$0xff]  }
 0x5ab   : > { %v3236_v19 = vmax.f32 %v3214_v7, %v3216_v28  ;;  %v14285_v39 = vld [vmem:[#allocation12 + $0x344] ss:$16 sps:$4 sm:$0xff]   ;;  %v14283_v3 = vld [vmem:[#allocation12 + $0x340] ss:$16 sps:$4 sm:$0xff]  }
 0x5ac   : > { %v3237_v20 = vmax.f32 %v3215_v8, %v3217_v18  ;;  %v3085_v21 = vpop.f32.mrb[80].mxu1  ;;  %v14288_v44 = vld [vmem:[#allocation12 + $0x364] ss:$16 sps:$4 sm:$0xff]   ;;  %v14286_v7 = vld [vmem:[#allocation12 + $0x360] ss:$16 sps:$4 sm:$0xff]  }
 0x5ad   : > { %v3246_v23 = vpack.c.bf16 %v3236_v19, %v3234_v10  ;;  %v3126_v24 = vadd.f32 %v3085_v21, %v15617_v36  ;;  %v3087_v40 = vpop.f32.mrb[81].mxu1  ;;  %v14291_v10 = vld [vmem:[#allocation12 + $0x384] ss:$16 sps:$4 sm:$0xff]   ;;  %v14289_v28 = vld [vmem:[#allocation12 + $0x380] ss:$16 sps:$4 sm:$0xff]  }
 0x5ae   : > { %v3127_v32 = vadd.f32 %v3087_v40, %v15619_v4  ;;  %v3089_v31 = vpop.f32.mrb[82].mxu1  ;;  %v3247_v33 = vpack.c.bf16 %v3237_v20, %v3235_v48  ;;  %v14247_v4 = vld [vmem:[#allocation19] sm:$0xff]  }
 0x5af   : > { %v3184_v15 = vadd.f32 %v15654_v58, %v3126_v24  ;;  %v3090_v41 = vpop.f32.mrb[83].mxu1  ;;  %v14249_v58 = vld [vmem:[#allocation19 + $0x10] ss:$0 sps:$4 sm:$0xff]   ;;  %v14294_v8 = vld [vmem:[#allocation12 + $0x3a4] ss:$16 sps:$4 sm:$0xff]  }
 0x5b0   : > { %v3185_v17 = vadd.f32 %v15657_v59, %v3127_v32  ;;  %3289 = vmatprep.subr.bf16.mxu0 %v3247_v33  ;;  %v14255_v59 = vld [vmem:[#allocation12 + $0x204] ss:$16 sps:$4 sm:$0xff]   ;;  %v14292_v48 = vld [vmem:[#allocation12 + $0x3a0] ss:$16 sps:$4 sm:$0xff]  }
 0x5b1   : > { %v3220_v45 = vmax.f32 %v3184_v15, 0.0  ;;  %3290 = vmatpush1.bf16.msra.mxu0 %v3246_v23  ;;  %v14297_v18 = vld [vmem:[#allocation12 + $0x3c4] ss:$16 sps:$4 sm:$0xff]   ;;  %v14295_v19 = vld [vmem:[#allocation12 + $0x3c0] ss:$16 sps:$4 sm:$0xff]  }
 0x5b2   : > { %v3221_v56 = vmax.f32 %v3185_v17, 0.0  ;;  %v14300_v20 = vld [vmem:[#allocation12 + $0x3e4] ss:$16 sps:$4 sm:$0xff]   ;;  %v14298_v21 = vld [vmem:[#allocation12 + $0x3e0] ss:$16 sps:$4 sm:$0xff]  }
 0x5b3   : > { %v3238_v36 = vmax.f32 %v3218_v35, %v3220_v45 }
 0x5b4   : > { %v3239_v63 = vmax.f32 %v3219_v50, %v3221_v56 }
 0x5b5   : > { %v3248_v46 = vpack.c.bf16 %v3238_v36, %v3238_v36 }
 0x5b6   : > { %v3249_v37 = vpack.c.bf16 %v3239_v63, %v3239_v63 }
 0x5b7   : > { %v3278_v51 = vsel %vm1174_vm1, %v3248_v46, 0 }
 0x5b8   : > { %12499 = vmatprep.subr.msk.bf16.mxu0 %vm1174_vm1, %v3249_v37 }
 0x5b9   : > { %3292 = vmatpush1.bf16.msra.mxu0 %v3278_v51 }
 0x5ba   : > { %3372 = vmatprep.subr.bf16.mxu0 %v15675_v13  ;;  %v14253_v13 = vld [vmem:[#allocation12 + $0x200] ss:$16 sps:$4 sm:$0xff]  }
 0x5bc   : > { %12500 = vmatmul.mubr.msk.bf16.vlgmr.msra.gmra.mrb[24].mxu0 %vm1158_vm2, %v14247_v4 }
 0x5bd   : > { %3373 = vmatpush1.bf16.msra.mxu0 %v15670_v26  ;;  %3325 = vmatprep.mubr.bf16.mxu0 %v14946_v0  ;;  %v14250_v26 = vld [vmem:[#allocation19 + $0x14] sm:$0xff]  }
 0x5be   : > { %3374 = vmatprep.subr.bf16.mxu0 %v15693_v42  ;;  %v14256_v42 = vld [vmem:[#allocation12 + $0x220] ss:$16 sps:$4 sm:$0xff]  }
 0x5c1   : > { %3375 = vmatpush1.bf16.msra.mxu0 %v15687_v2  ;;  %v14258_v2 = vld [vmem:[#allocation12 + $0x224] ss:$16 sps:$4 sm:$0xff]  }
 0x5c2   : > { %3376 = vmatprep.subr.bf16.mxu0 %v3245_v6  ;;  %v14274_v6 = vld [vmem:[#allocation12 + $0x2e0] ss:$16 sps:$4 sm:$0xff]  }
 0x5c4   : > { %12501 = vmatmul.mubr.msk.bf16.gmra.mrb[28].mxu0 %vm1158_vm2, %v14248_v57 }
 0x5c5   : > { %3377 = vmatpush1.bf16.msra.mxu0 %v3244_v52  ;;  %3335 = vmatprep.mubr.bf16.mxu0 %v14946_v0  ;;  %v14265_v52 = vld [vmem:[#allocation12 + $0x280] ss:$16 sps:$4 sm:$0xff]  }
 0x5c6   : > { %3378 = vmatprep.subr.bf16.mxu0 %v3247_v33 }
 0x5c9   : > { %3379 = vmatpush1.bf16.msra.mxu0 %v3246_v23 }
 0x5ca   : > { %12506 = vmatprep.subr.msk.bf16.mxu0 %vm1174_vm1, %v3249_v37 }
 0x5cc   : > { %12502 = vmatmul.mubr.msk.bf16.gmra.mrb[32].mxu0 %vm1158_vm2, %v14249_v58 }
 0x5cd   : > { %3381 = vmatpush1.bf16.msra.mxu0 %v3278_v51  ;;  %3404 = vmatprep.mubr.bf16.mxu0 %v14946_v0 }
 0x5ce   : > { %3978 = vmatprep.subr.bf16.mxu0 %v14255_v59 }
 0x5d4   : > { %12507 = vmatmul.mubr.msk.bf16.vlgmr.msra.gmra.mrb[36].mxu0 %vm1158_vm2, %v14250_v26 }
 0x5d5   : > { %3414 = vmatprep.mubr.bf16.mxu0 %v14946_v0  ;;  %3979 = vmatpush1.bf16.msra.mxu0 %v14253_v13 }
 0x5d6   : > { %3980 = vmatprep.subr.bf16.mxu0 %v14258_v2 }
 0x5d9   : > { %3981 = vmatpush1.bf16.msra.mxu0 %v14256_v42 }
 0x5da   : > { %3982 = vmatprep.subr.bf16.mxu0 %v14261_v9 }
 0x5dc   : > { %12508 = vmatmul.mubr.msk.bf16.gmra.mrb[40].mxu0 %vm1158_vm2, %v14251_v30 }
 0x5dd   : > { %3424 = vmatprep.mubr.bf16.mxu0 %v14946_v0  ;;  %3983 = vmatpush1.bf16.msra.mxu0 %v14259_v47 }
 0x5de   : > { %3984 = vmatprep.subr.bf16.mxu0 %v14264_v34 }
 0x5e1   : > { %3985 = vmatpush1.bf16.msra.mxu0 %v14262_v49 }
 0x5e2   : > { %3986 = vmatprep.subr.bf16.mxu0 %v14267_v38 }
 0x5e4   : > { %12509 = vmatmul.mubr.msk.bf16.gmra.mrb[44].mxu0 %vm1158_vm2, %v14252_v16 }
 0x5e5   : > { %3987 = vmatpush1.bf16.msra.mxu0 %v14265_v52 }
 0x5e6   : > { %3988 = vmatprep.subr.bf16.mxu0 %v14270_v29 }
 0x5e9   : > { %3989 = vmatpush1.bf16.msra.mxu0 %v14268_v53 }
 0x5ea   : > { %3990 = vmatprep.subr.bf16.mxu0 %v14273_v54 }
 0x5ed   : > { %3991 = vmatpush1.bf16.msra.mxu0 %v14271_v60 }
 0x5ee   : > { %3992 = vmatprep.subr.bf16.mxu0 %v14276_v27 }
 0x5f1   : > { %3993 = vmatpush1.bf16.msra.mxu0 %v14274_v6 }
 0x5f2   : > { %3994 = vmatprep.subr.bf16.mxu0 %v14279_v61 }
 0x5f5   : > { %3995 = vmatpush1.bf16.msra.mxu0 %v14277_v62 }
 0x5f6   : > { %3996 = vmatprep.subr.bf16.mxu0 %v14282_v43 }
 0x5f9   : > { %3997 = vmatpush1.bf16.msra.mxu0 %v14280_v1 }
 0x5fa   : > { %3998 = vmatprep.subr.bf16.mxu0 %v14285_v39 }
 0x5fd   : > { %3999 = vmatpush1.bf16.msra.mxu0 %v14283_v3 }
 0x5fe   : > { %4000 = vmatprep.subr.bf16.mxu0 %v14288_v44 }
 0x601   : > { %4001 = vmatpush1.bf16.msra.mxu0 %v14286_v7 }
 0x602   : > { %4002 = vmatprep.subr.bf16.mxu0 %v14291_v10 }
 0x605   : > { %4003 = vmatpush1.bf16.msra.mxu0 %v14289_v28 }
 0x606   : > { %4004 = vmatprep.subr.bf16.mxu0 %v14294_v8 }
 0x609   : > { %4005 = vmatpush1.bf16.msra.mxu0 %v14292_v48 }
 0x60a   : > { %4006 = vmatprep.subr.bf16.mxu0 %v14297_v18  ;;  %v14301_v18 = vld [vmem:[#allocation12 + $0x208] ss:$16 sps:$4 sm:$0xff]  }
 0x60d   : > { %4007 = vmatpush1.bf16.msra.mxu0 %v14295_v19 }
 0x60e   : > { %4008 = vmatprep.subr.bf16.mxu0 %v14300_v20 }
 0x611   : > { %4009 = vmatpush1.bf16.msra.mxu0 %v14298_v21  ;;  %v14306_v21 = vld [vmem:[#allocation12 + $0x22c] ss:$16 sps:$4 sm:$0xff]  }
 0x612   : > { %4039 = vmatprep.subr.bf16.mxu0 %v14303_v22 }
 0x68f   : > { %v3317_v23 = vpop.f32.mrb[24].mxu0 }
 0x690   : > { %v3319_v24 = vpop.f32.mrb[25].mxu0 }
 0x691   : > { %v3321_v40 = vpop.f32.mrb[26].mxu0 }
 0x692   : > { %v3323_v25 = vpop.f32.mrb[27].mxu0 }
 0x697   : > { %v3327_v32 = vpop.f32.mrb[28].mxu0 }
 0x698   : > { %v3329_v31 = vpop.f32.mrb[29].mxu0 }
 0x699   : > { %v3331_v33 = vpop.f32.mrb[30].mxu0 }
 0x69a   : > { %v3333_v15 = vpop.f32.mrb[31].mxu0 }
 0x69f   : > { %v3337_v41 = vpop.f32.mrb[32].mxu0 }
 0x6a0   : > { %v3339_v17 = vpop.f32.mrb[33].mxu0 }
 0x6a1   : > { %v3341_v35 = vpop.f32.mrb[34].mxu0 }
 0x6a2   : > { %v3342_v45 = vpop.f32.mrb[35].mxu0 }
 0x6a7   : > { %v3406_v50 = vpop.f32.mrb[36].mxu0 }
 0x6a8   : > { %v3433_v56 = vmax.f32 %v3317_v23, %v3406_v50  ;;  %v3408_v36 = vpop.f32.mrb[37].mxu0  ;;  %v14304_v23 = vld [vmem:[#allocation12 + $0x228] ss:$16 sps:$4 sm:$0xff]  }
 0x6a9   : > { %v3434_v63 = vmax.f32 %v3319_v24, %v3408_v36  ;;  %v3410_v46 = vpop.f32.mrb[38].mxu0  ;;  %v14309_v24 = vld [vmem:[#allocation12 + $0x24c] ss:$16 sps:$4 sm:$0xff]  }
 0x6aa   : > { %3443 = vst [vmem:[#allocation3] sm:$0xff] %v3433_v56  ;;  %v15737_v37 = vmax.f32 %v3321_v40, %v3410_v46  ;;  %v3412_v51 = vpop.f32.mrb[39].mxu0 }
 0x6ab   : > { %3444 = vst [vmem:[#allocation3 + $0x8] sm:$0xff] %v3434_v63  ;;  %v15739_v4 = vmax.f32 %v3323_v25, %v3412_v51  ;;  %v14315_v51 = vld [vmem:[#allocation12 + $0x28c] ss:$16 sps:$4 sm:$0xff]  }
 0x6ac   : > { %v15742_v57 = vpack.c.bf16 %v15737_v37, %v3433_v56  ;;  %v14310_v56 = vld [vmem:[#allocation12 + $0x268] ss:$16 sps:$4 sm:$0xff]  }
 0x6ad   : > { %v15745_v58 = vpack.c.bf16 %v15739_v4, %v3434_v63 }
 0x6af   : > { %v3416_v59 = vpop.f32.mrb[40].mxu0 }
 0x6b0   : > { %v3437_v26 = vmax.f32 %v3327_v32, %v3416_v59  ;;  %v3418_v13 = vpop.f32.mrb[41].mxu0  ;;  %v14307_v32 = vld [vmem:[#allocation12 + $0x248] ss:$16 sps:$4 sm:$0xff]  }
 0x6b1   : > { %v3438_v2 = vmax.f32 %v3329_v31, %v3418_v13  ;;  %v3420_v42 = vpop.f32.mrb[42].mxu0  ;;  %v3533_v9 = vld [vmem:[#allocation3] sm:$0xfe] }
 0x6b2   : > { %v3439_v30 = vmax.f32 %v3331_v33, %v3420_v42  ;;  %v3422_v47 = vpop.f32.mrb[43].mxu0  ;;  %v3534_v16 = vld [vmem:[#allocation3 + $0x8] sm:$0xfe]  ;;  %v3537_v34 = vpack.c.bf16 %v15737_v37, %v3533_v9  ;;  %v14318_v9 = vld [vmem:[#allocation12 + $0x2ac] ss:$16 sps:$4 sm:$0xff]  }
 0x6b3   : > { %v3440_v49 = vmax.f32 %v3333_v15, %v3422_v47  ;;  %v3538_v38 = vpack.c.bf16 %v15739_v4, %v3534_v16  ;;  %v14312_v15 = vld [vmem:[#allocation12 + $0x26c] ss:$16 sps:$4 sm:$0xff]   ;;  %v14313_v42 = vld [vmem:[#allocation12 + $0x288] ss:$16 sps:$4 sm:$0xff]  }
 0x6b4   : > { %v15749_v52 = vpack.c.bf16 %v3439_v30, %v3437_v26  ;;  %v3609_v29 = vshll.u32 %v3537_v34, 16  ;;  %v3607_v60 = vshrl.u32 %v3537_v34, 16  ;;  %v14316_v30 = vld [vmem:[#allocation12 + $0x2a8] ss:$16 sps:$4 sm:$0xff]   ;;  %v14321_v16 = vld [vmem:[#allocation12 + $0x2cc] ss:$16 sps:$4 sm:$0xff]  }
 0x6b5   : > { %v15751_v53 = vpack.c.bf16 %v3440_v49, %v3438_v2  ;;  %v3621_v54 = vshll.u32 %v3538_v38, 16  ;;  %v3619_v62 = vshrl.u32 %v3538_v38, 16  ;;  %v14319_v49 = vld [vmem:[#allocation12 + $0x2c8] ss:$16 sps:$4 sm:$0xff]   ;;  %v14324_v38 = vld [vmem:[#allocation12 + $0x2ec] ss:$16 sps:$4 sm:$0xff]  }
 0x6b6   : > { %v3611_v27 = vrot.slane %v3609_v29, 1  ;;  %v3614_v6 = vshll.u32 %v15749_v52, 16  ;;  %v3630_v45 = vshrl.u32 %v15749_v52, 16  ;;  %v14322_v29 = vld [vmem:[#allocation12 + $0x2e8] ss:$16 sps:$4 sm:$0xff]  }
 0x6b7   : > { %v3426_v61 = vpop.f32.mrb[44].mxu0  ;;  %v3623_v43 = vrot.slane %v3621_v54, 1  ;;  %v3626_v1 = vshll.u32 %v15751_v53, 16  ;;  %v14327_v54 = vld [vmem:[#allocation12 + $0x30c] ss:$16 sps:$4 sm:$0xff]  }
 0x6b8   : > { %v3441_v39 = vmax.f32 %v3337_v41, %v3426_v61  ;;  %v3428_v3 = vpop.f32.mrb[45].mxu0  ;;  %v3612_v44 = vor.u32 %v3611_v27, %v3607_v60  ;;  %v3616_v7 = vrot.slane %v3614_v6, 1  ;;  %v14325_v60 = vld [vmem:[#allocation12 + $0x308] ss:$16 sps:$4 sm:$0xff]   ;;  %v14330_v27 = vld [vmem:[#allocation12 + $0x32c] ss:$16 sps:$4 sm:$0xff]  }
 0x6b9   : > { %v15755_v10 = vmax.f32 %v3339_v17, %v3428_v3  ;;  %v3624_v28 = vor.u32 %v3623_v43, %v3619_v62  ;;  %v3628_v8 = vrot.slane %v3626_v1, 1  ;;  %v3430_v48 = vpop.f32.mrb[46].mxu0  ;;  %v3638_v17 = vshrl.u32 %v15751_v53, 16  ;;  %v14328_v6 = vld [vmem:[#allocation12 + $0x328] ss:$16 sps:$4 sm:$0xff]  }
 0x6ba   : > { %3451 = vst [vmem:[#allocation3 + $0x40] sm:$0xff] %v3441_v39  ;;  %v3431_v19 = vpop.f32.mrb[47].mxu0  ;;  %v15760_v22 = vsel %vm1445_vm3, %v3612_v44, %v3616_v7  ;;  %v3632_v59 = vor.u32 %v3630_v45, %v3616_v7  ;;  %v14333_v61 = vld [vmem:[#allocation12 + $0x34c] ss:$16 sps:$4 sm:$0xff]   ;;  %v14331_v62 = vld [vmem:[#allocation12 + $0x348] ss:$16 sps:$4 sm:$0xff]  }
 0x6bb   : > { %3452 = vst [vmem:[#allocation3 + $0x48] sm:$0xff] %v15755_v10  ;;  %v3629_v20 = vsel %vm1445_vm3, %v3624_v28, %v3628_v8  ;;  %v3640_v36 = vor.u32 %v3638_v17, %v3628_v8  ;;  %v14336_v43 = vld [vmem:[#allocation12 + $0x36c] ss:$16 sps:$4 sm:$0xff]   ;;  %v14334_v1 = vld [vmem:[#allocation12 + $0x368] ss:$16 sps:$4 sm:$0xff]  }
 0x6bc   : > { %4010 = vmatprep.mubr.bf16.mxu0 %v3629_v20  ;;  %v14339_v39 = vld [vmem:[#allocation12 + $0x38c] ss:$16 sps:$4 sm:$0xff]   ;;  %v14337_v3 = vld [vmem:[#allocation12 + $0x388] ss:$16 sps:$4 sm:$0xff]   ;;  %v14351_v19 = vld [vmem:[#allocation12 + $0x4] ss:$16 sps:$4 sm:$0xff]  }
 0x6bd   : > { %4011 = vmatmul.mubr.bf16.vlgmr.msra.gmra.mrb[48].mxu0 %v15760_v22  ;;  %v14342_v44 = vld [vmem:[#allocation12 + $0x3ac] ss:$16 sps:$4 sm:$0xff]   ;;  %v14340_v7 = vld [vmem:[#allocation12 + $0x3a8] ss:$16 sps:$4 sm:$0xff]   ;;  %v14367_v17 = vld [vmem:[#allocation12 + $0xc0] ss:$16 sps:$4 sm:$0xff]  }
 0x6be   : > { %4040 = vmatpush1.bf16.msra.mxu0 %v14301_v18  ;;  %v14345_v28 = vld [vmem:[#allocation12 + $0x3cc] ss:$16 sps:$4 sm:$0xff]   ;;  %v14343_v8 = vld [vmem:[#allocation12 + $0x3c8] ss:$16 sps:$4 sm:$0xff]   ;;  %v14370_v45 = vld [vmem:[#allocation12 + $0xe0] ss:$16 sps:$4 sm:$0xff]  }
 0x6bf   : > { %4041 = vmatprep.subr.bf16.mxu0 %v14306_v21  ;;  %v14348_v48 = vld [vmem:[#allocation12 + $0x3ec] ss:$16 sps:$4 sm:$0xff]   ;;  %v14346_v18 = vld [vmem:[#allocation12 + $0x3e8] ss:$16 sps:$4 sm:$0xff]   ;;  %v14354_v21 = vld [vmem:[#allocation12 + $0x24] ss:$16 sps:$4 sm:$0xff]  }
 0x6c1   : > { %v3535_v40 = vld [vmem:[#allocation3 + $0x40] sm:$0x7f] }
 0x6c2   : > { %4042 = vmatpush1.bf16.msra.mxu0 %v14304_v23  ;;  %v3536_v25 = vld [vmem:[#allocation3 + $0x48] sm:$0x7f]  ;;  %v3539_v31 = vpack.c.bf16 %v3535_v40, %v3535_v40 }
 0x6c3   : > { %v3540_v33 = vpack.c.bf16 %v3536_v25, %v3536_v25  ;;  %4043 = vmatprep.subr.bf16.mxu0 %v14309_v24  ;;  %v14352_v23 = vld [vmem:[#allocation12 + $0x20] ss:$16 sps:$4 sm:$0xff]   ;;  %v14357_v24 = vld [vmem:[#allocation12 + $0x44] ss:$16 sps:$4 sm:$0xff]  }
 0x6c4   : > { %v3634_v41 = vshll.u32 %v3539_v31, 16  ;;  %v3646_v47 = vshrl.u32 %v3539_v31, 16  ;;  %v14355_v40 = vld [vmem:[#allocation12 + $0x40] ss:$16 sps:$4 sm:$0xff]   ;;  %v14360_v25 = vld [vmem:[#allocation12 + $0x64] ss:$16 sps:$4 sm:$0xff]  }
 0x6c5   : > { %v3642_v35 = vshll.u32 %v3540_v33, 16  ;;  %v3649_v46 = vshrl.u32 %v3540_v33, 16  ;;  %v14363_v31 = vld [vmem:[#allocation12 + $0x84] ss:$16 sps:$4 sm:$0xff]   ;;  %v14361_v33 = vld [vmem:[#allocation12 + $0x80] ss:$16 sps:$4 sm:$0xff]  }
 0x6c6   : > { %v3636_v50 = vrot.slane %v3634_v41, 1  ;;  %4044 = vmatpush1.bf16.msra.mxu0 %v14307_v32  ;;  %v14358_v32 = vld [vmem:[#allocation12 + $0x60] ss:$16 sps:$4 sm:$0xff]   ;;  %v14369_v41 = vld [vmem:[#allocation12 + $0xc4] ss:$16 sps:$4 sm:$0xff]  }
 0x6c7   : > { %v3644_v63 = vrot.slane %v3642_v35, 1  ;;  %4045 = vmatprep.subr.bf16.mxu0 %v14312_v15  ;;  %v14364_v15 = vld [vmem:[#allocation12 + $0xa0] ss:$16 sps:$4 sm:$0xff]   ;;  %v14372_v35 = vld [vmem:[#allocation12 + $0xe4] ss:$16 sps:$4 sm:$0xff]  }
 0x6c8   : > { %v15769_v2 = vsel %vm1445_vm3, %v3632_v59, %v3636_v50  ;;  %v15773_v34 = vor.u32 %v3646_v47, %v3636_v50  ;;  %v14375_v50 = vld [vmem:[#allocation12 + $0x104] ss:$16 sps:$4 sm:$0xff]   ;;  %v14391_v47 = vld [vmem:[#allocation12 + $0x1c0] ss:$16 sps:$4 sm:$0xff]  }
 0x6c9   : > { %v3645_v26 = vsel %vm1445_vm3, %v3640_v36, %v3644_v63  ;;  %v15766_v13 = vor.u32 %v3649_v46, %v3644_v63  ;;  %v14378_v36 = vld [vmem:[#allocation12 + $0x124] ss:$16 sps:$4 sm:$0xff]   ;;  %v14376_v63 = vld [vmem:[#allocation12 + $0x120] ss:$16 sps:$4 sm:$0xff]  }
 0x6ca   : > { %4020 = vmatprep.mubr.bf16.mxu0 %v3645_v26  ;;  %4046 = vmatpush1.bf16.msra.mxu0 %v14310_v56  ;;  %v14373_v56 = vld [vmem:[#allocation12 + $0x100] ss:$16 sps:$4 sm:$0xff]   ;;  %v14381_v46 = vld [vmem:[#allocation12 + $0x144] ss:$16 sps:$4 sm:$0xff]  }
 0x6cb   : > { %4021 = vmatmul.mubr.bf16.gmra.mrb[52].mxu0 %v15769_v2  ;;  %4047 = vmatprep.subr.bf16.mxu0 %v14315_v51  ;;  %v14379_v51 = vld [vmem:[#allocation12 + $0x140] ss:$16 sps:$4 sm:$0xff]   ;;  %v14384_v59 = vld [vmem:[#allocation12 + $0x164] ss:$16 sps:$4 sm:$0xff]  }
 0x6cc   : > { %4030 = vmatprep.mubr.bf16.mxu0 %v15766_v13 }
 0x6ce   : > { %4048 = vmatpush1.bf16.msra.mxu0 %v14313_v42  ;;  %v14390_v42 = vld [vmem:[#allocation12 + $0x1a4] ss:$16 sps:$4 sm:$0xff]  }
 0x6cf   : > { %4049 = vmatprep.subr.bf16.mxu0 %v14318_v9  ;;  %v14388_v9 = vld [vmem:[#allocation12 + $0x1a0] ss:$16 sps:$4 sm:$0xff]  }
 0x6d2   : > { %4050 = vmatpush1.bf16.msra.mxu0 %v14316_v30  ;;  %v14393_v30 = vld [vmem:[#allocation12 + $0x1c4] ss:$16 sps:$4 sm:$0xff]  }
 0x6d3   : > { %4031 = vmatmul.mubr.bf16.gmra.mrb[56].mxu0 %v15773_v34  ;;  %4051 = vmatprep.subr.bf16.mxu0 %v14321_v16  ;;  %v14396_v16 = vld [vmem:[#allocation12 + $0x1e4] ss:$16 sps:$4 sm:$0xff]  }
 0x6d4   : > { %4071 = vmatprep.mubr.bf16.mxu0 %v3629_v20  ;;  %v14349_v20 = vld [vmem:[#allocation12] ss:$16 sps:$4 sm:$0xff]  }
 0x6d6   : > { %4052 = vmatpush1.bf16.msra.mxu0 %v14319_v49  ;;  %v14399_v49 = vld [vmem:[#allocation12 + $0xc] ss:$16 sps:$4 sm:$0xff]  }
 0x6d7   : > { %4053 = vmatprep.subr.bf16.mxu0 %v14324_v38  ;;  %v14397_v38 = vld [vmem:[#allocation12 + $0x8] ss:$16 sps:$4 sm:$0xff]  }
 0x6da   : > { %4054 = vmatpush1.bf16.msra.mxu0 %v14322_v29  ;;  %v14402_v29 = vld [vmem:[#allocation12 + $0x2c] ss:$16 sps:$4 sm:$0xff]  }
 0x6db   : > { %4055 = vmatprep.subr.bf16.mxu0 %v14327_v54  ;;  %v14400_v54 = vld [vmem:[#allocation12 + $0x28] ss:$16 sps:$4 sm:$0xff]  }
 0x6de   : > { %4056 = vmatpush1.bf16.msra.mxu0 %v14325_v60  ;;  %v14405_v60 = vld [vmem:[#allocation12 + $0x4c] ss:$16 sps:$4 sm:$0xff]  }
 0x6df   : > { %4057 = vmatprep.subr.bf16.mxu0 %v14330_v27  ;;  %v3462_v27 = vld [vmem:[#allocation3 + $0x48] sm:$0x3f] }
 0x6e2   : > { %4058 = vmatpush1.bf16.msra.mxu0 %v14328_v6  ;;  %v14403_v6 = vld [vmem:[#allocation12 + $0x48] ss:$16 sps:$4 sm:$0xff]  }
 0x6e3   : > { %4059 = vmatprep.subr.bf16.mxu0 %v14333_v61  ;;  %v14408_v61 = vld [vmem:[#allocation12 + $0x6c] ss:$16 sps:$4 sm:$0xff]  }
 0x6e6   : > { %4060 = vmatpush1.bf16.msra.mxu0 %v14331_v62  ;;  %v15783_v62 = vpack.c.bf16 %v3462_v27, %v3462_v27  ;;  %v14474_v27 = vld [vmem:[#allocation12 + $0x524] ss:$16 sps:$4 sm:$0xff]  }
 0x6e7   : > { %4061 = vmatprep.subr.bf16.mxu0 %v14336_v43  ;;  %v14406_v43 = vld [vmem:[#allocation12 + $0x68] ss:$16 sps:$4 sm:$0xff]  }
 0x6ea   : > { %4062 = vmatpush1.bf16.msra.mxu0 %v14334_v1  ;;  %v14411_v1 = vld [vmem:[#allocation12 + $0x8c] ss:$16 sps:$4 sm:$0xff]  }
 0x6eb   : > { %4063 = vmatprep.subr.bf16.mxu0 %v14339_v39  ;;  %v3461_v39 = vld [vmem:[#allocation3 + $0x40] sm:$0x3f] }
 0x6ee   : > { %4064 = vmatpush1.bf16.msra.mxu0 %v14337_v3  ;;  %v14409_v3 = vld [vmem:[#allocation12 + $0x88] ss:$16 sps:$4 sm:$0xff]  }
 0x6ef   : > { %4065 = vmatprep.subr.bf16.mxu0 %v14342_v44  ;;  %v15787_v44 = vpack.c.bf16 %v3461_v39, %v3461_v39  ;;  %v14478_v39 = vld [vmem:[#allocation12 + $0x560] ss:$16 sps:$4 sm:$0xff]  }
 0x6f2   : > { %4066 = vmatpush1.bf16.msra.mxu0 %v14340_v7  ;;  %v14414_v7 = vld [vmem:[#allocation12 + $0xac] ss:$16 sps:$4 sm:$0xff]  }
 0x6f3   : > { %4067 = vmatprep.subr.bf16.mxu0 %v14345_v28  ;;  %v14412_v28 = vld [vmem:[#allocation12 + $0xa8] ss:$16 sps:$4 sm:$0xff]  }
 0x6f6   : > { %4068 = vmatpush1.bf16.msra.mxu0 %v14343_v8  ;;  %v14417_v8 = vld [vmem:[#allocation12 + $0xcc] ss:$16 sps:$4 sm:$0xff]  }
 0x6f7   : > { %4069 = vmatprep.subr.bf16.mxu0 %v14348_v48  ;;  %v14415_v48 = vld [vmem:[#allocation12 + $0xc8] ss:$16 sps:$4 sm:$0xff]  }
 0x6fa   : > { %4070 = vmatpush1.bf16.msra.mxu0 %v14346_v18  ;;  %v14420_v18 = vld [vmem:[#allocation12 + $0xec] ss:$16 sps:$4 sm:$0xff]  }
 0x6fb   : > { %4420 = vmatprep.subr.bf16.mxu0 %v14351_v19  ;;  %v14418_v19 = vld [vmem:[#allocation12 + $0xe8] ss:$16 sps:$4 sm:$0xff]  }
 0x6fd   : > { %4072 = vmatmul.mubr.bf16.vlgmr.msra.gmra.mrb[60].mxu0 %v15760_v22  ;;  %v14366_v22 = vld [vmem:[#allocation12 + $0xa4] ss:$16 sps:$4 sm:$0xff]  }
 0x6fe   : > { %4081 = vmatprep.mubr.bf16.mxu0 %v3645_v26  ;;  %4421 = vmatpush1.bf16.msra.mxu0 %v14349_v20  ;;  %v14382_v26 = vld [vmem:[#allocation12 + $0x160] ss:$16 sps:$4 sm:$0xff]   ;;  %v14423_v20 = vld [vmem:[#allocation12 + $0x10c] ss:$16 sps:$4 sm:$0xff]  }
 0x6ff   : > { %4422 = vmatprep.subr.bf16.mxu0 %v14354_v21  ;;  %v14421_v21 = vld [vmem:[#allocation12 + $0x108] ss:$16 sps:$4 sm:$0xff]  }
 0x702   : > { %4423 = vmatpush1.bf16.msra.mxu0 %v14352_v23  ;;  %v14426_v23 = vld [vmem:[#allocation12 + $0x12c] ss:$16 sps:$4 sm:$0xff]  }
 0x703   : > { %4424 = vmatprep.subr.bf16.mxu0 %v14357_v24  ;;  %v14424_v24 = vld [vmem:[#allocation12 + $0x128] ss:$16 sps:$4 sm:$0xff]  }
 0x705   : > { %4082 = vmatmul.mubr.bf16.gmra.mrb[64].mxu0 %v15769_v2  ;;  %v14385_v2 = vld [vmem:[#allocation12 + $0x180] ss:$16 sps:$4 sm:$0xff]  }
 0x706   : > { %4091 = vmatprep.mubr.bf16.mxu0 %v15766_v13  ;;  %4425 = vmatpush1.bf16.msra.mxu0 %v14355_v40  ;;  %v14387_v13 = vld [vmem:[#allocation12 + $0x184] ss:$16 sps:$4 sm:$0xff]   ;;  %v14429_v40 = vld [vmem:[#allocation12 + $0x14c] ss:$16 sps:$4 sm:$0xff]  }
 0x707   : > { %4426 = vmatprep.subr.bf16.mxu0 %v14360_v25  ;;  %v14432_v25 = vld [vmem:[#allocation12 + $0x16c] ss:$16 sps:$4 sm:$0xff]  }
 0x70a   : > { %4427 = vmatpush1.bf16.msra.mxu0 %v14358_v32  ;;  %v14430_v32 = vld [vmem:[#allocation12 + $0x168] ss:$16 sps:$4 sm:$0xff]  }
 0x70b   : > { %4428 = vmatprep.subr.bf16.mxu0 %v14363_v31  ;;  %v14435_v31 = vld [vmem:[#allocation12 + $0x18c] ss:$16 sps:$4 sm:$0xff]  }
 0x70d   : > { %4092 = vmatmul.mubr.bf16.gmra.mrb[68].mxu0 %v15773_v34  ;;  %v14394_v34 = vld [vmem:[#allocation12 + $0x1e0] ss:$16 sps:$4 sm:$0xff]  }
 0x70e   : > { %4429 = vmatpush1.bf16.msra.mxu0 %v14361_v33  ;;  %4452 = vmatprep.mubr.bf16.mxu0 %v15745_v58  ;;  %v14433_v33 = vld [vmem:[#allocation12 + $0x188] ss:$16 sps:$4 sm:$0xff]  }
 0x70f   : > { %4430 = vmatprep.subr.bf16.mxu0 %v14366_v22  ;;  %v14438_v22 = vld [vmem:[#allocation12 + $0x1ac] ss:$16 sps:$4 sm:$0xff]  }
 0x712   : > { %4431 = vmatpush1.bf16.msra.mxu0 %v14364_v15  ;;  %v14436_v15 = vld [vmem:[#allocation12 + $0x1a8] ss:$16 sps:$4 sm:$0xff]  }
 0x713   : > { %4432 = vmatprep.subr.bf16.mxu0 %v14369_v41  ;;  %v14441_v41 = vld [vmem:[#allocation12 + $0x1cc] ss:$16 sps:$4 sm:$0xff]  }
 0x716   : > { %4433 = vmatpush1.bf16.msra.mxu0 %v14367_v17  ;;  %v14439_v17 = vld [vmem:[#allocation12 + $0x1c8] ss:$16 sps:$4 sm:$0xff]  }
 0x717   : > { %4434 = vmatprep.subr.bf16.mxu0 %v14372_v35  ;;  %v14444_v35 = vld [vmem:[#allocation12 + $0x1ec] ss:$16 sps:$4 sm:$0xff]  }
 0x71a   : > { %4435 = vmatpush1.bf16.msra.mxu0 %v14370_v45  ;;  %v14442_v45 = vld [vmem:[#allocation12 + $0x1e8] ss:$16 sps:$4 sm:$0xff]  }
 0x71b   : > { %4436 = vmatprep.subr.bf16.mxu0 %v14375_v50  ;;  %v14447_v50 = vld [vmem:[#allocation12 + $0x404] ss:$16 sps:$4 sm:$0xff]  }
 0x71e   : > { %4437 = vmatpush1.bf16.msra.mxu0 %v14373_v56  ;;  %v14445_v56 = vld [vmem:[#allocation12 + $0x400] ss:$16 sps:$4 sm:$0xff]  }
 0x71f   : > { %4438 = vmatprep.subr.bf16.mxu0 %v14378_v36  ;;  %v14450_v36 = vld [vmem:[#allocation12 + $0x424] ss:$16 sps:$4 sm:$0xff]  }
 0x722   : > { %4439 = vmatpush1.bf16.msra.mxu0 %v14376_v63  ;;  %v14448_v63 = vld [vmem:[#allocation12 + $0x420] ss:$16 sps:$4 sm:$0xff]  }
 0x723   : > { %4440 = vmatprep.subr.bf16.mxu0 %v14381_v46  ;;  %v14453_v46 = vld [vmem:[#allocation12 + $0x444] ss:$16 sps:$4 sm:$0xff]  }
 0x726   : > { %4441 = vmatpush1.bf16.msra.mxu0 %v14379_v51  ;;  %v14451_v51 = vld [vmem:[#allocation12 + $0x440] ss:$16 sps:$4 sm:$0xff]  }
 0x727   : > { %4442 = vmatprep.subr.bf16.mxu0 %v14384_v59  ;;  %v14456_v59 = vld [vmem:[#allocation12 + $0x464] ss:$16 sps:$4 sm:$0xff]  }
 0x72a   : > { %4443 = vmatpush1.bf16.msra.mxu0 %v14382_v26  ;;  %v4543_v26 = vld [vmem:[#allocation3 + $0x8] sm:$0xfc] }
 0x72b   : > { %4444 = vmatprep.subr.bf16.mxu0 %v14387_v13  ;;  %v14454_v13 = vld [vmem:[#allocation12 + $0x460] ss:$16 sps:$4 sm:$0xff]  }
 0x72e   : > { %4445 = vmatpush1.bf16.msra.mxu0 %v14385_v2  ;;  %v14459_v2 = vld [vmem:[#allocation12 + $0x484] ss:$16 sps:$4 sm:$0xff]  }
 0x72f   : > { %4446 = vmatprep.subr.bf16.mxu0 %v14390_v42  ;;  %v4625_v42 = vrot.slane %v15751_v53, 1 }
 0x732   : > { %4447 = vmatpush1.bf16.msra.mxu0 %v14388_v9  ;;  %v14457_v9 = vld [vmem:[#allocation12 + $0x480] ss:$16 sps:$4 sm:$0xff]  }
 0x733   : > { %4448 = vmatprep.subr.bf16.mxu0 %v14393_v30 }
 0x736   : > { %4449 = vmatpush1.bf16.msra.mxu0 %v14391_v47  ;;  %v14462_v47 = vld [vmem:[#allocation12 + $0x4a4] ss:$16 sps:$4 sm:$0xff]  }
 0x737   : > { %4450 = vmatprep.subr.bf16.mxu0 %v14396_v16 }
 0x73a   : > { %4451 = vmatpush1.bf16.msra.mxu0 %v14394_v34  ;;  %v14460_v34 = vld [vmem:[#allocation12 + $0x4a0] ss:$16 sps:$4 sm:$0xff]  }
 0x73b   : > { %4481 = vmatprep.subr.bf16.mxu0 %v14399_v49  ;;  %v14463_v49 = vld [vmem:[#allocation12 + $0x4c0] ss:$16 sps:$4 sm:$0xff]  }
 0x73d   : > { %4453 = vmatmul.mubr.bf16.vlgmr.msra.gmra.mrb[48].mxu0 %v15742_v57 }
 0x73e   : > { %4462 = vmatprep.mubr.bf16.mxu0 %v15751_v53  ;;  %4482 = vmatpush1.bf16.msra.mxu0 %v14397_v38  ;;  %v14468_v38 = vld [vmem:[#allocation12 + $0x4e4] ss:$16 sps:$4 sm:$0xff]  }
 0x73f   : > { %4483 = vmatprep.subr.bf16.mxu0 %v14402_v29  ;;  %v14466_v29 = vld [vmem:[#allocation12 + $0x4e0] ss:$16 sps:$4 sm:$0xff]  }
 0x742   : > { %4484 = vmatpush1.bf16.msra.mxu0 %v14400_v54  ;;  %v14471_v54 = vld [vmem:[#allocation12 + $0x504] ss:$16 sps:$4 sm:$0xff]  }
 0x743   : > { %4485 = vmatprep.subr.bf16.mxu0 %v14405_v60  ;;  %v14469_v60 = vld [vmem:[#allocation12 + $0x500] ss:$16 sps:$4 sm:$0xff]  }
 0x745   : > { %4463 = vmatmul.mubr.bf16.gmra.mrb[52].mxu0 %v15749_v52 }
 0x746   : > { %4472 = vmatprep.mubr.bf16.mxu0 %v15783_v62  ;;  %4486 = vmatpush1.bf16.msra.mxu0 %v14403_v6  ;;  %v14472_v6 = vld [vmem:[#allocation12 + $0x520] ss:$16 sps:$4 sm:$0xff]  }
 0x747   : > { %4487 = vmatprep.subr.bf16.mxu0 %v14408_v61  ;;  %v14477_v61 = vld [vmem:[#allocation12 + $0x544] ss:$16 sps:$4 sm:$0xff]  }
 0x74a   : > { %4488 = vmatpush1.bf16.msra.mxu0 %v14406_v43  ;;  %v14480_v43 = vld [vmem:[#allocation12 + $0x564] ss:$16 sps:$4 sm:$0xff]  }
 0x74b   : > { %4489 = vmatprep.subr.bf16.mxu0 %v14411_v1 }
 0x74d   : > { %4473 = vmatmul.mubr.bf16.gmra.mrb[72].mxu0 %v15787_v44 }
 0x74e   : > { %4490 = vmatpush1.bf16.msra.mxu0 %v14409_v3  ;;  %4513 = vmatprep.mubr.bf16.mxu0 %v15745_v58  ;;  %v14427_v58 = vld [vmem:[#allocation12 + $0x148] ss:$16 sps:$4 sm:$0xff]  }
 0x74f   : > { %4491 = vmatprep.subr.bf16.mxu0 %v14414_v7 }
 0x752   : > { %4492 = vmatpush1.bf16.msra.mxu0 %v14412_v28 }
 0x753   : > { %4493 = vmatprep.subr.bf16.mxu0 %v14417_v8  ;;  %v14481_v8 = vld [vmem:[#allocation12 + $0x580] ss:$16 sps:$4 sm:$0xff]  }
 0x756   : > { %4494 = vmatpush1.bf16.msra.mxu0 %v14415_v48  ;;  %v14486_v48 = vld [vmem:[#allocation12 + $0x5a4] ss:$16 sps:$4 sm:$0xff]  }
 0x757   : > { %4495 = vmatprep.subr.bf16.mxu0 %v14420_v18  ;;  %v14484_v18 = vld [vmem:[#allocation12 + $0x5a0] ss:$16 sps:$4 sm:$0xff]  }
 0x75a   : > { %4496 = vmatpush1.bf16.msra.mxu0 %v14418_v19  ;;  %v14489_v19 = vld [vmem:[#allocation12 + $0x5c4] ss:$16 sps:$4 sm:$0xff]  }
 0x75b   : > { %4497 = vmatprep.subr.bf16.mxu0 %v14423_v20  ;;  %v14487_v20 = vld [vmem:[#allocation12 + $0x5c0] ss:$16 sps:$4 sm:$0xff]  }
 0x75e   : > { %4498 = vmatpush1.bf16.msra.mxu0 %v14421_v21  ;;  %v14492_v21 = vld [vmem:[#allocation12 + $0x5e4] ss:$16 sps:$4 sm:$0xff]  }
 0x75f   : > { %4499 = vmatprep.subr.bf16.mxu0 %v14426_v23  ;;  %v4542_v23 = vld [vmem:[#allocation3] sm:$0xfc] }
 0x762   : > { %4500 = vmatpush1.bf16.msra.mxu0 %v14424_v24  ;;  %v4549_v24 = vpack.c.bf16 %v15755_v10, %v15755_v10 }
 0x763   : > { %4501 = vmatprep.subr.bf16.mxu0 %v14429_v40  ;;  %v14490_v40 = vld [vmem:[#allocation12 + $0x5e0] ss:$16 sps:$4 sm:$0xff]  }
 0x766   : > { %4502 = vmatpush1.bf16.msra.mxu0 %v14427_v58  ;;  %v4546_v58 = vpack.c.bf16 %v15737_v37, %v4542_v23 }
 0x767   : > { %4503 = vmatprep.subr.bf16.mxu0 %v14432_v25  ;;  %v14495_v25 = vld [vmem:[#allocation12 + $0x40c] ss:$16 sps:$4 sm:$0xff]  }
 0x76a   : > { %4504 = vmatpush1.bf16.msra.mxu0 %v14430_v32  ;;  %v4622_v32 = vrot.slane %v15749_v52, 1 }
 0x76b   : > { %4505 = vmatprep.subr.bf16.mxu0 %v14435_v31  ;;  %v15812_v31 = vrot.slane %v4549_v24, 1 }
 0x76d   : > { %v15822_v37 = vsel %vm2581_vm4, %v4625_v42, %v15812_v31 }
 0x76e   : > { %4506 = vmatpush1.bf16.msra.mxu0 %v14433_v33  ;;  %v4544_v33 = vld [vmem:[#allocation3 + $0x40] sm:$0xff] }
 0x76f   : > { %4507 = vmatprep.subr.bf16.mxu0 %v14438_v22  ;;  %v4621_v22 = vrot.slane %v4546_v58, 1  ;;  %v4548_v10 = vpack.c.bf16 %v4544_v33, %v4544_v33 }
 0x772   : > { %4508 = vmatpush1.bf16.msra.mxu0 %v14436_v15  ;;  %v14493_v15 = vld [vmem:[#allocation12 + $0x408] ss:$16 sps:$4 sm:$0xff]  }
 0x773   : > { %4509 = vmatprep.subr.bf16.mxu0 %v14441_v41  ;;  %v14498_v41 = vld [vmem:[#allocation12 + $0x42c] ss:$16 sps:$4 sm:$0xff]  }
 0x776   : > { %4510 = vmatpush1.bf16.msra.mxu0 %v14439_v17  ;;  %v15815_v17 = vsel %vm2581_vm4, %v4621_v22, %v4622_v32 }
 0x777   : > { %4511 = vmatprep.subr.bf16.mxu0 %v14444_v35  ;;  %v14501_v35 = vld [vmem:[#allocation12 + $0x44c] ss:$16 sps:$4 sm:$0xff]  }
 0x77a   : > { %4512 = vmatpush1.bf16.msra.mxu0 %v14442_v45  ;;  %v15825_v45 = vrot.slane %v4548_v10, 1 }
 0x77b   : > { %4957 = vmatprep.subr.bf16.mxu0 %v14447_v50  ;;  %v14499_v50 = vld [vmem:[#allocation12 + $0x448] ss:$16 sps:$4 sm:$0xff]  }
 0x77d   : > { %4514 = vmatmul.mubr.bf16.vlgmr.msra.gmra.mrb[60].mxu0 %v15742_v57  ;;  %v4547_v57 = vpack.c.bf16 %v15739_v4, %v4543_v26  ;;  %v14465_v4 = vld [vmem:[#allocation12 + $0x4c4] ss:$16 sps:$4 sm:$0xff]   ;;  %v14513_v26 = vld [vmem:[#allocation12 + $0x4cc] ss:$16 sps:$4 sm:$0xff]  }
 0x77e   : > { %4523 = vmatprep.mubr.bf16.mxu0 %v15751_v53  ;;  %4958 = vmatpush1.bf16.msra.mxu0 %v14445_v56  ;;  %v14504_v56 = vld [vmem:[#allocation12 + $0x46c] ss:$16 sps:$4 sm:$0xff]   ;;  %v14502_v53 = vld [vmem:[#allocation12 + $0x468] ss:$16 sps:$4 sm:$0xff]  }
 0x77f   : > { %4959 = vmatprep.subr.bf16.mxu0 %v14450_v36  ;;  %v4624_v30 = vrot.slane %v4547_v57, 1  ;;  %v4628_v36 = vsel %vm2581_vm4, %v4622_v32, %v15825_v45  ;;  %v14514_v57 = vld [vmem:[#allocation12 + $0x4e8] ss:$16 sps:$4 sm:$0xff]   ;;  %v5661_v32 = vld [vmem:[#allocation15 + $0x808] sm:$0xff] }
 0x781   : > { %v15801_v16 = vsel %vm2581_vm4, %v4624_v30, %v4625_v42  ;;  %v14519_v42 = vld [vmem:[#allocation12 + $0x50c] ss:$16 sps:$4 sm:$0xff]  }
 0x782   : > { %4960 = vmatpush1.bf16.msra.mxu0 %v14448_v63  ;;  %v14507_v63 = vld [vmem:[#allocation12 + $0x48c] ss:$16 sps:$4 sm:$0xff]  }
 0x783   : > { %4961 = vmatprep.subr.bf16.mxu0 %v14453_v46  ;;  %v14505_v46 = vld [vmem:[#allocation12 + $0x488] ss:$16 sps:$4 sm:$0xff]   ;;  %v14522_v30 = vld [vmem:[#allocation12 + $0x52c] ss:$16 sps:$4 sm:$0xff]  }
 0x785   : > { %4524 = vmatmul.mubr.bf16.gmra.mrb[64].mxu0 %v15749_v52  ;;  %v14496_v52 = vld [vmem:[#allocation12 + $0x428] ss:$16 sps:$4 sm:$0xff]  }
 0x786   : > { %4533 = vmatprep.mubr.bf16.mxu0 %v15783_v62  ;;  %4962 = vmatpush1.bf16.msra.mxu0 %v14451_v51  ;;  %v14475_v62 = vld [vmem:[#allocation12 + $0x540] ss:$16 sps:$4 sm:$0xff]   ;;  %v14510_v51 = vld [vmem:[#allocation12 + $0x4ac] ss:$16 sps:$4 sm:$0xff]  }
 0x787   : > { %4963 = vmatprep.subr.bf16.mxu0 %v14456_v59  ;;  %v14508_v59 = vld [vmem:[#allocation12 + $0x4a8] ss:$16 sps:$4 sm:$0xff]  }
 0x78a   : > { %4964 = vmatpush1.bf16.msra.mxu0 %v14454_v13  ;;  %v14511_v13 = vld [vmem:[#allocation12 + $0x4c8] ss:$16 sps:$4 sm:$0xff]  }
 0x78b   : > { %4965 = vmatprep.subr.bf16.mxu0 %v14459_v2  ;;  %v14516_v2 = vld [vmem:[#allocation12 + $0x4ec] ss:$16 sps:$4 sm:$0xff]  }
 0x78d   : > { %4534 = vmatmul.mubr.bf16.gmra.mrb[76].mxu0 %v15787_v44  ;;  %v14483_v44 = vld [vmem:[#allocation12 + $0x584] ss:$16 sps:$4 sm:$0xff]  }
 0x78e   : > { %4966 = vmatpush1.bf16.msra.mxu0 %v14457_v9  ;;  %4989 = vmatprep.mubr.bf16.mxu0 %v15801_v16  ;;  %v14517_v9 = vld [vmem:[#allocation12 + $0x508] ss:$16 sps:$4 sm:$0xff]  }
 0x78f   : > { %4967 = vmatprep.subr.bf16.mxu0 %v14462_v47  ;;  %v14520_v47 = vld [vmem:[#allocation12 + $0x528] ss:$16 sps:$4 sm:$0xff]  }
 0x792   : > { %4968 = vmatpush1.bf16.msra.mxu0 %v14460_v34  ;;  %v14525_v34 = vld [vmem:[#allocation12 + $0x54c] ss:$16 sps:$4 sm:$0xff]  }
 0x793   : > { %4969 = vmatprep.subr.bf16.mxu0 %v14465_v4 }
 0x796   : > { %4970 = vmatpush1.bf16.msra.mxu0 %v14463_v49 }
 0x797   : > { %4971 = vmatprep.subr.bf16.mxu0 %v14468_v38  ;;  %v14523_v38 = vld [vmem:[#allocation12 + $0x548] ss:$16 sps:$4 sm:$0xff]  }
 0x79a   : > { %4972 = vmatpush1.bf16.msra.mxu0 %v14466_v29 }
 0x79b   : > { %4973 = vmatprep.subr.bf16.mxu0 %v14471_v54  ;;  %v14528_v54 = vld [vmem:[#allocation12 + $0x56c] ss:$16 sps:$4 sm:$0xff]  }
 0x79e   : > { %4974 = vmatpush1.bf16.msra.mxu0 %v14469_v60  ;;  %v14526_v60 = vld [vmem:[#allocation12 + $0x568] ss:$16 sps:$4 sm:$0xff]  }
 0x79f   : > { %4975 = vmatprep.subr.bf16.mxu0 %v14474_v27  ;;  %v14531_v27 = vld [vmem:[#allocation12 + $0x58c] ss:$16 sps:$4 sm:$0xff]  }
 0x7a2   : > { %4976 = vmatpush1.bf16.msra.mxu0 %v14472_v6  ;;  %v14529_v6 = vld [vmem:[#allocation12 + $0x588] ss:$16 sps:$4 sm:$0xff]  }
 0x7a3   : > { %4977 = vmatprep.subr.bf16.mxu0 %v14477_v61  ;;  %v14534_v61 = vld [vmem:[#allocation12 + $0x5ac] ss:$16 sps:$4 sm:$0xff]  }
 0x7a6   : > { %v15804_v1 = vpop.f32.mrb[56].mxu0  ;;  %4978 = vmatpush1.bf16.msra.mxu0 %v14475_v62  ;;  %v14532_v62 = vld [vmem:[#allocation12 + $0x5a8] ss:$16 sps:$4 sm:$0xff]  }
 0x7a7   : > { %v15806_v3 = vpop.f32.mrb[57].mxu0  ;;  %4979 = vmatprep.subr.bf16.mxu0 %v14480_v43  ;;  %v14537_v43 = vld [vmem:[#allocation12 + $0x5cc] ss:$16 sps:$4 sm:$0xff]  }
 0x7a8   : > { %v4036_v7 = vpop.f32.mrb[58].mxu0 }
 0x7a9   : > { %v4037_v28 = vpop.f32.mrb[59].mxu0  ;;  %v14538_v7 = vld [vmem:[#allocation12 + $0x5e8] ss:$16 sps:$4 sm:$0xff]  }
 0x7aa   : > { %4980 = vmatpush1.bf16.msra.mxu0 %v14478_v39  ;;  %v14535_v39 = vld [vmem:[#allocation12 + $0x5c8] ss:$16 sps:$4 sm:$0xff]  }
 0x7ab   : > { %4981 = vmatprep.subr.bf16.mxu0 %v14483_v44  ;;  %v14540_v44 = vld [vmem:[#allocation12 + $0x5ec] ss:$16 sps:$4 sm:$0xff]  }
 0x7ae   : > { %4982 = vmatpush1.bf16.msra.mxu0 %v14481_v8 }
 0x7af   : > { %4983 = vmatprep.subr.bf16.mxu0 %v14486_v48 }
 0x7b2   : > { %4984 = vmatpush1.bf16.msra.mxu0 %v14484_v18 }
 0x7b3   : > { %4985 = vmatprep.subr.bf16.mxu0 %v14489_v19 }
 0x7b6   : > { %4986 = vmatpush1.bf16.msra.mxu0 %v14487_v20 }
 0x7b7   : > { %4987 = vmatprep.subr.bf16.mxu0 %v14492_v21 }
 0x7ba   : > { %4988 = vmatpush1.bf16.msra.mxu0 %v14490_v40 }
 0x7bb   : > { %5018 = vmatprep.subr.bf16.mxu0 %v14495_v25 }
 0x7bd   : > { %4990 = vmatmul.mubr.bf16.vlgmr.msra.gmra.mrb[48].mxu0 %v15815_v17 }
 0x7be   : > { %4999 = vmatprep.mubr.bf16.mxu0 %v15822_v37  ;;  %5019 = vmatpush1.bf16.msra.mxu0 %v14493_v15  ;;  %v5673_v15 = vld [vmem:[#allocation15 + $0x868] sm:$0xff] }
 0x7bf   : > { %5020 = vmatprep.subr.bf16.mxu0 %v14498_v41 }
 0x7c2   : > { %5021 = vmatpush1.bf16.msra.mxu0 %v14496_v52  ;;  %v5685_v52 = vld [vmem:[#allocation15 + $0x8c8] sm:$0xff] }
 0x7c3   : > { %5022 = vmatprep.subr.bf16.mxu0 %v14501_v35  ;;  %v5689_v35 = vld [vmem:[#allocation15 + $0x8e8] sm:$0xff] }
 0x7c5   : > { %5000 = vmatmul.mubr.bf16.gmra.mrb[52].mxu0 %v4628_v36 }
 0x7c6   : > { %5009 = vmatprep.mubr.bf16.mxu0 %v15812_v31  ;;  %5023 = vmatpush1.bf16.msra.mxu0 %v14499_v50  ;;  %v12740_v50 = vcombine.high %v5685_v52, %v5689_v35 }
 0x7c7   : > { %5024 = vmatprep.subr.bf16.mxu0 %v14504_v56  ;;  %v5693_v56 = vld [vmem:[#allocation15 + $0x908] sm:$0xff] }
 0x7ca   : > { %5025 = vmatpush1.bf16.msra.mxu0 %v14502_v53  ;;  %v15846_v53 = vld [vmem:[#allocation13] sm:$0xf] }
 0x7cb   : > { %5026 = vmatprep.subr.bf16.mxu0 %v14507_v63  ;;  %v12739_v63 = vcombine.low %v5685_v52, %v5689_v35 }
 0x7cd   : > { %5010 = vmatmul.mubr.bf16.gmra.mrb[80].mxu0 %v15825_v45 }
 0x7ce   : > { %5027 = vmatpush1.bf16.msra.mxu0 %v14505_v46  ;;  %5050 = vmatprep.mubr.bf16.mxu0 %v15801_v16 }
 0x7cf   : > { %5028 = vmatprep.subr.bf16.mxu0 %v14510_v51  ;;  %v15850_v51 = vrot.slane %v15846_v53, %v15418_v12 }
 0x7d2   : > { %5029 = vmatpush1.bf16.msra.mxu0 %v14508_v59  ;;  %v5701_v59 = vld [vmem:[#allocation15 + $0x948] sm:$0xff] }
 0x7d3   : > { %5030 = vmatprep.subr.bf16.mxu0 %v14513_v26  ;;  %v5705_v26 = vld [vmem:[#allocation15 + $0x968] sm:$0xff] }
 0x7d6   : > { %5031 = vmatpush1.bf16.msra.mxu0 %v14511_v13  ;;  %v15854_v13 = vrot.slane %v15846_v53, %v15421_v14 }
 0x7d7   : > { %5032 = vmatprep.subr.bf16.mxu0 %v14516_v2 }
 0x7da   : > { %5033 = vmatpush1.bf16.msra.mxu0 %v14514_v57 }
 0x7db   : > { %5034 = vmatprep.subr.bf16.mxu0 %v14519_v42  ;;  %v12756_v42 = vcombine.high %v5701_v59, %v5705_v26 }
 0x7de   : > { %5035 = vmatpush1.bf16.msra.mxu0 %v14517_v9 }
 0x7df   : > { %5036 = vmatprep.subr.bf16.mxu0 %v14522_v30 }
 0x7e0   : > { %v4093_v16 = vpop.f32.mrb[68].mxu0 }
 0x7e1   : > { %v4095_v4 = vpop.f32.mrb[69].mxu0 }
 0x7e2   : > { %v4097_v49 = vpop.f32.mrb[70].mxu0  ;;  %5037 = vmatpush1.bf16.msra.mxu0 %v14520_v47  ;;  %v5709_v47 = vld [vmem:[#allocation15 + $0x988] sm:$0xff] }
 0x7e3   : > { %v4098_v29 = vpop.f32.mrb[71].mxu0  ;;  %5038 = vmatprep.subr.bf16.mxu0 %v14525_v34  ;;  %v5713_v34 = vld [vmem:[#allocation15 + $0x9a8] sm:$0xff] }
 0x7e4   : > { %v12755_v29 = vcombine.low %v5701_v59, %v5705_v26  ;;  %v5741_v59 = vld [vmem:[#allocation15 + $0xa88] sm:$0xff] }
 0x7e5   : > { %v5745_v26 = vld [vmem:[#allocation15 + $0xaa8] sm:$0xff] }
 0x7e6   : > { %5039 = vmatpush1.bf16.msra.mxu0 %v14523_v38 }
 0x7e7   : > { %5040 = vmatprep.subr.bf16.mxu0 %v14528_v54 }
 0x7ea   : > { %5041 = vmatpush1.bf16.msra.mxu0 %v14526_v60  ;;  %v12764_v60 = vcombine.high %v5709_v47, %v5713_v34 }
 0x7eb   : > { %5042 = vmatprep.subr.bf16.mxu0 %v14531_v27 }
 0x7ee   : > { %5043 = vmatpush1.bf16.msra.mxu0 %v14529_v6 }
 0x7ef   : > { %5044 = vmatprep.subr.bf16.mxu0 %v14534_v61  ;;  %v5717_v61 = vld [vmem:[#allocation15 + $0x9c8] sm:$0xff] }
 0x7f2   : > { %5045 = vmatpush1.bf16.msra.mxu0 %v14532_v62  ;;  %v5721_v62 = vld [vmem:[#allocation15 + $0x9e8] sm:$0xff] }
 0x7f3   : > { %5046 = vmatprep.subr.bf16.mxu0 %v14537_v43 }
 0x7f6   : > { %5047 = vmatpush1.bf16.msra.mxu0 %v14535_v39 }
 0x7f7   : > { %5048 = vmatprep.subr.bf16.mxu0 %v14540_v44 }
 0x7fa   : > { %5049 = vmatpush1.bf16.msra.mxu0 %v14538_v7  ;;  %v12763_v7 = vcombine.low %v5709_v47, %v5713_v34  ;;  %v12796_v34 = vcombine.high %v5741_v59, %v5745_v26 }
 0x7fd   : > { %5051 = vmatmul.mubr.bf16.vlgmr.msra.gmra.mrb[60].mxu0 %v15815_v17  ;;  %v5677_v17 = vld [vmem:[#allocation15 + $0x888] sm:$0xff] }
 0x7fe   : > { %5060 = vmatprep.mubr.bf16.mxu0 %v15822_v37 }
 0x805   : > { %5061 = vmatmul.mubr.bf16.gmra.mrb[64].mxu0 %v4628_v36  ;;  %v5697_v36 = vld [vmem:[#allocation15 + $0x928] sm:$0xff] }
 0x806   : > { %5070 = vmatprep.mubr.bf16.mxu0 %v15812_v31  ;;  %v5665_v31 = vld [vmem:[#allocation15 + $0x828] sm:$0xff]  ;;  %v12748_v46 = vcombine.high %v5693_v56, %v5697_v36  ;;  %v12747_v2 = vcombine.low %v5693_v56, %v5697_v36 }
 0x807   : > { %v12715_v33 = vcombine.low %v5661_v32, %v5665_v31  ;;  %v12716_v22 = vcombine.high %v5661_v32, %v5665_v31 }
 0x809   : > { %7422 = vmatprep.subr.bf16.mxu0 %v12716_v22  ;;  %v12771_v22 = vcombine.low %v5717_v61, %v5721_v62 }
 0x80a   : > { %7423 = vmatpush1.bf16.msra.mxu0 %v12715_v33 }
 0x80d   : > { %5071 = vmatmul.mubr.bf16.gmra.mrb[84].mxu0 %v15825_v45 }
 0x820   : > { %v4474_v28 = vpop.f32.mrb[72].mxu0 }
 0x821   : > { %v15837_v8 = vadd.f32 %v4474_v28, %v15804_v1  ;;  %v4476_v48 = vpop.f32.mrb[73].mxu0  ;;  %v5669_v1 = vld [vmem:[#allocation15 + $0x848] sm:$0xff] }
 0x822   : > { %v15840_v18 = vadd.f32 %v4476_v48, %v15806_v3  ;;  %v4478_v19 = vpop.f32.mrb[74].mxu0  ;;  %v12724_v41 = vcombine.high %v5669_v1, %v5673_v15  ;;  %v5681_v3 = vld [vmem:[#allocation15 + $0x8a8] sm:$0xff]  ;;  %v12723_v10 = vcombine.low %v5669_v1, %v5673_v15 }
 0x823   : > { %v4479_v20 = vpop.f32.mrb[75].mxu0  ;;  %v12732_v37 = vcombine.high %v5677_v17, %v5681_v3  ;;  %v12731_v45 = vcombine.low %v5677_v17, %v5681_v3  ;;  %v12772_v19 = vcombine.high %v5717_v61, %v5721_v62  ;;  %v5733_v3 = vld [vmem:[#allocation15 + $0xa48] sm:$0xff] }
 0x824   : > { %7424 = vmatprep.subr.bf16.mxu0 %v12724_v41 }
 0x825   : > { %7425 = vmatpush1.bf16.msra.mxu0 %v12723_v10  ;;  %v5737_v10 = vld [vmem:[#allocation15 + $0xa68] sm:$0xff] }
 0x826   : > { %7426 = vmatprep.subr.bf16.mxu0 %v12732_v37  ;;  %v12788_v36 = vcombine.high %v5733_v3, %v5737_v10 }
 0x829   : > { %7427 = vmatpush1.bf16.msra.mxu0 %v12731_v45 }
 0x82a   : > { %7428 = vmatprep.subr.bf16.mxu0 %v12740_v50 }
 0x82d   : > { %7429 = vmatpush1.bf16.msra.mxu0 %v12739_v63 }
 0x82e   : > { %7430 = vmatprep.subr.bf16.mxu0 %v12748_v46 }
 0x831   : > { %7431 = vmatpush1.bf16.msra.mxu0 %v12747_v2 }
 0x832   : > { %7432 = vmatprep.subr.bf16.mxu0 %v12756_v42 }
 0x835   : > { %7433 = vmatpush1.bf16.msra.mxu0 %v12755_v29  ;;  %v15880_v29 = vld [vmem:[#allocation21 + $0x10] ss:$0 sps:$4 sm:$0xff]  }
 0x836   : > { %7434 = vmatprep.subr.bf16.mxu0 %v12764_v60  ;;  %v5116_v60 = vrot.slane %v15846_v53, %v15645_v55 }
 0x839   : > { %7435 = vmatpush1.bf16.msra.mxu0 %v12763_v7 }
 0x83a   : > { %7436 = vmatprep.subr.bf16.mxu0 %v12772_v19 }
 0x83d   : > { %7437 = vmatpush1.bf16.msra.mxu0 %v12771_v22 }
 0x860   : > { %v4535_v21 = vpop.f32.mrb[76].mxu0 }
 0x861   : > { %v15842_v23 = vadd.f32 %v4535_v21, %v4093_v16  ;;  %v4537_v24 = vpop.f32.mrb[77].mxu0 }
 0x862   : > { %v15844_v40 = vadd.f32 %v4537_v24, %v4095_v4  ;;  %v4539_v58 = vpop.f32.mrb[78].mxu0  ;;  %v5725_v24 = vld [vmem:[#allocation15 + $0xa08] sm:$0xff] }
 0x863   : > { %v4540_v25 = vpop.f32.mrb[79].mxu0  ;;  %v5729_v58 = vld [vmem:[#allocation15 + $0xa28] sm:$0xff] }
 0x864   : > { %v12780_v15 = vcombine.high %v5725_v24, %v5729_v58  ;;  %v12779_v45 = vcombine.low %v5725_v24, %v5729_v58 }
 0x866   : > { %7438 = vmatprep.subr.bf16.mxu0 %v12780_v15 }
 0x867   : > { %7439 = vmatpush1.bf16.msra.mxu0 %v12779_v45 }
 0x868   : > { %7440 = vmatprep.subr.bf16.mxu0 %v12788_v36 }
 0x890   : > { %v4991_v57 = vpop.f32.mrb[48].mxu0 }
 0x891   : > { %v5121_v9 = vadd.f32 %v15850_v51, %v4991_v57  ;;  %v4993_v30 = vpop.f32.mrb[49].mxu0 }
 0x892   : > { %v5122_v16 = vadd.f32 %v15854_v13, %v4993_v30  ;;  %v4995_v4 = vpop.f32.mrb[50].mxu0  ;;  %v12787_v30 = vcombine.low %v5733_v3, %v5737_v10 }
 0x893   : > { %v5125_v49 = vadd.f32 %v15850_v51, %v4995_v4  ;;  %v4997_v38 = vpop.f32.mrb[51].mxu0  ;;  %v5141_v27 = vmax.f32 %v5121_v9, 0.0 }
 0x894   : > { %v5126_v54 = vadd.f32 %v15854_v13, %v4997_v38  ;;  %v5142_v43 = vmax.f32 %v5122_v16, 0.0  ;;  %7441 = vmatpush1.bf16.msra.mxu0 %v12787_v30 }
 0x895   : > { %v5145_v6 = vmax.f32 %v5125_v49, 0.0  ;;  %v12795_v49 = vcombine.low %v5741_v59, %v5745_v26  ;;  %7442 = vmatprep.subr.bf16.mxu0 %v12796_v34  ;;  %v5660_v26 = vld [vmem:[#allocation15 + $0x800] sm:$0xff] }
 0x896   : > { %v5146_v39 = vmax.f32 %v5126_v54, 0.0  ;;  %v5112_v54 = vrot.slane %v15846_v53, %v15642_v5  ;;  %v5668_v34 = vld [vmem:[#allocation15 + $0x840] sm:$0xff] }
 0x897   : > { %v5166_v44 = vpack.c.bf16 %v5145_v6, %v5141_v27 }
 0x898   : > { %v5167_v28 = vpack.c.bf16 %v5146_v39, %v5142_v43  ;;  %v5001_v48 = vpop.f32.mrb[52].mxu0  ;;  %7443 = vmatpush1.bf16.msra.mxu0 %v12795_v49 }
 0x899   : > { %v5129_v20 = vadd.f32 %v15850_v51, %v5001_v48  ;;  %v5003_v21 = vpop.f32.mrb[53].mxu0 }
 0x89a   : > { %v5130_v25 = vadd.f32 %v15854_v13, %v5003_v21  ;;  %v5005_v32 = vpop.f32.mrb[54].mxu0  ;;  %5213 = vmatprep.subr.bf16.mxu1 %v5167_v28 }
 0x89b   : > { %v5133_v31 = vadd.f32 %v15850_v51, %v5005_v32  ;;  %v5007_v33 = vpop.f32.mrb[55].mxu0  ;;  %5214 = vmatpush1.bf16.msra.mxu1 %v5166_v44  ;;  %v5149_v41 = vmax.f32 %v5129_v20, 0.0 }
 0x89c   : > { %v5134_v1 = vadd.f32 %v15854_v13, %v5007_v33  ;;  %v5150_v37 = vmax.f32 %v5130_v25, 0.0 }
 0x89d   : > { %v5153_v17 = vmax.f32 %v5133_v31, 0.0 }
 0x89e   : > { %v5154_v52 = vmax.f32 %v5134_v1, 0.0 }
 0x89f   : > { %v5170_v35 = vpack.c.bf16 %v5153_v17, %v5149_v41 }
 0x8a0   : > { %v5171_v50 = vpack.c.bf16 %v5154_v52, %v5150_v37  ;;  %v5011_v56 = vpop.f32.mrb[80].mxu0 }
 0x8a1   : > { %v5095_v63 = vadd.f32 %v5011_v56, %v15837_v8  ;;  %v5013_v46 = vpop.f32.mrb[81].mxu0 }
 0x8a2   : > { %v5096_v2 = vadd.f32 %v5013_v46, %v15840_v18  ;;  %v5015_v57 = vpop.f32.mrb[82].mxu0  ;;  %5215 = vmatprep.subr.bf16.mxu1 %v5171_v50 }
 0x8a3   : > { %v5137_v42 = vadd.f32 %v15850_v51, %v5095_v63  ;;  %v5016_v9 = vpop.f32.mrb[83].mxu0  ;;  %5216 = vmatpush1.bf16.msra.mxu1 %v5170_v35  ;;  %v15870_v51 = vld [vmem:[#allocation21] sm:$0xff]  }
 0x8a4   : > { %v5138_v47 = vadd.f32 %v15854_v13, %v5096_v2  ;;  %v15875_v13 = vld [vmem:[#allocation21 + $0x8] sm:$0xff]  }
 0x8a5   : > { %v5157_v16 = vmax.f32 %v5137_v42, 0.0  ;;  %v5664_v2 = vld [vmem:[#allocation15 + $0x820] sm:$0xff] }
 0x8a6   : > { %v5158_v4 = vmax.f32 %v5138_v47, 0.0  ;;  %v12714_v30 = vcombine.high %v5660_v26, %v5664_v2 }
 0x8a7   : > { %v5174_v8 = vpack.c.bf16 %v5157_v16, %v5157_v16 }
 0x8a8   : > { %v5175_v38 = vpack.c.bf16 %v5158_v4, %v5158_v4  ;;  %v5676_v4 = vld [vmem:[#allocation15 + $0x880] sm:$0xff] }
 0x8a9   : > { %v5202_v18 = vsel %vm1174_vm1, %v5174_v8, 0  ;;  %v5680_v8 = vld [vmem:[#allocation15 + $0x8a0] sm:$0xff] }
 0x8aa   : > { %12705 = vmatprep.subr.msk.bf16.mxu1 %vm1174_vm1, %v5175_v38  ;;  %v12730_v38 = vcombine.high %v5676_v4, %v5680_v8 }
 0x8ab   : > { %5218 = vmatpush1.bf16.msra.mxu1 %v5202_v18  ;;  %v5684_v18 = vld [vmem:[#allocation15 + $0x8c0] sm:$0xff] }
 0x8ae   : > { %12706 = vmatmul.mubr.msk.bf16.vlgmr.msra.gmra.mrb[84].mxu1 %vm5191_vm5, %v15870_v51 }
 0x8af   : > { %5255 = vmatprep.mubr.bf16.mxu1 %v14946_v0 }
 0x8b6   : > { %12707 = vmatmul.mubr.msk.bf16.gmra.mrb[88].mxu1 %vm5191_vm5, %v15875_v13 }
 0x8b7   : > { %5265 = vmatprep.mubr.bf16.mxu1 %v14946_v0 }
 0x8be   : > { %12708 = vmatmul.mubr.msk.bf16.gmra.mrb[92].mxu1 %vm5191_vm5, %v15880_v29 }
 0x8bf   : > { %5306 = vmatprep.mubr.bf16.mxu1 %v14946_v0 }
 0x8d0   : > { %v5052_v27 = vpop.f32.mrb[60].mxu0 }
 0x8d1   : > { %v5123_v6 = vadd.f32 %v5112_v54, %v5052_v27  ;;  %v5054_v61 = vpop.f32.mrb[61].mxu0 }
 0x8d2   : > { %v5124_v62 = vadd.f32 %v5116_v60, %v5054_v61  ;;  %v5056_v43 = vpop.f32.mrb[62].mxu0  ;;  %v5696_v61 = vld [vmem:[#allocation15 + $0x920] sm:$0xff] }
 0x8d3   : > { %v5127_v39 = vadd.f32 %v5112_v54, %v5056_v43  ;;  %v5058_v44 = vpop.f32.mrb[63].mxu0  ;;  %v5143_v28 = vmax.f32 %v5123_v6, 0.0  ;;  %v5692_v6 = vld [vmem:[#allocation15 + $0x900] sm:$0xff] }
 0x8d4   : > { %v5128_v7 = vadd.f32 %v5116_v60, %v5058_v44  ;;  %v5144_v19 = vmax.f32 %v5124_v62, 0.0  ;;  %v12746_v62 = vcombine.high %v5692_v6, %v5696_v61  ;;  %v5700_v43 = vld [vmem:[#allocation15 + $0x940] sm:$0xff]  ;;  %v12745_v44 = vcombine.low %v5692_v6, %v5696_v61 }
 0x8d5   : > { %v5147_v48 = vmax.f32 %v5127_v39, 0.0  ;;  %v5704_v39 = vld [vmem:[#allocation15 + $0x960] sm:$0xff] }
 0x8d6   : > { %v5148_v20 = vmax.f32 %v5128_v7, 0.0  ;;  %v12754_v7 = vcombine.high %v5700_v43, %v5704_v39  ;;  %v5760_v6 = vld [vmem:[#allocation15 + $0xb20] sm:$0xff] }
 0x8d7   : > { %v5168_v21 = vpack.c.bf16 %v5147_v48, %v5143_v28  ;;  %v5708_v28 = vld [vmem:[#allocation15 + $0x980] sm:$0xff] }
 0x8d8   : > { %v5169_v24 = vpack.c.bf16 %v5148_v20, %v5144_v19  ;;  %v5062_v58 = vpop.f32.mrb[64].mxu0  ;;  %v5712_v48 = vld [vmem:[#allocation15 + $0x9a0] sm:$0xff]  ;;  %v12753_v19 = vcombine.low %v5700_v43, %v5704_v39 }
 0x8d9   : > { %v5131_v25 = vadd.f32 %v5112_v54, %v5062_v58  ;;  %v5064_v32 = vpop.f32.mrb[65].mxu0  ;;  %v12762_v20 = vcombine.high %v5708_v28, %v5712_v48  ;;  %v5720_v58 = vld [vmem:[#allocation15 + $0x9e0] sm:$0xff] }
 0x8da   : > { %v5132_v31 = vadd.f32 %v5116_v60, %v5064_v32  ;;  %v5066_v33 = vpop.f32.mrb[66].mxu0  ;;  %5274 = vmatprep.subr.bf16.mxu1 %v5169_v24  ;;  %v5716_v24 = vld [vmem:[#allocation15 + $0x9c0] sm:$0xff] }
 0x8db   : > { %v5135_v53 = vadd.f32 %v5112_v54, %v5066_v33  ;;  %v5068_v22 = vpop.f32.mrb[67].mxu0  ;;  %5275 = vmatpush1.bf16.msra.mxu1 %v5168_v21  ;;  %v5151_v15 = vmax.f32 %v5131_v25, 0.0  ;;  %v5753_v21 = vld [vmem:[#allocation15 + $0xae8] sm:$0xff]  ;;  %v5764_v39 = vld [vmem:[#allocation15 + $0xb40] sm:$0xff] }
 0x8dc   : > { %v5136_v1 = vadd.f32 %v5116_v60, %v5068_v22  ;;  %v5152_v17 = vmax.f32 %v5132_v31, 0.0  ;;  %v12761_v31 = vcombine.low %v5708_v28, %v5712_v48  ;;  %v5757_v33 = vld [vmem:[#allocation15 + $0xb08] sm:$0xff]  ;;  %v5772_v48 = vld [vmem:[#allocation15 + $0xb80] sm:$0xff] }
 0x8dd   : > { %v5155_v41 = vmax.f32 %v5135_v53, 0.0  ;;  %v12770_v53 = vcombine.high %v5716_v24, %v5720_v58  ;;  %v5761_v22 = vld [vmem:[#allocation15 + $0xb28] sm:$0xff] }
 0x8de   : > { %v5156_v3 = vmax.f32 %v5136_v1, 0.0  ;;  %v5724_v1 = vld [vmem:[#allocation15 + $0xa00] sm:$0xff] }
 0x8df   : > { %v5172_v10 = vpack.c.bf16 %v5155_v41, %v5151_v15  ;;  %v12811_v15 = vcombine.low %v5757_v33, %v5761_v22  ;;  %v12812_v41 = vcombine.high %v5757_v33, %v5761_v22 }
 0x8e0   : > { %v5173_v37 = vpack.c.bf16 %v5156_v3, %v5152_v17  ;;  %v5072_v52 = vpop.f32.mrb[84].mxu0  ;;  %v12769_v17 = vcombine.low %v5716_v24, %v5720_v58  ;;  %v5765_v3 = vld [vmem:[#allocation15 + $0xb48] sm:$0xff]  ;;  %v5784_v24 = vld [vmem:[#allocation15 + $0xbe0] sm:$0xff] }
 0x8e1   : > { %v5097_v35 = vadd.f32 %v5072_v52, %v15842_v23  ;;  %v5074_v45 = vpop.f32.mrb[85].mxu0  ;;  %v5672_v23 = vld [vmem:[#allocation15 + $0x860] sm:$0xff] }
 0x8e2   : > { %v5098_v50 = vadd.f32 %v5074_v45, %v15844_v40  ;;  %v5076_v56 = vpop.f32.mrb[86].mxu0  ;;  %5276 = vmatprep.subr.bf16.mxu1 %v5173_v37  ;;  %v12713_v40 = vcombine.low %v5660_v26, %v5664_v2  ;;  %v12722_v16 = vcombine.high %v5668_v34, %v5672_v23  ;;  %v12721_v49 = vcombine.low %v5668_v34, %v5672_v23  ;;  %v5769_v37 = vld [vmem:[#allocation15 + $0xb68] sm:$0xff]  ;;  %v5732_v52 = vld [vmem:[#allocation15 + $0xa40] sm:$0xff] }
 0x8e3   : > { %v5139_v36 = vadd.f32 %v5112_v54, %v5097_v35  ;;  %v5077_v63 = vpop.f32.mrb[87].mxu0  ;;  %5277 = vmatpush1.bf16.msra.mxu1 %v5172_v10  ;;  %v5688_v54 = vld [vmem:[#allocation15 + $0x8e0] sm:$0xff]  ;;  %v12819_v45 = vcombine.low %v5765_v3, %v5769_v37 }
 0x8e4   : > { %v5140_v46 = vadd.f32 %v5116_v60, %v5098_v50  ;;  %v12729_v60 = vcombine.low %v5676_v4, %v5680_v8  ;;  %v12738_v27 = vcombine.high %v5684_v18, %v5688_v54  ;;  %v5736_v35 = vld [vmem:[#allocation15 + $0xa60] sm:$0xff]  ;;  %v12820_v50 = vcombine.high %v5765_v3, %v5769_v37 }
 0x8e5   : > { %v5159_v59 = vmax.f32 %v5139_v36, 0.0  ;;  %v5773_v36 = vld [vmem:[#allocation15 + $0xb88] sm:$0xff]  ;;  %v12786_v63 = vcombine.high %v5732_v52, %v5736_v35  ;;  %v5744_v26 = vld [vmem:[#allocation15 + $0xaa0] sm:$0xff] }
 0x8e6   : > { %v5160_v57 = vmax.f32 %v5140_v46, 0.0  ;;  %v5777_v46 = vld [vmem:[#allocation15 + $0xba8] sm:$0xff]  ;;  %v5748_v34 = vld [vmem:[#allocation15 + $0xac0] sm:$0xff] }
 0x8e7   : > { %v5176_v42 = vpack.c.bf16 %v5159_v59, %v5159_v59  ;;  %v5740_v59 = vld [vmem:[#allocation15 + $0xa80] sm:$0xff]  ;;  %v12827_v2 = vcombine.low %v5773_v36, %v5777_v46 }
 0x8e8   : > { %v5177_v9 = vpack.c.bf16 %v5160_v57, %v5160_v57  ;;  %v12828_v57 = vcombine.high %v5773_v36, %v5777_v46  ;;  %v5752_v23 = vld [vmem:[#allocation15 + $0xae0] sm:$0xff]  ;;  %v12793_v4 = vcombine.low %v5740_v59, %v5744_v26 }
 0x8e9   : > { %v5208_v47 = vsel %vm1174_vm1, %v5176_v42, 0  ;;  %v12785_v42 = vcombine.low %v5732_v52, %v5736_v35  ;;  %v15901_v8 = vld [vmem:[#allocation15 + $0xc00] sm:$0xff] }
 0x8ea   : > { %12709 = vmatprep.subr.msk.bf16.mxu1 %vm1174_vm1, %v5177_v9  ;;  %v5781_v9 = vld [vmem:[#allocation15 + $0xbc8] sm:$0xff] }
 0x8eb   : > { %5279 = vmatpush1.bf16.msra.mxu1 %v5208_v47  ;;  %v5785_v47 = vld [vmem:[#allocation15 + $0xbe8] sm:$0xff] }
 0x8ec   : > { %7300 = vmatprep.subr.bf16.mxu1 %v12714_v30  ;;  %v12794_v30 = vcombine.high %v5740_v59, %v5744_v26 }
 0x8ee   : > { %12710 = vmatmul.mubr.msk.bf16.vlgmr.msra.gmra.mrb[96].mxu1 %vm5191_vm5, %v15870_v51  ;;  %v12737_v51 = vcombine.low %v5684_v18, %v5688_v54  ;;  %v12802_v18 = vcombine.high %v5748_v34, %v5752_v23 }
 0x8ef   : > { %5316 = vmatprep.mubr.bf16.mxu1 %v14946_v0  ;;  %7301 = vmatpush1.bf16.msra.mxu1 %v12713_v40  ;;  %v12835_v40 = vcombine.low %v5781_v9, %v5785_v47 }
 0x8f0   : > { %7302 = vmatprep.subr.bf16.mxu1 %v12722_v16  ;;  %v12836_v16 = vcombine.high %v5781_v9, %v5785_v47  ;;  %v5797_v47 = vld [vmem:[#allocation15 + $0xc48] sm:$0xff] }
 0x8f3   : > { %7303 = vmatpush1.bf16.msra.mxu1 %v12721_v49  ;;  %v15903_v49 = vld [vmem:[#allocation15 + $0xc20] sm:$0xff] }
 0x8f4   : > { %7304 = vmatprep.subr.bf16.mxu1 %v12730_v38  ;;  %v15905_v38 = vld [vmem:[#allocation15 + $0xc08] sm:$0xff]  ;;  %v12841_v54 = vcombine.low %v15901_v8, %v15903_v49 }
 0x8f6   : > { %12711 = vmatmul.mubr.msk.bf16.gmra.mrb[100].mxu1 %vm5191_vm5, %v15875_v13  ;;  %v5749_v13 = vld [vmem:[#allocation15 + $0xac8] sm:$0xff] }
 0x8f7   : > { %5326 = vmatprep.mubr.bf16.mxu1 %v14946_v0  ;;  %7305 = vmatpush1.bf16.msra.mxu1 %v12729_v60  ;;  %v12803_v25 = vcombine.low %v5749_v13, %v5753_v21  ;;  %v12804_v32 = vcombine.high %v5749_v13, %v5753_v21  ;;  %v15909_v60 = vld [vmem:[#allocation15 + $0xc28] sm:$0xff]  ;;  %v5780_v21 = vld [vmem:[#allocation15 + $0xbc0] sm:$0xff] }
 0x8f8   : > { %7306 = vmatprep.subr.bf16.mxu1 %v12738_v27  ;;  %v5756_v27 = vld [vmem:[#allocation15 + $0xb00] sm:$0xff]  ;;  %v12843_v61 = vcombine.low %v15905_v38, %v15909_v60 }
 0x8f9   : > { %7444 = vmatprep.subr.bf16.mxu0 %v12804_v32  ;;  %v12810_v43 = vcombine.high %v5756_v27, %v5760_v6  ;;  %v12833_v32 = vcombine.low %v5780_v21, %v5784_v24 }
 0x8fa   : > { %7445 = vmatpush1.bf16.msra.mxu0 %v12803_v25  ;;  %v12834_v25 = vcombine.high %v5780_v21, %v5784_v24  ;;  %v5812_v21 = vld [vmem:[#allocation15 + $0xcc0] sm:$0xff] }
 0x8fb   : > { %7307 = vmatpush1.bf16.msra.mxu1 %v12737_v51  ;;  %7446 = vmatprep.subr.bf16.mxu0 %v12812_v41  ;;  %v12844_v51 = vcombine.high %v15905_v38, %v15909_v60  ;;  %v5816_v24 = vld [vmem:[#allocation15 + $0xce0] sm:$0xff] }
 0x8fc   : > { %7308 = vmatprep.subr.bf16.mxu1 %v12746_v62  ;;  %v12801_v62 = vcombine.low %v5748_v34, %v5752_v23  ;;  %v5801_v34 = vld [vmem:[#allocation15 + $0xc68] sm:$0xff]  ;;  %v12866_v38 = vcombine.high %v5812_v21, %v5816_v24 }
 0x8fe   : > { %12712 = vmatmul.mubr.msk.bf16.gmra.mrb[104].mxu1 %vm5191_vm5, %v15880_v29  ;;  %v5728_v29 = vld [vmem:[#allocation15 + $0xa20] sm:$0xff]  ;;  %7447 = vmatpush1.bf16.msra.mxu0 %v12811_v15 }
 0x8ff   : > { %7309 = vmatpush1.bf16.msra.mxu1 %v12745_v44  ;;  %v12778_v10 = vcombine.high %v5724_v1, %v5728_v29  ;;  %v12777_v56 = vcombine.low %v5724_v1, %v5728_v29  ;;  %7448 = vmatprep.subr.bf16.mxu0 %v12820_v50  ;;  %v5768_v44 = vld [vmem:[#allocation15 + $0xb60] sm:$0xff] }
 0x900   : > { %7310 = vmatprep.subr.bf16.mxu1 %v12754_v7  ;;  %v12809_v7 = vcombine.low %v5756_v27, %v5760_v6  ;;  %v12818_v28 = vcombine.high %v5764_v39, %v5768_v44  ;;  %v12817_v13 = vcombine.low %v5764_v39, %v5768_v44  ;;  %v12852_v6 = vcombine.high %v5797_v47, %v5801_v34  ;;  %v5808_v39 = vld [vmem:[#allocation15 + $0xca0] sm:$0xff]  ;;  %v5805_v44 = vld [vmem:[#allocation15 + $0xc88] sm:$0xff] }
 0x902   : > { %7449 = vmatpush1.bf16.msra.mxu0 %v12819_v45 }
 0x903   : > { %7311 = vmatpush1.bf16.msra.mxu1 %v12753_v19  ;;  %7450 = vmatprep.subr.bf16.mxu0 %v12828_v57  ;;  %v5776_v19 = vld [vmem:[#allocation15 + $0xba0] sm:$0xff] }
 0x904   : > { %7312 = vmatprep.subr.bf16.mxu1 %v12762_v20  ;;  %v12826_v20 = vcombine.high %v5772_v48, %v5776_v19  ;;  %v12825_v58 = vcombine.low %v5772_v48, %v5776_v19  ;;  %v5796_v57 = vld [vmem:[#allocation15 + $0xc40] sm:$0xff]  ;;  %v12851_v19 = vcombine.low %v5797_v47, %v5801_v34 }
 0x906   : > { %7451 = vmatpush1.bf16.msra.mxu0 %v12827_v2 }
 0x907   : > { %7313 = vmatpush1.bf16.msra.mxu1 %v12761_v31  ;;  %7452 = vmatprep.subr.bf16.mxu0 %v12836_v16  ;;  %v12842_v31 = vcombine.high %v15901_v8, %v15903_v49 }
 0x908   : > { %7314 = vmatprep.subr.bf16.mxu1 %v12770_v53 }
 0x90a   : > { %7453 = vmatpush1.bf16.msra.mxu0 %v12835_v40 }
 0x90b   : > { %7315 = vmatpush1.bf16.msra.mxu1 %v12769_v17  ;;  %7483 = vmatprep.subr.bf16.mxu0 %v12844_v51  ;;  %v5804_v51 = vld [vmem:[#allocation15 + $0xc80] sm:$0xff] }
 0x90c   : > { %7316 = vmatprep.subr.bf16.mxu1 %v12778_v10 }
 0x90f   : > { %7317 = vmatpush1.bf16.msra.mxu1 %v12777_v56 }
 0x910   : > { %7318 = vmatprep.subr.bf16.mxu1 %v12786_v63 }
 0x913   : > { %7319 = vmatpush1.bf16.msra.mxu1 %v12785_v42 }
 0x914   : > { %7320 = vmatprep.subr.bf16.mxu1 %v12794_v30  ;;  %v5800_v30 = vld [vmem:[#allocation15 + $0xc60] sm:$0xff] }
 0x915   : > { %v12850_v27 = vcombine.high %v5796_v57, %v5800_v30  ;;  %v12849_v48 = vcombine.low %v5796_v57, %v5800_v30  ;;  %v5829_v57 = vld [vmem:[#allocation15 + $0xd48] sm:$0xff] }
 0x917   : > { %7321 = vmatpush1.bf16.msra.mxu1 %v12793_v4 }
 0x918   : > { %7322 = vmatprep.subr.bf16.mxu1 %v12802_v18 }
 0x91b   : > { %7323 = vmatpush1.bf16.msra.mxu1 %v12801_v62 }
 0x91c   : > { %7324 = vmatprep.subr.bf16.mxu1 %v12810_v43 }
 0x91f   : > { %7325 = vmatpush1.bf16.msra.mxu1 %v12809_v7  ;;  %v5809_v7 = vld [vmem:[#allocation15 + $0xca8] sm:$0xff] }
 0x920   : > { %7326 = vmatprep.subr.bf16.mxu1 %v12818_v28  ;;  %v12859_v8 = vcombine.low %v5805_v44, %v5809_v7 }
 0x923   : > { %7327 = vmatpush1.bf16.msra.mxu1 %v12817_v13  ;;  %v12858_v13 = vcombine.high %v5804_v51, %v5808_v39 }
 0x924   : > { %7328 = vmatprep.subr.bf16.mxu1 %v12826_v20  ;;  %v12860_v20 = vcombine.high %v5805_v44, %v5809_v7 }
 0x927   : > { %7329 = vmatpush1.bf16.msra.mxu1 %v12825_v58  ;;  %v5813_v58 = vld [vmem:[#allocation15 + $0xcc8] sm:$0xff] }
 0x928   : > { %7330 = vmatprep.subr.bf16.mxu1 %v12834_v25  ;;  %v5817_v25 = vld [vmem:[#allocation15 + $0xce8] sm:$0xff] }
 0x929   : > { %v12868_v60 = vcombine.high %v5813_v58, %v5817_v25 }
 0x92b   : > { %7331 = vmatpush1.bf16.msra.mxu1 %v12833_v32 }
 0x92c   : > { %7361 = vmatprep.subr.bf16.mxu1 %v12842_v31  ;;  %v12857_v31 = vcombine.low %v5804_v51, %v5808_v39  ;;  %v5841_v51 = vld [vmem:[#allocation15 + $0xda8] sm:$0xff] }
 0x981   : > { %v5247_v33 = vpop.f32.mrb[84].mxu1 }
 0x982   : > { %5335 = vst [vmem:[#allocation4] sm:$0xff] %v5247_v33  ;;  %v5249_v53 = vpop.f32.mrb[85].mxu1 }
 0x983   : > { %5336 = vst [vmem:[#allocation4 + $0x8] sm:$0xff] %v5249_v53  ;;  %v5251_v22 = vpop.f32.mrb[86].mxu1 }
 0x984   : > { %5339 = vst [vmem:[#allocation4 + $0x20] sm:$0xff] %v5251_v22  ;;  %v5253_v1 = vpop.f32.mrb[87].mxu1 }
 0x985   : > { %5340 = vst [vmem:[#allocation4 + $0x28] sm:$0xff] %v5253_v1 }
 0x989   : > { %v5257_v29 = vpop.f32.mrb[88].mxu1  ;;  %v5643_v15 = vld [vmem:[#allocation4] sm:$0xfe] }
 0x98a   : > { %v5259_v41 = vpop.f32.mrb[89].mxu1  ;;  %v5644_v17 = vld [vmem:[#allocation4 + $0x8] sm:$0xfe]  ;;  %v5651_v3 = vpack.c.bf16 %v5251_v22, %v5643_v15  ;;  %v12867_v15 = vcombine.low %v5813_v58, %v5817_v25 }
 0x98b   : > { %v5261_v10 = vpop.f32.mrb[90].mxu1  ;;  %v5652_v37 = vpack.c.bf16 %v5253_v1, %v5644_v17  ;;  %v5820_v1 = vld [vmem:[#allocation15 + $0xd00] sm:$0xff]  ;;  %v5821_v17 = vld [vmem:[#allocation15 + $0xd08] sm:$0xff] }
 0x98c   : > { %v15917_v52 = vpack.c.bf16 %v5261_v10, %v5257_v29  ;;  %v5263_v35 = vpop.f32.mrb[91].mxu1  ;;  %v5919_v45 = vshll.u32 %v5651_v3, 16  ;;  %v5917_v36 = vshrl.u32 %v5651_v3, 16  ;;  %v12865_v29 = vcombine.low %v5812_v21, %v5816_v24  ;;  %v5825_v3 = vld [vmem:[#allocation15 + $0xd28] sm:$0xff] }
 0x98d   : > { %v15919_v50 = vpack.c.bf16 %v5263_v35, %v5259_v41  ;;  %v5931_v56 = vshll.u32 %v5652_v37, 16  ;;  %v5929_v59 = vshrl.u32 %v5652_v37, 16  ;;  %v5824_v41 = vld [vmem:[#allocation15 + $0xd20] sm:$0xff] }
 0x98e   : > { %v5921_v63 = vrot.slane %v5919_v45, 1  ;;  %v5924_v46 = vshll.u32 %v15917_v52, 16  ;;  %v5964_v45 = vshrl.u32 %v15917_v52, 16  ;;  %v12873_v30 = vcombine.low %v5820_v1, %v5824_v41 }
 0x98f   : > { %v5933_v26 = vrot.slane %v5931_v56, 1  ;;  %v5936_v2 = vshll.u32 %v15919_v50, 16  ;;  %v5972_v53 = vshrl.u32 %v15919_v50, 16 }
 0x990   : > { %v5922_v42 = vor.u32 %v5921_v63, %v5917_v36  ;;  %v15923_v9 = vrot.slane %v5924_v46, 1  ;;  %v5828_v36 = vld [vmem:[#allocation15 + $0xd40] sm:$0xff] }
 0x991   : > { %v5267_v23 = vpop.f32.mrb[92].mxu1  ;;  %v5934_v40 = vor.u32 %v5933_v26, %v5929_v59  ;;  %v5938_v16 = vrot.slane %v5936_v2, 1  ;;  %v5832_v63 = vld [vmem:[#allocation15 + $0xd60] sm:$0xff]  ;;  %v12874_v26 = vcombine.high %v5820_v1, %v5824_v41  ;;  %v12876_v2 = vcombine.high %v5821_v17, %v5825_v3  ;;  %v5865_v1 = vld [vmem:[#allocation15 + $0xe68] sm:$0xff] }
 0x992   : > { %5351 = vst [vmem:[#allocation4 + $0x80] sm:$0xff] %v5267_v23  ;;  %v5269_v4 = vpop.f32.mrb[93].mxu1  ;;  %v15932_v43 = vsel %vm1445_vm3, %v5922_v42, %v15923_v9  ;;  %v5966_v59 = vor.u32 %v5964_v45, %v15923_v9  ;;  %v5833_v42 = vld [vmem:[#allocation15 + $0xd68] sm:$0xff]  ;;  %v12875_v23 = vcombine.low %v5821_v17, %v5825_v3  ;;  %v5868_v3 = vld [vmem:[#allocation15 + $0xe80] sm:$0xff] }
 0x993   : > { %5352 = vst [vmem:[#allocation4 + $0x88] sm:$0xff] %v5269_v4  ;;  %v15926_v18 = vsel %vm1445_vm3, %v5934_v40, %v5938_v16  ;;  %v5271_v62 = vpop.f32.mrb[94].mxu1  ;;  %v5974_v37 = vor.u32 %v5972_v53, %v5938_v16  ;;  %v12882_v40 = vcombine.high %v5828_v36, %v5832_v63  ;;  %v12884_v9 = vcombine.high %v5829_v57, %v5833_v42  ;;  %v5836_v16 = vld [vmem:[#allocation15 + $0xd80] sm:$0xff] }
 0x994   : > { %7332 = vmatprep.mubr.bf16.mxu1 %v15926_v18  ;;  %7454 = vmatprep.mubr.bf16.mxu0 %v15926_v18  ;;  %v5272_v28 = vpop.f32.mrb[95].mxu1  ;;  %v5840_v4 = vld [vmem:[#allocation15 + $0xda0] sm:$0xff]  ;;  %v12881_v62 = vcombine.low %v5828_v36, %v5832_v63  ;;  %v12883_v39 = vcombine.low %v5829_v57, %v5833_v42  ;;  %v5881_v57 = vld [vmem:[#allocation15 + $0xee8] sm:$0xff] }
 0x995   : > { %7333 = vmatmul.mubr.bf16.vlgmr.msra.gmra.mrb[108].mxu1 %v15932_v43  ;;  %7455 = vmatmul.mubr.bf16.vlgmr.msra.gmra.mrb[88].mxu0 %v15932_v43  ;;  %v12890_v44 = vcombine.high %v5836_v16, %v5840_v4  ;;  %v5844_v28 = vld [vmem:[#allocation15 + $0xdc0] sm:$0xff]  ;;  %v12889_v21 = vcombine.low %v5836_v16, %v5840_v4  ;;  %v5885_v4 = vld [vmem:[#allocation15 + $0xf08] sm:$0xff] }
 0x996   : > { %7362 = vmatpush1.bf16.msra.mxu1 %v12841_v54  ;;  %7484 = vmatpush1.bf16.msra.mxu0 %v12843_v61  ;;  %v5864_v53 = vld [vmem:[#allocation15 + $0xe60] sm:$0xff] }
 0x997   : > { %7363 = vmatprep.subr.bf16.mxu1 %v12850_v27  ;;  %7485 = vmatprep.subr.bf16.mxu0 %v12852_v6  ;;  %v5837_v6 = vld [vmem:[#allocation15 + $0xd88] sm:$0xff]  ;;  %v5888_v16 = vld [vmem:[#allocation15 + $0xf20] sm:$0xff] }
 0x998   : > { %v12892_v7 = vcombine.high %v5837_v6, %v5841_v51  ;;  %v12891_v24 = vcombine.low %v5837_v6, %v5841_v51 }
 0x999   : > { %v5647_v32 = vld [vmem:[#allocation4 + $0x80] sm:$0x7f] }
 0x99a   : > { %7364 = vmatpush1.bf16.msra.mxu1 %v12849_v48  ;;  %7486 = vmatpush1.bf16.msra.mxu0 %v12851_v19  ;;  %v5648_v49 = vld [vmem:[#allocation4 + $0x88] sm:$0x7f]  ;;  %v15942_v54 = vpack.c.bf16 %v5647_v32, %v5647_v32  ;;  %v5848_v48 = vld [vmem:[#allocation15 + $0xde0] sm:$0xff] }
 0x99b   : > { %7365 = vmatprep.subr.bf16.mxu1 %v12858_v13  ;;  %7487 = vmatprep.subr.bf16.mxu0 %v12860_v20  ;;  %v5656_v61 = vpack.c.bf16 %v5648_v49, %v5648_v49  ;;  %v5845_v13 = vld [vmem:[#allocation15 + $0xdc8] sm:$0xff]  ;;  %v12898_v58 = vcombine.high %v5844_v28, %v5848_v48  ;;  %v5852_v32 = vld [vmem:[#allocation15 + $0xe00] sm:$0xff] }
 0x99c   : > { %v5968_v33 = vshll.u32 %v15942_v54, 16  ;;  %v5996_v27 = vshrl.u32 %v15942_v54, 16  ;;  %v5849_v20 = vld [vmem:[#allocation15 + $0xde8] sm:$0xff]  ;;  %v12897_v54 = vcombine.low %v5844_v28, %v5848_v48 }
 0x99d   : > { %v5976_v22 = vshll.u32 %v5656_v61, 16  ;;  %v5999_v10 = vshrl.u32 %v5656_v61, 16  ;;  %v12900_v25 = vcombine.high %v5845_v13, %v5849_v20  ;;  %v5857_v49 = vld [vmem:[#allocation15 + $0xe28] sm:$0xff] }
 0x99e   : > { %7366 = vmatpush1.bf16.msra.mxu1 %v12857_v31  ;;  %7488 = vmatpush1.bf16.msra.mxu0 %v12859_v8  ;;  %v5970_v56 = vrot.slane %v5968_v33, 1  ;;  %v5856_v31 = vld [vmem:[#allocation15 + $0xe20] sm:$0xff]  ;;  %v5853_v8 = vld [vmem:[#allocation15 + $0xe08] sm:$0xff] }
 0x99f   : > { %7367 = vmatprep.subr.bf16.mxu1 %v12866_v38  ;;  %7489 = vmatprep.subr.bf16.mxu0 %v12868_v60  ;;  %v5978_v35 = vrot.slane %v5976_v22, 1  ;;  %v12899_v38 = vcombine.low %v5845_v13, %v5849_v20  ;;  %v12906_v60 = vcombine.high %v5852_v32, %v5856_v31  ;;  %v12908_v61 = vcombine.high %v5853_v8, %v5857_v49  ;;  %v5860_v33 = vld [vmem:[#allocation15 + $0xe40] sm:$0xff]  ;;  %v5861_v22 = vld [vmem:[#allocation15 + $0xe48] sm:$0xff] }
 0x9a0   : > { %v15956_v34 = vsel %vm1445_vm3, %v5966_v59, %v5970_v56  ;;  %v15963_v19 = vor.u32 %v5996_v27, %v5970_v56  ;;  %v12914_v41 = vcombine.high %v5860_v33, %v5864_v53  ;;  %v12916_v17 = vcombine.high %v5861_v22, %v5865_v1  ;;  %v5876_v59 = vld [vmem:[#allocation15 + $0xec0] sm:$0xff]  ;;  %v5889_v27 = vld [vmem:[#allocation15 + $0xf28] sm:$0xff] }
 0x9a1   : > { %v15948_v46 = vsel %vm1445_vm3, %v5974_v37, %v5978_v35  ;;  %v15952_v47 = vor.u32 %v5999_v10, %v5978_v35  ;;  %v5872_v10 = vld [vmem:[#allocation15 + $0xea0] sm:$0xff]  ;;  %v5869_v37 = vld [vmem:[#allocation15 + $0xe88] sm:$0xff]  ;;  %v12913_v45 = vcombine.low %v5860_v33, %v5864_v53  ;;  %v12915_v56 = vcombine.low %v5861_v22, %v5865_v1 }
 0x9a2   : > { %7342 = vmatprep.mubr.bf16.mxu1 %v15948_v46  ;;  %7368 = vmatpush1.bf16.msra.mxu1 %v12865_v29  ;;  %v12905_v29 = vcombine.low %v5852_v32, %v5856_v31  ;;  %v5873_v35 = vld [vmem:[#allocation15 + $0xea8] sm:$0xff]  ;;  %v12922_v36 = vcombine.high %v5868_v3, %v5872_v10  ;;  %v12921_v42 = vcombine.low %v5868_v3, %v5872_v10  ;;  %v5908_v22 = vld [vmem:[#allocation15 + $0xfc0] sm:$0xff] }
 0x9a3   : > { %7464 = vmatprep.mubr.bf16.mxu0 %v15948_v46  ;;  %7490 = vmatpush1.bf16.msra.mxu0 %v12867_v15  ;;  %v12907_v15 = vcombine.low %v5853_v8, %v5857_v49  ;;  %v12924_v63 = vcombine.high %v5869_v37, %v5873_v35  ;;  %v5893_v48 = vld [vmem:[#allocation15 + $0xf48] sm:$0xff]  ;;  %v5900_v8 = vld [vmem:[#allocation15 + $0xf80] sm:$0xff] }
 0x9a4   : > { %7343 = vmatmul.mubr.bf16.gmra.mrb[112].mxu1 %v15956_v34  ;;  %7465 = vmatmul.mubr.bf16.gmra.mrb[92].mxu0 %v15956_v34  ;;  %v5897_v13 = vld [vmem:[#allocation15 + $0xf68] sm:$0xff]  ;;  %v5904_v49 = vld [vmem:[#allocation15 + $0xfa0] sm:$0xff] }
 0x9a5   : > { %7369 = vmatprep.subr.bf16.mxu1 %v12874_v26  ;;  %7491 = vmatprep.subr.bf16.mxu0 %v12876_v2  ;;  %v5880_v26 = vld [vmem:[#allocation15 + $0xee0] sm:$0xff]  ;;  %v5877_v2 = vld [vmem:[#allocation15 + $0xec8] sm:$0xff]  ;;  %v12948_v31 = vcombine.high %v5893_v48, %v5897_v13  ;;  %v12954_v33 = vcombine.high %v5900_v8, %v5904_v49  ;;  %v12953_v10 = vcombine.low %v5900_v8, %v5904_v49  ;;  %v5675_v8 = vld [vmem:[#allocation15 + $0x878] sm:$0xff] }
 0x9a6   : > { %7370 = vmatpush1.bf16.msra.mxu1 %v12873_v30  ;;  %7352 = vmatprep.mubr.bf16.mxu1 %v15952_v47  ;;  %v12923_v30 = vcombine.low %v5869_v37, %v5873_v35  ;;  %v12929_v6 = vcombine.low %v5876_v59, %v5880_v26  ;;  %v12931_v51 = vcombine.low %v5877_v2, %v5881_v57  ;;  %v5912_v1 = vld [vmem:[#allocation15 + $0xfe0] sm:$0xff] }
 0x9a7   : > { %7492 = vmatpush1.bf16.msra.mxu0 %v12875_v23  ;;  %7371 = vmatprep.subr.bf16.mxu1 %v12882_v40  ;;  %v12930_v23 = vcombine.high %v5876_v59, %v5880_v26  ;;  %v12932_v40 = vcombine.high %v5877_v2, %v5881_v57  ;;  %v5662_v57 = vld [vmem:[#allocation15 + $0x810] sm:$0xff] }
 0x9a8   : > { %7493 = vmatprep.subr.bf16.mxu0 %v12884_v9  ;;  %7474 = vmatprep.mubr.bf16.mxu0 %v15952_v47  ;;  %v5884_v9 = vld [vmem:[#allocation15 + $0xf00] sm:$0xff] }
 0x9aa   : > { %7372 = vmatpush1.bf16.msra.mxu1 %v12881_v62  ;;  %v12938_v62 = vcombine.high %v5884_v9, %v5888_v16 }
 0x9ab   : > { %7494 = vmatpush1.bf16.msra.mxu0 %v12883_v39  ;;  %7373 = vmatprep.subr.bf16.mxu1 %v12890_v44  ;;  %v12940_v39 = vcombine.high %v5885_v4, %v5889_v27  ;;  %v5892_v44 = vld [vmem:[#allocation15 + $0xf40] sm:$0xff] }
 0x9ac   : > { %7495 = vmatprep.subr.bf16.mxu0 %v12892_v7  ;;  %7353 = vmatmul.mubr.bf16.gmra.mrb[116].mxu1 %v15963_v19  ;;  %v5896_v7 = vld [vmem:[#allocation15 + $0xf60] sm:$0xff] }
 0x9ad   : > { %7475 = vmatmul.mubr.bf16.gmra.mrb[96].mxu0 %v15963_v19 }
 0x9ae   : > { %7374 = vmatpush1.bf16.msra.mxu1 %v12889_v21  ;;  %v12937_v21 = vcombine.low %v5884_v9, %v5888_v16 }
 0x9af   : > { %7496 = vmatpush1.bf16.msra.mxu0 %v12891_v24  ;;  %7375 = vmatprep.subr.bf16.mxu1 %v12898_v58  ;;  %v12939_v58 = vcombine.low %v5885_v4, %v5889_v27  ;;  %v5663_v4 = vld [vmem:[#allocation15 + $0x818] sm:$0xff] }
 0x9b0   : > { %7497 = vmatprep.subr.bf16.mxu0 %v12900_v25  ;;  %v12946_v25 = vcombine.high %v5892_v44, %v5896_v7  ;;  %v5667_v27 = vld [vmem:[#allocation15 + $0x838] sm:$0xff] }
 0x9b2   : > { %7376 = vmatpush1.bf16.msra.mxu1 %v12897_v54  ;;  %v5901_v54 = vld [vmem:[#allocation15 + $0xf88] sm:$0xff] }
 0x9b3   : > { %7498 = vmatpush1.bf16.msra.mxu0 %v12899_v38  ;;  %7377 = vmatprep.subr.bf16.mxu1 %v12906_v60  ;;  %v5905_v38 = vld [vmem:[#allocation15 + $0xfa8] sm:$0xff]  ;;  %v12945_v60 = vcombine.low %v5892_v44, %v5896_v7 }
 0x9b4   : > { %7499 = vmatprep.subr.bf16.mxu0 %v12908_v61  ;;  %v12947_v61 = vcombine.low %v5893_v48, %v5897_v13  ;;  %v12956_v53 = vcombine.high %v5901_v54, %v5905_v38 }
 0x9b6   : > { %7378 = vmatpush1.bf16.msra.mxu1 %v12905_v29 }
 0x9b7   : > { %7500 = vmatpush1.bf16.msra.mxu0 %v12907_v15  ;;  %7379 = vmatprep.subr.bf16.mxu1 %v12914_v41  ;;  %v5909_v15 = vld [vmem:[#allocation15 + $0xfc8] sm:$0xff] }
 0x9b8   : > { %7501 = vmatprep.subr.bf16.mxu0 %v12916_v17  ;;  %v5913_v41 = vld [vmem:[#allocation15 + $0xfe8] sm:$0xff] }
 0x9b9   : > { %v12964_v2 = vcombine.high %v5909_v15, %v5913_v41  ;;  %v12963_v16 = vcombine.low %v5909_v15, %v5913_v41  ;;  %v5679_v41 = vld [vmem:[#allocation15 + $0x898] sm:$0xff] }
 0x9ba   : > { %7380 = vmatpush1.bf16.msra.mxu1 %v12913_v45 }
 0x9bb   : > { %7502 = vmatpush1.bf16.msra.mxu0 %v12915_v56  ;;  %7381 = vmatprep.subr.bf16.mxu1 %v12922_v36  ;;  %v12955_v56 = vcombine.low %v5901_v54, %v5905_v38  ;;  %v12962_v36 = vcombine.high %v5908_v22, %v5912_v1 }
 0x9bc   : > { %7503 = vmatprep.subr.bf16.mxu0 %v12924_v63 }
 0x9be   : > { %7382 = vmatpush1.bf16.msra.mxu1 %v12921_v42  ;;  %v5666_v42 = vld [vmem:[#allocation15 + $0x830] sm:$0xff] }
 0x9bf   : > { %7504 = vmatpush1.bf16.msra.mxu0 %v12923_v30  ;;  %7383 = vmatprep.subr.bf16.mxu1 %v12930_v23  ;;  %v12961_v23 = vcombine.low %v5908_v22, %v5912_v1  ;;  %v12717_v54 = vcombine.low %v5662_v57, %v5666_v42  ;;  %v5678_v1 = vld [vmem:[#allocation15 + $0x890] sm:$0xff] }
 0x9c0   : > { %7505 = vmatprep.subr.bf16.mxu0 %v12932_v40 }
 0x9c1   : > { %v5308_v28 = vpop.f32.mrb[96].mxu1 }
 0x9c2   : > { %5337 = vst [vmem:[#allocation4 + $0x10] sm:$0xff] %v5308_v28  ;;  %v5310_v20 = vpop.f32.mrb[97].mxu1  ;;  %7384 = vmatpush1.bf16.msra.mxu1 %v12929_v6  ;;  %v12718_v28 = vcombine.high %v5662_v57, %v5666_v42 }
 0x9c3   : > { %5338 = vst [vmem:[#allocation4 + $0x18] sm:$0xff] %v5310_v20  ;;  %v5312_v24 = vpop.f32.mrb[98].mxu1  ;;  %7506 = vmatpush1.bf16.msra.mxu0 %v12931_v51  ;;  %7385 = vmatprep.subr.bf16.mxu1 %v12938_v62  ;;  %v5670_v20 = vld [vmem:[#allocation15 + $0x850] sm:$0xff] }
 0x9c4   : > { %5341 = vst [vmem:[#allocation4 + $0x30] sm:$0xff] %v5312_v24  ;;  %v5314_v32 = vpop.f32.mrb[99].mxu1  ;;  %7507 = vmatprep.subr.bf16.mxu0 %v12940_v39 }
 0x9c5   : > { %5342 = vst [vmem:[#allocation4 + $0x38] sm:$0xff] %v5314_v32 }
 0x9c6   : > { %7386 = vmatpush1.bf16.msra.mxu1 %v12937_v21  ;;  %v5674_v21 = vld [vmem:[#allocation15 + $0x870] sm:$0xff] }
 0x9c7   : > { %7508 = vmatpush1.bf16.msra.mxu0 %v12939_v58  ;;  %7387 = vmatprep.subr.bf16.mxu1 %v12946_v25 }
 0x9c8   : > { %7509 = vmatprep.subr.bf16.mxu0 %v12948_v31  ;;  %v5671_v31 = vld [vmem:[#allocation15 + $0x858] sm:$0xff] }
 0x9c9   : > { %v5318_v29 = vpop.f32.mrb[100].mxu1  ;;  %v5645_v17 = vld [vmem:[#allocation4 + $0x10] sm:$0xfe]  ;;  %v12728_v22 = vcombine.high %v5671_v31, %v5675_v8 }
 0x9ca   : > { %v5320_v3 = vpop.f32.mrb[101].mxu1  ;;  %7388 = vmatpush1.bf16.msra.mxu1 %v12945_v60  ;;  %v5646_v37 = vld [vmem:[#allocation4 + $0x18] sm:$0xfe]  ;;  %v5653_v35 = vpack.c.bf16 %v5312_v24, %v5645_v17  ;;  %v12719_v60 = vcombine.low %v5663_v4, %v5667_v27 }
 0x9cb   : > { %v5322_v45 = vpop.f32.mrb[102].mxu1  ;;  %7510 = vmatpush1.bf16.msra.mxu0 %v12947_v61  ;;  %7389 = vmatprep.subr.bf16.mxu1 %v12954_v33  ;;  %v5654_v63 = vpack.c.bf16 %v5314_v32, %v5646_v37  ;;  %v12720_v32 = vcombine.high %v5663_v4, %v5667_v27  ;;  %v12726_v61 = vcombine.high %v5670_v20, %v5674_v21  ;;  %v5683_v17 = vld [vmem:[#allocation15 + $0x8b8] sm:$0xff] }
 0x9cc   : > { %v15967_v59 = vpack.c.bf16 %v5322_v45, %v5318_v29  ;;  %v5324_v26 = vpop.f32.mrb[103].mxu1  ;;  %7511 = vmatprep.subr.bf16.mxu0 %v12956_v53  ;;  %v5943_v30 = vshll.u32 %v5653_v35, 16  ;;  %v5941_v6 = vshrl.u32 %v5653_v35, 16  ;;  %v5682_v29 = vld [vmem:[#allocation15 + $0x8b0] sm:$0xff]  ;;  %v12736_v35 = vcombine.high %v5679_v41, %v5683_v17 }
 0x9cd   : > { %v15969_v40 = vpack.c.bf16 %v5324_v26, %v5320_v3  ;;  %v5955_v9 = vshll.u32 %v5654_v63, 16  ;;  %v5953_v39 = vshrl.u32 %v5654_v63, 16  ;;  %v12725_v3 = vcombine.low %v5670_v20, %v5674_v21  ;;  %v5686_v45 = vld [vmem:[#allocation15 + $0x8d0] sm:$0xff]  ;;  %v5687_v63 = vld [vmem:[#allocation15 + $0x8d8] sm:$0xff] }
 0x9ce   : > { %7390 = vmatpush1.bf16.msra.mxu1 %v12953_v10  ;;  %v5945_v51 = vrot.slane %v5943_v30, 1  ;;  %v5948_v62 = vshll.u32 %v15967_v59, 16  ;;  %v12727_v10 = vcombine.low %v5671_v31, %v5675_v8  ;;  %v12734_v37 = vcombine.high %v5678_v1, %v5682_v29  ;;  %v5691_v26 = vld [vmem:[#allocation15 + $0x8f8] sm:$0xff] }
 0x9cf   : > { %7512 = vmatpush1.bf16.msra.mxu0 %v12955_v56  ;;  %7391 = vmatprep.subr.bf16.mxu1 %v12962_v36  ;;  %v5957_v44 = vrot.slane %v5955_v9, 1  ;;  %v5960_v7 = vshll.u32 %v15969_v40, 16  ;;  %v5690_v56 = vld [vmem:[#allocation15 + $0x8f0] sm:$0xff]  ;;  %v12733_v57 = vcombine.low %v5678_v1, %v5682_v29  ;;  %v12744_v4 = vcombine.high %v5687_v63, %v5691_v26  ;;  %v5695_v20 = vld [vmem:[#allocation15 + $0x918] sm:$0xff] }
 0x9d0   : > { %7513 = vmatprep.subr.bf16.mxu0 %v12964_v2  ;;  %v5946_v48 = vor.u32 %v5945_v51, %v5941_v6  ;;  %v15973_v13 = vrot.slane %v5948_v62, 1  ;;  %v12742_v9 = vcombine.high %v5686_v45, %v5690_v56  ;;  %v5988_v27 = vshrl.u32 %v15969_v40, 16  ;;  %v5699_v21 = vld [vmem:[#allocation15 + $0x938] sm:$0xff] }
 0x9d1   : > { %v5328_v24 = vpop.f32.mrb[104].mxu1  ;;  %v5958_v58 = vor.u32 %v5957_v44, %v5953_v39  ;;  %v5962_v25 = vrot.slane %v5960_v7, 1  ;;  %v5980_v62 = vshrl.u32 %v15967_v59, 16  ;;  %v5694_v44 = vld [vmem:[#allocation15 + $0x910] sm:$0xff]  ;;  %v12751_v29 = vcombine.low %v5695_v20, %v5699_v21 }
 0x9d2   : > { %5353 = vst [vmem:[#allocation4 + $0x90] sm:$0xff] %v5328_v24  ;;  %v5330_v49 = vpop.f32.mrb[105].mxu1  ;;  %7392 = vmatpush1.bf16.msra.mxu1 %v12961_v23  ;;  %v15982_v53 = vsel %vm1445_vm3, %v5946_v48, %v15973_v13  ;;  %v12735_v23 = vcombine.low %v5679_v41, %v5683_v17  ;;  %v5698_v48 = vld [vmem:[#allocation15 + $0x930] sm:$0xff] }
 0x9d3   : > { %5354 = vst [vmem:[#allocation4 + $0x98] sm:$0xff] %v5330_v49  ;;  %7514 = vmatpush1.bf16.msra.mxu0 %v12963_v16  ;;  %v15976_v38 = vsel %vm1445_vm3, %v5958_v58, %v5962_v25  ;;  %7544 = vmatprep.subr.bf16.mxu1 %v12718_v28  ;;  %v5332_v33 = vpop.f32.mrb[106].mxu1  ;;  %v5990_v7 = vor.u32 %v5988_v27, %v5962_v25  ;;  %v5702_v49 = vld [vmem:[#allocation15 + $0x950] sm:$0xff] }
 0x9d4   : > { %7393 = vmatprep.mubr.bf16.mxu1 %v15976_v38  ;;  %7515 = vmatprep.mubr.bf16.mxu0 %v15976_v38  ;;  %v5333_v15 = vpop.f32.mrb[107].mxu1  ;;  %v5982_v24 = vor.u32 %v5980_v62, %v15973_v13  ;;  %v12741_v58 = vcombine.low %v5686_v45, %v5690_v56  ;;  %v5703_v13 = vld [vmem:[#allocation15 + $0x958] sm:$0xff]  ;;  %v12749_v1 = vcombine.low %v5694_v44, %v5698_v48  ;;  %v5710_v17 = vld [vmem:[#allocation15 + $0x990] sm:$0xff] }
 0x9d5   : > { %7666 = vmatprep.subr.bf16.mxu0 %v12720_v32  ;;  %7394 = vmatmul.mubr.bf16.vlgmr.msra.gmra.mrb[108].mxu1 %v15982_v53  ;;  %v12743_v32 = vcombine.low %v5687_v63, %v5691_v26  ;;  %v5707_v33 = vld [vmem:[#allocation15 + $0x978] sm:$0xff]  ;;  %v5718_v26 = vld [vmem:[#allocation15 + $0x9d0] sm:$0xff] }
 0x9d6   : > { %7516 = vmatmul.mubr.bf16.vlgmr.msra.gmra.mrb[88].mxu0 %v15982_v53  ;;  %7545 = vmatpush1.bf16.msra.mxu1 %v12717_v54  ;;  %v12750_v54 = vcombine.high %v5694_v44, %v5698_v48  ;;  %v12760_v41 = vcombine.high %v5703_v13, %v5707_v33  ;;  %v12759_v56 = vcombine.low %v5703_v13, %v5707_v33  ;;  %v5730_v27 = vld [vmem:[#allocation15 + $0xa30] sm:$0xff]  ;;  %v5735_v48 = vld [vmem:[#allocation15 + $0xa58] sm:$0xff] }
 0x9d7   : > { %7667 = vmatpush1.bf16.msra.mxu0 %v12719_v60  ;;  %7546 = vmatprep.subr.bf16.mxu1 %v12726_v61  ;;  %v12752_v60 = vcombine.high %v5695_v20, %v5699_v21  ;;  %v5706_v61 = vld [vmem:[#allocation15 + $0x970] sm:$0xff]  ;;  %v5739_v20 = vld [vmem:[#allocation15 + $0xa78] sm:$0xff] }
 0x9d8   : > { %7668 = vmatprep.subr.bf16.mxu0 %v12728_v22  ;;  %v12758_v15 = vcombine.high %v5702_v49, %v5706_v61  ;;  %v12757_v45 = vcombine.low %v5702_v49, %v5706_v61  ;;  %v5742_v49 = vld [vmem:[#allocation15 + $0xa90] sm:$0xff]  ;;  %v5747_v61 = vld [vmem:[#allocation15 + $0xab8] sm:$0xff]  ;;  %v12791_v33 = vcombine.low %v5735_v48, %v5739_v20 }
 0x9d9   : > { %v5649_v36 = vld [vmem:[#allocation4 + $0x90] sm:$0x7f] }
 0x9da   : > { %7547 = vmatpush1.bf16.msra.mxu1 %v12725_v3  ;;  %v5650_v2 = vld [vmem:[#allocation4 + $0x98] sm:$0x7f]  ;;  %v5657_v42 = vpack.c.bf16 %v5649_v36, %v5649_v36 }
 0x9db   : > { %7669 = vmatpush1.bf16.msra.mxu0 %v12727_v10  ;;  %v5658_v30 = vpack.c.bf16 %v5650_v2, %v5650_v2  ;;  %7548 = vmatprep.subr.bf16.mxu1 %v12734_v37  ;;  %v5714_v10 = vld [vmem:[#allocation15 + $0x9b0] sm:$0xff]  ;;  %v5711_v37 = vld [vmem:[#allocation15 + $0x998] sm:$0xff] }
 0x9dc   : > { %7670 = vmatprep.subr.bf16.mxu0 %v12736_v35  ;;  %v5984_v16 = vshll.u32 %v5657_v42, 16  ;;  %v6002_v22 = vshrl.u32 %v5657_v42, 16  ;;  %v5715_v35 = vld [vmem:[#allocation15 + $0x9b8] sm:$0xff]  ;;  %v12766_v36 = vcombine.high %v5710_v17, %v5714_v10  ;;  %v5722_v2 = vld [vmem:[#allocation15 + $0x9f0] sm:$0xff] }
 0x9dd   : > { %v5992_v6 = vshll.u32 %v5658_v30, 16  ;;  %v6005_v51 = vshrl.u32 %v5658_v30, 16  ;;  %v12768_v63 = vcombine.high %v5711_v37, %v5715_v35  ;;  %v5723_v42 = vld [vmem:[#allocation15 + $0x9f8] sm:$0xff]  ;;  %v12765_v30 = vcombine.low %v5710_v17, %v5714_v10 }
 0x9de   : > { %v5986_v39 = vrot.slane %v5984_v16, 1  ;;  %7549 = vmatpush1.bf16.msra.mxu1 %v12733_v57  ;;  %v5719_v57 = vld [vmem:[#allocation15 + $0x9d8] sm:$0xff]  ;;  %v12773_v62 = vcombine.low %v5718_v26, %v5722_v2 }
 0x9df   : > { %v5994_v28 = vrot.slane %v5992_v6, 1  ;;  %7671 = vmatpush1.bf16.msra.mxu0 %v12735_v23  ;;  %7550 = vmatprep.subr.bf16.mxu1 %v12742_v9  ;;  %v12767_v23 = vcombine.low %v5711_v37, %v5715_v35  ;;  %v12774_v9 = vcombine.high %v5718_v26, %v5722_v2  ;;  %v12776_v16 = vcombine.high %v5719_v57, %v5723_v42  ;;  %v5727_v6 = vld [vmem:[#allocation15 + $0xa18] sm:$0xff] }
 0x9e0   : > { %7672 = vmatprep.subr.bf16.mxu0 %v12744_v4  ;;  %v15997_v25 = vsel %vm1445_vm3, %v5982_v24, %v5986_v39  ;;  %v16003_v3 = vor.u32 %v6002_v22, %v5986_v39  ;;  %v5726_v4 = vld [vmem:[#allocation15 + $0xa10] sm:$0xff]  ;;  %v12775_v39 = vcombine.low %v5719_v57, %v5723_v42  ;;  %v5755_v17 = vld [vmem:[#allocation15 + $0xaf8] sm:$0xff] }
 0x9e1   : > { %v15990_v31 = vsel %vm1445_vm3, %v5990_v7, %v5994_v28  ;;  %v15992_v8 = vor.u32 %v6005_v51, %v5994_v28  ;;  %v5731_v51 = vld [vmem:[#allocation15 + $0xa38] sm:$0xff]  ;;  %v12782_v44 = vcombine.high %v5726_v4, %v5730_v27  ;;  %v5734_v7 = vld [vmem:[#allocation15 + $0xa50] sm:$0xff]  ;;  %v12781_v21 = vcombine.low %v5726_v4, %v5730_v27 }
 0x9e2   : > { %7403 = vmatprep.mubr.bf16.mxu1 %v15990_v31  ;;  %7525 = vmatprep.mubr.bf16.mxu0 %v15990_v31  ;;  %v5738_v28 = vld [vmem:[#allocation15 + $0xa70] sm:$0xff]  ;;  %v12783_v24 = vcombine.low %v5727_v6, %v5731_v51  ;;  %v5763_v26 = vld [vmem:[#allocation15 + $0xb38] sm:$0xff] }
 0x9e3   : > { %7404 = vmatmul.mubr.bf16.gmra.mrb[112].mxu1 %v15997_v25  ;;  %7526 = vmatmul.mubr.bf16.gmra.mrb[92].mxu0 %v15997_v25  ;;  %v12789_v13 = vcombine.low %v5734_v7, %v5738_v28  ;;  %v5771_v4 = vld [vmem:[#allocation15 + $0xb78] sm:$0xff] }
 0x9e4   : > { %7551 = vmatpush1.bf16.msra.mxu1 %v12741_v58  ;;  %7673 = vmatpush1.bf16.msra.mxu0 %v12743_v32  ;;  %v12790_v58 = vcombine.high %v5734_v7, %v5738_v28  ;;  %v12792_v32 = vcombine.high %v5735_v48, %v5739_v20  ;;  %v5779_v7 = vld [vmem:[#allocation15 + $0xbb8] sm:$0xff] }
 0x9e5   : > { %7413 = vmatprep.mubr.bf16.mxu1 %v15992_v8  ;;  %7535 = vmatprep.mubr.bf16.mxu0 %v15992_v8 }
 0x9e6   : > { %7552 = vmatprep.subr.bf16.mxu1 %v12750_v54  ;;  %7674 = vmatprep.subr.bf16.mxu0 %v12752_v60  ;;  %v5746_v54 = vld [vmem:[#allocation15 + $0xab0] sm:$0xff]  ;;  %v5743_v60 = vld [vmem:[#allocation15 + $0xa98] sm:$0xff] }
 0x9e7   : > { %v12798_v22 = vcombine.high %v5742_v49, %v5746_v54  ;;  %v12797_v10 = vcombine.low %v5742_v49, %v5746_v54  ;;  %v12799_v37 = vcombine.low %v5743_v60, %v5747_v61  ;;  %v5787_v49 = vld [vmem:[#allocation15 + $0xbf8] sm:$0xff] }
 0x9e8   : > { %7553 = vmatpush1.bf16.msra.mxu1 %v12749_v1  ;;  %7675 = vmatpush1.bf16.msra.mxu0 %v12751_v29  ;;  %v12800_v1 = vcombine.high %v5743_v60, %v5747_v61  ;;  %v5750_v29 = vld [vmem:[#allocation15 + $0xad0] sm:$0xff] }
 0x9e9   : > { %7554 = vmatprep.subr.bf16.mxu1 %v12758_v15  ;;  %7676 = vmatprep.subr.bf16.mxu0 %v12760_v41  ;;  %v5754_v15 = vld [vmem:[#allocation15 + $0xaf0] sm:$0xff]  ;;  %v5751_v41 = vld [vmem:[#allocation15 + $0xad8] sm:$0xff] }
 0x9ea   : > { %v12806_v35 = vcombine.high %v5750_v29, %v5754_v15  ;;  %v12805_v2 = vcombine.low %v5750_v29, %v5754_v15  ;;  %v12807_v57 = vcombine.low %v5751_v41, %v5755_v17  ;;  %v5795_v29 = vld [vmem:[#allocation15 + $0xc38] sm:$0xff] }
 0x9eb   : > { %7414 = vmatmul.mubr.bf16.gmra.mrb[120].mxu1 %v16003_v3  ;;  %7536 = vmatmul.mubr.bf16.gmra.mrb[100].mxu0 %v16003_v3 }
 0x9ec   : > { %7576 = vmatprep.mubr.bf16.mxu1 %v15926_v18  ;;  %7698 = vmatprep.mubr.bf16.mxu0 %v15926_v18  ;;  %v12784_v18 = vcombine.high %v5727_v6, %v5731_v51 }
 0x9ed   : > { %7555 = vmatpush1.bf16.msra.mxu1 %v12757_v45  ;;  %7677 = vmatpush1.bf16.msra.mxu0 %v12759_v56  ;;  %v12808_v45 = vcombine.high %v5751_v41, %v5755_v17  ;;  %v5758_v56 = vld [vmem:[#allocation15 + $0xb10] sm:$0xff] }
 0x9ee   : > { %7556 = vmatprep.subr.bf16.mxu1 %v12766_v36  ;;  %7678 = vmatprep.subr.bf16.mxu0 %v12768_v63  ;;  %v5762_v36 = vld [vmem:[#allocation15 + $0xb30] sm:$0xff]  ;;  %v5759_v63 = vld [vmem:[#allocation15 + $0xb18] sm:$0xff] }
 0x9ef   : > { %v12814_v42 = vcombine.high %v5758_v56, %v5762_v36  ;;  %v12813_v27 = vcombine.low %v5758_v56, %v5762_v36  ;;  %v12815_v6 = vcombine.low %v5759_v63, %v5763_v26  ;;  %v5803_v56 = vld [vmem:[#allocation15 + $0xc78] sm:$0xff] }
 0x9f1   : > { %7557 = vmatpush1.bf16.msra.mxu1 %v12765_v30  ;;  %7679 = vmatpush1.bf16.msra.mxu0 %v12767_v23  ;;  %v12816_v30 = vcombine.high %v5759_v63, %v5763_v26  ;;  %v5766_v23 = vld [vmem:[#allocation15 + $0xb50] sm:$0xff] }
 0x9f2   : > { %7558 = vmatprep.subr.bf16.mxu1 %v12774_v9  ;;  %7680 = vmatprep.subr.bf16.mxu0 %v12776_v16  ;;  %v5770_v9 = vld [vmem:[#allocation15 + $0xb70] sm:$0xff]  ;;  %v5767_v16 = vld [vmem:[#allocation15 + $0xb58] sm:$0xff] }
 0x9f3   : > { %v12822_v51 = vcombine.high %v5766_v23, %v5770_v9  ;;  %v12821_v28 = vcombine.low %v5766_v23, %v5770_v9  ;;  %v12823_v48 = vcombine.low %v5767_v16, %v5771_v4  ;;  %v5811_v23 = vld [vmem:[#allocation15 + $0xcb8] sm:$0xff] }
 0x9f5   : > { %7559 = vmatpush1.bf16.msra.mxu1 %v12773_v62  ;;  %7681 = vmatpush1.bf16.msra.mxu0 %v12775_v39  ;;  %v12824_v62 = vcombine.high %v5767_v16, %v5771_v4  ;;  %v5774_v39 = vld [vmem:[#allocation15 + $0xb90] sm:$0xff] }
 0x9f6   : > { %7560 = vmatprep.subr.bf16.mxu1 %v12782_v44  ;;  %7682 = vmatprep.subr.bf16.mxu0 %v12784_v18  ;;  %v5778_v44 = vld [vmem:[#allocation15 + $0xbb0] sm:$0xff]  ;;  %v5775_v18 = vld [vmem:[#allocation15 + $0xb98] sm:$0xff] }
 0x9f7   : > { %v12830_v20 = vcombine.high %v5774_v39, %v5778_v44  ;;  %v12829_v54 = vcombine.low %v5774_v39, %v5778_v44  ;;  %v12831_v60 = vcombine.low %v5775_v18, %v5779_v7  ;;  %v5819_v39 = vld [vmem:[#allocation15 + $0xcf8] sm:$0xff] }
 0x9f9   : > { %7561 = vmatpush1.bf16.msra.mxu1 %v12781_v21  ;;  %7683 = vmatpush1.bf16.msra.mxu0 %v12783_v24  ;;  %v12832_v21 = vcombine.high %v5775_v18, %v5779_v7  ;;  %v5782_v24 = vld [vmem:[#allocation15 + $0xbd0] sm:$0xff] }
 0x9fa   : > { %7562 = vmatprep.subr.bf16.mxu1 %v12790_v58  ;;  %7684 = vmatprep.subr.bf16.mxu0 %v12792_v32  ;;  %v5786_v58 = vld [vmem:[#allocation15 + $0xbf0] sm:$0xff]  ;;  %v5783_v32 = vld [vmem:[#allocation15 + $0xbd8] sm:$0xff] }
 0x9fb   : > { %v12838_v61 = vcombine.high %v5782_v24, %v5786_v58  ;;  %v12837_v15 = vcombine.low %v5782_v24, %v5786_v58  ;;  %v12839_v41 = vcombine.low %v5783_v32, %v5787_v49 }
 0x9fd   : > { %7563 = vmatpush1.bf16.msra.mxu1 %v12789_v13  ;;  %7685 = vmatpush1.bf16.msra.mxu0 %v12791_v33  ;;  %v12840_v13 = vcombine.high %v5783_v32, %v5787_v49  ;;  %v5790_v33 = vld [vmem:[#allocation15 + $0xc10] sm:$0xff] }
 0x9fe   : > { %7564 = vmatprep.subr.bf16.mxu1 %v12798_v22  ;;  %7686 = vmatprep.subr.bf16.mxu0 %v12800_v1  ;;  %v5794_v22 = vld [vmem:[#allocation15 + $0xc30] sm:$0xff]  ;;  %v5791_v1 = vld [vmem:[#allocation15 + $0xc18] sm:$0xff] }
 0x9ff   : > { %v12846_v17 = vcombine.high %v5790_v33, %v5794_v22  ;;  %v12845_v36 = vcombine.low %v5790_v33, %v5794_v22  ;;  %v12847_v63 = vcombine.low %v5791_v1, %v5795_v29  ;;  %v5830_v49 = vld [vmem:[#allocation15 + $0xd50] sm:$0xff] }
 0xa01   : > { %7565 = vmatpush1.bf16.msra.mxu1 %v12797_v10  ;;  %7687 = vmatpush1.bf16.msra.mxu0 %v12799_v37  ;;  %v12848_v10 = vcombine.high %v5791_v1, %v5795_v29  ;;  %v5798_v37 = vld [vmem:[#allocation15 + $0xc50] sm:$0xff]  ;;  %v5839_v29 = vld [vmem:[#allocation15 + $0xd98] sm:$0xff] }
 0xa02   : > { %7566 = vmatprep.subr.bf16.mxu1 %v12806_v35  ;;  %7688 = vmatprep.subr.bf16.mxu0 %v12808_v45  ;;  %v5802_v35 = vld [vmem:[#allocation15 + $0xc70] sm:$0xff]  ;;  %v5799_v45 = vld [vmem:[#allocation15 + $0xc58] sm:$0xff] }
 0xa03   : > { %v12854_v26 = vcombine.high %v5798_v37, %v5802_v35  ;;  %v12853_v9 = vcombine.low %v5798_v37, %v5802_v35  ;;  %v12855_v16 = vcombine.low %v5799_v45, %v5803_v56  ;;  %v5838_v1 = vld [vmem:[#allocation15 + $0xd90] sm:$0xff] }
 0xa04   : > { %v5846_v35 = vld [vmem:[#allocation15 + $0xdd0] sm:$0xff] }
 0xa05   : > { %7567 = vmatpush1.bf16.msra.mxu1 %v12805_v2  ;;  %7689 = vmatpush1.bf16.msra.mxu0 %v12807_v57  ;;  %v12856_v2 = vcombine.high %v5799_v45, %v5803_v56  ;;  %v5806_v57 = vld [vmem:[#allocation15 + $0xc90] sm:$0xff]  ;;  %v5847_v56 = vld [vmem:[#allocation15 + $0xdd8] sm:$0xff] }
 0xa06   : > { %7568 = vmatprep.subr.bf16.mxu1 %v12814_v42  ;;  %7690 = vmatprep.subr.bf16.mxu0 %v12816_v30  ;;  %v5810_v42 = vld [vmem:[#allocation15 + $0xcb0] sm:$0xff]  ;;  %v5807_v30 = vld [vmem:[#allocation15 + $0xc98] sm:$0xff] }
 0xa07   : > { %v12862_v4 = vcombine.high %v5806_v57, %v5810_v42  ;;  %v12863_v44 = vcombine.low %v5807_v30, %v5811_v23  ;;  %v5850_v45 = vld [vmem:[#allocation15 + $0xdf0] sm:$0xff] }
 0xa09   : > { %7569 = vmatpush1.bf16.msra.mxu1 %v12813_v27  ;;  %7691 = vmatpush1.bf16.msra.mxu0 %v12815_v6  ;;  %v12864_v27 = vcombine.high %v5807_v30, %v5811_v23  ;;  %v5814_v6 = vld [vmem:[#allocation15 + $0xcd0] sm:$0xff]  ;;  %v5859_v30 = vld [vmem:[#allocation15 + $0xe38] sm:$0xff]  ;;  %v12901_v23 = vcombine.low %v5846_v35, %v5850_v45 }
 0xa0a   : > { %7570 = vmatprep.subr.bf16.mxu1 %v12822_v51  ;;  %7692 = vmatprep.subr.bf16.mxu0 %v12824_v62  ;;  %v5818_v51 = vld [vmem:[#allocation15 + $0xcf0] sm:$0xff]  ;;  %v5815_v62 = vld [vmem:[#allocation15 + $0xcd8] sm:$0xff] }
 0xa0b   : > { %v12870_v18 = vcombine.high %v5814_v6, %v5818_v51  ;;  %v12872_v7 = vcombine.high %v5815_v62, %v5819_v39  ;;  %v12871_v24 = vcombine.low %v5815_v62, %v5819_v39  ;;  %v5867_v62 = vld [vmem:[#allocation15 + $0xe78] sm:$0xff] }
 0xa0d   : > { %7571 = vmatpush1.bf16.msra.mxu1 %v12821_v28  ;;  %7693 = vmatpush1.bf16.msra.mxu0 %v12823_v48  ;;  %v5822_v28 = vld [vmem:[#allocation15 + $0xd10] sm:$0xff]  ;;  %v5823_v48 = vld [vmem:[#allocation15 + $0xd18] sm:$0xff] }
 0xa0e   : > { %7572 = vmatprep.subr.bf16.mxu1 %v12830_v20  ;;  %7694 = vmatprep.subr.bf16.mxu0 %v12832_v21  ;;  %v5827_v20 = vld [vmem:[#allocation15 + $0xd38] sm:$0xff]  ;;  %v12869_v21 = vcombine.low %v5814_v6, %v5818_v51  ;;  %v5866_v6 = vld [vmem:[#allocation15 + $0xe70] sm:$0xff] }
 0xa0f   : > { %v12880_v32 = vcombine.high %v5823_v48, %v5827_v20  ;;  %v5863_v51 = vld [vmem:[#allocation15 + $0xe58] sm:$0xff] }
 0xa11   : > { %7573 = vmatpush1.bf16.msra.mxu1 %v12829_v54  ;;  %7695 = vmatpush1.bf16.msra.mxu0 %v12831_v60  ;;  %v5834_v54 = vld [vmem:[#allocation15 + $0xd70] sm:$0xff]  ;;  %v5831_v60 = vld [vmem:[#allocation15 + $0xd58] sm:$0xff] }
 0xa12   : > { %7574 = vmatprep.subr.bf16.mxu1 %v12838_v61  ;;  %7696 = vmatprep.subr.bf16.mxu0 %v12840_v13  ;;  %v5835_v61 = vld [vmem:[#allocation15 + $0xd78] sm:$0xff]  ;;  %v12879_v13 = vcombine.low %v5823_v48, %v5827_v20  ;;  %v12886_v33 = vcombine.high %v5830_v49, %v5834_v54 }
 0xa13   : > { %v12888_v22 = vcombine.high %v5831_v60, %v5835_v61  ;;  %v5875_v48 = vld [vmem:[#allocation15 + $0xeb8] sm:$0xff] }
 0xa15   : > { %7575 = vmatpush1.bf16.msra.mxu1 %v12837_v15  ;;  %7697 = vmatpush1.bf16.msra.mxu0 %v12839_v41  ;;  %v5843_v15 = vld [vmem:[#allocation15 + $0xdb8] sm:$0xff]  ;;  %v12885_v41 = vcombine.low %v5830_v49, %v5834_v54  ;;  %v5882_v49 = vld [vmem:[#allocation15 + $0xef0] sm:$0xff] }
 0xa16   : > { %7605 = vmatprep.subr.bf16.mxu1 %v12846_v17  ;;  %7727 = vmatprep.subr.bf16.mxu0 %v12848_v10  ;;  %v12887_v17 = vcombine.low %v5831_v60, %v5835_v61  ;;  %v12896_v37 = vcombine.high %v5839_v29, %v5843_v15  ;;  %v5879_v54 = vld [vmem:[#allocation15 + $0xed8] sm:$0xff] }
 0xa17   : > { %v5883_v60 = vld [vmem:[#allocation15 + $0xef8] sm:$0xff] }
 0xa18   : > { %7577 = vmatmul.mubr.bf16.vlgmr.msra.gmra.mrb[124].mxu1 %v15932_v43  ;;  %7699 = vmatmul.mubr.bf16.vlgmr.msra.gmra.mrb[104].mxu0 %v15932_v43  ;;  %v12861_v43 = vcombine.low %v5806_v57, %v5810_v42  ;;  %v5854_v57 = vld [vmem:[#allocation15 + $0xe10] sm:$0xff] }
 0xa19   : > { %7586 = vmatprep.mubr.bf16.mxu1 %v15948_v46  ;;  %7606 = vmatpush1.bf16.msra.mxu1 %v12845_v36  ;;  %v5851_v36 = vld [vmem:[#allocation15 + $0xdf8] sm:$0xff]  ;;  %v5858_v42 = vld [vmem:[#allocation15 + $0xe30] sm:$0xff] }
 0xa1a   : > { %7708 = vmatprep.mubr.bf16.mxu0 %v15948_v46  ;;  %7728 = vmatpush1.bf16.msra.mxu0 %v12847_v63  ;;  %v5826_v46 = vld [vmem:[#allocation15 + $0xd30] sm:$0xff]  ;;  %v12895_v63 = vcombine.low %v5839_v29, %v5843_v15  ;;  %v12909_v39 = vcombine.low %v5854_v57, %v5858_v42  ;;  %v5891_v29 = vld [vmem:[#allocation15 + $0xf38] sm:$0xff] }
 0xa1b   : > { %7607 = vmatprep.subr.bf16.mxu1 %v12854_v26  ;;  %7729 = vmatprep.subr.bf16.mxu0 %v12856_v2  ;;  %v12878_v58 = vcombine.high %v5822_v28, %v5826_v46  ;;  %v12902_v26 = vcombine.high %v5846_v35, %v5850_v45  ;;  %v12904_v2 = vcombine.high %v5847_v56, %v5851_v36  ;;  %v5898_v35 = vld [vmem:[#allocation15 + $0xf70] sm:$0xff]  ;;  %v5895_v45 = vld [vmem:[#allocation15 + $0xf58] sm:$0xff] }
 0xa1d   : > { %7608 = vmatpush1.bf16.msra.mxu1 %v12853_v9  ;;  %v12903_v9 = vcombine.low %v5847_v56, %v5851_v36  ;;  %v5899_v56 = vld [vmem:[#allocation15 + $0xf78] sm:$0xff] }
 0xa1e   : > { %7730 = vmatpush1.bf16.msra.mxu0 %v12855_v16  ;;  %7609 = vmatprep.subr.bf16.mxu1 %v12862_v4  ;;  %v12910_v16 = vcombine.high %v5854_v57, %v5858_v42  ;;  %v5906_v57 = vld [vmem:[#allocation15 + $0xfb0] sm:$0xff]  ;;  %v5903_v42 = vld [vmem:[#allocation15 + $0xf98] sm:$0xff] }
 0xa1f   : > { %7731 = vmatprep.subr.bf16.mxu0 %v12864_v27  ;;  %v5862_v27 = vld [vmem:[#allocation15 + $0xe50] sm:$0xff] }
 0xa20   : > { %7587 = vmatmul.mubr.bf16.gmra.mrb[128].mxu1 %v15956_v34  ;;  %7709 = vmatmul.mubr.bf16.gmra.mrb[108].mxu0 %v15956_v34  ;;  %v12877_v34 = vcombine.low %v5822_v28, %v5826_v46  ;;  %v5874_v28 = vld [vmem:[#allocation15 + $0xeb0] sm:$0xff]  ;;  %v5871_v46 = vld [vmem:[#allocation15 + $0xe98] sm:$0xff]  ;;  %v12917_v20 = vcombine.low %v5862_v27, %v5866_v6 }
 0xa21   : > { %7596 = vmatprep.mubr.bf16.mxu1 %v15952_v47  ;;  %7610 = vmatpush1.bf16.msra.mxu1 %v12861_v43 }
 0xa22   : > { %7718 = vmatprep.mubr.bf16.mxu0 %v15952_v47  ;;  %7732 = vmatpush1.bf16.msra.mxu0 %v12863_v44  ;;  %v5842_v47 = vld [vmem:[#allocation15 + $0xdb0] sm:$0xff]  ;;  %v12918_v44 = vcombine.high %v5862_v27, %v5866_v6  ;;  %v5911_v6 = vld [vmem:[#allocation15 + $0xfd8] sm:$0xff] }
 0xa23   : > { %7611 = vmatprep.subr.bf16.mxu1 %v12870_v18  ;;  %7733 = vmatprep.subr.bf16.mxu0 %v12872_v7  ;;  %v12894_v10 = vcombine.high %v5838_v1, %v5842_v47  ;;  %v12920_v18 = vcombine.high %v5863_v51, %v5867_v62  ;;  %v5870_v7 = vld [vmem:[#allocation15 + $0xe90] sm:$0xff] }
 0xa24   : > { %v12925_v61 = vcombine.low %v5870_v7, %v5874_v28  ;;  %v5914_v27 = vld [vmem:[#allocation15 + $0xff0] sm:$0xff] }
 0xa25   : > { %7612 = vmatpush1.bf16.msra.mxu1 %v12869_v21  ;;  %v12919_v21 = vcombine.low %v5863_v51, %v5867_v62  ;;  %v5915_v51 = vld [vmem:[#allocation15 + $0xff8] sm:$0xff] }
 0xa26   : > { %7734 = vmatpush1.bf16.msra.mxu0 %v12871_v24  ;;  %7613 = vmatprep.subr.bf16.mxu1 %v12878_v58  ;;  %v12926_v24 = vcombine.high %v5870_v7, %v5874_v28  ;;  %v12928_v58 = vcombine.high %v5871_v46, %v5875_v48  ;;  %v5391_v7 = vld [vmem:[#allocation15 + $0x20] sm:$0xff]  ;;  %v5388_v28 = vld [vmem:[#allocation15 + $0x8] sm:$0xff] }
 0xa27   : > { %7735 = vmatprep.subr.bf16.mxu0 %v12880_v32  ;;  %v5878_v32 = vld [vmem:[#allocation15 + $0xed0] sm:$0xff] }
 0xa28   : > { %7597 = vmatmul.mubr.bf16.gmra.mrb[132].mxu1 %v15963_v19  ;;  %7719 = vmatmul.mubr.bf16.gmra.mrb[112].mxu0 %v15963_v19  ;;  %v12893_v19 = vcombine.low %v5838_v1, %v5842_v47  ;;  %v5890_v1 = vld [vmem:[#allocation15 + $0xf30] sm:$0xff]  ;;  %v5887_v47 = vld [vmem:[#allocation15 + $0xf18] sm:$0xff]  ;;  %v12933_v15 = vcombine.low %v5878_v32, %v5882_v49 }
 0xa29   : > { %7614 = vmatpush1.bf16.msra.mxu1 %v12877_v34  ;;  %7637 = vmatprep.mubr.bf16.mxu1 %v15976_v38  ;;  %v12927_v34 = vcombine.low %v5871_v46, %v5875_v48  ;;  %v5392_v46 = vld [vmem:[#allocation15 + $0x28] sm:$0xff] }
 0xa2a   : > { %7736 = vmatpush1.bf16.msra.mxu0 %v12879_v13  ;;  %7759 = vmatprep.mubr.bf16.mxu0 %v15976_v38  ;;  %v5855_v38 = vld [vmem:[#allocation15 + $0xe18] sm:$0xff]  ;;  %v12934_v13 = vcombine.high %v5878_v32, %v5882_v49  ;;  %v5399_v32 = vld [vmem:[#allocation15 + $0x60] sm:$0xff]  ;;  %v5396_v49 = vld [vmem:[#allocation15 + $0x48] sm:$0xff] }
 0xa2b   : > { %7615 = vmatprep.subr.bf16.mxu1 %v12886_v33  ;;  %7737 = vmatprep.subr.bf16.mxu0 %v12888_v22  ;;  %v12912_v4 = vcombine.high %v5855_v38, %v5859_v30  ;;  %v12911_v43 = vcombine.low %v5855_v38, %v5859_v30  ;;  %v12936_v33 = vcombine.high %v5879_v54, %v5883_v60  ;;  %v5886_v22 = vld [vmem:[#allocation15 + $0xf10] sm:$0xff]  ;;  %v5907_v38 = vld [vmem:[#allocation15 + $0xfb8] sm:$0xff] }
 0xa2c   : > { %v12941_v36 = vcombine.low %v5886_v22, %v5890_v1 }
 0xa2d   : > { %7616 = vmatpush1.bf16.msra.mxu1 %v12885_v41  ;;  %v12935_v41 = vcombine.low %v5879_v54, %v5883_v60  ;;  %v5400_v54 = vld [vmem:[#allocation15 + $0x68] sm:$0xff] }
 0xa2e   : > { %7738 = vmatpush1.bf16.msra.mxu0 %v12887_v17  ;;  %7617 = vmatprep.subr.bf16.mxu1 %v12894_v10  ;;  %v12942_v17 = vcombine.high %v5886_v22, %v5890_v1  ;;  %v12944_v10 = vcombine.high %v5887_v47, %v5891_v29  ;;  %v5407_v22 = vld [vmem:[#allocation15 + $0xa0] sm:$0xff]  ;;  %v5404_v1 = vld [vmem:[#allocation15 + $0x88] sm:$0xff] }
 0xa2f   : > { %7739 = vmatprep.subr.bf16.mxu0 %v12896_v37  ;;  %v5894_v37 = vld [vmem:[#allocation15 + $0xf50] sm:$0xff] }
 0xa30   : > { %v12949_v30 = vcombine.low %v5894_v37, %v5898_v35 }
 0xa31   : > { %7618 = vmatpush1.bf16.msra.mxu1 %v12893_v19  ;;  %v12943_v19 = vcombine.low %v5887_v47, %v5891_v29  ;;  %v5408_v47 = vld [vmem:[#allocation15 + $0xa8] sm:$0xff] }
 0xa32   : > { %7740 = vmatpush1.bf16.msra.mxu0 %v12895_v63  ;;  %7619 = vmatprep.subr.bf16.mxu1 %v12902_v26  ;;  %v12950_v63 = vcombine.high %v5894_v37, %v5898_v35  ;;  %v12952_v26 = vcombine.high %v5895_v45, %v5899_v56  ;;  %v5415_v37 = vld [vmem:[#allocation15 + $0xe0] sm:$0xff]  ;;  %v5412_v35 = vld [vmem:[#allocation15 + $0xc8] sm:$0xff] }
 0xa33   : > { %7741 = vmatprep.subr.bf16.mxu0 %v12904_v2  ;;  %v5902_v2 = vld [vmem:[#allocation15 + $0xf90] sm:$0xff] }
 0xa34   : > { %v12957_v62 = vcombine.low %v5902_v2, %v5906_v57 }
 0xa35   : > { %7620 = vmatpush1.bf16.msra.mxu1 %v12901_v23  ;;  %v12951_v23 = vcombine.low %v5895_v45, %v5899_v56  ;;  %v5416_v45 = vld [vmem:[#allocation15 + $0xe8] sm:$0xff]  ;;  %v12987_v56 = vcombine.low %v5404_v1, %v5408_v47 }
 0xa36   : > { %7742 = vmatpush1.bf16.msra.mxu0 %v12903_v9  ;;  %7621 = vmatprep.subr.bf16.mxu1 %v12910_v16  ;;  %v12958_v9 = vcombine.high %v5902_v2, %v5906_v57  ;;  %v12960_v16 = vcombine.high %v5903_v42, %v5907_v38  ;;  %v5424_v2 = vld [vmem:[#allocation15 + $0x128] sm:$0xff] }
 0xa37   : > { %7743 = vmatprep.subr.bf16.mxu0 %v12912_v4  ;;  %v5910_v4 = vld [vmem:[#allocation15 + $0xfd0] sm:$0xff] }
 0xa38   : > { %v12965_v48 = vcombine.low %v5910_v4, %v5914_v27 }
 0xa39   : > { %7622 = vmatpush1.bf16.msra.mxu1 %v12909_v39  ;;  %v12959_v39 = vcombine.low %v5903_v42, %v5907_v38  ;;  %v12995_v42 = vcombine.low %v5412_v35, %v5416_v45 }
 0xa3a   : > { %7744 = vmatpush1.bf16.msra.mxu0 %v12911_v43  ;;  %7623 = vmatprep.subr.bf16.mxu1 %v12918_v44  ;;  %v12966_v43 = vcombine.high %v5910_v4, %v5914_v27  ;;  %v12968_v44 = vcombine.high %v5911_v6, %v5915_v51  ;;  %v5428_v4 = vld [vmem:[#allocation15 + $0x148] sm:$0xff] }
 0xa3b   : > { %7745 = vmatprep.subr.bf16.mxu0 %v12920_v18  ;;  %v5387_v18 = vld [vmem:[#allocation15] sm:$0xff]  ;;  %v5432_v27 = vld [vmem:[#allocation15 + $0x168] sm:$0xff] }
 0xa3c   : > { %v12969_v60 = vcombine.low %v5387_v18, %v5391_v7 }
 0xa3d   : > { %7624 = vmatpush1.bf16.msra.mxu1 %v12917_v20  ;;  %v12967_v20 = vcombine.low %v5911_v6, %v5915_v51  ;;  %v14546_v51 = vld [vmem:[#allocation4 + $0x28] sm:$0xff] }
 0xa3e   : > { %7746 = vmatpush1.bf16.msra.mxu0 %v12919_v21  ;;  %7625 = vmatprep.subr.bf16.mxu1 %v12926_v24  ;;  %v12970_v21 = vcombine.high %v5387_v18, %v5391_v7  ;;  %v12972_v24 = vcombine.high %v5388_v28, %v5392_v46  ;;  %v5436_v18 = vld [vmem:[#allocation15 + $0x188] sm:$0xff] }
 0xa3f   : > { %7747 = vmatprep.subr.bf16.mxu0 %v12928_v58  ;;  %v5395_v58 = vld [vmem:[#allocation15 + $0x40] sm:$0xff]  ;;  %v5440_v7 = vld [vmem:[#allocation15 + $0x1a8] sm:$0xff] }
 0xa40   : > { %v12977_v29 = vcombine.low %v5395_v58, %v5399_v32 }
 0xa41   : > { %7626 = vmatpush1.bf16.msra.mxu1 %v12925_v61  ;;  %v12971_v61 = vcombine.low %v5388_v28, %v5392_v46  ;;  %v13011_v46 = vcombine.low %v5428_v4, %v5432_v27 }
 0xa42   : > { %7748 = vmatpush1.bf16.msra.mxu0 %v12927_v34  ;;  %7627 = vmatprep.subr.bf16.mxu1 %v12934_v13  ;;  %v12978_v34 = vcombine.high %v5395_v58, %v5399_v32  ;;  %v12980_v13 = vcombine.high %v5396_v49, %v5400_v54  ;;  %v5444_v58 = vld [vmem:[#allocation15 + $0x1c8] sm:$0xff] }
 0xa43   : > { %7749 = vmatprep.subr.bf16.mxu0 %v12936_v33  ;;  %v5403_v33 = vld [vmem:[#allocation15 + $0x80] sm:$0xff]  ;;  %v5448_v32 = vld [vmem:[#allocation15 + $0x1e8] sm:$0xff] }
 0xa45   : > { %7628 = vmatpush1.bf16.msra.mxu1 %v12933_v15  ;;  %v12979_v15 = vcombine.low %v5396_v49, %v5400_v54  ;;  %v13019_v49 = vcombine.low %v5436_v18, %v5440_v7 }
 0xa46   : > { %7750 = vmatpush1.bf16.msra.mxu0 %v12935_v41  ;;  %7629 = vmatprep.subr.bf16.mxu1 %v12942_v17  ;;  %v12986_v41 = vcombine.high %v5403_v33, %v5407_v22  ;;  %v12988_v17 = vcombine.high %v5404_v1, %v5408_v47  ;;  %v13027_v1 = vcombine.low %v5444_v58, %v5448_v32 }
 0xa47   : > { %7751 = vmatprep.subr.bf16.mxu0 %v12944_v10  ;;  %v5411_v10 = vld [vmem:[#allocation15 + $0xc0] sm:$0xff] }
 0xa48   : > { %v12993_v57 = vcombine.low %v5411_v10, %v5415_v37 }
 0xa49   : > { %7630 = vmatpush1.bf16.msra.mxu1 %v12941_v36  ;;  %v12994_v36 = vcombine.high %v5411_v10, %v5415_v37  ;;  %v5464_v10 = vld [vmem:[#allocation15 + $0x268] sm:$0xff] }
 0xa4a   : > { %7752 = vmatpush1.bf16.msra.mxu0 %v12943_v19  ;;  %7631 = vmatprep.subr.bf16.mxu1 %v12950_v63  ;;  %v5419_v19 = vld [vmem:[#allocation15 + $0x100] sm:$0xff] }
 0xa4b   : > { %7753 = vmatprep.subr.bf16.mxu0 %v12952_v26  ;;  %v5423_v63 = vld [vmem:[#allocation15 + $0x120] sm:$0xff]  ;;  %v5420_v26 = vld [vmem:[#allocation15 + $0x108] sm:$0xff] }
 0xa4c   : > { %v13002_v38 = vcombine.high %v5419_v19, %v5423_v63  ;;  %v13003_v6 = vcombine.low %v5420_v26, %v5424_v2 }
 0xa4d   : > { %7632 = vmatpush1.bf16.msra.mxu1 %v12949_v30  ;;  %v13004_v30 = vcombine.high %v5420_v26, %v5424_v2 }
 0xa4e   : > { %7754 = vmatpush1.bf16.msra.mxu0 %v12951_v23  ;;  %7633 = vmatprep.subr.bf16.mxu1 %v12958_v9  ;;  %v5356_v23 = vld [vmem:[#allocation4 + $0x8] sm:$0xff]  ;;  %v5427_v9 = vld [vmem:[#allocation15 + $0x140] sm:$0xff] }
 0xa4f   : > { %7755 = vmatprep.subr.bf16.mxu0 %v12960_v16  ;;  %v5431_v16 = vld [vmem:[#allocation15 + $0x160] sm:$0xff] }
 0xa50   : > { %v13009_v28 = vcombine.low %v5427_v9, %v5431_v16 }
 0xa51   : > { %7634 = vmatpush1.bf16.msra.mxu1 %v12957_v62  ;;  %v13010_v62 = vcombine.high %v5427_v9, %v5431_v16 }
 0xa52   : > { %7756 = vmatpush1.bf16.msra.mxu0 %v12959_v39  ;;  %7635 = vmatprep.subr.bf16.mxu1 %v12966_v43  ;;  %v13012_v39 = vcombine.high %v5428_v4, %v5432_v27  ;;  %v5435_v43 = vld [vmem:[#allocation15 + $0x180] sm:$0xff] }
 0xa53   : > { %7757 = vmatprep.subr.bf16.mxu0 %v12968_v44  ;;  %v5439_v44 = vld [vmem:[#allocation15 + $0x1a0] sm:$0xff] }
 0xa55   : > { %7636 = vmatpush1.bf16.msra.mxu1 %v12965_v48  ;;  %v13018_v48 = vcombine.high %v5435_v43, %v5439_v44 }
 0xa56   : > { %7758 = vmatpush1.bf16.msra.mxu0 %v12967_v20  ;;  %9068 = vmatprep.subr.bf16.mxu1 %v12970_v21  ;;  %v13020_v20 = vcombine.high %v5436_v18, %v5440_v7  ;;  %v5443_v21 = vld [vmem:[#allocation15 + $0x1c0] sm:$0xff] }
 0xa57   : > { %9190 = vmatprep.subr.bf16.mxu0 %v12972_v24  ;;  %v5447_v24 = vld [vmem:[#allocation15 + $0x1e0] sm:$0xff] }
 0xa58   : > { %7638 = vmatmul.mubr.bf16.vlgmr.msra.gmra.mrb[124].mxu1 %v15982_v53  ;;  %v13026_v54 = vcombine.high %v5443_v21, %v5447_v24 }
 0xa59   : > { %7760 = vmatmul.mubr.bf16.vlgmr.msra.gmra.mrb[104].mxu0 %v15982_v53  ;;  %7647 = vmatprep.mubr.bf16.mxu1 %v15990_v31  ;;  %v12985_v53 = vcombine.low %v5403_v33, %v5407_v22  ;;  %v5456_v33 = vld [vmem:[#allocation15 + $0x228] sm:$0xff]  ;;  %v13025_v22 = vcombine.low %v5443_v21, %v5447_v24 }
 0xa5a   : > { %7769 = vmatprep.mubr.bf16.mxu0 %v15990_v31  ;;  %9069 = vmatpush1.bf16.msra.mxu1 %v12969_v60  ;;  %v12996_v31 = vcombine.high %v5412_v35, %v5416_v45  ;;  %v13028_v60 = vcombine.high %v5444_v58, %v5448_v32  ;;  %v5491_v32 = vld [vmem:[#allocation15 + $0x340] sm:$0xff] }
 0xa5b   : > { %9191 = vmatpush1.bf16.msra.mxu0 %v12971_v61  ;;  %9070 = vmatprep.subr.bf16.mxu1 %v12978_v34  ;;  %v5451_v61 = vld [vmem:[#allocation15 + $0x200] sm:$0xff] }
 0xa5c   : > { %9192 = vmatprep.subr.bf16.mxu0 %v12980_v13  ;;  %v5455_v34 = vld [vmem:[#allocation15 + $0x220] sm:$0xff]  ;;  %v5452_v13 = vld [vmem:[#allocation15 + $0x208] sm:$0xff] }
 0xa5d   : > { %v13034_v47 = vcombine.high %v5451_v61, %v5455_v34  ;;  %v13033_v37 = vcombine.low %v5451_v61, %v5455_v34  ;;  %v13035_v35 = vcombine.low %v5452_v13, %v5456_v33 }
 0xa5e   : > { %9071 = vmatpush1.bf16.msra.mxu1 %v12977_v29  ;;  %v13036_v29 = vcombine.high %v5452_v13, %v5456_v33  ;;  %v5499_v33 = vld [vmem:[#allocation15 + $0x380] sm:$0xff] }
 0xa5f   : > { %9193 = vmatpush1.bf16.msra.mxu0 %v12979_v15  ;;  %9072 = vmatprep.subr.bf16.mxu1 %v12986_v41  ;;  %v5459_v15 = vld [vmem:[#allocation15 + $0x240] sm:$0xff] }
 0xa60   : > { %7648 = vmatmul.mubr.bf16.gmra.mrb[128].mxu1 %v15997_v25  ;;  %9194 = vmatprep.subr.bf16.mxu0 %v12988_v17  ;;  %v5463_v41 = vld [vmem:[#allocation15 + $0x260] sm:$0xff]  ;;  %v5460_v17 = vld [vmem:[#allocation15 + $0x248] sm:$0xff] }
 0xa61   : > { %7770 = vmatmul.mubr.bf16.gmra.mrb[108].mxu0 %v15997_v25  ;;  %7657 = vmatprep.mubr.bf16.mxu1 %v15992_v8  ;;  %v13001_v25 = vcombine.low %v5419_v19, %v5423_v63  ;;  %v13042_v45 = vcombine.high %v5459_v15, %v5463_v41  ;;  %v5472_v19 = vld [vmem:[#allocation15 + $0x2a8] sm:$0xff]  ;;  %v13041_v63 = vcombine.low %v5459_v15, %v5463_v41 }
 0xa62   : > { %7779 = vmatprep.mubr.bf16.mxu0 %v15992_v8  ;;  %9073 = vmatpush1.bf16.msra.mxu1 %v12985_v53  ;;  %v16029_v8 = vpack.c.bf16 %v14546_v51, %v5356_v23  ;;  %v13044_v53 = vcombine.high %v5460_v17, %v5464_v10  ;;  %v13043_v26 = vcombine.low %v5460_v17, %v5464_v10  ;;  %v5480_v23 = vld [vmem:[#allocation15 + $0x2e8] sm:$0xff]  ;;  %v5487_v51 = vld [vmem:[#allocation15 + $0x320] sm:$0xff] }
 0xa63   : > { %9195 = vmatpush1.bf16.msra.mxu0 %v12987_v56  ;;  %9074 = vmatprep.subr.bf16.mxu1 %v12994_v36  ;;  %v5467_v56 = vld [vmem:[#allocation15 + $0x280] sm:$0xff] }
 0xa64   : > { %9196 = vmatprep.subr.bf16.mxu0 %v12996_v31  ;;  %v5471_v36 = vld [vmem:[#allocation15 + $0x2a0] sm:$0xff]  ;;  %v5468_v31 = vld [vmem:[#allocation15 + $0x288] sm:$0xff] }
 0xa65   : > { %v13050_v2 = vcombine.high %v5467_v56, %v5471_v36  ;;  %v13049_v9 = vcombine.low %v5467_v56, %v5471_v36  ;;  %v13051_v16 = vcombine.low %v5468_v31, %v5472_v19  ;;  %v5507_v10 = vld [vmem:[#allocation15 + $0x3c0] sm:$0xff] }
 0xa66   : > { %9075 = vmatpush1.bf16.msra.mxu1 %v12993_v57  ;;  %v13052_v57 = vcombine.high %v5468_v31, %v5472_v19  ;;  %v5515_v19 = vld [vmem:[#allocation15 + $0x400] sm:$0xff] }
 0xa67   : > { %9197 = vmatpush1.bf16.msra.mxu0 %v12995_v42  ;;  %9076 = vmatprep.subr.bf16.mxu1 %v13002_v38  ;;  %v5475_v42 = vld [vmem:[#allocation15 + $0x2c0] sm:$0xff] }
 0xa68   : > { %7658 = vmatmul.mubr.bf16.gmra.mrb[136].mxu1 %v16003_v3  ;;  %9198 = vmatprep.subr.bf16.mxu0 %v13004_v30  ;;  %v5479_v38 = vld [vmem:[#allocation15 + $0x2e0] sm:$0xff]  ;;  %v5476_v30 = vld [vmem:[#allocation15 + $0x2c8] sm:$0xff] }
 0xa69   : > { %7780 = vmatmul.mubr.bf16.gmra.mrb[116].mxu0 %v16003_v3  ;;  %9100 = vmatprep.mubr.bf16.mxu1 %v16029_v8  ;;  %v13017_v3 = vcombine.low %v5435_v43, %v5439_v44  ;;  %v13058_v4 = vcombine.high %v5475_v42, %v5479_v38  ;;  %v5484_v43 = vld [vmem:[#allocation15 + $0x308] sm:$0xff] }
 0xa6a   : > { %9077 = vmatpush1.bf16.msra.mxu1 %v13001_v25  ;;  %9222 = vmatprep.mubr.bf16.mxu0 %v16029_v8  ;;  %v13060_v25 = vcombine.high %v5476_v30, %v5480_v23  ;;  %v5488_v44 = vld [vmem:[#allocation15 + $0x328] sm:$0xff] }
 0xa6b   : > { %9199 = vmatpush1.bf16.msra.mxu0 %v13003_v6  ;;  %9078 = vmatprep.subr.bf16.mxu1 %v13010_v62  ;;  %v5483_v6 = vld [vmem:[#allocation15 + $0x300] sm:$0xff]  ;;  %v13068_v58 = vcombine.high %v5484_v43, %v5488_v44  ;;  %v13067_v61 = vcombine.low %v5484_v43, %v5488_v44 }
 0xa6c   : > { %9200 = vmatprep.subr.bf16.mxu0 %v13012_v39  ;;  %v13066_v21 = vcombine.high %v5483_v6, %v5487_v51 }
 0xa6e   : > { %9079 = vmatpush1.bf16.msra.mxu1 %v13009_v28  ;;  %v13057_v28 = vcombine.low %v5475_v42, %v5479_v38 }
 0xa6f   : > { %9201 = vmatpush1.bf16.msra.mxu0 %v13011_v46  ;;  %9080 = vmatprep.subr.bf16.mxu1 %v13018_v48 }
 0xa70   : > { %9202 = vmatprep.subr.bf16.mxu0 %v13020_v20  ;;  %v13059_v20 = vcombine.low %v5476_v30, %v5480_v23  ;;  %v5355_v30 = vld [vmem:[#allocation4] sm:$0xff] }
 0xa72   : > { %9081 = vmatpush1.bf16.msra.mxu1 %v13017_v3  ;;  %v5495_v3 = vld [vmem:[#allocation15 + $0x360] sm:$0xff] }
 0xa73   : > { %9203 = vmatpush1.bf16.msra.mxu0 %v13019_v49  ;;  %9082 = vmatprep.subr.bf16.mxu1 %v13026_v54  ;;  %v5492_v49 = vld [vmem:[#allocation15 + $0x348] sm:$0xff]  ;;  %v13074_v34 = vcombine.high %v5491_v32, %v5495_v3 }
 0xa74   : > { %9204 = vmatprep.subr.bf16.mxu0 %v13028_v60  ;;  %v5496_v54 = vld [vmem:[#allocation15 + $0x368] sm:$0xff]  ;;  %v13065_v60 = vcombine.low %v5483_v6, %v5487_v51 }
 0xa75   : > { %v13076_v13 = vcombine.high %v5492_v49, %v5496_v54  ;;  %v13075_v15 = vcombine.low %v5492_v49, %v5496_v54  ;;  %v14547_v6 = vld [vmem:[#allocation4 + $0x20] sm:$0xff]  ;;  %v5372_v49 = vld [vmem:[#allocation4 + $0x88] sm:$0x3f] }
 0xa76   : > { %9083 = vmatpush1.bf16.msra.mxu1 %v13025_v22  ;;  %v5503_v22 = vld [vmem:[#allocation15 + $0x3a0] sm:$0xff]  ;;  %v16043_v51 = vpack.c.bf16 %v14547_v6, %v5355_v30 }
 0xa77   : > { %9205 = vmatpush1.bf16.msra.mxu0 %v13027_v1  ;;  %9084 = vmatprep.subr.bf16.mxu1 %v13034_v47  ;;  %v5500_v1 = vld [vmem:[#allocation15 + $0x388] sm:$0xff]  ;;  %v13082_v41 = vcombine.high %v5499_v33, %v5503_v22  ;;  %v5539_v54 = vld [vmem:[#allocation15 + $0x4c0] sm:$0xff] }
 0xa78   : > { %9206 = vmatprep.subr.bf16.mxu0 %v13036_v29  ;;  %v5504_v47 = vld [vmem:[#allocation15 + $0x3a8] sm:$0xff]  ;;  %v13073_v29 = vcombine.low %v5491_v32, %v5495_v3 }
 0xa79   : > { %v13084_v17 = vcombine.high %v5500_v1, %v5504_v47  ;;  %v13083_v56 = vcombine.low %v5500_v1, %v5504_v47 }
 0xa7a   : > { %9085 = vmatpush1.bf16.msra.mxu1 %v13033_v37  ;;  %v5511_v37 = vld [vmem:[#allocation15 + $0x3e0] sm:$0xff] }
 0xa7b   : > { %9207 = vmatpush1.bf16.msra.mxu0 %v13035_v35  ;;  %9086 = vmatprep.subr.bf16.mxu1 %v13042_v45  ;;  %v5508_v35 = vld [vmem:[#allocation15 + $0x3c8] sm:$0xff]  ;;  %v13090_v36 = vcombine.high %v5507_v10, %v5511_v37 }
 0xa7c   : > { %9208 = vmatprep.subr.bf16.mxu0 %v13044_v53  ;;  %v5512_v45 = vld [vmem:[#allocation15 + $0x3e8] sm:$0xff]  ;;  %v13081_v53 = vcombine.low %v5499_v33, %v5503_v22  ;;  %v16049_v22 = vpack.c.bf16 %v5372_v49, %v5372_v49  ;;  %v5583_v49 = vld [vmem:[#allocation15 + $0x620] sm:$0xff] }
 0xa7d   : > { %v13092_v31 = vcombine.high %v5508_v35, %v5512_v45  ;;  %v13091_v42 = vcombine.low %v5508_v35, %v5512_v45  ;;  %v5371_v35 = vld [vmem:[#allocation4 + $0x80] sm:$0x3f] }
 0xa7e   : > { %9087 = vmatpush1.bf16.msra.mxu1 %v13041_v63  ;;  %v5519_v63 = vld [vmem:[#allocation15 + $0x420] sm:$0xff] }
 0xa7f   : > { %9209 = vmatpush1.bf16.msra.mxu0 %v13043_v26  ;;  %9088 = vmatprep.subr.bf16.mxu1 %v13050_v2  ;;  %v16035_v27 = vpop.f32.mrb[116].mxu1  ;;  %v5516_v26 = vld [vmem:[#allocation15 + $0x408] sm:$0xff]  ;;  %v13098_v38 = vcombine.high %v5515_v19, %v5519_v63  ;;  %v13097_v43 = vcombine.low %v5515_v19, %v5519_v63 }
 0xa80   : > { %9210 = vmatprep.subr.bf16.mxu0 %v13052_v57  ;;  %v16037_v62 = vpop.f32.mrb[96].mxu0  ;;  %v16039_v39 = vpop.f32.mrb[117].mxu1  ;;  %v5520_v2 = vld [vmem:[#allocation15 + $0x428] sm:$0xff]  ;;  %v13089_v57 = vcombine.low %v5507_v10, %v5511_v37 }
 0xa81   : > { %v16041_v18 = vpop.f32.mrb[97].mxu0  ;;  %v7358_v7 = vpop.f32.mrb[118].mxu1  ;;  %v13100_v23 = vcombine.high %v5516_v26, %v5520_v2  ;;  %v13099_v44 = vcombine.low %v5516_v26, %v5520_v2  ;;  %v5556_v19 = vld [vmem:[#allocation15 + $0x548] sm:$0xff]  ;;  %v16055_v26 = vpack.c.bf16 %v5371_v35, %v5371_v35  ;;  %v5595_v35 = vld [vmem:[#allocation15 + $0x680] sm:$0xff] }
 0xa82   : > { %9089 = vmatpush1.bf16.msra.mxu1 %v13049_v9  ;;  %v7480_v46 = vpop.f32.mrb[98].mxu0  ;;  %v7359_v48 = vpop.f32.mrb[119].mxu1  ;;  %v5523_v9 = vld [vmem:[#allocation15 + $0x440] sm:$0xff]  ;;  %v5560_v63 = vld [vmem:[#allocation15 + $0x568] sm:$0xff] }
 0xa83   : > { %9211 = vmatpush1.bf16.msra.mxu0 %v13051_v16  ;;  %9090 = vmatprep.subr.bf16.mxu1 %v13058_v4  ;;  %v7481_v24 = vpop.f32.mrb[99].mxu0  ;;  %v5527_v16 = vld [vmem:[#allocation15 + $0x460] sm:$0xff]  ;;  %v5524_v4 = vld [vmem:[#allocation15 + $0x448] sm:$0xff] }
 0xa84   : > { %9212 = vmatprep.subr.bf16.mxu0 %v13060_v25  ;;  %v5528_v25 = vld [vmem:[#allocation15 + $0x468] sm:$0xff]  ;;  %v13106_v7 = vcombine.high %v5523_v9, %v5527_v16  ;;  %v5531_v46 = vld [vmem:[#allocation15 + $0x480] sm:$0xff]  ;;  %v13105_v24 = vcombine.low %v5523_v9, %v5527_v16 }
 0xa85   : > { %v5535_v48 = vld [vmem:[#allocation15 + $0x4a0] sm:$0xff] }
 0xa86   : > { %9091 = vmatpush1.bf16.msra.mxu1 %v13057_v28  ;;  %v13108_v28 = vcombine.high %v5524_v4, %v5528_v25  ;;  %v13114_v32 = vcombine.high %v5531_v46, %v5535_v48  ;;  %v5563_v9 = vld [vmem:[#allocation15 + $0x580] sm:$0xff] }
 0xa87   : > { %9213 = vmatpush1.bf16.msra.mxu0 %v13059_v20  ;;  %9092 = vmatprep.subr.bf16.mxu1 %v13066_v21  ;;  %v5532_v20 = vld [vmem:[#allocation15 + $0x488] sm:$0xff]  ;;  %v5567_v16 = vld [vmem:[#allocation15 + $0x5a0] sm:$0xff] }
 0xa88   : > { %9214 = vmatprep.subr.bf16.mxu0 %v13068_v58  ;;  %v5536_v21 = vld [vmem:[#allocation15 + $0x4a8] sm:$0xff]  ;;  %v13107_v58 = vcombine.low %v5524_v4, %v5528_v25 }
 0xa89   : > { %v13116_v3 = vcombine.high %v5532_v20, %v5536_v21  ;;  %v13115_v33 = vcombine.low %v5532_v20, %v5536_v21  ;;  %v5564_v4 = vld [vmem:[#allocation15 + $0x588] sm:$0xff]  ;;  %v13145_v21 = vcombine.low %v5563_v9, %v5567_v16 }
 0xa8a   : > { %9093 = vmatpush1.bf16.msra.mxu1 %v13065_v60  ;;  %v5543_v60 = vld [vmem:[#allocation15 + $0x4e0] sm:$0xff]  ;;  %v5568_v25 = vld [vmem:[#allocation15 + $0x5a8] sm:$0xff] }
 0xa8b   : > { %9215 = vmatpush1.bf16.msra.mxu0 %v13067_v61  ;;  %9094 = vmatprep.subr.bf16.mxu1 %v13074_v34  ;;  %v5540_v61 = vld [vmem:[#allocation15 + $0x4c8] sm:$0xff]  ;;  %v13122_v1 = vcombine.high %v5539_v54, %v5543_v60  ;;  %v13121_v10 = vcombine.low %v5539_v54, %v5543_v60 }
 0xa8c   : > { %9216 = vmatprep.subr.bf16.mxu0 %v13076_v13  ;;  %v5544_v34 = vld [vmem:[#allocation15 + $0x4e8] sm:$0xff]  ;;  %v13113_v13 = vcombine.low %v5531_v46, %v5535_v48  ;;  %v5575_v46 = vld [vmem:[#allocation15 + $0x5e0] sm:$0xff] }
 0xa8d   : > { %v13124_v47 = vcombine.high %v5540_v61, %v5544_v34  ;;  %v13123_v37 = vcombine.low %v5540_v61, %v5544_v34  ;;  %v5572_v48 = vld [vmem:[#allocation15 + $0x5c8] sm:$0xff] }
 0xa8e   : > { %9095 = vmatpush1.bf16.msra.mxu1 %v13073_v29  ;;  %v5547_v29 = vld [vmem:[#allocation15 + $0x500] sm:$0xff]  ;;  %v5576_v20 = vld [vmem:[#allocation15 + $0x5e8] sm:$0xff] }
 0xa8f   : > { %9217 = vmatpush1.bf16.msra.mxu0 %v13075_v15  ;;  %9096 = vmatprep.subr.bf16.mxu1 %v13082_v41  ;;  %v5551_v15 = vld [vmem:[#allocation15 + $0x520] sm:$0xff]  ;;  %v5548_v41 = vld [vmem:[#allocation15 + $0x508] sm:$0xff]  ;;  %v13155_v34 = vcombine.low %v5572_v48, %v5576_v20 }
 0xa90   : > { %9218 = vmatprep.subr.bf16.mxu0 %v13084_v17  ;;  %v5552_v17 = vld [vmem:[#allocation15 + $0x528] sm:$0xff]  ;;  %v13130_v45 = vcombine.high %v5547_v29, %v5551_v15  ;;  %v13129_v2 = vcombine.low %v5547_v29, %v5551_v15 }
 0xa91   : > { %v5580_v54 = vld [vmem:[#allocation15 + $0x608] sm:$0xff] }
 0xa92   : > { %9097 = vmatpush1.bf16.msra.mxu1 %v13081_v53  ;;  %v13132_v53 = vcombine.high %v5548_v41, %v5552_v17  ;;  %v5584_v60 = vld [vmem:[#allocation15 + $0x628] sm:$0xff] }
 0xa93   : > { %9219 = vmatpush1.bf16.msra.mxu0 %v13083_v56  ;;  %9098 = vmatprep.subr.bf16.mxu1 %v13090_v36  ;;  %v5358_v56 = vld [vmem:[#allocation4 + $0x18] sm:$0xff]  ;;  %v5588_v29 = vld [vmem:[#allocation15 + $0x648] sm:$0xff] }
 0xa94   : > { %9220 = vmatprep.subr.bf16.mxu0 %v13092_v31  ;;  %v5555_v36 = vld [vmem:[#allocation15 + $0x540] sm:$0xff]  ;;  %v5592_v15 = vld [vmem:[#allocation15 + $0x668] sm:$0xff] }
 0xa95   : > { %v5559_v31 = vld [vmem:[#allocation15 + $0x560] sm:$0xff] }
 0xa96   : > { %9099 = vmatpush1.bf16.msra.mxu1 %v13089_v57  ;;  %v13131_v57 = vcombine.low %v5548_v41, %v5552_v17  ;;  %v13138_v30 = vcombine.high %v5555_v36, %v5559_v31  ;;  %v13137_v6 = vcombine.low %v5555_v36, %v5559_v31  ;;  %v13163_v17 = vcombine.low %v5580_v54, %v5584_v60 }
 0xa97   : > { %9221 = vmatpush1.bf16.msra.mxu0 %v13091_v42  ;;  %9129 = vmatprep.subr.bf16.mxu1 %v13098_v38  ;;  %v14548_v42 = vld [vmem:[#allocation4 + $0x38] sm:$0xff]  ;;  %v13171_v31 = vcombine.low %v5588_v29, %v5592_v15 }
 0xa98   : > { %9251 = vmatprep.subr.bf16.mxu0 %v13100_v23  ;;  %v16057_v38 = vpack.c.bf16 %v14548_v42, %v5358_v56  ;;  %v13140_v23 = vcombine.high %v5556_v19, %v5560_v63  ;;  %v5600_v56 = vld [vmem:[#allocation15 + $0x6a8] sm:$0xff] }
 0xa99   : > { %9101 = vmatmul.mubr.bf16.vlgmr.msra.gmra.mrb[108].mxu1 %v16043_v51 }
 0xa9a   : > { %9223 = vmatmul.mubr.bf16.vlgmr.msra.gmra.mrb[88].mxu0 %v16043_v51  ;;  %9110 = vmatprep.mubr.bf16.mxu1 %v15919_v50 }
 0xa9b   : > { %9130 = vmatpush1.bf16.msra.mxu1 %v13097_v43  ;;  %9232 = vmatprep.mubr.bf16.mxu0 %v15919_v50  ;;  %v13139_v43 = vcombine.low %v5556_v19, %v5560_v63 }
 0xa9c   : > { %9252 = vmatpush1.bf16.msra.mxu0 %v13099_v44  ;;  %9131 = vmatprep.subr.bf16.mxu1 %v13106_v7  ;;  %v13146_v44 = vcombine.high %v5563_v9, %v5567_v16  ;;  %v13148_v7 = vcombine.high %v5564_v4, %v5568_v25  ;;  %v5608_v9 = vld [vmem:[#allocation15 + $0x6e8] sm:$0xff] }
 0xa9d   : > { %9253 = vmatprep.subr.bf16.mxu0 %v13108_v28  ;;  %v5571_v28 = vld [vmem:[#allocation15 + $0x5c0] sm:$0xff] }
 0xa9e   : > { %v13153_v61 = vcombine.low %v5571_v28, %v5575_v46 }
 0xa9f   : > { %9132 = vmatpush1.bf16.msra.mxu1 %v13105_v24  ;;  %v13147_v24 = vcombine.low %v5564_v4, %v5568_v25 }
 0xaa0   : > { %9254 = vmatpush1.bf16.msra.mxu0 %v13107_v58  ;;  %9133 = vmatprep.subr.bf16.mxu1 %v13114_v32  ;;  %v13154_v58 = vcombine.high %v5571_v28, %v5575_v46  ;;  %v13156_v32 = vcombine.high %v5572_v48, %v5576_v20 }
 0xaa1   : > { %9111 = vmatmul.mubr.bf16.gmra.mrb[112].mxu1 %v15917_v52  ;;  %9255 = vmatprep.subr.bf16.mxu0 %v13116_v3  ;;  %v5579_v3 = vld [vmem:[#allocation15 + $0x600] sm:$0xff] }
 0xaa2   : > { %9233 = vmatmul.mubr.bf16.gmra.mrb[92].mxu0 %v15917_v52  ;;  %9120 = vmatprep.mubr.bf16.mxu1 %v16049_v22  ;;  %v13161_v41 = vcombine.low %v5579_v3, %v5583_v49 }
 0xaa3   : > { %9134 = vmatpush1.bf16.msra.mxu1 %v13113_v13  ;;  %9242 = vmatprep.mubr.bf16.mxu0 %v16049_v22  ;;  %v13162_v13 = vcombine.high %v5579_v3, %v5583_v49  ;;  %v5616_v3 = vld [vmem:[#allocation15 + $0x728] sm:$0xff] }
 0xaa4   : > { %9256 = vmatpush1.bf16.msra.mxu0 %v13115_v33  ;;  %9135 = vmatprep.subr.bf16.mxu1 %v13122_v1  ;;  %v13164_v33 = vcombine.high %v5580_v54, %v5584_v60  ;;  %v5587_v1 = vld [vmem:[#allocation15 + $0x640] sm:$0xff] }
 0xaa5   : > { %9257 = vmatprep.subr.bf16.mxu0 %v13124_v47  ;;  %v5591_v47 = vld [vmem:[#allocation15 + $0x660] sm:$0xff] }
 0xaa6   : > { %v13169_v36 = vcombine.low %v5587_v1, %v5591_v47  ;;  %v5619_v60 = vld [vmem:[#allocation15 + $0x740] sm:$0xff] }
 0xaa7   : > { %9136 = vmatpush1.bf16.msra.mxu1 %v13121_v10  ;;  %v13170_v10 = vcombine.high %v5587_v1, %v5591_v47 }
 0xaa8   : > { %9258 = vmatpush1.bf16.msra.mxu0 %v13123_v37  ;;  %9137 = vmatprep.subr.bf16.mxu1 %v13130_v45  ;;  %v13172_v37 = vcombine.high %v5588_v29, %v5592_v15  ;;  %v5599_v45 = vld [vmem:[#allocation15 + $0x6a0] sm:$0xff] }
 0xaa9   : > { %9121 = vmatmul.mubr.bf16.gmra.mrb[140].mxu1 %v16055_v26  ;;  %9259 = vmatprep.subr.bf16.mxu0 %v13132_v53  ;;  %v5596_v53 = vld [vmem:[#allocation15 + $0x688] sm:$0xff]  ;;  %v13178_v19 = vcombine.high %v5595_v35, %v5599_v45  ;;  %v5627_v15 = vld [vmem:[#allocation15 + $0x780] sm:$0xff] }
 0xaaa   : > { %9243 = vmatmul.mubr.bf16.gmra.mrb[120].mxu0 %v16055_v26  ;;  %9161 = vmatprep.mubr.bf16.mxu1 %v16057_v38  ;;  %v13180_v63 = vcombine.high %v5596_v53, %v5600_v56 }
 0xaab   : > { %9138 = vmatpush1.bf16.msra.mxu1 %v13129_v2  ;;  %9283 = vmatprep.mubr.bf16.mxu0 %v16057_v38  ;;  %v5603_v2 = vld [vmem:[#allocation15 + $0x6c0] sm:$0xff] }
 0xaac   : > { %9260 = vmatpush1.bf16.msra.mxu0 %v13131_v57  ;;  %9139 = vmatprep.subr.bf16.mxu1 %v13138_v30  ;;  %v5607_v57 = vld [vmem:[#allocation15 + $0x6e0] sm:$0xff] }
 0xaad   : > { %9261 = vmatprep.subr.bf16.mxu0 %v13140_v23  ;;  %v5604_v23 = vld [vmem:[#allocation15 + $0x6c8] sm:$0xff]  ;;  %v13186_v46 = vcombine.high %v5603_v2, %v5607_v57  ;;  %v13185_v49 = vcombine.low %v5603_v2, %v5607_v57 }
 0xaae   : > { %v13188_v20 = vcombine.high %v5604_v23, %v5608_v9 }
 0xaaf   : > { %9140 = vmatpush1.bf16.msra.mxu1 %v13137_v6 }
 0xab0   : > { %9262 = vmatpush1.bf16.msra.mxu0 %v13139_v43  ;;  %9141 = vmatprep.subr.bf16.mxu1 %v13146_v44  ;;  %v13177_v43 = vcombine.low %v5595_v35, %v5599_v45  ;;  %v13179_v44 = vcombine.low %v5596_v53, %v5600_v56  ;;  %v5635_v56 = vld [vmem:[#allocation15 + $0x7c0] sm:$0xff] }
 0xab1   : > { %9263 = vmatprep.subr.bf16.mxu0 %v13148_v7 }
 0xab3   : > { %9142 = vmatpush1.bf16.msra.mxu1 %v13145_v21  ;;  %v5615_v21 = vld [vmem:[#allocation15 + $0x720] sm:$0xff] }
 0xab4   : > { %9264 = vmatpush1.bf16.msra.mxu0 %v13147_v24  ;;  %9143 = vmatprep.subr.bf16.mxu1 %v13154_v58 }
 0xab5   : > { %9265 = vmatprep.subr.bf16.mxu0 %v13156_v32  ;;  %v5612_v32 = vld [vmem:[#allocation15 + $0x708] sm:$0xff] }
 0xab6   : > { %v13196_v54 = vcombine.high %v5612_v32, %v5616_v3  ;;  %v13195_v1 = vcombine.low %v5612_v32, %v5616_v3 }
 0xab7   : > { %9144 = vmatpush1.bf16.msra.mxu1 %v13153_v61  ;;  %v5623_v61 = vld [vmem:[#allocation15 + $0x760] sm:$0xff] }
 0xab8   : > { %9266 = vmatpush1.bf16.msra.mxu0 %v13155_v34  ;;  %9145 = vmatprep.subr.bf16.mxu1 %v13162_v13  ;;  %v5620_v34 = vld [vmem:[#allocation15 + $0x748] sm:$0xff]  ;;  %v13202_v47 = vcombine.high %v5619_v60, %v5623_v61 }
 0xab9   : > { %9267 = vmatprep.subr.bf16.mxu0 %v13164_v33  ;;  %v5624_v13 = vld [vmem:[#allocation15 + $0x768] sm:$0xff] }
 0xaba   : > { %v13204_v29 = vcombine.high %v5620_v34, %v5624_v13  ;;  %v13203_v35 = vcombine.low %v5620_v34, %v5624_v13 }
 0xabb   : > { %9146 = vmatpush1.bf16.msra.mxu1 %v13161_v41  ;;  %v5631_v41 = vld [vmem:[#allocation15 + $0x7a0] sm:$0xff] }
 0xabc   : > { %9268 = vmatpush1.bf16.msra.mxu0 %v13163_v17  ;;  %9147 = vmatprep.subr.bf16.mxu1 %v13170_v10  ;;  %v5628_v17 = vld [vmem:[#allocation15 + $0x788] sm:$0xff]  ;;  %v13210_v45 = vcombine.high %v5627_v15, %v5631_v41 }
 0xabd   : > { %9269 = vmatprep.subr.bf16.mxu0 %v13172_v37  ;;  %v5632_v10 = vld [vmem:[#allocation15 + $0x7a8] sm:$0xff]  ;;  %v13201_v37 = vcombine.low %v5619_v60, %v5623_v61  ;;  %v5406_v60 = vld [vmem:[#allocation15 + $0x98] sm:$0xff] }
 0xabe   : > { %v7415_v42 = vpop.f32.mrb[120].mxu1  ;;  %v7537_v30 = vpop.f32.mrb[100].mxu0  ;;  %v13212_v53 = vcombine.high %v5628_v17, %v5632_v10  ;;  %v13211_v2 = vcombine.low %v5628_v17, %v5632_v10  ;;  %v5410_v61 = vld [vmem:[#allocation15 + $0xb8] sm:$0xff] }
 0xabf   : > { %v16064_v16 = vadd.f32 %v7415_v42, %v16035_v27  ;;  %v16067_v4 = vadd.f32 %v7537_v30, %v16037_v62  ;;  %v7417_v25 = vpop.f32.mrb[121].mxu1  ;;  %v7539_v6 = vpop.f32.mrb[101].mxu0  ;;  %9148 = vmatpush1.bf16.msra.mxu1 %v13169_v36  ;;  %v5611_v62 = vld [vmem:[#allocation15 + $0x700] sm:$0xff]  ;;  %v5389_v30 = vld [vmem:[#allocation15 + $0x10] sm:$0xff]  ;;  %v5418_v17 = vld [vmem:[#allocation15 + $0xf8] sm:$0xff] }
 0xac0   : > { %v16070_v7 = vadd.f32 %v7417_v25, %v16039_v39  ;;  %v16073_v28 = vadd.f32 %v7539_v6, %v16041_v18  ;;  %9270 = vmatpush1.bf16.msra.mxu0 %v13171_v31  ;;  %9149 = vmatprep.subr.bf16.mxu1 %v13178_v19  ;;  %v7419_v48 = vpop.f32.mrb[122].mxu1  ;;  %v7541_v27 = vpop.f32.mrb[102].mxu0  ;;  %v13187_v39 = vcombine.low %v5604_v23, %v5608_v9  ;;  %v5639_v36 = vld [vmem:[#allocation15 + $0x7e0] sm:$0xff]  ;;  %v5636_v31 = vld [vmem:[#allocation15 + $0x7c8] sm:$0xff]  ;;  %v5393_v23 = vld [vmem:[#allocation15 + $0x30] sm:$0xff] }
 0xac1   : > { %9271 = vmatprep.subr.bf16.mxu0 %v13180_v63  ;;  %v7420_v24 = vpop.f32.mrb[123].mxu1  ;;  %v7542_v58 = vpop.f32.mrb[103].mxu0  ;;  %v13194_v18 = vcombine.high %v5611_v62, %v5615_v21  ;;  %v13193_v33 = vcombine.low %v5611_v62, %v5615_v21  ;;  %v5640_v19 = vld [vmem:[#allocation15 + $0x7e8] sm:$0xff]  ;;  %v13209_v63 = vcombine.low %v5627_v15, %v5631_v41  ;;  %v13218_v57 = vcombine.high %v5635_v56, %v5639_v36  ;;  %v5390_v9 = vld [vmem:[#allocation15 + $0x18] sm:$0xff]  ;;  %v5397_v27 = vld [vmem:[#allocation15 + $0x50] sm:$0xff] }
 0xac2   : > { %v13220_v42 = vcombine.high %v5636_v31, %v5640_v19  ;;  %v5394_v25 = vld [vmem:[#allocation15 + $0x38] sm:$0xff]  ;;  %v13217_v6 = vcombine.low %v5635_v56, %v5639_v36  ;;  %v12973_v32 = vcombine.low %v5389_v30, %v5393_v23  ;;  %v5417_v15 = vld [vmem:[#allocation15 + $0xf0] sm:$0xff] }
 0xac3   : > { %9150 = vmatpush1.bf16.msra.mxu1 %v13177_v43  ;;  %v13219_v43 = vcombine.low %v5636_v31, %v5640_v19  ;;  %v12976_v48 = vcombine.high %v5390_v9, %v5394_v25  ;;  %v5398_v62 = vld [vmem:[#allocation15 + $0x58] sm:$0xff]  ;;  %v12975_v3 = vcombine.low %v5390_v9, %v5394_v25  ;;  %v5421_v56 = vld [vmem:[#allocation15 + $0x110] sm:$0xff] }
 0xac4   : > { %9272 = vmatpush1.bf16.msra.mxu0 %v13179_v44  ;;  %9151 = vmatprep.subr.bf16.mxu1 %v13186_v46  ;;  %v12974_v44 = vcombine.high %v5389_v30, %v5393_v23  ;;  %v5357_v46 = vld [vmem:[#allocation4 + $0x10] sm:$0xff] }
 0xac5   : > { %9273 = vmatprep.subr.bf16.mxu0 %v13188_v20  ;;  %v5401_v20 = vld [vmem:[#allocation15 + $0x70] sm:$0xff]  ;;  %v5402_v21 = vld [vmem:[#allocation15 + $0x78] sm:$0xff] }
 0xac6   : > { %v14549_v24 = vld [vmem:[#allocation4 + $0x30] sm:$0xff]  ;;  %v12981_v34 = vcombine.low %v5397_v27, %v5401_v20  ;;  %v12983_v13 = vcombine.low %v5398_v62, %v5402_v21 }
 0xac7   : > { %9152 = vmatpush1.bf16.msra.mxu1 %v13185_v49  ;;  %v16075_v58 = vpack.c.bf16 %v14549_v24, %v5357_v46  ;;  %v12982_v49 = vcombine.high %v5397_v27, %v5401_v20  ;;  %v5414_v41 = vld [vmem:[#allocation15 + $0xd8] sm:$0xff]  ;;  %v5425_v36 = vld [vmem:[#allocation15 + $0x130] sm:$0xff] }
 0xac8   : > { %9274 = vmatpush1.bf16.msra.mxu0 %v13187_v39  ;;  %9153 = vmatprep.subr.bf16.mxu1 %v13194_v18  ;;  %v12984_v39 = vcombine.high %v5398_v62, %v5402_v21  ;;  %v5405_v18 = vld [vmem:[#allocation15 + $0x90] sm:$0xff]  ;;  %v5422_v31 = vld [vmem:[#allocation15 + $0x118] sm:$0xff] }
 0xac9   : > { %9275 = vmatprep.subr.bf16.mxu0 %v13196_v54  ;;  %v5409_v54 = vld [vmem:[#allocation15 + $0xb0] sm:$0xff]  ;;  %v5426_v19 = vld [vmem:[#allocation15 + $0x138] sm:$0xff] }
 0xaca   : > { %v12989_v10 = vcombine.low %v5405_v18, %v5409_v54  ;;  %v13008_v30 = vcombine.high %v5422_v31, %v5426_v19  ;;  %v5429_v23 = vld [vmem:[#allocation15 + $0x150] sm:$0xff]  ;;  %v5430_v25 = vld [vmem:[#allocation15 + $0x158] sm:$0xff]  ;;  %v13007_v46 = vcombine.low %v5422_v31, %v5426_v19 }
 0xacb   : > { %9154 = vmatpush1.bf16.msra.mxu1 %v13193_v33  ;;  %v12990_v33 = vcombine.high %v5405_v18, %v5409_v54  ;;  %v5433_v9 = vld [vmem:[#allocation15 + $0x170] sm:$0xff]  ;;  %v5438_v21 = vld [vmem:[#allocation15 + $0x198] sm:$0xff] }
 0xacc   : > { %9276 = vmatpush1.bf16.msra.mxu0 %v13195_v1  ;;  %9155 = vmatprep.subr.bf16.mxu1 %v13202_v47  ;;  %v12992_v1 = vcombine.high %v5406_v60, %v5410_v61  ;;  %v5374_v47 = vld [vmem:[#allocation4 + $0x98] sm:$0x3f]  ;;  %v5437_v20 = vld [vmem:[#allocation15 + $0x190] sm:$0xff] }
 0xacd   : > { %9277 = vmatprep.subr.bf16.mxu0 %v13204_v29  ;;  %v5413_v29 = vld [vmem:[#allocation15 + $0xd0] sm:$0xff]  ;;  %v5442_v24 = vld [vmem:[#allocation15 + $0x1b8] sm:$0xff] }
 0xace   : > { %v5441_v62 = vld [vmem:[#allocation15 + $0x1b0] sm:$0xff] }
 0xacf   : > { %9156 = vmatpush1.bf16.msra.mxu1 %v13201_v37  ;;  %v12991_v37 = vcombine.low %v5406_v60, %v5410_v61  ;;  %v5445_v18 = vld [vmem:[#allocation15 + $0x1d0] sm:$0xff]  ;;  %v5446_v60 = vld [vmem:[#allocation15 + $0x1d8] sm:$0xff] }
 0xad0   : > { %9278 = vmatpush1.bf16.msra.mxu0 %v13203_v35  ;;  %9157 = vmatprep.subr.bf16.mxu1 %v13210_v45  ;;  %v16081_v35 = vpack.c.bf16 %v5374_v47, %v5374_v47  ;;  %v12998_v45 = vcombine.high %v5413_v29, %v5417_v15  ;;  %v5449_v54 = vld [vmem:[#allocation15 + $0x1f0] sm:$0xff]  ;;  %v5450_v61 = vld [vmem:[#allocation15 + $0x1f8] sm:$0xff] }
 0xad1   : > { %9279 = vmatprep.subr.bf16.mxu0 %v13212_v53  ;;  %v13000_v53 = vcombine.high %v5414_v41, %v5418_v17  ;;  %v5457_v47 = vld [vmem:[#allocation15 + $0x230] sm:$0xff] }
 0xad3   : > { %9158 = vmatpush1.bf16.msra.mxu1 %v13209_v63  ;;  %v12997_v63 = vcombine.low %v5413_v29, %v5417_v15  ;;  %v5454_v29 = vld [vmem:[#allocation15 + $0x218] sm:$0xff] }
 0xad4   : > { %9280 = vmatpush1.bf16.msra.mxu0 %v13211_v2  ;;  %9159 = vmatprep.subr.bf16.mxu1 %v13218_v57  ;;  %v12999_v2 = vcombine.low %v5414_v41, %v5418_v17  ;;  %v5373_v57 = vld [vmem:[#allocation4 + $0x90] sm:$0x3f]  ;;  %v13029_v41 = vcombine.low %v5445_v18, %v5449_v54  ;;  %v13031_v17 = vcombine.low %v5446_v60, %v5450_v61 }
 0xad5   : > { %9281 = vmatprep.subr.bf16.mxu0 %v13220_v42  ;;  %v13006_v42 = vcombine.high %v5421_v56, %v5425_v36  ;;  %v5458_v15 = vld [vmem:[#allocation15 + $0x238] sm:$0xff] }
 0xad6   : > { %v13039_v19 = vcombine.low %v5454_v29, %v5458_v15 }
 0xad7   : > { %9160 = vmatpush1.bf16.msra.mxu1 %v13217_v6  ;;  %v5434_v6 = vld [vmem:[#allocation15 + $0x178] sm:$0xff] }
 0xad8   : > { %9282 = vmatpush1.bf16.msra.mxu0 %v13219_v43  ;;  %9312 = vmatprep.subr.bf16.mxu1 %v12974_v44  ;;  %v16087_v43 = vpack.c.bf16 %v5373_v57, %v5373_v57  ;;  %v13005_v44 = vcombine.low %v5421_v56, %v5425_v36  ;;  %v13016_v27 = vcombine.high %v5430_v25, %v5434_v6  ;;  %v5462_v56 = vld [vmem:[#allocation15 + $0x258] sm:$0xff]  ;;  %v5469_v57 = vld [vmem:[#allocation15 + $0x290] sm:$0xff] }
 0xad9   : > { %9434 = vmatprep.subr.bf16.mxu0 %v12976_v48  ;;  %v13014_v48 = vcombine.high %v5429_v23, %v5433_v9  ;;  %v5466_v36 = vld [vmem:[#allocation15 + $0x278] sm:$0xff] }
 0xada   : > { %9162 = vmatmul.mubr.bf16.vlgmr.msra.gmra.mrb[108].mxu1 %v16075_v58 }
 0xadb   : > { %9284 = vmatmul.mubr.bf16.vlgmr.msra.gmra.mrb[88].mxu0 %v16075_v58  ;;  %9171 = vmatprep.mubr.bf16.mxu1 %v15969_v40 }
 0xadc   : > { %9293 = vmatprep.mubr.bf16.mxu0 %v15969_v40  ;;  %9313 = vmatpush1.bf16.msra.mxu1 %v12973_v32  ;;  %v13013_v32 = vcombine.low %v5429_v23, %v5433_v9  ;;  %v5470_v9 = vld [vmem:[#allocation15 + $0x298] sm:$0xff] }
 0xadd   : > { %9435 = vmatpush1.bf16.msra.mxu0 %v12975_v3  ;;  %9314 = vmatprep.subr.bf16.mxu1 %v12982_v49  ;;  %v13015_v3 = vcombine.low %v5430_v25, %v5434_v6  ;;  %v13022_v49 = vcombine.high %v5437_v20, %v5441_v62  ;;  %v5474_v25 = vld [vmem:[#allocation15 + $0x2b8] sm:$0xff] }
 0xade   : > { %9436 = vmatprep.subr.bf16.mxu0 %v12984_v39  ;;  %v13024_v39 = vcombine.high %v5438_v21, %v5442_v24 }
 0xae0   : > { %9315 = vmatpush1.bf16.msra.mxu1 %v12981_v34  ;;  %v13021_v34 = vcombine.low %v5437_v20, %v5441_v62 }
 0xae1   : > { %9437 = vmatpush1.bf16.msra.mxu0 %v12983_v13  ;;  %9316 = vmatprep.subr.bf16.mxu1 %v12990_v33  ;;  %v13023_v13 = vcombine.low %v5438_v21, %v5442_v24  ;;  %v13030_v33 = vcombine.high %v5445_v18, %v5449_v54  ;;  %v5482_v18 = vld [vmem:[#allocation15 + $0x2f8] sm:$0xff] }
 0xae2   : > { %9172 = vmatmul.mubr.bf16.gmra.mrb[112].mxu1 %v15967_v59  ;;  %9438 = vmatprep.subr.bf16.mxu0 %v12992_v1  ;;  %v13032_v1 = vcombine.high %v5446_v60, %v5450_v61  ;;  %v13055_v60 = vcombine.low %v5470_v9, %v5474_v25 }
 0xae3   : > { %9294 = vmatmul.mubr.bf16.gmra.mrb[92].mxu0 %v15967_v59  ;;  %9181 = vmatprep.mubr.bf16.mxu1 %v16081_v35 }
 0xae4   : > { %9303 = vmatprep.mubr.bf16.mxu0 %v16081_v35  ;;  %9317 = vmatpush1.bf16.msra.mxu1 %v12989_v10 }
 0xae5   : > { %9439 = vmatpush1.bf16.msra.mxu0 %v12991_v37  ;;  %9318 = vmatprep.subr.bf16.mxu1 %v12998_v45  ;;  %v13040_v37 = vcombine.high %v5454_v29, %v5458_v15  ;;  %v5461_v45 = vld [vmem:[#allocation15 + $0x250] sm:$0xff] }
 0xae6   : > { %9440 = vmatprep.subr.bf16.mxu0 %v13000_v53  ;;  %v5465_v53 = vld [vmem:[#allocation15 + $0x270] sm:$0xff] }
 0xae8   : > { %9319 = vmatpush1.bf16.msra.mxu1 %v12997_v63  ;;  %v13046_v63 = vcombine.high %v5461_v45, %v5465_v53 }
 0xae9   : > { %9441 = vmatpush1.bf16.msra.mxu0 %v12999_v2  ;;  %9320 = vmatprep.subr.bf16.mxu1 %v13006_v42  ;;  %v13048_v2 = vcombine.high %v5462_v56, %v5466_v36  ;;  %v5473_v42 = vld [vmem:[#allocation15 + $0x2b0] sm:$0xff] }
 0xaea   : > { %9182 = vmatmul.mubr.bf16.gmra.mrb[144].mxu1 %v16087_v43  ;;  %9442 = vmatprep.subr.bf16.mxu0 %v13008_v30  ;;  %v13054_v62 = vcombine.high %v5469_v57, %v5473_v42  ;;  %v13053_v54 = vcombine.low %v5469_v57, %v5473_v42  ;;  %v5506_v57 = vld [vmem:[#allocation15 + $0x3b8] sm:$0xff] }
 0xaeb   : > { %9304 = vmatmul.mubr.bf16.gmra.mrb[124].mxu0 %v16087_v43  ;;  %9344 = vmatprep.mubr.bf16.mxu1 %v16029_v8 }
 0xaec   : > { %9321 = vmatpush1.bf16.msra.mxu1 %v13005_v44  ;;  %9466 = vmatprep.mubr.bf16.mxu0 %v16029_v8  ;;  %v5453_v8 = vld [vmem:[#allocation15 + $0x210] sm:$0xff] }
 0xaed   : > { %9443 = vmatpush1.bf16.msra.mxu0 %v13007_v46  ;;  %9322 = vmatprep.subr.bf16.mxu1 %v13014_v48  ;;  %v13038_v10 = vcombine.high %v5453_v8, %v5457_v47  ;;  %v13037_v31 = vcombine.low %v5453_v8, %v5457_v47  ;;  %v13045_v46 = vcombine.low %v5461_v45, %v5465_v53  ;;  %v5490_v8 = vld [vmem:[#allocation15 + $0x338] sm:$0xff] }
 0xaee   : > { %9444 = vmatprep.subr.bf16.mxu0 %v13016_v27  ;;  %v13047_v48 = vcombine.low %v5462_v56, %v5466_v36  ;;  %v5498_v45 = vld [vmem:[#allocation15 + $0x378] sm:$0xff] }
 0xaf0   : > { %9323 = vmatpush1.bf16.msra.mxu1 %v13013_v32  ;;  %v13056_v32 = vcombine.high %v5470_v9, %v5474_v25 }
 0xaf1   : > { %9445 = vmatpush1.bf16.msra.mxu0 %v13015_v3  ;;  %9324 = vmatprep.subr.bf16.mxu1 %v13022_v49  ;;  %v5477_v3 = vld [vmem:[#allocation15 + $0x2d0] sm:$0xff] }
 0xaf2   : > { %9446 = vmatprep.subr.bf16.mxu0 %v13024_v39  ;;  %v5481_v49 = vld [vmem:[#allocation15 + $0x2f0] sm:$0xff]  ;;  %v5478_v39 = vld [vmem:[#allocation15 + $0x2d8] sm:$0xff] }
 0xaf3   : > { %v13062_v61 = vcombine.high %v5477_v3, %v5481_v49  ;;  %v13061_v47 = vcombine.low %v5477_v3, %v5481_v49  ;;  %v13063_v29 = vcombine.low %v5478_v39, %v5482_v18  ;;  %v5517_v49 = vld [vmem:[#allocation15 + $0x410] sm:$0xff] }
 0xaf4   : > { %9325 = vmatpush1.bf16.msra.mxu1 %v13021_v34  ;;  %v13064_v34 = vcombine.high %v5478_v39, %v5482_v18  ;;  %v5521_v39 = vld [vmem:[#allocation15 + $0x430] sm:$0xff]  ;;  %v5518_v18 = vld [vmem:[#allocation15 + $0x418] sm:$0xff] }
 0xaf5   : > { %9447 = vmatpush1.bf16.msra.mxu0 %v13023_v13  ;;  %9326 = vmatprep.subr.bf16.mxu1 %v13030_v33  ;;  %v5485_v13 = vld [vmem:[#allocation15 + $0x310] sm:$0xff] }
 0xaf6   : > { %9448 = vmatprep.subr.bf16.mxu0 %v13032_v1  ;;  %v5489_v33 = vld [vmem:[#allocation15 + $0x330] sm:$0xff]  ;;  %v5486_v1 = vld [vmem:[#allocation15 + $0x318] sm:$0xff] }
 0xaf7   : > { %v13070_v15 = vcombine.high %v5485_v13, %v5489_v33  ;;  %v13069_v53 = vcombine.low %v5485_v13, %v5489_v33  ;;  %v13071_v56 = vcombine.low %v5486_v1, %v5490_v8  ;;  %v5525_v33 = vld [vmem:[#allocation15 + $0x450] sm:$0xff] }
 0xaf8   : > { %9327 = vmatpush1.bf16.msra.mxu1 %v13029_v41  ;;  %v13072_v41 = vcombine.high %v5486_v1, %v5490_v8  ;;  %v5529_v1 = vld [vmem:[#allocation15 + $0x470] sm:$0xff]  ;;  %v5526_v8 = vld [vmem:[#allocation15 + $0x458] sm:$0xff] }
 0xaf9   : > { %9449 = vmatpush1.bf16.msra.mxu0 %v13031_v17  ;;  %9328 = vmatprep.subr.bf16.mxu1 %v13038_v10  ;;  %v5493_v17 = vld [vmem:[#allocation15 + $0x350] sm:$0xff] }
 0xafa   : > { %9450 = vmatprep.subr.bf16.mxu0 %v13040_v37  ;;  %v5497_v10 = vld [vmem:[#allocation15 + $0x370] sm:$0xff]  ;;  %v5494_v37 = vld [vmem:[#allocation15 + $0x358] sm:$0xff] }
 0xafb   : > { %v16093_v30 = vpop.f32.mrb[132].mxu1  ;;  %v16095_v23 = vpop.f32.mrb[112].mxu0  ;;  %v13078_v36 = vcombine.high %v5493_v17, %v5497_v10  ;;  %v13077_v42 = vcombine.low %v5493_v17, %v5497_v10  ;;  %v13079_v9 = vcombine.low %v5494_v37, %v5498_v45  ;;  %v5533_v10 = vld [vmem:[#allocation15 + $0x490] sm:$0xff] }
 0xafc   : > { %9329 = vmatpush1.bf16.msra.mxu1 %v13037_v31  ;;  %v16097_v6 = vpop.f32.mrb[133].mxu1  ;;  %v16099_v44 = vpop.f32.mrb[113].mxu0  ;;  %v13080_v31 = vcombine.high %v5494_v37, %v5498_v45  ;;  %v5537_v37 = vld [vmem:[#allocation15 + $0x4b0] sm:$0xff]  ;;  %v5534_v45 = vld [vmem:[#allocation15 + $0x498] sm:$0xff] }
 0xafd   : > { %9451 = vmatpush1.bf16.msra.mxu0 %v13039_v19  ;;  %9330 = vmatprep.subr.bf16.mxu1 %v13046_v63  ;;  %v7602_v27 = vpop.f32.mrb[134].mxu1  ;;  %v7724_v20 = vpop.f32.mrb[114].mxu0  ;;  %v5501_v19 = vld [vmem:[#allocation15 + $0x390] sm:$0xff] }
 0xafe   : > { %9452 = vmatprep.subr.bf16.mxu0 %v13048_v2  ;;  %v7603_v21 = vpop.f32.mrb[135].mxu1  ;;  %v7725_v24 = vpop.f32.mrb[115].mxu0  ;;  %v5505_v63 = vld [vmem:[#allocation15 + $0x3b0] sm:$0xff]  ;;  %v5502_v2 = vld [vmem:[#allocation15 + $0x398] sm:$0xff] }
 0xaff   : > { %v13086_v25 = vcombine.high %v5501_v19, %v5505_v63  ;;  %v5513_v27 = vld [vmem:[#allocation15 + $0x3f0] sm:$0xff]  ;;  %v5510_v20 = vld [vmem:[#allocation15 + $0x3d8] sm:$0xff]  ;;  %v13085_v21 = vcombine.low %v5501_v19, %v5505_v63  ;;  %v13087_v24 = vcombine.low %v5502_v2, %v5506_v57 }
 0xb00   : > { %9331 = vmatpush1.bf16.msra.mxu1 %v13045_v46  ;;  %v13088_v46 = vcombine.high %v5502_v2, %v5506_v57  ;;  %v5541_v63 = vld [vmem:[#allocation15 + $0x4d0] sm:$0xff]  ;;  %v5542_v57 = vld [vmem:[#allocation15 + $0x4d8] sm:$0xff] }
 0xb01   : > { %9453 = vmatpush1.bf16.msra.mxu0 %v13047_v48  ;;  %9332 = vmatprep.subr.bf16.mxu1 %v13054_v62  ;;  %v5509_v48 = vld [vmem:[#allocation15 + $0x3d0] sm:$0xff]  ;;  %v5514_v62 = vld [vmem:[#allocation15 + $0x3f8] sm:$0xff] }
 0xb02   : > { %9454 = vmatprep.subr.bf16.mxu0 %v13056_v32  ;;  %v13094_v32 = vcombine.high %v5509_v48, %v5513_v27  ;;  %v13096_v3 = vcombine.high %v5510_v20, %v5514_v62  ;;  %v5545_v2 = vld [vmem:[#allocation15 + $0x4f0] sm:$0xff] }
 0xb04   : > { %9333 = vmatpush1.bf16.msra.mxu1 %v13053_v54  ;;  %v5522_v54 = vld [vmem:[#allocation15 + $0x438] sm:$0xff] }
 0xb05   : > { %9455 = vmatpush1.bf16.msra.mxu0 %v13055_v60  ;;  %9334 = vmatprep.subr.bf16.mxu1 %v13062_v61  ;;  %v13093_v60 = vcombine.low %v5509_v48, %v5513_v27  ;;  %v13095_v61 = vcombine.low %v5510_v20, %v5514_v62  ;;  %v13104_v13 = vcombine.high %v5518_v18, %v5522_v54  ;;  %v5549_v48 = vld [vmem:[#allocation15 + $0x510] sm:$0xff]  ;;  %v5550_v20 = vld [vmem:[#allocation15 + $0x518] sm:$0xff] }
 0xb06   : > { %9456 = vmatprep.subr.bf16.mxu0 %v13064_v34  ;;  %v13102_v34 = vcombine.high %v5517_v49, %v5521_v39  ;;  %v5553_v27 = vld [vmem:[#allocation15 + $0x530] sm:$0xff]  ;;  %v5554_v62 = vld [vmem:[#allocation15 + $0x538] sm:$0xff] }
 0xb08   : > { %9335 = vmatpush1.bf16.msra.mxu1 %v13061_v47  ;;  %v5530_v47 = vld [vmem:[#allocation15 + $0x478] sm:$0xff] }
 0xb09   : > { %9457 = vmatpush1.bf16.msra.mxu0 %v13063_v29  ;;  %9336 = vmatprep.subr.bf16.mxu1 %v13070_v15  ;;  %v13101_v29 = vcombine.low %v5517_v49, %v5521_v39  ;;  %v13103_v15 = vcombine.low %v5518_v18, %v5522_v54  ;;  %v13112_v17 = vcombine.high %v5526_v8, %v5530_v47  ;;  %v5557_v49 = vld [vmem:[#allocation15 + $0x550] sm:$0xff]  ;;  %v5558_v18 = vld [vmem:[#allocation15 + $0x558] sm:$0xff] }
 0xb0a   : > { %9458 = vmatprep.subr.bf16.mxu0 %v13072_v41  ;;  %v13110_v41 = vcombine.high %v5525_v33, %v5529_v1  ;;  %v5561_v39 = vld [vmem:[#allocation15 + $0x570] sm:$0xff]  ;;  %v5562_v54 = vld [vmem:[#allocation15 + $0x578] sm:$0xff] }
 0xb0c   : > { %9337 = vmatpush1.bf16.msra.mxu1 %v13069_v53  ;;  %v5538_v53 = vld [vmem:[#allocation15 + $0x4b8] sm:$0xff] }
 0xb0d   : > { %9459 = vmatpush1.bf16.msra.mxu0 %v13071_v56  ;;  %9338 = vmatprep.subr.bf16.mxu1 %v13078_v36  ;;  %v13109_v56 = vcombine.low %v5525_v33, %v5529_v1  ;;  %v13111_v36 = vcombine.low %v5526_v8, %v5530_v47  ;;  %v13120_v19 = vcombine.high %v5534_v45, %v5538_v53  ;;  %v5569_v33 = vld [vmem:[#allocation15 + $0x5b0] sm:$0xff]  ;;  %v5566_v1 = vld [vmem:[#allocation15 + $0x598] sm:$0xff] }
 0xb0e   : > { %9460 = vmatprep.subr.bf16.mxu0 %v13080_v31  ;;  %v13118_v31 = vcombine.high %v5533_v10, %v5537_v37  ;;  %v5570_v8 = vld [vmem:[#allocation15 + $0x5b8] sm:$0xff]  ;;  %v13141_v47 = vcombine.low %v5557_v49, %v5561_v39 }
 0xb10   : > { %9339 = vmatpush1.bf16.msra.mxu1 %v13077_v42  ;;  %v5546_v42 = vld [vmem:[#allocation15 + $0x4f8] sm:$0xff] }
 0xb11   : > { %9461 = vmatpush1.bf16.msra.mxu0 %v13079_v9  ;;  %9340 = vmatprep.subr.bf16.mxu1 %v13086_v25  ;;  %v13119_v9 = vcombine.low %v5534_v45, %v5538_v53  ;;  %v13126_v25 = vcombine.high %v5541_v63, %v5545_v2  ;;  %v5578_v45 = vld [vmem:[#allocation15 + $0x5f8] sm:$0xff]  ;;  %v13151_v53 = vcombine.low %v5566_v1, %v5570_v8 }
 0xb12   : > { %9462 = vmatprep.subr.bf16.mxu0 %v13088_v46  ;;  %v13128_v46 = vcombine.high %v5542_v57, %v5546_v42 }
 0xb14   : > { %9341 = vmatpush1.bf16.msra.mxu1 %v13085_v21  ;;  %v13125_v21 = vcombine.low %v5541_v63, %v5545_v2  ;;  %v5586_v63 = vld [vmem:[#allocation15 + $0x638] sm:$0xff] }
 0xb15   : > { %9463 = vmatpush1.bf16.msra.mxu0 %v13087_v24  ;;  %9342 = vmatprep.subr.bf16.mxu1 %v13094_v32  ;;  %v13127_v24 = vcombine.low %v5542_v57, %v5546_v42  ;;  %v13134_v32 = vcombine.high %v5549_v48, %v5553_v27 }
 0xb16   : > { %9464 = vmatprep.subr.bf16.mxu0 %v13096_v3  ;;  %v13136_v3 = vcombine.high %v5550_v20, %v5554_v62 }
 0xb18   : > { %9343 = vmatpush1.bf16.msra.mxu1 %v13093_v60  ;;  %v13133_v60 = vcombine.low %v5549_v48, %v5553_v27  ;;  %v5594_v48 = vld [vmem:[#allocation15 + $0x678] sm:$0xff] }
 0xb19   : > { %9465 = vmatpush1.bf16.msra.mxu0 %v13095_v61  ;;  %9373 = vmatprep.subr.bf16.mxu1 %v13102_v34  ;;  %v13135_v61 = vcombine.low %v5550_v20, %v5554_v62  ;;  %v13142_v34 = vcombine.high %v5557_v49, %v5561_v39 }
 0xb1a   : > { %9495 = vmatprep.subr.bf16.mxu0 %v13104_v13  ;;  %v5565_v13 = vld [vmem:[#allocation15 + $0x590] sm:$0xff] }
 0xb1b   : > { %9345 = vmatmul.mubr.bf16.vlgmr.msra.gmra.mrb[124].mxu1 %v16043_v51 }
 0xb1c   : > { %9467 = vmatmul.mubr.bf16.vlgmr.msra.gmra.mrb[104].mxu0 %v16043_v51  ;;  %9354 = vmatprep.mubr.bf16.mxu1 %v15919_v50  ;;  %v13117_v51 = vcombine.low %v5533_v10, %v5537_v37  ;;  %v5577_v10 = vld [vmem:[#allocation15 + $0x5f0] sm:$0xff]  ;;  %v5574_v37 = vld [vmem:[#allocation15 + $0x5d8] sm:$0xff] }
 0xb1d   : > { %9374 = vmatpush1.bf16.msra.mxu1 %v13101_v29  ;;  %9476 = vmatprep.mubr.bf16.mxu0 %v15919_v50  ;;  %v13143_v29 = vcombine.low %v5558_v18, %v5562_v54  ;;  %v13159_v57 = vcombine.low %v5574_v37, %v5578_v45 }
 0xb1e   : > { %9496 = vmatpush1.bf16.msra.mxu0 %v13103_v15  ;;  %9375 = vmatprep.subr.bf16.mxu1 %v13110_v41  ;;  %v13150_v15 = vcombine.high %v5565_v13, %v5569_v33  ;;  %v13152_v41 = vcombine.high %v5566_v1, %v5570_v8 }
 0xb1f   : > { %9497 = vmatprep.subr.bf16.mxu0 %v13112_v17  ;;  %v5573_v17 = vld [vmem:[#allocation15 + $0x5d0] sm:$0xff] }
 0xb20   : > { %v13157_v2 = vcombine.low %v5573_v17, %v5577_v10 }
 0xb21   : > { %9376 = vmatpush1.bf16.msra.mxu1 %v13109_v56  ;;  %v13158_v56 = vcombine.high %v5573_v17, %v5577_v10  ;;  %v5609_v17 = vld [vmem:[#allocation15 + $0x6f0] sm:$0xff]  ;;  %v5606_v10 = vld [vmem:[#allocation15 + $0x6d8] sm:$0xff] }
 0xb22   : > { %9498 = vmatpush1.bf16.msra.mxu0 %v13111_v36  ;;  %9377 = vmatprep.subr.bf16.mxu1 %v13118_v31  ;;  %v13160_v36 = vcombine.high %v5574_v37, %v5578_v45  ;;  %v5585_v31 = vld [vmem:[#allocation15 + $0x630] sm:$0xff] }
 0xb23   : > { %9355 = vmatmul.mubr.bf16.gmra.mrb[128].mxu1 %v15917_v52  ;;  %9499 = vmatprep.subr.bf16.mxu0 %v13120_v19  ;;  %v5582_v19 = vld [vmem:[#allocation15 + $0x618] sm:$0xff] }
 0xb24   : > { %9477 = vmatmul.mubr.bf16.gmra.mrb[108].mxu0 %v15917_v52  ;;  %9364 = vmatprep.mubr.bf16.mxu1 %v16049_v22  ;;  %v13167_v20 = vcombine.low %v5582_v19, %v5586_v63 }
 0xb25   : > { %9378 = vmatpush1.bf16.msra.mxu1 %v13117_v51  ;;  %9486 = vmatprep.mubr.bf16.mxu0 %v16049_v22  ;;  %v13144_v22 = vcombine.high %v5558_v18, %v5562_v54  ;;  %v13168_v51 = vcombine.high %v5582_v19, %v5586_v63  ;;  %v5598_v54 = vld [vmem:[#allocation15 + $0x698] sm:$0xff] }
 0xb26   : > { %9500 = vmatpush1.bf16.msra.mxu0 %v13119_v9  ;;  %9379 = vmatprep.subr.bf16.mxu1 %v13126_v25  ;;  %v5589_v9 = vld [vmem:[#allocation15 + $0x650] sm:$0xff] }
 0xb27   : > { %9501 = vmatprep.subr.bf16.mxu0 %v13128_v46  ;;  %v5593_v25 = vld [vmem:[#allocation15 + $0x670] sm:$0xff]  ;;  %v5590_v46 = vld [vmem:[#allocation15 + $0x658] sm:$0xff] }
 0xb28   : > { %v13174_v62 = vcombine.high %v5589_v9, %v5593_v25 }
 0xb29   : > { %9380 = vmatpush1.bf16.msra.mxu1 %v13125_v21 }
 0xb2a   : > { %9502 = vmatpush1.bf16.msra.mxu0 %v13127_v24  ;;  %9381 = vmatprep.subr.bf16.mxu1 %v13134_v32  ;;  %v13176_v24 = vcombine.high %v5590_v46, %v5594_v48  ;;  %v5597_v32 = vld [vmem:[#allocation15 + $0x690] sm:$0xff] }
 0xb2b   : > { %9365 = vmatmul.mubr.bf16.gmra.mrb[148].mxu1 %v16055_v26  ;;  %9503 = vmatprep.subr.bf16.mxu0 %v13136_v3  ;;  %v5601_v3 = vld [vmem:[#allocation15 + $0x6b0] sm:$0xff] }
 0xb2c   : > { %9487 = vmatmul.mubr.bf16.gmra.mrb[128].mxu0 %v16055_v26  ;;  %9405 = vmatprep.mubr.bf16.mxu1 %v16057_v38  ;;  %v13149_v26 = vcombine.low %v5565_v13, %v5569_v33  ;;  %v13173_v13 = vcombine.low %v5589_v9, %v5593_v25  ;;  %v13181_v37 = vcombine.low %v5597_v32, %v5601_v3  ;;  %v5626_v9 = vld [vmem:[#allocation15 + $0x778] sm:$0xff] }
 0xb2d   : > { %9382 = vmatpush1.bf16.msra.mxu1 %v13133_v60  ;;  %9527 = vmatprep.mubr.bf16.mxu0 %v16057_v38  ;;  %v5581_v38 = vld [vmem:[#allocation15 + $0x610] sm:$0xff]  ;;  %v5602_v60 = vld [vmem:[#allocation15 + $0x6b8] sm:$0xff] }
 0xb2e   : > { %9504 = vmatpush1.bf16.msra.mxu0 %v13135_v61  ;;  %9383 = vmatprep.subr.bf16.mxu1 %v13142_v34  ;;  %v13166_v42 = vcombine.high %v5581_v38, %v5585_v31  ;;  %v13165_v27 = vcombine.low %v5581_v38, %v5585_v31  ;;  %v13183_v45 = vcombine.low %v5598_v54, %v5602_v60  ;;  %v5618_v38 = vld [vmem:[#allocation15 + $0x738] sm:$0xff] }
 0xb2f   : > { %9505 = vmatprep.subr.bf16.mxu0 %v13144_v22 }
 0xb31   : > { %9384 = vmatpush1.bf16.msra.mxu1 %v13141_v47 }
 0xb32   : > { %9506 = vmatpush1.bf16.msra.mxu0 %v13143_v29  ;;  %9385 = vmatprep.subr.bf16.mxu1 %v13150_v15  ;;  %v13182_v29 = vcombine.high %v5597_v32, %v5601_v3 }
 0xb33   : > { %9507 = vmatprep.subr.bf16.mxu0 %v13152_v41  ;;  %v13184_v41 = vcombine.high %v5598_v54, %v5602_v60  ;;  %v5637_v54 = vld [vmem:[#allocation15 + $0x7d0] sm:$0xff] }
 0xb34   : > { %v5641_v60 = vld [vmem:[#allocation15 + $0x7f0] sm:$0xff] }
 0xb35   : > { %9386 = vmatpush1.bf16.msra.mxu1 %v13149_v26 }
 0xb36   : > { %9508 = vmatpush1.bf16.msra.mxu0 %v13151_v53  ;;  %9387 = vmatprep.subr.bf16.mxu1 %v13158_v56  ;;  %v5613_v53 = vld [vmem:[#allocation15 + $0x710] sm:$0xff] }
 0xb37   : > { %9509 = vmatprep.subr.bf16.mxu0 %v13160_v36  ;;  %v5617_v56 = vld [vmem:[#allocation15 + $0x730] sm:$0xff]  ;;  %v5614_v36 = vld [vmem:[#allocation15 + $0x718] sm:$0xff] }
 0xb38   : > { %v13198_v63 = vcombine.high %v5613_v53, %v5617_v56  ;;  %v13197_v25 = vcombine.low %v5613_v53, %v5617_v56  ;;  %v9586_v53 = vld [vmem:[#allocation15 + $0x1068] sm:$0xff] }
 0xb39   : > { %9388 = vmatpush1.bf16.msra.mxu1 %v13157_v2  ;;  %v13200_v2 = vcombine.high %v5614_v36, %v5618_v38 }
 0xb3a   : > { %9510 = vmatpush1.bf16.msra.mxu0 %v13159_v57  ;;  %9389 = vmatprep.subr.bf16.mxu1 %v13166_v42  ;;  %v5621_v57 = vld [vmem:[#allocation15 + $0x750] sm:$0xff] }
 0xb3b   : > { %9511 = vmatprep.subr.bf16.mxu0 %v13168_v51  ;;  %v7659_v21 = vpop.f32.mrb[136].mxu1  ;;  %v5625_v42 = vld [vmem:[#allocation15 + $0x770] sm:$0xff]  ;;  %v5622_v51 = vld [vmem:[#allocation15 + $0x758] sm:$0xff] }
 0xb3c   : > { %v16114_v49 = vadd.f32 %v7659_v21, %v16093_v30  ;;  %v7781_v39 = vpop.f32.mrb[116].mxu0  ;;  %v7661_v18 = vpop.f32.mrb[137].mxu1  ;;  %v13175_v30 = vcombine.low %v5590_v46, %v5594_v48  ;;  %v13199_v46 = vcombine.low %v5614_v36, %v5618_v38  ;;  %v13206_v48 = vcombine.high %v5621_v57, %v5625_v42  ;;  %v5630_v21 = vld [vmem:[#allocation15 + $0x798] sm:$0xff] }
 0xb3d   : > { %9390 = vmatpush1.bf16.msra.mxu1 %v13165_v27  ;;  %v16117_v61 = vadd.f32 %v7781_v39, %v16095_v23  ;;  %v16120_v34 = vadd.f32 %v7661_v18, %v16097_v6  ;;  %v7783_v22 = vpop.f32.mrb[117].mxu0  ;;  %v7663_v33 = vpop.f32.mrb[138].mxu1  ;;  %v5605_v23 = vld [vmem:[#allocation15 + $0x6d0] sm:$0xff]  ;;  %v5610_v6 = vld [vmem:[#allocation15 + $0x6f8] sm:$0xff]  ;;  %v13208_v27 = vcombine.high %v5622_v51, %v5626_v9  ;;  %v13205_v32 = vcombine.low %v5621_v57, %v5625_v42  ;;  %v9594_v57 = vld [vmem:[#allocation15 + $0x10a8] sm:$0xff] }
 0xb3e   : > { %9512 = vmatpush1.bf16.msra.mxu0 %v13167_v20  ;;  %v16123_v1 = vadd.f32 %v7783_v22, %v16099_v44  ;;  %9391 = vmatprep.subr.bf16.mxu1 %v13174_v62  ;;  %v7785_v8 = vpop.f32.mrb[118].mxu0  ;;  %v7664_v47 = vpop.f32.mrb[139].mxu1  ;;  %v13190_v26 = vcombine.high %v5605_v23, %v5609_v17  ;;  %v13192_v44 = vcombine.high %v5606_v10, %v5610_v6  ;;  %v5629_v20 = vld [vmem:[#allocation15 + $0x790] sm:$0xff]  ;;  %v5638_v22 = vld [vmem:[#allocation15 + $0x7d8] sm:$0xff] }
 0xb3f   : > { %9513 = vmatprep.subr.bf16.mxu0 %v13176_v24  ;;  %v7786_v15 = vpop.f32.mrb[119].mxu0  ;;  %v13189_v31 = vcombine.low %v5605_v23, %v5609_v17  ;;  %v13191_v19 = vcombine.low %v5606_v10, %v5610_v6  ;;  %v5633_v62 = vld [vmem:[#allocation15 + $0x7b0] sm:$0xff]  ;;  %v5634_v24 = vld [vmem:[#allocation15 + $0x7b8] sm:$0xff]  ;;  %v13207_v3 = vcombine.low %v5622_v51, %v5626_v9  ;;  %v13222_v8 = vcombine.high %v5637_v54, %v5641_v60  ;;  %v9578_v23 = vld [vmem:[#allocation15 + $0x1028] sm:$0xff] }
 0xb40   : > { %v13214_v39 = vcombine.high %v5629_v20, %v5633_v62  ;;  %v13216_v18 = vcombine.high %v5630_v21, %v5634_v24  ;;  %v13213_v33 = vcombine.low %v5629_v20, %v5633_v62  ;;  %v9577_v15 = vld [vmem:[#allocation15 + $0x1020] sm:$0xff]  ;;  %v13221_v17 = vcombine.low %v5637_v54, %v5641_v60  ;;  %v9602_v20 = vld [vmem:[#allocation15 + $0x10e8] sm:$0xff] }
 0xb41   : > { %9392 = vmatpush1.bf16.msra.mxu1 %v13173_v13  ;;  %v5642_v13 = vld [vmem:[#allocation15 + $0x7f8] sm:$0xff]  ;;  %v9610_v54 = vld [vmem:[#allocation15 + $0x1128] sm:$0xff] }
 0xb42   : > { %9514 = vmatpush1.bf16.msra.mxu0 %v13175_v30  ;;  %9393 = vmatprep.subr.bf16.mxu1 %v13182_v29  ;;  %v13215_v30 = vcombine.low %v5630_v21, %v5634_v24  ;;  %v13224_v47 = vcombine.high %v5638_v22, %v5642_v13  ;;  %v9573_v29 = vld [vmem:[#allocation15 + $0x1000] sm:$0xff]  ;;  %v13223_v10 = vcombine.low %v5638_v22, %v5642_v13  ;;  %v9557_v24 = vld [vmem:[#allocation4 + $0x8] sm:$0xfc] }
 0xb43   : > { %9515 = vmatprep.subr.bf16.mxu0 %v13184_v41  ;;  %v9574_v41 = vld [vmem:[#allocation15 + $0x1008] sm:$0xff]  ;;  %v13226_v6 = vcombine.high %v9573_v29, %v9577_v15  ;;  %v13225_v56 = vcombine.low %v9573_v29, %v9577_v15  ;;  %v9613_v29 = vld [vmem:[#allocation15 + $0x1140] sm:$0xff] }
 0xb44   : > { %v13227_v36 = vcombine.low %v9574_v41, %v9578_v23  ;;  %v14550_v22 = vld [vmem:[#allocation4 + $0x28] sm:$0xff]  ;;  %v9617_v15 = vld [vmem:[#allocation15 + $0x1160] sm:$0xff] }
 0xb45   : > { %9394 = vmatpush1.bf16.msra.mxu1 %v13181_v37  ;;  %v13228_v37 = vcombine.high %v9574_v41, %v9578_v23  ;;  %v9565_v13 = vpack.c.bf16 %v14550_v22, %v9557_v24  ;;  %v9614_v41 = vld [vmem:[#allocation15 + $0x1148] sm:$0xff] }
 0xb46   : > { %9516 = vmatpush1.bf16.msra.mxu0 %v13183_v45  ;;  %9395 = vmatprep.subr.bf16.mxu1 %v13190_v26  ;;  %v9581_v45 = vld [vmem:[#allocation15 + $0x1040] sm:$0xff]  ;;  %v9618_v23 = vld [vmem:[#allocation15 + $0x1168] sm:$0xff] }
 0xb47   : > { %9517 = vmatprep.subr.bf16.mxu0 %v13192_v44  ;;  %v9585_v26 = vld [vmem:[#allocation15 + $0x1060] sm:$0xff]  ;;  %v9582_v44 = vld [vmem:[#allocation15 + $0x1048] sm:$0xff] }
 0xb48   : > { %v13234_v38 = vcombine.high %v9581_v45, %v9585_v26  ;;  %v13233_v42 = vcombine.low %v9581_v45, %v9585_v26  ;;  %v13235_v51 = vcombine.low %v9582_v44, %v9586_v53  ;;  %v13268_v45 = vcombine.high %v9614_v41, %v9618_v23  ;;  %v9621_v26 = vld [vmem:[#allocation15 + $0x1180] sm:$0xff] }
 0xb49   : > { %9396 = vmatpush1.bf16.msra.mxu1 %v13189_v31  ;;  %v13236_v31 = vcombine.high %v9582_v44, %v9586_v53  ;;  %v9625_v44 = vld [vmem:[#allocation15 + $0x11a0] sm:$0xff]  ;;  %v9622_v53 = vld [vmem:[#allocation15 + $0x1188] sm:$0xff] }
 0xb4a   : > { %9518 = vmatpush1.bf16.msra.mxu0 %v13191_v19  ;;  %9397 = vmatprep.subr.bf16.mxu1 %v13198_v63  ;;  %v9589_v19 = vld [vmem:[#allocation15 + $0x1080] sm:$0xff] }
 0xb4b   : > { %9519 = vmatprep.subr.bf16.mxu0 %v13200_v2  ;;  %v9593_v63 = vld [vmem:[#allocation15 + $0x10a0] sm:$0xff]  ;;  %v9590_v2 = vld [vmem:[#allocation15 + $0x1088] sm:$0xff] }
 0xb4c   : > { %v13242_v9 = vcombine.high %v9589_v19, %v9593_v63  ;;  %v13243_v62 = vcombine.low %v9590_v2, %v9594_v57 }
 0xb4d   : > { %9398 = vmatpush1.bf16.msra.mxu1 %v13197_v25  ;;  %v13244_v25 = vcombine.high %v9590_v2, %v9594_v57  ;;  %v9633_v2 = vld [vmem:[#allocation15 + $0x11e0] sm:$0xff]  ;;  %v9630_v57 = vld [vmem:[#allocation15 + $0x11c8] sm:$0xff] }
 0xb4e   : > { %9520 = vmatpush1.bf16.msra.mxu0 %v13199_v46  ;;  %9399 = vmatprep.subr.bf16.mxu1 %v13206_v48  ;;  %v9597_v46 = vld [vmem:[#allocation15 + $0x10c0] sm:$0xff] }
 0xb4f   : > { %9521 = vmatprep.subr.bf16.mxu0 %v13208_v27  ;;  %v9601_v48 = vld [vmem:[#allocation15 + $0x10e0] sm:$0xff]  ;;  %v9598_v27 = vld [vmem:[#allocation15 + $0x10c8] sm:$0xff] }
 0xb50   : > { %v13250_v21 = vcombine.high %v9597_v46, %v9601_v48  ;;  %v13249_v60 = vcombine.low %v9597_v46, %v9601_v48  ;;  %v9637_v46 = vld [vmem:[#allocation15 + $0x1200] sm:$0xff] }
 0xb51   : > { %9400 = vmatpush1.bf16.msra.mxu1 %v13205_v32  ;;  %v13252_v32 = vcombine.high %v9598_v27, %v9602_v20  ;;  %v9641_v48 = vld [vmem:[#allocation15 + $0x1220] sm:$0xff] }
 0xb52   : > { %9522 = vmatpush1.bf16.msra.mxu0 %v13207_v3  ;;  %9401 = vmatprep.subr.bf16.mxu1 %v13214_v39  ;;  %v9605_v3 = vld [vmem:[#allocation15 + $0x1100] sm:$0xff] }
 0xb53   : > { %9523 = vmatprep.subr.bf16.mxu0 %v13216_v18  ;;  %v9609_v39 = vld [vmem:[#allocation15 + $0x1120] sm:$0xff]  ;;  %v9606_v18 = vld [vmem:[#allocation15 + $0x1108] sm:$0xff] }
 0xb55   : > { %9402 = vmatpush1.bf16.msra.mxu1 %v13213_v33  ;;  %v13251_v33 = vcombine.low %v9598_v27, %v9602_v20  ;;  %v9638_v27 = vld [vmem:[#allocation15 + $0x1208] sm:$0xff] }
 0xb56   : > { %9524 = vmatpush1.bf16.msra.mxu0 %v13215_v30  ;;  %9403 = vmatprep.subr.bf16.mxu1 %v13222_v8  ;;  %v13258_v30 = vcombine.high %v9605_v3, %v9609_v39  ;;  %v13260_v8 = vcombine.high %v9606_v18, %v9610_v54  ;;  %v9642_v20 = vld [vmem:[#allocation15 + $0x1228] sm:$0xff] }
 0xb57   : > { %9525 = vmatprep.subr.bf16.mxu0 %v13224_v47  ;;  %v9845_v47 = vrot.slane %v15919_v50, 1  ;;  %v13292_v24 = vcombine.high %v9638_v27, %v9642_v20 }
 0xb59   : > { %9404 = vmatpush1.bf16.msra.mxu1 %v13221_v17  ;;  %v13257_v17 = vcombine.low %v9605_v3, %v9609_v39  ;;  %v9649_v3 = vld [vmem:[#allocation15 + $0x1260] sm:$0xff]  ;;  %v9646_v39 = vld [vmem:[#allocation15 + $0x1248] sm:$0xff] }
 0xb5a   : > { %9526 = vmatpush1.bf16.msra.mxu0 %v13223_v10  ;;  %11153 = vmatprep.subr.bf16.mxu1 %v13226_v6  ;;  %v9844_v10 = vrot.slane %v9565_v13, 1  ;;  %v13266_v6 = vcombine.high %v9613_v29, %v9617_v15 }
 0xb5b   : > { %11275 = vmatprep.subr.bf16.mxu0 %v13228_v37 }
 0xb5c   : > { %9406 = vmatmul.mubr.bf16.vlgmr.msra.gmra.mrb[124].mxu1 %v16075_v58  ;;  %v16138_v37 = vsel %vm2581_vm4, %v9844_v10, %v9845_v47 }
 0xb5d   : > { %9528 = vmatmul.mubr.bf16.vlgmr.msra.gmra.mrb[104].mxu0 %v16075_v58  ;;  %9415 = vmatprep.mubr.bf16.mxu1 %v15969_v40  ;;  %v13241_v58 = vcombine.low %v9589_v19, %v9593_v63  ;;  %v9629_v63 = vld [vmem:[#allocation15 + $0x11c0] sm:$0xff] }
 0xb5e   : > { %9537 = vmatprep.mubr.bf16.mxu0 %v15969_v40  ;;  %11154 = vmatpush1.bf16.msra.mxu1 %v13225_v56  ;;  %v9626_v56 = vld [vmem:[#allocation15 + $0x11a8] sm:$0xff] }
 0xb5f   : > { %11276 = vmatpush1.bf16.msra.mxu0 %v13227_v36  ;;  %11155 = vmatprep.subr.bf16.mxu1 %v13234_v38  ;;  %v13265_v36 = vcombine.low %v9613_v29, %v9617_v15  ;;  %v13267_v38 = vcombine.low %v9614_v41, %v9618_v23  ;;  %v13276_v19 = vcombine.high %v9622_v53, %v9626_v56  ;;  %v9654_v23 = vld [vmem:[#allocation15 + $0x1288] sm:$0xff] }
 0xb60   : > { %11277 = vmatprep.subr.bf16.mxu0 %v13236_v31  ;;  %v13274_v31 = vcombine.high %v9621_v26, %v9625_v44 }
 0xb62   : > { %11156 = vmatpush1.bf16.msra.mxu1 %v13233_v42  ;;  %v9634_v42 = vld [vmem:[#allocation15 + $0x11e8] sm:$0xff] }
 0xb63   : > { %11278 = vmatpush1.bf16.msra.mxu0 %v13235_v51  ;;  %11157 = vmatprep.subr.bf16.mxu1 %v13242_v9  ;;  %v13275_v51 = vcombine.low %v9622_v53, %v9626_v56  ;;  %v13282_v9 = vcombine.high %v9629_v63, %v9633_v2 }
 0xb64   : > { %9416 = vmatmul.mubr.bf16.gmra.mrb[128].mxu1 %v15967_v59  ;;  %11279 = vmatprep.subr.bf16.mxu0 %v13244_v25  ;;  %v13284_v25 = vcombine.high %v9630_v57, %v9634_v42 }
 0xb65   : > { %9538 = vmatmul.mubr.bf16.gmra.mrb[108].mxu0 %v15967_v59  ;;  %9425 = vmatprep.mubr.bf16.mxu1 %v16081_v35 }
 0xb66   : > { %9547 = vmatprep.mubr.bf16.mxu0 %v16081_v35  ;;  %11158 = vmatpush1.bf16.msra.mxu1 %v13241_v58  ;;  %v13259_v35 = vcombine.low %v9606_v18, %v9610_v54  ;;  %v13281_v58 = vcombine.low %v9629_v63, %v9633_v2  ;;  %v9650_v18 = vld [vmem:[#allocation15 + $0x1268] sm:$0xff]  ;;  %v13289_v54 = vcombine.low %v9637_v46, %v9641_v48 }
 0xb67   : > { %11280 = vmatpush1.bf16.msra.mxu0 %v13243_v62  ;;  %11159 = vmatprep.subr.bf16.mxu1 %v13250_v21  ;;  %v13283_v62 = vcombine.low %v9630_v57, %v9634_v42  ;;  %v13290_v21 = vcombine.high %v9637_v46, %v9641_v48  ;;  %v9662_v63 = vld [vmem:[#allocation15 + $0x12c8] sm:$0xff] }
 0xb68   : > { %11281 = vmatprep.subr.bf16.mxu0 %v13252_v32  ;;  %v9645_v32 = vld [vmem:[#allocation15 + $0x1240] sm:$0xff] }
 0xb69   : > { %v13298_v22 = vcombine.high %v9645_v32, %v9649_v3 }
 0xb6a   : > { %11160 = vmatpush1.bf16.msra.mxu1 %v13249_v60  ;;  %v13291_v60 = vcombine.low %v9638_v27, %v9642_v20 }
 0xb6b   : > { %11282 = vmatpush1.bf16.msra.mxu0 %v13251_v33  ;;  %11161 = vmatprep.subr.bf16.mxu1 %v13258_v30  ;;  %v13300_v33 = vcombine.high %v9646_v39, %v9650_v18  ;;  %v9653_v30 = vld [vmem:[#allocation15 + $0x1280] sm:$0xff] }
 0xb6c   : > { %9426 = vmatmul.mubr.bf16.gmra.mrb[152].mxu1 %v16087_v43  ;;  %11283 = vmatprep.subr.bf16.mxu0 %v13260_v8  ;;  %v9657_v8 = vld [vmem:[#allocation15 + $0x12a0] sm:$0xff] }
 0xb6d   : > { %9548 = vmatmul.mubr.bf16.gmra.mrb[132].mxu0 %v16087_v43  ;;  %11185 = vmatprep.mubr.bf16.mxu1 %v16138_v37  ;;  %v13273_v43 = vcombine.low %v9621_v26, %v9625_v44  ;;  %v13305_v2 = vcombine.low %v9653_v30, %v9657_v8 }
 0xb6e   : > { %11162 = vmatpush1.bf16.msra.mxu1 %v13257_v17  ;;  %11307 = vmatprep.mubr.bf16.mxu0 %v16138_v37  ;;  %v9658_v17 = vld [vmem:[#allocation15 + $0x12a8] sm:$0xff] }
 0xb6f   : > { %11284 = vmatpush1.bf16.msra.mxu0 %v13259_v35  ;;  %11163 = vmatprep.subr.bf16.mxu1 %v13266_v6  ;;  %v13307_v57 = vcombine.low %v9654_v23, %v9658_v17 }
 0xb70   : > { %11285 = vmatprep.subr.bf16.mxu0 %v13268_v45  ;;  %v13297_v45 = vcombine.low %v9645_v32, %v9649_v3 }
 0xb72   : > { %11164 = vmatpush1.bf16.msra.mxu1 %v13265_v36  ;;  %v13306_v36 = vcombine.high %v9653_v30, %v9657_v8 }
 0xb73   : > { %11286 = vmatpush1.bf16.msra.mxu0 %v13267_v38  ;;  %11165 = vmatprep.subr.bf16.mxu1 %v13274_v31  ;;  %v13308_v31 = vcombine.high %v9654_v23, %v9658_v17  ;;  %v9697_v23 = vld [vmem:[#allocation15 + $0x13e0] sm:$0xff]  ;;  %v9694_v17 = vld [vmem:[#allocation15 + $0x13c8] sm:$0xff] }
 0xb74   : > { %11287 = vmatprep.subr.bf16.mxu0 %v13276_v19  ;;  %v9665_v19 = vld [vmem:[#allocation15 + $0x12e0] sm:$0xff] }
 0xb76   : > { %11166 = vmatpush1.bf16.msra.mxu1 %v13273_v43  ;;  %v9669_v43 = vld [vmem:[#allocation15 + $0x1300] sm:$0xff] }
 0xb77   : > { %11288 = vmatpush1.bf16.msra.mxu0 %v13275_v51  ;;  %11167 = vmatprep.subr.bf16.mxu1 %v13282_v9  ;;  %v9673_v51 = vld [vmem:[#allocation15 + $0x1320] sm:$0xff]  ;;  %v9670_v9 = vld [vmem:[#allocation15 + $0x1308] sm:$0xff] }
 0xb78   : > { %11289 = vmatprep.subr.bf16.mxu0 %v13284_v25  ;;  %v9674_v25 = vld [vmem:[#allocation15 + $0x1328] sm:$0xff]  ;;  %v13322_v27 = vcombine.high %v9669_v43, %v9673_v51  ;;  %v13321_v32 = vcombine.low %v9669_v43, %v9673_v51  ;;  %v9842_v43 = vrot.slane %v15917_v52, 1 }
 0xb79   : > { %v13324_v20 = vcombine.high %v9670_v9, %v9674_v25  ;;  %v13323_v3 = vcombine.low %v9670_v9, %v9674_v25  ;;  %v9709_v25 = vld [vmem:[#allocation15 + $0x1440] sm:$0xff] }
 0xb7a   : > { %11168 = vmatpush1.bf16.msra.mxu1 %v13281_v58  ;;  %v9677_v58 = vld [vmem:[#allocation15 + $0x1340] sm:$0xff] }
 0xb7b   : > { %11290 = vmatpush1.bf16.msra.mxu0 %v13283_v62  ;;  %11169 = vmatprep.subr.bf16.mxu1 %v13290_v21  ;;  %v9681_v62 = vld [vmem:[#allocation15 + $0x1360] sm:$0xff]  ;;  %v9678_v21 = vld [vmem:[#allocation15 + $0x1348] sm:$0xff] }
 0xb7c   : > { %11291 = vmatprep.subr.bf16.mxu0 %v13292_v24  ;;  %v9122_v13 = vpop.f32.mrb[140].mxu1  ;;  %v9682_v24 = vld [vmem:[#allocation15 + $0x1368] sm:$0xff] }
 0xb7d   : > { %v16144_v29 = vadd.f32 %v9122_v13, %v16064_v16  ;;  %v9244_v15 = vpop.f32.mrb[120].mxu0  ;;  %v9124_v41 = vpop.f32.mrb[141].mxu1  ;;  %v13299_v16 = vcombine.low %v9646_v39, %v9650_v18  ;;  %v13330_v39 = vcombine.high %v9677_v58, %v9681_v62  ;;  %v13332_v18 = vcombine.high %v9678_v21, %v9682_v24  ;;  %v9690_v13 = vld [vmem:[#allocation15 + $0x13a8] sm:$0xff] }
 0xb7e   : > { %11170 = vmatpush1.bf16.msra.mxu1 %v13289_v54  ;;  %v16147_v10 = vadd.f32 %v9244_v15, %v16067_v4  ;;  %v16150_v35 = vadd.f32 %v9124_v41, %v16070_v7  ;;  %v9246_v6 = vpop.f32.mrb[121].mxu0  ;;  %v9126_v26 = vpop.f32.mrb[142].mxu1  ;;  %v9661_v4 = vld [vmem:[#allocation15 + $0x12c0] sm:$0xff]  ;;  %v9666_v7 = vld [vmem:[#allocation15 + $0x12e8] sm:$0xff]  ;;  %v13331_v30 = vcombine.low %v9678_v21, %v9682_v24 }
 0xb7f   : > { %11292 = vmatpush1.bf16.msra.mxu0 %v13291_v60  ;;  %v16153_v44 = vadd.f32 %v9246_v6, %v16073_v28  ;;  %11171 = vmatprep.subr.bf16.mxu1 %v13298_v22  ;;  %v9248_v53 = vpop.f32.mrb[122].mxu0  ;;  %v9127_v56 = vpop.f32.mrb[143].mxu1  ;;  %v13314_v42 = vcombine.high %v9661_v4, %v9665_v19  ;;  %v13316_v28 = vcombine.high %v9662_v63, %v9666_v7  ;;  %v9685_v54 = vld [vmem:[#allocation15 + $0x1380] sm:$0xff]  ;;  %v9686_v22 = vld [vmem:[#allocation15 + $0x1388] sm:$0xff] }
 0xb80   : > { %11293 = vmatprep.subr.bf16.mxu0 %v13300_v33  ;;  %v9249_v38 = vpop.f32.mrb[123].mxu0  ;;  %v13313_v46 = vcombine.low %v9661_v4, %v9665_v19  ;;  %v13315_v48 = vcombine.low %v9662_v63, %v9666_v7  ;;  %v9689_v60 = vld [vmem:[#allocation15 + $0x13a0] sm:$0xff]  ;;  %v13329_v33 = vcombine.low %v9677_v58, %v9681_v62  ;;  %v13340_v15 = vcombine.high %v9686_v22, %v9690_v13  ;;  %v9698_v6 = vld [vmem:[#allocation15 + $0x13e8] sm:$0xff] }
 0xb81   : > { %v13338_v8 = vcombine.high %v9685_v54, %v9689_v60  ;;  %v9693_v41 = vld [vmem:[#allocation15 + $0x13c0] sm:$0xff]  ;;  %v9561_v26 = vld [vmem:[#allocation4 + $0x88] sm:$0xff]  ;;  %v9556_v56 = vld [vmem:[#allocation4] sm:$0xfc] }
 0xb82   : > { %11172 = vmatpush1.bf16.msra.mxu1 %v13297_v45  ;;  %v13337_v45 = vcombine.low %v9685_v54, %v9689_v60  ;;  %v13346_v53 = vcombine.high %v9693_v41, %v9697_v23  ;;  %v9701_v38 = vld [vmem:[#allocation15 + $0x1400] sm:$0xff]  ;;  %v9702_v4 = vld [vmem:[#allocation15 + $0x1408] sm:$0xff]  ;;  %v9569_v63 = vpack.c.bf16 %v9561_v26, %v9561_v26  ;;  %v13345_v7 = vcombine.low %v9693_v41, %v9697_v23 }
 0xb83   : > { %11294 = vmatpush1.bf16.msra.mxu0 %v13299_v16  ;;  %11173 = vmatprep.subr.bf16.mxu1 %v13306_v36  ;;  %v13339_v16 = vcombine.low %v9686_v22, %v9690_v13  ;;  %v13348_v36 = vcombine.high %v9694_v17, %v9698_v6  ;;  %v9706_v19 = vld [vmem:[#allocation15 + $0x1428] sm:$0xff]  ;;  %v9721_v54 = vld [vmem:[#allocation15 + $0x14a0] sm:$0xff] }
 0xb84   : > { %11295 = vmatprep.subr.bf16.mxu0 %v13308_v31  ;;  %v9705_v31 = vld [vmem:[#allocation15 + $0x1420] sm:$0xff]  ;;  %v13356_v51 = vcombine.high %v9702_v4, %v9706_v19  ;;  %v16156_v9 = vrot.slane %v9569_v63, 1  ;;  %v9714_v58 = vld [vmem:[#allocation15 + $0x1468] sm:$0xff]  ;;  %v13355_v24 = vcombine.low %v9702_v4, %v9706_v19 }
 0xb85   : > { %v13353_v62 = vcombine.low %v9701_v38, %v9705_v31  ;;  %v9718_v60 = vld [vmem:[#allocation15 + $0x1488] sm:$0xff]  ;;  %v14552_v19 = vld [vmem:[#allocation4 + $0x38] sm:$0xff] }
 0xb86   : > { %11174 = vmatpush1.bf16.msra.mxu1 %v13305_v2  ;;  %v14551_v2 = vld [vmem:[#allocation4 + $0x20] sm:$0xff] }
 0xb87   : > { %11296 = vmatpush1.bf16.msra.mxu0 %v13307_v57  ;;  %11175 = vmatprep.subr.bf16.mxu1 %v13314_v42  ;;  %v9564_v57 = vpack.c.bf16 %v14551_v2, %v9556_v56  ;;  %v13347_v42 = vcombine.low %v9694_v17, %v9698_v6  ;;  %v9722_v22 = vld [vmem:[#allocation15 + $0x14a8] sm:$0xff]  ;;  %v9733_v56 = vld [vmem:[#allocation15 + $0x1500] sm:$0xff] }
 0xb88   : > { %11297 = vmatprep.subr.bf16.mxu0 %v13316_v28  ;;  %v13354_v28 = vcombine.high %v9701_v38, %v9705_v31  ;;  %v9726_v41 = vld [vmem:[#allocation15 + $0x14c8] sm:$0xff] }
 0xb89   : > { %v9730_v23 = vld [vmem:[#allocation15 + $0x14e8] sm:$0xff] }
 0xb8a   : > { %11176 = vmatpush1.bf16.msra.mxu1 %v13313_v46  ;;  %v9713_v46 = vld [vmem:[#allocation15 + $0x1460] sm:$0xff]  ;;  %v9734_v38 = vld [vmem:[#allocation15 + $0x1508] sm:$0xff] }
 0xb8b   : > { %11298 = vmatpush1.bf16.msra.mxu0 %v13315_v48  ;;  %11177 = vmatprep.subr.bf16.mxu1 %v13322_v27  ;;  %v9560_v48 = vld [vmem:[#allocation4 + $0x80] sm:$0xff]  ;;  %v9841_v27 = vrot.slane %v9564_v57, 1  ;;  %v13361_v13 = vcombine.low %v9709_v25, %v9713_v46 }
 0xb8c   : > { %11299 = vmatprep.subr.bf16.mxu0 %v13324_v20  ;;  %v9710_v20 = vld [vmem:[#allocation15 + $0x1448] sm:$0xff]  ;;  %v9568_v52 = vpack.c.bf16 %v9560_v48, %v9560_v48 }
 0xb8d   : > { %v16159_v21 = vsel %vm2581_vm4, %v9841_v27, %v9842_v43  ;;  %v9738_v31 = vld [vmem:[#allocation15 + $0x1528] sm:$0xff] }
 0xb8e   : > { %11178 = vmatpush1.bf16.msra.mxu1 %v13321_v32  ;;  %v13362_v32 = vcombine.high %v9709_v25, %v9713_v46  ;;  %v16171_v50 = vrot.slane %v9568_v52, 1  ;;  %v13388_v57 = vcombine.high %v9734_v38, %v9738_v31  ;;  %v9746_v25 = vld [vmem:[#allocation15 + $0x1568] sm:$0xff]  ;;  %v13387_v27 = vcombine.low %v9734_v38, %v9738_v31  ;;  %v9773_v31 = vld [vmem:[#allocation15 + $0x1640] sm:$0xff] }
 0xb8f   : > { %11300 = vmatpush1.bf16.msra.mxu0 %v13323_v3  ;;  %11179 = vmatprep.subr.bf16.mxu1 %v13330_v39  ;;  %v16166_v3 = vsel %vm2581_vm4, %v9845_v47, %v16156_v9  ;;  %v13364_v39 = vcombine.high %v9710_v20, %v9714_v58  ;;  %v9750_v52 = vld [vmem:[#allocation15 + $0x1588] sm:$0xff] }
 0xb90   : > { %11301 = vmatprep.subr.bf16.mxu0 %v13332_v18  ;;  %v9717_v18 = vld [vmem:[#allocation15 + $0x1480] sm:$0xff]  ;;  %v16175_v6 = vsel %vm2581_vm4, %v9842_v43, %v16171_v50 }
 0xb91   : > { %v13370_v47 = vcombine.high %v9717_v18, %v9721_v54  ;;  %v13369_v17 = vcombine.low %v9717_v18, %v9721_v54  ;;  %v9745_v43 = vld [vmem:[#allocation15 + $0x1560] sm:$0xff] }
 0xb92   : > { %11180 = vmatpush1.bf16.msra.mxu1 %v13329_v33  ;;  %v13363_v33 = vcombine.low %v9710_v20, %v9714_v58 }
 0xb93   : > { %11302 = vmatpush1.bf16.msra.mxu0 %v13331_v30  ;;  %11181 = vmatprep.subr.bf16.mxu1 %v13338_v8  ;;  %v13372_v30 = vcombine.high %v9718_v60, %v9722_v22  ;;  %v9725_v8 = vld [vmem:[#allocation15 + $0x14c0] sm:$0xff] }
 0xb94   : > { %11303 = vmatprep.subr.bf16.mxu0 %v13340_v15  ;;  %v9729_v15 = vld [vmem:[#allocation15 + $0x14e0] sm:$0xff] }
 0xb95   : > { %v13378_v26 = vcombine.high %v9725_v8, %v9729_v15  ;;  %v13377_v4 = vcombine.low %v9725_v8, %v9729_v15 }
 0xb96   : > { %11182 = vmatpush1.bf16.msra.mxu1 %v13337_v45  ;;  %v13371_v45 = vcombine.low %v9718_v60, %v9722_v22 }
 0xb97   : > { %11304 = vmatpush1.bf16.msra.mxu0 %v13339_v16  ;;  %11183 = vmatprep.subr.bf16.mxu1 %v13346_v53  ;;  %v9559_v16 = vld [vmem:[#allocation4 + $0x18] sm:$0xfc]  ;;  %v13380_v53 = vcombine.high %v9726_v41, %v9730_v23 }
 0xb98   : > { %11305 = vmatprep.subr.bf16.mxu0 %v13348_v36  ;;  %v9737_v36 = vld [vmem:[#allocation15 + $0x1520] sm:$0xff]  ;;  %v9567_v63 = vpack.c.bf16 %v14552_v19, %v9559_v16  ;;  %v9770_v16 = vld [vmem:[#allocation15 + $0x1628] sm:$0xff] }
 0xb99   : > { %v13386_v2 = vcombine.high %v9733_v56, %v9737_v36  ;;  %v13385_v46 = vcombine.low %v9733_v56, %v9737_v36  ;;  %v9774_v19 = vld [vmem:[#allocation15 + $0x1648] sm:$0xff] }
 0xb9a   : > { %11184 = vmatpush1.bf16.msra.mxu1 %v13345_v7  ;;  %v13379_v7 = vcombine.low %v9726_v41, %v9730_v23  ;;  %v9850_v48 = vrot.slane %v9567_v63, 1  ;;  %v9778_v63 = vld [vmem:[#allocation15 + $0x1668] sm:$0xff] }
 0xb9b   : > { %11306 = vmatpush1.bf16.msra.mxu0 %v13347_v42  ;;  %11214 = vmatprep.subr.bf16.mxu1 %v13354_v28  ;;  %v9851_v42 = vrot.slane %v15969_v40, 1  ;;  %v9741_v28 = vld [vmem:[#allocation15 + $0x1540] sm:$0xff] }
 0xb9c   : > { %11336 = vmatprep.subr.bf16.mxu0 %v13356_v51  ;;  %v9742_v51 = vld [vmem:[#allocation15 + $0x1548] sm:$0xff]  ;;  %v13394_v20 = vcombine.high %v9741_v28, %v9745_v43  ;;  %v13393_v18 = vcombine.low %v9741_v28, %v9745_v43  ;;  %v13428_v43 = vcombine.high %v9774_v19, %v9778_v63 }
 0xb9d   : > { %11186 = vmatmul.mubr.bf16.vlgmr.msra.gmra.mrb[108].mxu1 %v16159_v21  ;;  %v16186_v58 = vsel %vm2581_vm4, %v9850_v48, %v9851_v42  ;;  %v13395_v54 = vcombine.low %v9742_v51, %v9746_v25 }
 0xb9e   : > { %11308 = vmatmul.mubr.bf16.vlgmr.msra.gmra.mrb[88].mxu0 %v16159_v21  ;;  %11195 = vmatprep.mubr.bf16.mxu1 %v16166_v3 }
 0xb9f   : > { %11215 = vmatpush1.bf16.msra.mxu1 %v13353_v62  ;;  %11317 = vmatprep.mubr.bf16.mxu0 %v16166_v3  ;;  %v13396_v62 = vcombine.high %v9742_v51, %v9746_v25  ;;  %v9781_v51 = vld [vmem:[#allocation15 + $0x1680] sm:$0xff] }
 0xba0   : > { %11337 = vmatpush1.bf16.msra.mxu0 %v13355_v24  ;;  %11216 = vmatprep.subr.bf16.mxu1 %v13362_v32  ;;  %v9749_v24 = vld [vmem:[#allocation15 + $0x1580] sm:$0xff] }
 0xba1   : > { %11338 = vmatprep.subr.bf16.mxu0 %v13364_v39  ;;  %v9753_v32 = vld [vmem:[#allocation15 + $0x15a0] sm:$0xff]  ;;  %v9754_v39 = vld [vmem:[#allocation15 + $0x15a8] sm:$0xff] }
 0xba2   : > { %v13402_v60 = vcombine.high %v9749_v24, %v9753_v32  ;;  %v13404_v22 = vcombine.high %v9750_v52, %v9754_v39  ;;  %v13401_v8 = vcombine.low %v9749_v24, %v9753_v32  ;;  %v13403_v15 = vcombine.low %v9750_v52, %v9754_v39  ;;  %v9785_v25 = vld [vmem:[#allocation15 + $0x16a0] sm:$0xff] }
 0xba3   : > { %11217 = vmatpush1.bf16.msra.mxu1 %v13361_v13  ;;  %v9757_v13 = vld [vmem:[#allocation15 + $0x15c0] sm:$0xff] }
 0xba4   : > { %11339 = vmatpush1.bf16.msra.mxu0 %v13363_v33  ;;  %11218 = vmatprep.subr.bf16.mxu1 %v13370_v47  ;;  %v9761_v33 = vld [vmem:[#allocation15 + $0x15e0] sm:$0xff]  ;;  %v9758_v47 = vld [vmem:[#allocation15 + $0x15c8] sm:$0xff] }
 0xba5   : > { %11196 = vmatmul.mubr.bf16.gmra.mrb[112].mxu1 %v16175_v6  ;;  %11340 = vmatprep.subr.bf16.mxu0 %v13372_v30  ;;  %v9762_v30 = vld [vmem:[#allocation15 + $0x15e8] sm:$0xff]  ;;  %v13410_v41 = vcombine.high %v9757_v13, %v9761_v33 }
 0xba6   : > { %11318 = vmatmul.mubr.bf16.gmra.mrb[92].mxu0 %v16175_v6  ;;  %11205 = vmatprep.mubr.bf16.mxu1 %v16156_v9  ;;  %v13412_v23 = vcombine.high %v9758_v47, %v9762_v30  ;;  %v13411_v56 = vcombine.low %v9758_v47, %v9762_v30  ;;  %v9793_v30 = vld [vmem:[#allocation15 + $0x16e0] sm:$0xff] }
 0xba7   : > { %11219 = vmatpush1.bf16.msra.mxu1 %v13369_v17  ;;  %11327 = vmatprep.mubr.bf16.mxu0 %v16156_v9  ;;  %v9765_v17 = vld [vmem:[#allocation15 + $0x1600] sm:$0xff] }
 0xba8   : > { %11341 = vmatpush1.bf16.msra.mxu0 %v13371_v45  ;;  %11220 = vmatprep.subr.bf16.mxu1 %v13378_v26  ;;  %v9769_v45 = vld [vmem:[#allocation15 + $0x1620] sm:$0xff]  ;;  %v9766_v26 = vld [vmem:[#allocation15 + $0x1608] sm:$0xff] }
 0xba9   : > { %11342 = vmatprep.subr.bf16.mxu0 %v13380_v53  ;;  %v13409_v53 = vcombine.low %v9757_v13, %v9761_v33  ;;  %v13418_v36 = vcombine.high %v9765_v17, %v9769_v45  ;;  %v13420_v38 = vcombine.high %v9766_v26, %v9770_v16  ;;  %v13434_v13 = vcombine.high %v9781_v51, %v9785_v25 }
 0xbab   : > { %11221 = vmatpush1.bf16.msra.mxu1 %v13377_v4  ;;  %v9777_v4 = vld [vmem:[#allocation15 + $0x1660] sm:$0xff] }
 0xbac   : > { %11343 = vmatpush1.bf16.msra.mxu0 %v13379_v7  ;;  %11222 = vmatprep.subr.bf16.mxu1 %v13386_v2  ;;  %v13417_v7 = vcombine.low %v9765_v17, %v9769_v45  ;;  %v13419_v2 = vcombine.low %v9766_v26, %v9770_v16  ;;  %v13425_v39 = vcombine.low %v9773_v31, %v9777_v4  ;;  %v9797_v17 = vld [vmem:[#allocation15 + $0x1700] sm:$0xff]  ;;  %v9798_v26 = vld [vmem:[#allocation15 + $0x1708] sm:$0xff] }
 0xbad   : > { %11206 = vmatmul.mubr.bf16.gmra.mrb[156].mxu1 %v16171_v50  ;;  %11344 = vmatprep.subr.bf16.mxu0 %v13388_v57  ;;  %v13426_v57 = vcombine.high %v9773_v31, %v9777_v4  ;;  %v9801_v45 = vld [vmem:[#allocation15 + $0x1720] sm:$0xff]  ;;  %v9802_v16 = vld [vmem:[#allocation15 + $0x1728] sm:$0xff] }
 0xbae   : > { %11328 = vmatmul.mubr.bf16.gmra.mrb[136].mxu0 %v16171_v50  ;;  %11246 = vmatprep.mubr.bf16.mxu1 %v16186_v58  ;;  %v9805_v31 = vld [vmem:[#allocation15 + $0x1740] sm:$0xff] }
 0xbaf   : > { %11223 = vmatpush1.bf16.msra.mxu1 %v13385_v46  ;;  %11368 = vmatprep.mubr.bf16.mxu0 %v16186_v58  ;;  %v9809_v4 = vld [vmem:[#allocation15 + $0x1760] sm:$0xff] }
 0xbb0   : > { %11345 = vmatpush1.bf16.msra.mxu0 %v13387_v27  ;;  %11224 = vmatprep.subr.bf16.mxu1 %v13394_v20  ;;  %v9782_v20 = vld [vmem:[#allocation15 + $0x1688] sm:$0xff] }
 0xbb1   : > { %11346 = vmatprep.subr.bf16.mxu0 %v13396_v62  ;;  %v9786_v62 = vld [vmem:[#allocation15 + $0x16a8] sm:$0xff] }
 0xbb2   : > { %v13436_v47 = vcombine.high %v9782_v20, %v9786_v62 }
 0xbb3   : > { %11225 = vmatpush1.bf16.msra.mxu1 %v13393_v18 }
 0xbb4   : > { %11347 = vmatpush1.bf16.msra.mxu0 %v13395_v54  ;;  %11226 = vmatprep.subr.bf16.mxu1 %v13402_v60 }
 0xbb5   : > { %11348 = vmatprep.subr.bf16.mxu0 %v13404_v22 }
 0xbb7   : > { %11227 = vmatpush1.bf16.msra.mxu1 %v13401_v8  ;;  %v9790_v8 = vld [vmem:[#allocation15 + $0x16c8] sm:$0xff] }
 0xbb8   : > { %11349 = vmatpush1.bf16.msra.mxu0 %v13403_v15  ;;  %11228 = vmatprep.subr.bf16.mxu1 %v13410_v41  ;;  %v13433_v15 = vcombine.low %v9781_v51, %v9785_v25  ;;  %v13435_v41 = vcombine.low %v9782_v20, %v9786_v62  ;;  %v9817_v51 = vld [vmem:[#allocation15 + $0x17a0] sm:$0xff]  ;;  %v9814_v25 = vld [vmem:[#allocation15 + $0x1788] sm:$0xff] }
 0xbb9   : > { %11350 = vmatprep.subr.bf16.mxu0 %v13412_v23 }
 0xbbb   : > { %11229 = vmatpush1.bf16.msra.mxu1 %v13409_v53 }
 0xbbc   : > { %11351 = vmatpush1.bf16.msra.mxu0 %v13411_v56  ;;  %11230 = vmatprep.subr.bf16.mxu1 %v13418_v36  ;;  %v13450_v36 = vcombine.high %v9797_v17, %v9801_v45 }
 0xbbd   : > { %11352 = vmatprep.subr.bf16.mxu0 %v13420_v38  ;;  %v9183_v28 = vpop.f32.mrb[144].mxu1  ;;  %v13452_v38 = vcombine.high %v9798_v26, %v9802_v16 }
 0xbbe   : > { %v16192_v46 = vadd.f32 %v9183_v28, %v16144_v29  ;;  %v9305_v48 = vpop.f32.mrb[124].mxu0  ;;  %v9185_v27 = vpop.f32.mrb[145].mxu1  ;;  %v13427_v29 = vcombine.low %v9774_v19, %v9778_v63  ;;  %v9806_v19 = vld [vmem:[#allocation15 + $0x1748] sm:$0xff] }
 0xbbf   : > { %11231 = vmatpush1.bf16.msra.mxu1 %v13417_v7  ;;  %v16195_v24 = vadd.f32 %v9305_v48, %v16147_v10  ;;  %v16198_v32 = vadd.f32 %v9185_v27, %v16150_v35  ;;  %v9307_v52 = vpop.f32.mrb[125].mxu0  ;;  %v9187_v18 = vpop.f32.mrb[146].mxu1  ;;  %v9789_v10 = vld [vmem:[#allocation15 + $0x16c0] sm:$0xff]  ;;  %v9794_v35 = vld [vmem:[#allocation15 + $0x16e8] sm:$0xff]  ;;  %v13449_v7 = vcombine.low %v9797_v17, %v9801_v45  ;;  %v13457_v27 = vcombine.low %v9805_v31, %v9809_v4  ;;  %v14553_v17 = vld [vmem:[#allocation4 + $0x30] sm:$0xff] }
 0xbc0   : > { %11353 = vmatpush1.bf16.msra.mxu0 %v13419_v2  ;;  %v16201_v54 = vadd.f32 %v9307_v52, %v16153_v44  ;;  %11232 = vmatprep.subr.bf16.mxu1 %v13426_v57  ;;  %v9309_v60 = vpop.f32.mrb[126].mxu0  ;;  %v9188_v22 = vpop.f32.mrb[147].mxu1  ;;  %v13442_v23 = vcombine.high %v9789_v10, %v9793_v30  ;;  %v13444_v44 = vcombine.high %v9790_v8, %v9794_v35  ;;  %v9810_v63 = vld [vmem:[#allocation15 + $0x1768] sm:$0xff]  ;;  %v9825_v18 = vld [vmem:[#allocation15 + $0x17e0] sm:$0xff] }
 0xbc1   : > { %11354 = vmatprep.subr.bf16.mxu0 %v13428_v43  ;;  %v9310_v33 = vpop.f32.mrb[127].mxu0  ;;  %v13441_v53 = vcombine.low %v9789_v10, %v9793_v30  ;;  %v13443_v56 = vcombine.low %v9790_v8, %v9794_v35  ;;  %v13451_v2 = vcombine.low %v9798_v26, %v9802_v16  ;;  %v13458_v57 = vcombine.high %v9805_v31, %v9809_v4  ;;  %v9813_v43 = vld [vmem:[#allocation15 + $0x1780] sm:$0xff]  ;;  %v9818_v48 = vld [vmem:[#allocation15 + $0x17a8] sm:$0xff]  ;;  %v9558_v10 = vld [vmem:[#allocation4 + $0x10] sm:$0xfc] }
 0xbc2   : > { %v13460_v28 = vcombine.high %v9806_v19, %v9810_v63  ;;  %v13459_v20 = vcombine.low %v9806_v19, %v9810_v63  ;;  %v13466_v62 = vcombine.high %v9813_v43, %v9817_v51  ;;  %v13468_v52 = vcombine.high %v9814_v25, %v9818_v48  ;;  %v9826_v60 = vld [vmem:[#allocation15 + $0x17e8] sm:$0xff]  ;;  %v9575_v8 = vld [vmem:[#allocation15 + $0x1010] sm:$0xff]  ;;  %v9584_v63 = vld [vmem:[#allocation15 + $0x1058] sm:$0xff] }
 0xbc3   : > { %11233 = vmatpush1.bf16.msra.mxu1 %v13425_v39  ;;  %v9821_v39 = vld [vmem:[#allocation15 + $0x17c0] sm:$0xff]  ;;  %v13465_v22 = vcombine.low %v9813_v43, %v9817_v51  ;;  %v13467_v33 = vcombine.low %v9814_v25, %v9818_v48  ;;  %v9579_v35 = vld [vmem:[#allocation15 + $0x1030] sm:$0xff]  ;;  %v9566_v45 = vpack.c.bf16 %v14553_v17, %v9558_v10 }
 0xbc4   : > { %11355 = vmatpush1.bf16.msra.mxu0 %v13427_v29  ;;  %11234 = vmatprep.subr.bf16.mxu1 %v13434_v13  ;;  %v9822_v29 = vld [vmem:[#allocation15 + $0x17c8] sm:$0xff]  ;;  %v9563_v13 = vld [vmem:[#allocation4 + $0x98] sm:$0xff]  ;;  %v13230_v16 = vcombine.high %v9575_v8, %v9579_v35  ;;  %v9587_v31 = vld [vmem:[#allocation15 + $0x1070] sm:$0xff] }
 0xbc5   : > { %11356 = vmatprep.subr.bf16.mxu0 %v13436_v47  ;;  %v13474_v47 = vcombine.high %v9821_v39, %v9825_v18  ;;  %v13476_v30 = vcombine.high %v9822_v29, %v9826_v60  ;;  %v13475_v26 = vcombine.low %v9822_v29, %v9826_v60  ;;  %v9562_v4 = vld [vmem:[#allocation4 + $0x90] sm:$0xff]  ;;  %v9847_v19 = vrot.slane %v9566_v45, 1 }
 0xbc6   : > { %v9591_v48 = vld [vmem:[#allocation15 + $0x1090] sm:$0xff] }
 0xbc7   : > { %11235 = vmatpush1.bf16.msra.mxu1 %v13433_v15  ;;  %v9576_v15 = vld [vmem:[#allocation15 + $0x1018] sm:$0xff]  ;;  %v9599_v29 = vld [vmem:[#allocation15 + $0x10d0] sm:$0xff] }
 0xbc8   : > { %11357 = vmatpush1.bf16.msra.mxu0 %v13435_v41  ;;  %11236 = vmatprep.subr.bf16.mxu1 %v13442_v23  ;;  %v9580_v41 = vld [vmem:[#allocation15 + $0x1038] sm:$0xff]  ;;  %v9571_v23 = vpack.c.bf16 %v9563_v13, %v9563_v13  ;;  %v9603_v60 = vld [vmem:[#allocation15 + $0x10f0] sm:$0xff] }
 0xbc9   : > { %11358 = vmatprep.subr.bf16.mxu0 %v13444_v44  ;;  %v13473_v44 = vcombine.low %v9821_v39, %v9825_v18  ;;  %v9604_v13 = vld [vmem:[#allocation15 + $0x10f8] sm:$0xff] }
 0xbcb   : > { %11237 = vmatpush1.bf16.msra.mxu1 %v13441_v53  ;;  %v9848_v53 = vrot.slane %v15967_v59, 1  ;;  %v9570_v59 = vpack.c.bf16 %v9562_v4, %v9562_v4 }
 0xbcc   : > { %11359 = vmatpush1.bf16.msra.mxu0 %v13443_v56  ;;  %11238 = vmatprep.subr.bf16.mxu1 %v13450_v36  ;;  %v13232_v56 = vcombine.high %v9576_v15, %v9580_v41  ;;  %v16204_v36 = vrot.slane %v9571_v23, 1  ;;  %v9612_v23 = vld [vmem:[#allocation15 + $0x1138] sm:$0xff] }
 0xbcd   : > { %11360 = vmatprep.subr.bf16.mxu0 %v13452_v38  ;;  %v9583_v38 = vld [vmem:[#allocation15 + $0x1050] sm:$0xff]  ;;  %v16219_v40 = vrot.slane %v9570_v59, 1 }
 0xbce   : > { %v13238_v43 = vcombine.high %v9583_v38, %v9587_v31  ;;  %v16214_v51 = vsel %vm2581_vm4, %v9851_v42, %v16204_v36 }
 0xbcf   : > { %11239 = vmatpush1.bf16.msra.mxu1 %v13449_v7  ;;  %v9588_v7 = vld [vmem:[#allocation15 + $0x1078] sm:$0xff] }
 0xbd0   : > { %11361 = vmatpush1.bf16.msra.mxu0 %v13451_v2  ;;  %11240 = vmatprep.subr.bf16.mxu1 %v13458_v57  ;;  %v13229_v2 = vcombine.low %v9575_v8, %v9579_v35  ;;  %v16207_v57 = vsel %vm2581_vm4, %v9847_v19, %v9848_v53  ;;  %v13240_v25 = vcombine.high %v9584_v63, %v9588_v7  ;;  %v9607_v35 = vld [vmem:[#allocation15 + $0x1110] sm:$0xff] }
 0xbd1   : > { %11362 = vmatprep.subr.bf16.mxu0 %v13460_v28  ;;  %v13231_v28 = vcombine.low %v9576_v15, %v9580_v41  ;;  %v13239_v39 = vcombine.low %v9584_v63, %v9588_v7  ;;  %v9611_v15 = vld [vmem:[#allocation15 + $0x1130] sm:$0xff]  ;;  %v9608_v41 = vld [vmem:[#allocation15 + $0x1118] sm:$0xff] }
 0xbd2   : > { %v13262_v45 = vcombine.high %v9607_v35, %v9611_v15  ;;  %v13263_v4 = vcombine.low %v9608_v41, %v9612_v23  ;;  %v9623_v7 = vld [vmem:[#allocation15 + $0x1190] sm:$0xff] }
 0xbd3   : > { %11241 = vmatpush1.bf16.msra.mxu1 %v13457_v27  ;;  %v9595_v27 = vld [vmem:[#allocation15 + $0x10b0] sm:$0xff] }
 0xbd4   : > { %11363 = vmatpush1.bf16.msra.mxu0 %v13459_v20  ;;  %11242 = vmatprep.subr.bf16.mxu1 %v13466_v62  ;;  %v9592_v20 = vld [vmem:[#allocation15 + $0x1098] sm:$0xff]  ;;  %v13246_v42 = vcombine.high %v9591_v48, %v9595_v27 }
 0xbd5   : > { %11364 = vmatprep.subr.bf16.mxu0 %v13468_v52  ;;  %v9596_v62 = vld [vmem:[#allocation15 + $0x10b8] sm:$0xff]  ;;  %v13237_v52 = vcombine.low %v9583_v38, %v9587_v31  ;;  %v13261_v31 = vcombine.low %v9607_v35, %v9611_v15  ;;  %v9647_v15 = vld [vmem:[#allocation15 + $0x1250] sm:$0xff] }
 0xbd6   : > { %v13248_v18 = vcombine.high %v9592_v20, %v9596_v62  ;;  %v13247_v10 = vcombine.low %v9592_v20, %v9596_v62  ;;  %v9620_v38 = vld [vmem:[#allocation15 + $0x1178] sm:$0xff]  ;;  %v9631_v20 = vld [vmem:[#allocation15 + $0x11d0] sm:$0xff] }
 0xbd7   : > { %11243 = vmatpush1.bf16.msra.mxu1 %v13465_v22  ;;  %v9600_v22 = vld [vmem:[#allocation15 + $0x10d8] sm:$0xff]  ;;  %v9635_v62 = vld [vmem:[#allocation15 + $0x11f0] sm:$0xff] }
 0xbd8   : > { %11365 = vmatpush1.bf16.msra.mxu0 %v13467_v33  ;;  %11244 = vmatprep.subr.bf16.mxu1 %v13474_v47  ;;  %v13245_v33 = vcombine.low %v9591_v48, %v9595_v27  ;;  %v16223_v47 = vsel %vm2581_vm4, %v9848_v53, %v16219_v40  ;;  %v13256_v8 = vcombine.high %v9600_v22, %v9604_v13  ;;  %v9619_v53 = vld [vmem:[#allocation15 + $0x1170] sm:$0xff] }
 0xbd9   : > { %11366 = vmatprep.subr.bf16.mxu0 %v13476_v30  ;;  %v13254_v30 = vcombine.high %v9599_v29, %v9603_v60  ;;  %v13255_v17 = vcombine.low %v9600_v22, %v9604_v13  ;;  %v9643_v22 = vld [vmem:[#allocation15 + $0x1230] sm:$0xff]  ;;  %v9640_v13 = vld [vmem:[#allocation15 + $0x1218] sm:$0xff] }
 0xbdb   : > { %11245 = vmatpush1.bf16.msra.mxu1 %v13473_v44  ;;  %v13253_v44 = vcombine.low %v9599_v29, %v9603_v60  ;;  %v13286_v29 = vcombine.high %v9631_v20, %v9635_v62 }
 0xbdc   : > { %11367 = vmatpush1.bf16.msra.mxu0 %v13475_v26  ;;  %11397 = vmatprep.subr.bf16.mxu1 %v13230_v16  ;;  %v13264_v26 = vcombine.high %v9608_v41, %v9612_v23  ;;  %v9615_v16 = vld [vmem:[#allocation15 + $0x1150] sm:$0xff]  ;;  %v9648_v23 = vld [vmem:[#allocation15 + $0x1258] sm:$0xff] }
 0xbdd   : > { %11519 = vmatprep.subr.bf16.mxu0 %v13232_v56  ;;  %v9616_v56 = vld [vmem:[#allocation15 + $0x1158] sm:$0xff]  ;;  %v13270_v19 = vcombine.high %v9615_v16, %v9619_v53  ;;  %v13269_v59 = vcombine.low %v9615_v16, %v9619_v53  ;;  %v9651_v41 = vld [vmem:[#allocation15 + $0x1270] sm:$0xff] }
 0xbde   : > { %11247 = vmatmul.mubr.bf16.vlgmr.msra.gmra.mrb[108].mxu1 %v16207_v57  ;;  %v13272_v63 = vcombine.high %v9616_v56, %v9620_v38 }
 0xbdf   : > { %11369 = vmatmul.mubr.bf16.vlgmr.msra.gmra.mrb[88].mxu0 %v16207_v57  ;;  %11256 = vmatprep.mubr.bf16.mxu1 %v16214_v51 }
 0xbe0   : > { %11378 = vmatprep.mubr.bf16.mxu0 %v16214_v51  ;;  %11398 = vmatpush1.bf16.msra.mxu1 %v13229_v2  ;;  %v9627_v2 = vld [vmem:[#allocation15 + $0x11b0] sm:$0xff] }
 0xbe1   : > { %11520 = vmatpush1.bf16.msra.mxu0 %v13231_v28  ;;  %11399 = vmatprep.subr.bf16.mxu1 %v13238_v43  ;;  %v9624_v28 = vld [vmem:[#allocation15 + $0x1198] sm:$0xff]  ;;  %v13278_v48 = vcombine.high %v9623_v7, %v9627_v2 }
 0xbe2   : > { %11521 = vmatprep.subr.bf16.mxu0 %v13240_v25  ;;  %v9628_v43 = vld [vmem:[#allocation15 + $0x11b8] sm:$0xff]  ;;  %v13271_v25 = vcombine.low %v9616_v56, %v9620_v38  ;;  %v9655_v56 = vld [vmem:[#allocation15 + $0x1290] sm:$0xff] }
 0xbe3   : > { %v13280_v27 = vcombine.high %v9624_v28, %v9628_v43  ;;  %v9659_v38 = vld [vmem:[#allocation15 + $0x12b0] sm:$0xff] }
 0xbe4   : > { %11400 = vmatpush1.bf16.msra.mxu1 %v13237_v52  ;;  %v9632_v52 = vld [vmem:[#allocation15 + $0x11d8] sm:$0xff] }
 0xbe5   : > { %11522 = vmatpush1.bf16.msra.mxu0 %v13239_v39  ;;  %11401 = vmatprep.subr.bf16.mxu1 %v13246_v42  ;;  %v9636_v39 = vld [vmem:[#allocation15 + $0x11f8] sm:$0xff]  ;;  %v13277_v42 = vcombine.low %v9623_v7, %v9627_v2 }
 0xbe6   : > { %11257 = vmatmul.mubr.bf16.gmra.mrb[112].mxu1 %v16223_v47  ;;  %11523 = vmatprep.subr.bf16.mxu0 %v13248_v18  ;;  %v13279_v18 = vcombine.low %v9624_v28, %v9628_v43  ;;  %v13288_v60 = vcombine.high %v9632_v52, %v9636_v39  ;;  %v9660_v7 = vld [vmem:[#allocation15 + $0x12b8] sm:$0xff] }
 0xbe7   : > { %11379 = vmatmul.mubr.bf16.gmra.mrb[92].mxu0 %v16223_v47  ;;  %11266 = vmatprep.mubr.bf16.mxu1 %v16204_v36 }
 0xbe8   : > { %11388 = vmatprep.mubr.bf16.mxu0 %v16204_v36  ;;  %11402 = vmatpush1.bf16.msra.mxu1 %v13245_v33  ;;  %v9644_v33 = vld [vmem:[#allocation15 + $0x1238] sm:$0xff] }
 0xbe9   : > { %11524 = vmatpush1.bf16.msra.mxu0 %v13247_v10  ;;  %11403 = vmatprep.subr.bf16.mxu1 %v13254_v30  ;;  %v13285_v10 = vcombine.low %v9631_v20, %v9635_v62  ;;  %v13287_v30 = vcombine.low %v9632_v52, %v9636_v39  ;;  %v13296_v35 = vcombine.high %v9640_v13, %v9644_v33 }
 0xbea   : > { %11525 = vmatprep.subr.bf16.mxu0 %v13256_v8  ;;  %v13310_v62 = vcombine.high %v9655_v56, %v9659_v38 }
 0xbec   : > { %11404 = vmatpush1.bf16.msra.mxu1 %v13253_v44  ;;  %v9652_v44 = vld [vmem:[#allocation15 + $0x1278] sm:$0xff] }
 0xbed   : > { %11526 = vmatpush1.bf16.msra.mxu0 %v13255_v17  ;;  %11405 = vmatprep.subr.bf16.mxu1 %v13262_v45  ;;  %v13295_v45 = vcombine.low %v9640_v13, %v9644_v33  ;;  %v13304_v53 = vcombine.high %v9648_v23, %v9652_v44  ;;  %v9675_v13 = vld [vmem:[#allocation15 + $0x1330] sm:$0xff]  ;;  %v9672_v33 = vld [vmem:[#allocation15 + $0x1318] sm:$0xff] }
 0xbee   : > { %11267 = vmatmul.mubr.bf16.gmra.mrb[160].mxu1 %v16219_v40  ;;  %11527 = vmatprep.subr.bf16.mxu0 %v13264_v26  ;;  %v13302_v26 = vcombine.high %v9647_v15, %v9651_v41 }
 0xbef   : > { %11389 = vmatmul.mubr.bf16.gmra.mrb[140].mxu0 %v16219_v40  ;;  %11429 = vmatprep.mubr.bf16.mxu1 %v16138_v37 }
 0xbf0   : > { %11406 = vmatpush1.bf16.msra.mxu1 %v13261_v31  ;;  %11551 = vmatprep.mubr.bf16.mxu0 %v16138_v37  ;;  %v9639_v37 = vld [vmem:[#allocation15 + $0x1210] sm:$0xff] }
 0xbf1   : > { %11528 = vmatpush1.bf16.msra.mxu0 %v13263_v4  ;;  %11407 = vmatprep.subr.bf16.mxu1 %v13270_v19  ;;  %v13294_v8 = vcombine.high %v9639_v37, %v9643_v22  ;;  %v13293_v17 = vcombine.low %v9639_v37, %v9643_v22  ;;  %v9671_v22 = vld [vmem:[#allocation15 + $0x1310] sm:$0xff] }
 0xbf2   : > { %11529 = vmatprep.subr.bf16.mxu0 %v13272_v63  ;;  %v9656_v63 = vld [vmem:[#allocation15 + $0x1298] sm:$0xff] }
 0xbf3   : > { %v13312_v39 = vcombine.high %v9656_v63, %v9660_v7 }
 0xbf4   : > { %11408 = vmatpush1.bf16.msra.mxu1 %v13269_v59  ;;  %v13301_v59 = vcombine.low %v9647_v15, %v9651_v41  ;;  %v9679_v41 = vld [vmem:[#allocation15 + $0x1350] sm:$0xff] }
 0xbf5   : > { %11530 = vmatpush1.bf16.msra.mxu0 %v13271_v25  ;;  %11409 = vmatprep.subr.bf16.mxu1 %v13278_v48 }
 0xbf6   : > { %11531 = vmatprep.subr.bf16.mxu0 %v13280_v27 }
 0xbf8   : > { %11410 = vmatpush1.bf16.msra.mxu1 %v13277_v42  ;;  %v9667_v42 = vld [vmem:[#allocation15 + $0x12f0] sm:$0xff] }
 0xbf9   : > { %11532 = vmatpush1.bf16.msra.mxu0 %v13279_v18  ;;  %11411 = vmatprep.subr.bf16.mxu1 %v13286_v29  ;;  %v9664_v18 = vld [vmem:[#allocation15 + $0x12d8] sm:$0xff]  ;;  %v13309_v29 = vcombine.low %v9655_v56, %v9659_v38  ;;  %v9687_v56 = vld [vmem:[#allocation15 + $0x1390] sm:$0xff] }
 0xbfa   : > { %11533 = vmatprep.subr.bf16.mxu0 %v13288_v60  ;;  %v13311_v60 = vcombine.low %v9656_v63, %v9660_v7  ;;  %v9691_v38 = vld [vmem:[#allocation15 + $0x13b0] sm:$0xff] }
 0xbfc   : > { %11412 = vmatpush1.bf16.msra.mxu1 %v13285_v10  ;;  %v9676_v10 = vld [vmem:[#allocation15 + $0x1338] sm:$0xff] }
 0xbfd   : > { %11534 = vmatpush1.bf16.msra.mxu0 %v13287_v30  ;;  %11413 = vmatprep.subr.bf16.mxu1 %v13294_v8  ;;  %v13328_v15 = vcombine.high %v9672_v33, %v9676_v10 }
 0xbfe   : > { %11535 = vmatprep.subr.bf16.mxu0 %v13296_v35  ;;  %v9366_v16 = vpop.f32.mrb[148].mxu1  ;;  %v13326_v35 = vcombine.high %v9671_v22, %v9675_v13 }
 0xbff   : > { %v16234_v31 = vadd.f32 %v9366_v16, %v16114_v49  ;;  %v9488_v4 = vpop.f32.mrb[128].mxu0  ;;  %v9368_v19 = vpop.f32.mrb[149].mxu1  ;;  %v13303_v49 = vcombine.low %v9648_v23, %v9652_v44  ;;  %v9683_v23 = vld [vmem:[#allocation15 + $0x1370] sm:$0xff]  ;;  %v9680_v44 = vld [vmem:[#allocation15 + $0x1358] sm:$0xff] }
 0xc00   : > { %11414 = vmatpush1.bf16.msra.mxu1 %v13293_v17  ;;  %v16237_v2 = vadd.f32 %v9488_v4, %v16117_v61  ;;  %v16240_v28 = vadd.f32 %v9368_v19, %v16120_v34  ;;  %v9490_v43 = vpop.f32.mrb[129].mxu0  ;;  %v9370_v25 = vpop.f32.mrb[150].mxu1  ;;  %v9663_v61 = vld [vmem:[#allocation15 + $0x12d0] sm:$0xff]  ;;  %v9668_v34 = vld [vmem:[#allocation15 + $0x12f8] sm:$0xff]  ;;  %v13334_v16 = vcombine.high %v9679_v41, %v9683_v23  ;;  %v13333_v63 = vcombine.low %v9679_v41, %v9683_v23 }
 0xc01   : > { %11536 = vmatpush1.bf16.msra.mxu0 %v13295_v45  ;;  %v16243_v48 = vadd.f32 %v9490_v43, %v16123_v1  ;;  %11415 = vmatprep.subr.bf16.mxu1 %v13302_v26  ;;  %v9492_v27 = vpop.f32.mrb[130].mxu0  ;;  %v9371_v20 = vpop.f32.mrb[151].mxu1  ;;  %v13318_v37 = vcombine.high %v9663_v61, %v9667_v42  ;;  %v13320_v1 = vcombine.high %v9664_v18, %v9668_v34  ;;  %v9684_v17 = vld [vmem:[#allocation15 + $0x1378] sm:$0xff]  ;;  %v9695_v25 = vld [vmem:[#allocation15 + $0x13d0] sm:$0xff] }
 0xc02   : > { %11537 = vmatprep.subr.bf16.mxu0 %v13304_v53  ;;  %v9493_v52 = vpop.f32.mrb[131].mxu0  ;;  %v13317_v30 = vcombine.low %v9663_v61, %v9667_v42  ;;  %v13319_v8 = vcombine.low %v9664_v18, %v9668_v34  ;;  %v13325_v45 = vcombine.low %v9671_v22, %v9675_v13  ;;  %v13327_v26 = vcombine.low %v9672_v33, %v9676_v10  ;;  %v9688_v4 = vld [vmem:[#allocation15 + $0x1398] sm:$0xff]  ;;  %v9703_v42 = vld [vmem:[#allocation15 + $0x1410] sm:$0xff] }
 0xc03   : > { %v13336_v53 = vcombine.high %v9680_v44, %v9684_v17  ;;  %v9692_v19 = vld [vmem:[#allocation15 + $0x13b8] sm:$0xff]  ;;  %v13335_v7 = vcombine.low %v9680_v44, %v9684_v17  ;;  %v13342_v43 = vcombine.high %v9687_v56, %v9691_v38  ;;  %v9707_v18 = vld [vmem:[#allocation15 + $0x1430] sm:$0xff] }
 0xc04   : > { %11416 = vmatpush1.bf16.msra.mxu1 %v13301_v59  ;;  %v13344_v59 = vcombine.high %v9688_v4, %v9692_v19  ;;  %v9696_v27 = vld [vmem:[#allocation15 + $0x13d8] sm:$0xff]  ;;  %v13343_v52 = vcombine.low %v9688_v4, %v9692_v19  ;;  %v9711_v13 = vld [vmem:[#allocation15 + $0x1450] sm:$0xff] }
 0xc05   : > { %11538 = vmatpush1.bf16.msra.mxu0 %v13303_v49  ;;  %11417 = vmatprep.subr.bf16.mxu1 %v13310_v62  ;;  %v9699_v49 = vld [vmem:[#allocation15 + $0x13f0] sm:$0xff]  ;;  %v9700_v20 = vld [vmem:[#allocation15 + $0x13f8] sm:$0xff]  ;;  %v13341_v62 = vcombine.low %v9687_v56, %v9691_v38 }
 0xc06   : > { %11539 = vmatprep.subr.bf16.mxu0 %v13312_v39  ;;  %v13350_v39 = vcombine.high %v9695_v25, %v9699_v49  ;;  %v13352_v61 = vcombine.high %v9696_v27, %v9700_v20  ;;  %v9704_v34 = vld [vmem:[#allocation15 + $0x1418] sm:$0xff]  ;;  %v9715_v33 = vld [vmem:[#allocation15 + $0x1470] sm:$0xff] }
 0xc07   : > { %v9712_v10 = vld [vmem:[#allocation15 + $0x1458] sm:$0xff]  ;;  %v9719_v23 = vld [vmem:[#allocation15 + $0x1490] sm:$0xff] }
 0xc08   : > { %11418 = vmatpush1.bf16.msra.mxu1 %v13309_v29  ;;  %v9708_v29 = vld [vmem:[#allocation15 + $0x1438] sm:$0xff]  ;;  %v9723_v44 = vld [vmem:[#allocation15 + $0x14b0] sm:$0xff] }
 0xc09   : > { %11540 = vmatpush1.bf16.msra.mxu0 %v13311_v60  ;;  %11419 = vmatprep.subr.bf16.mxu1 %v13318_v37  ;;  %v13349_v60 = vcombine.low %v9695_v25, %v9699_v49  ;;  %v13351_v37 = vcombine.low %v9696_v27, %v9700_v20  ;;  %v13360_v22 = vcombine.high %v9704_v34, %v9708_v29  ;;  %v9720_v17 = vld [vmem:[#allocation15 + $0x1498] sm:$0xff]  ;;  %v9727_v38 = vld [vmem:[#allocation15 + $0x14d0] sm:$0xff] }
 0xc0a   : > { %11541 = vmatprep.subr.bf16.mxu0 %v13320_v1  ;;  %v13358_v1 = vcombine.high %v9703_v42, %v9707_v18  ;;  %v9731_v4 = vld [vmem:[#allocation15 + $0x14f0] sm:$0xff]  ;;  %v9728_v19 = vld [vmem:[#allocation15 + $0x14d8] sm:$0xff] }
 0xc0b   : > { %v9739_v25 = vld [vmem:[#allocation15 + $0x1530] sm:$0xff]  ;;  %v9736_v49 = vld [vmem:[#allocation15 + $0x1518] sm:$0xff]  ;;  %v13381_v20 = vcombine.low %v9727_v38, %v9731_v4 }
 0xc0c   : > { %11420 = vmatpush1.bf16.msra.mxu1 %v13317_v30  ;;  %v9716_v30 = vld [vmem:[#allocation15 + $0x1478] sm:$0xff] }
 0xc0d   : > { %11542 = vmatpush1.bf16.msra.mxu0 %v13319_v8  ;;  %11421 = vmatprep.subr.bf16.mxu1 %v13326_v35  ;;  %v13357_v8 = vcombine.low %v9703_v42, %v9707_v18  ;;  %v13359_v35 = vcombine.low %v9704_v34, %v9708_v29  ;;  %v13368_v41 = vcombine.high %v9712_v10, %v9716_v30  ;;  %v9740_v27 = vld [vmem:[#allocation15 + $0x1538] sm:$0xff]  ;;  %v9747_v42 = vld [vmem:[#allocation15 + $0x1570] sm:$0xff] }
 0xc0e   : > { %11543 = vmatprep.subr.bf16.mxu0 %v13328_v15  ;;  %v13366_v15 = vcombine.high %v9711_v13, %v9715_v33  ;;  %v9744_v18 = vld [vmem:[#allocation15 + $0x1558] sm:$0xff]  ;;  %v13391_v29 = vcombine.low %v9736_v49, %v9740_v27 }
 0xc0f   : > { %v9748_v34 = vld [vmem:[#allocation15 + $0x1578] sm:$0xff] }
 0xc10   : > { %11422 = vmatpush1.bf16.msra.mxu1 %v13325_v45  ;;  %v9724_v45 = vld [vmem:[#allocation15 + $0x14b8] sm:$0xff] }
 0xc11   : > { %11544 = vmatpush1.bf16.msra.mxu0 %v13327_v26  ;;  %11423 = vmatprep.subr.bf16.mxu1 %v13334_v16  ;;  %v13365_v26 = vcombine.low %v9711_v13, %v9715_v33  ;;  %v13367_v16 = vcombine.low %v9712_v10, %v9716_v30  ;;  %v13376_v56 = vcombine.high %v9720_v17, %v9724_v45  ;;  %v9756_v13 = vld [vmem:[#allocation15 + $0x15b8] sm:$0xff] }
 0xc12   : > { %11545 = vmatprep.subr.bf16.mxu0 %v13336_v53  ;;  %v13374_v53 = vcombine.high %v9719_v23, %v9723_v44  ;;  %v13399_v10 = vcombine.low %v9744_v18, %v9748_v34 }
 0xc14   : > { %11424 = vmatpush1.bf16.msra.mxu1 %v13333_v63  ;;  %v9732_v63 = vld [vmem:[#allocation15 + $0x14f8] sm:$0xff] }
 0xc15   : > { %11546 = vmatpush1.bf16.msra.mxu0 %v13335_v7  ;;  %11425 = vmatprep.subr.bf16.mxu1 %v13342_v43  ;;  %v13375_v7 = vcombine.low %v9720_v17, %v9724_v45  ;;  %v13382_v43 = vcombine.high %v9727_v38, %v9731_v4 }
 0xc16   : > { %11547 = vmatprep.subr.bf16.mxu0 %v13344_v59  ;;  %v9735_v59 = vld [vmem:[#allocation15 + $0x1510] sm:$0xff] }
 0xc18   : > { %11426 = vmatpush1.bf16.msra.mxu1 %v13341_v62  ;;  %v13383_v62 = vcombine.low %v9728_v19, %v9732_v63 }
 0xc19   : > { %11548 = vmatpush1.bf16.msra.mxu0 %v13343_v52  ;;  %11427 = vmatprep.subr.bf16.mxu1 %v13350_v39  ;;  %v13390_v52 = vcombine.high %v9735_v59, %v9739_v25  ;;  %v13392_v39 = vcombine.high %v9736_v49, %v9740_v27 }
 0xc1a   : > { %11549 = vmatprep.subr.bf16.mxu0 %v13352_v61  ;;  %v9743_v61 = vld [vmem:[#allocation15 + $0x1550] sm:$0xff] }
 0xc1b   : > { %v13397_v33 = vcombine.low %v9743_v61, %v9747_v42 }
 0xc1c   : > { %11428 = vmatpush1.bf16.msra.mxu1 %v13349_v60  ;;  %v13398_v60 = vcombine.high %v9743_v61, %v9747_v42  ;;  %v9784_v42 = vld [vmem:[#allocation15 + $0x1698] sm:$0xff] }
 0xc1d   : > { %11550 = vmatpush1.bf16.msra.mxu0 %v13351_v37  ;;  %11458 = vmatprep.subr.bf16.mxu1 %v13358_v1  ;;  %v9751_v37 = vld [vmem:[#allocation15 + $0x1590] sm:$0xff] }
 0xc1e   : > { %11580 = vmatprep.subr.bf16.mxu0 %v13360_v22  ;;  %v9755_v1 = vld [vmem:[#allocation15 + $0x15b0] sm:$0xff]  ;;  %v9752_v22 = vld [vmem:[#allocation15 + $0x1598] sm:$0xff] }
 0xc1f   : > { %11430 = vmatmul.mubr.bf16.vlgmr.msra.gmra.mrb[124].mxu1 %v16159_v21  ;;  %v13406_v30 = vcombine.high %v9751_v37, %v9755_v1 }
 0xc20   : > { %11552 = vmatmul.mubr.bf16.vlgmr.msra.gmra.mrb[104].mxu0 %v16159_v21  ;;  %11439 = vmatprep.mubr.bf16.mxu1 %v16166_v3  ;;  %v13373_v21 = vcombine.low %v9719_v23, %v9723_v44  ;;  %v9764_v23 = vld [vmem:[#allocation15 + $0x15f8] sm:$0xff]  ;;  %v13407_v44 = vcombine.low %v9752_v22, %v9756_v13 }
 0xc21   : > { %11459 = vmatpush1.bf16.msra.mxu1 %v13357_v8  ;;  %11561 = vmatprep.mubr.bf16.mxu0 %v16166_v3  ;;  %v13384_v3 = vcombine.high %v9728_v19, %v9732_v63  ;;  %v13408_v8 = vcombine.high %v9752_v22, %v9756_v13  ;;  %v9775_v63 = vld [vmem:[#allocation15 + $0x1650] sm:$0xff] }
 0xc22   : > { %11581 = vmatpush1.bf16.msra.mxu0 %v13359_v35  ;;  %11460 = vmatprep.subr.bf16.mxu1 %v13366_v15  ;;  %v9759_v35 = vld [vmem:[#allocation15 + $0x15d0] sm:$0xff] }
 0xc23   : > { %11582 = vmatprep.subr.bf16.mxu0 %v13368_v41  ;;  %v9763_v15 = vld [vmem:[#allocation15 + $0x15f0] sm:$0xff]  ;;  %v9760_v41 = vld [vmem:[#allocation15 + $0x15d8] sm:$0xff] }
 0xc24   : > { %v13414_v17 = vcombine.high %v9759_v35, %v9763_v15  ;;  %v13416_v45 = vcombine.high %v9760_v41, %v9764_v23  ;;  %v13415_v38 = vcombine.low %v9760_v41, %v9764_v23  ;;  %v9799_v23 = vld [vmem:[#allocation15 + $0x1710] sm:$0xff] }
 0xc25   : > { %11461 = vmatpush1.bf16.msra.mxu1 %v13365_v26  ;;  %v9771_v26 = vld [vmem:[#allocation15 + $0x1630] sm:$0xff] }
 0xc26   : > { %11583 = vmatpush1.bf16.msra.mxu0 %v13367_v16  ;;  %11462 = vmatprep.subr.bf16.mxu1 %v13374_v53  ;;  %v9768_v16 = vld [vmem:[#allocation15 + $0x1618] sm:$0xff] }
 0xc27   : > { %11440 = vmatmul.mubr.bf16.gmra.mrb[128].mxu1 %v16175_v6  ;;  %11584 = vmatprep.subr.bf16.mxu0 %v13376_v56  ;;  %v9772_v53 = vld [vmem:[#allocation15 + $0x1638] sm:$0xff]  ;;  %v13413_v56 = vcombine.low %v9759_v35, %v9763_v15 }
 0xc28   : > { %11562 = vmatmul.mubr.bf16.gmra.mrb[108].mxu0 %v16175_v6  ;;  %11449 = vmatprep.mubr.bf16.mxu1 %v16156_v9  ;;  %v13389_v6 = vcombine.low %v9735_v59, %v9739_v25  ;;  %v13424_v19 = vcombine.high %v9768_v16, %v9772_v53  ;;  %v13423_v59 = vcombine.low %v9768_v16, %v9772_v53  ;;  %v9807_v53 = vld [vmem:[#allocation15 + $0x1750] sm:$0xff] }
 0xc29   : > { %11463 = vmatpush1.bf16.msra.mxu1 %v13373_v21  ;;  %11571 = vmatprep.mubr.bf16.mxu0 %v16156_v9  ;;  %v13400_v9 = vcombine.high %v9744_v18, %v9748_v34  ;;  %v9779_v21 = vld [vmem:[#allocation15 + $0x1670] sm:$0xff]  ;;  %v9788_v18 = vld [vmem:[#allocation15 + $0x16b8] sm:$0xff] }
 0xc2a   : > { %11585 = vmatpush1.bf16.msra.mxu0 %v13375_v7  ;;  %11464 = vmatprep.subr.bf16.mxu1 %v13382_v43  ;;  %v9776_v7 = vld [vmem:[#allocation15 + $0x1658] sm:$0xff]  ;;  %v13430_v25 = vcombine.high %v9775_v63, %v9779_v21  ;;  %v13439_v15 = vcombine.low %v9784_v42, %v9788_v18 }
 0xc2b   : > { %11586 = vmatprep.subr.bf16.mxu0 %v13384_v3  ;;  %v9780_v43 = vld [vmem:[#allocation15 + $0x1678] sm:$0xff] }
 0xc2c   : > { %v13432_v27 = vcombine.high %v9776_v7, %v9780_v43 }
 0xc2d   : > { %11465 = vmatpush1.bf16.msra.mxu1 %v13381_v20  ;;  %v9783_v20 = vld [vmem:[#allocation15 + $0x1690] sm:$0xff] }
 0xc2e   : > { %11587 = vmatpush1.bf16.msra.mxu0 %v13383_v62  ;;  %11466 = vmatprep.subr.bf16.mxu1 %v13390_v52  ;;  %v9787_v62 = vld [vmem:[#allocation15 + $0x16b0] sm:$0xff] }
 0xc2f   : > { %11450 = vmatmul.mubr.bf16.gmra.mrb[164].mxu1 %v16171_v50  ;;  %11588 = vmatprep.subr.bf16.mxu0 %v13392_v39  ;;  %v13438_v13 = vcombine.high %v9783_v20, %v9787_v62  ;;  %v13437_v35 = vcombine.low %v9783_v20, %v9787_v62 }
 0xc30   : > { %11572 = vmatmul.mubr.bf16.gmra.mrb[144].mxu0 %v16171_v50  ;;  %11490 = vmatprep.mubr.bf16.mxu1 %v16186_v58  ;;  %v13405_v50 = vcombine.low %v9751_v37, %v9755_v1 }
 0xc31   : > { %11467 = vmatpush1.bf16.msra.mxu1 %v13389_v6  ;;  %11612 = vmatprep.mubr.bf16.mxu0 %v16186_v58  ;;  %v9767_v58 = vld [vmem:[#allocation15 + $0x1610] sm:$0xff] }
 0xc32   : > { %11589 = vmatpush1.bf16.msra.mxu0 %v13391_v29  ;;  %11468 = vmatprep.subr.bf16.mxu1 %v13398_v60  ;;  %v13422_v4 = vcombine.high %v9767_v58, %v9771_v26  ;;  %v13421_v3 = vcombine.low %v9767_v58, %v9771_v26  ;;  %v13429_v60 = vcombine.low %v9775_v63, %v9779_v21 }
 0xc33   : > { %11590 = vmatprep.subr.bf16.mxu0 %v13400_v9 }
 0xc35   : > { %11469 = vmatpush1.bf16.msra.mxu1 %v13397_v33 }
 0xc36   : > { %11591 = vmatpush1.bf16.msra.mxu0 %v13399_v10  ;;  %11470 = vmatprep.subr.bf16.mxu1 %v13406_v30  ;;  %v13440_v10 = vcombine.high %v9784_v42, %v9788_v18  ;;  %v9795_v30 = vld [vmem:[#allocation15 + $0x16f0] sm:$0xff]  ;;  %v9824_v42 = vld [vmem:[#allocation15 + $0x17d8] sm:$0xff] }
 0xc37   : > { %11592 = vmatprep.subr.bf16.mxu0 %v13408_v8  ;;  %v9792_v8 = vld [vmem:[#allocation15 + $0x16d8] sm:$0xff] }
 0xc38   : > { %v9828_v18 = vld [vmem:[#allocation15 + $0x17f8] sm:$0xff] }
 0xc39   : > { %11471 = vmatpush1.bf16.msra.mxu1 %v13405_v50  ;;  %v9803_v50 = vld [vmem:[#allocation15 + $0x1730] sm:$0xff] }
 0xc3a   : > { %11593 = vmatpush1.bf16.msra.mxu0 %v13407_v44  ;;  %11472 = vmatprep.subr.bf16.mxu1 %v13414_v17  ;;  %v9800_v44 = vld [vmem:[#allocation15 + $0x1718] sm:$0xff]  ;;  %v13454_v26 = vcombine.high %v9799_v23, %v9803_v50 }
 0xc3b   : > { %11594 = vmatprep.subr.bf16.mxu0 %v13416_v45  ;;  %v9804_v17 = vld [vmem:[#allocation15 + $0x1738] sm:$0xff] }
 0xc3c   : > { %v13456_v16 = vcombine.high %v9800_v44, %v9804_v17  ;;  %v13455_v63 = vcombine.low %v9800_v44, %v9804_v17 }
 0xc3d   : > { %11473 = vmatpush1.bf16.msra.mxu1 %v13413_v56  ;;  %v9811_v56 = vld [vmem:[#allocation15 + $0x1770] sm:$0xff] }
 0xc3e   : > { %11595 = vmatpush1.bf16.msra.mxu0 %v13415_v38  ;;  %11474 = vmatprep.subr.bf16.mxu1 %v13422_v4  ;;  %v9808_v38 = vld [vmem:[#allocation15 + $0x1758] sm:$0xff]  ;;  %v13462_v21 = vcombine.high %v9807_v53, %v9811_v56 }
 0xc3f   : > { %11596 = vmatprep.subr.bf16.mxu0 %v13424_v19  ;;  %v9427_v49 = vpop.f32.mrb[152].mxu1  ;;  %v9812_v4 = vld [vmem:[#allocation15 + $0x1778] sm:$0xff]  ;;  %v13453_v19 = vcombine.low %v9799_v23, %v9803_v50 }
 0xc40   : > { %v16258_v52 = vadd.f32 %v9427_v49, %v16234_v31  ;;  %v9549_v39 = vpop.f32.mrb[132].mxu0  ;;  %v9429_v61 = vpop.f32.mrb[153].mxu1  ;;  %v13431_v31 = vcombine.low %v9776_v7, %v9780_v43  ;;  %v13464_v7 = vcombine.high %v9808_v38, %v9812_v4  ;;  %v9815_v43 = vld [vmem:[#allocation15 + $0x1790] sm:$0xff]  ;;  %v13461_v49 = vcombine.low %v9807_v53, %v9811_v56 }
 0xc41   : > { %11475 = vmatpush1.bf16.msra.mxu1 %v13421_v3  ;;  %v16261_v34 = vadd.f32 %v9549_v39, %v16237_v2  ;;  %v16264_v6 = vadd.f32 %v9429_v61, %v16240_v28  ;;  %v9551_v29 = vpop.f32.mrb[133].mxu0  ;;  %v9431_v9 = vpop.f32.mrb[154].mxu1  ;;  %v9791_v2 = vld [vmem:[#allocation15 + $0x16d0] sm:$0xff]  ;;  %v9796_v28 = vld [vmem:[#allocation15 + $0x16f8] sm:$0xff] }
 0xc42   : > { %11597 = vmatpush1.bf16.msra.mxu0 %v13423_v59  ;;  %v16267_v37 = vadd.f32 %v9551_v29, %v16243_v48  ;;  %11476 = vmatprep.subr.bf16.mxu1 %v13430_v25  ;;  %v9553_v1 = vpop.f32.mrb[134].mxu0  ;;  %v9432_v22 = vpop.f32.mrb[155].mxu1  ;;  %v13446_v41 = vcombine.high %v9791_v2, %v9795_v30  ;;  %v13448_v48 = vcombine.high %v9792_v8, %v9796_v28  ;;  %v9819_v3 = vld [vmem:[#allocation15 + $0x17b0] sm:$0xff]  ;;  %v9816_v59 = vld [vmem:[#allocation15 + $0x1798] sm:$0xff] }
 0xc43   : > { %11598 = vmatprep.subr.bf16.mxu0 %v13432_v27  ;;  %v9554_v33 = vpop.f32.mrb[135].mxu0  ;;  %v13445_v45 = vcombine.low %v9791_v2, %v9795_v30  ;;  %v13447_v58 = vcombine.low %v9792_v8, %v9796_v28  ;;  %v9820_v25 = vld [vmem:[#allocation15 + $0x17b8] sm:$0xff]  ;;  %v13463_v27 = vcombine.low %v9808_v38, %v9812_v4  ;;  %v13470_v20 = vcombine.high %v9815_v43, %v9819_v3  ;;  %v9823_v39 = vld [vmem:[#allocation15 + $0x17d0] sm:$0xff] }
 0xc44   : > { %v13472_v62 = vcombine.high %v9816_v59, %v9820_v25  ;;  %v9827_v61 = vld [vmem:[#allocation15 + $0x17f0] sm:$0xff]  ;;  %v13469_v29 = vcombine.low %v9815_v43, %v9819_v3  ;;  %v13479_v22 = vcombine.low %v9824_v42, %v9828_v18 }
 0xc45   : > { %11477 = vmatpush1.bf16.msra.mxu1 %v13429_v60  ;;  %v13471_v60 = vcombine.low %v9816_v59, %v9820_v25  ;;  %v13478_v9 = vcombine.high %v9823_v39, %v9827_v61  ;;  %v13477_v1 = vcombine.low %v9823_v39, %v9827_v61 }
 0xc46   : > { %11599 = vmatpush1.bf16.msra.mxu0 %v13431_v31  ;;  %11478 = vmatprep.subr.bf16.mxu1 %v13438_v13  ;;  %v13480_v31 = vcombine.high %v9824_v42, %v9828_v18 }
 0xc47   : > { %11600 = vmatprep.subr.bf16.mxu0 %v13440_v10 }
 0xc49   : > { %11479 = vmatpush1.bf16.msra.mxu1 %v13437_v35 }
 0xc4a   : > { %11601 = vmatpush1.bf16.msra.mxu0 %v13439_v15  ;;  %11480 = vmatprep.subr.bf16.mxu1 %v13446_v41 }
 0xc4b   : > { %11602 = vmatprep.subr.bf16.mxu0 %v13448_v48 }
 0xc4d   : > { %11481 = vmatpush1.bf16.msra.mxu1 %v13445_v45 }
 0xc4e   : > { %11603 = vmatpush1.bf16.msra.mxu0 %v13447_v58  ;;  %11482 = vmatprep.subr.bf16.mxu1 %v13454_v26 }
 0xc4f   : > { %11604 = vmatprep.subr.bf16.mxu0 %v13456_v16 }
 0xc51   : > { %11483 = vmatpush1.bf16.msra.mxu1 %v13453_v19 }
 0xc52   : > { %11605 = vmatpush1.bf16.msra.mxu0 %v13455_v63  ;;  %11484 = vmatprep.subr.bf16.mxu1 %v13462_v21 }
 0xc53   : > { %11606 = vmatprep.subr.bf16.mxu0 %v13464_v7 }
 0xc55   : > { %11485 = vmatpush1.bf16.msra.mxu1 %v13461_v49 }
 0xc56   : > { %11607 = vmatpush1.bf16.msra.mxu0 %v13463_v27  ;;  %11486 = vmatprep.subr.bf16.mxu1 %v13470_v20 }
 0xc57   : > { %11608 = vmatprep.subr.bf16.mxu0 %v13472_v62 }
 0xc59   : > { %11487 = vmatpush1.bf16.msra.mxu1 %v13469_v29 }
 0xc5a   : > { %11609 = vmatpush1.bf16.msra.mxu0 %v13471_v60  ;;  %11488 = vmatprep.subr.bf16.mxu1 %v13478_v9  ;;  %v11681_v9 = vld [vmem:[#allocation16] sm:$0xff] }
 0xc5b   : > { %11610 = vmatprep.subr.bf16.mxu0 %v13480_v31  ;;  %v16312_v31 = vrot.slane %v11681_v9, %v15642_v5 }
 0xc5d   : > { %11489 = vmatpush1.bf16.msra.mxu1 %v13477_v1  ;;  %v16318_v1 = vrot.slane %v11681_v9, %v15645_v55 }
 0xc5e   : > { %11611 = vmatpush1.bf16.msra.mxu0 %v13479_v22  ;;  %v11701_v22 = vsub.s32 4, %v15415_v11 }
 0xc60   : > { %11491 = vmatmul.mubr.bf16.vlgmr.msra.gmra.mrb[124].mxu1 %v16207_v57 }
 0xc61   : > { %11613 = vmatmul.mubr.bf16.vlgmr.msra.gmra.mrb[104].mxu0 %v16207_v57  ;;  %11500 = vmatprep.mubr.bf16.mxu1 %v16214_v51 }
 0xc62   : > { %11622 = vmatprep.mubr.bf16.mxu0 %v16214_v51 }
 0xc68   : > { %11501 = vmatmul.mubr.bf16.gmra.mrb[128].mxu1 %v16223_v47 }
 0xc69   : > { %11623 = vmatmul.mubr.bf16.gmra.mrb[108].mxu0 %v16223_v47  ;;  %11510 = vmatprep.mubr.bf16.mxu1 %v16204_v36 }
 0xc6a   : > { %11632 = vmatprep.mubr.bf16.mxu0 %v16204_v36 }
 0xc70   : > { %11511 = vmatmul.mubr.bf16.gmra.mrb[168].mxu1 %v16219_v40 }
 0xc71   : > { %11633 = vmatmul.mubr.bf16.gmra.mrb[148].mxu0 %v16219_v40  ;;  %11889 = vmatprep.mubr.bf16.mxu1 %v14946_v0 }
 0xc80   : > { %v11207_v13 = vpop.f32.mrb[156].mxu1 }
 0xc81   : > { %v11329_v57 = vpop.f32.mrb[136].mxu0  ;;  %v11209_v33 = vpop.f32.mrb[157].mxu1 }
 0xc82   : > { %v11331_v10 = vpop.f32.mrb[137].mxu0  ;;  %v11211_v2 = vpop.f32.mrb[158].mxu1 }
 0xc83   : > { %v11333_v51 = vpop.f32.mrb[138].mxu0  ;;  %v11212_v30 = vpop.f32.mrb[159].mxu1  ;;  %v11713_v2 = vsub.s32 7, %v15415_v11 }
 0xc84   : > { %v11334_v8 = vpop.f32.mrb[139].mxu0 }
 0xcb1   : > { %v11248_v28 = vpop.f32.mrb[108].mxu1 }
 0xcb2   : > { %v11370_v47 = vpop.f32.mrb[88].mxu0  ;;  %v11250_v35 = vpop.f32.mrb[109].mxu1 }
 0xcb3   : > { %v11372_v15 = vpop.f32.mrb[89].mxu0  ;;  %v11252_v41 = vpop.f32.mrb[110].mxu1 }
 0xcb4   : > { %v11374_v36 = vpop.f32.mrb[90].mxu0  ;;  %v11254_v48 = vpop.f32.mrb[111].mxu1  ;;  %v11726_v5 = vadd.f32 %v16318_v1, %v11372_v15 }
 0xcb5   : > { %v11376_v23 = vpop.f32.mrb[91].mxu0  ;;  %v11733_v55 = vadd.f32 %v16312_v31, %v11374_v36 }
 0xcb6   : > { %v11734_v30 = vadd.f32 %v16318_v1, %v11376_v23 }
 0xcb9   : > { %v11258_v50 = vpop.f32.mrb[112].mxu1 }
 0xcba   : > { %v11380_v40 = vpop.f32.mrb[92].mxu0  ;;  %v11260_v44 = vpop.f32.mrb[113].mxu1 }
 0xcbb   : > { %v11382_v17 = vpop.f32.mrb[93].mxu0  ;;  %v16280_v45 = vpop.f32.mrb[114].mxu1 }
 0xcbc   : > { %v16282_v58 = vpop.f32.mrb[94].mxu0  ;;  %v16284_v26 = vpop.f32.mrb[115].mxu1 }
 0xcbd   : > { %v16286_v16 = vpop.f32.mrb[95].mxu0 }
 0xcc1   : > { %v11268_v53 = vpop.f32.mrb[160].mxu1 }
 0xcc2   : > { %v11269_v56 = vadd.f32 %v11268_v53, %v11207_v13  ;;  %v11390_v38 = vpop.f32.mrb[140].mxu0  ;;  %v11270_v4 = vpop.f32.mrb[161].mxu1  ;;  %v11709_v13 = vsub.s32 6, %v15415_v11 }
 0xcc3   : > { %v11391_v19 = vadd.f32 %v11390_v38, %v11329_v57  ;;  %v11271_v63 = vadd.f32 %v11270_v4, %v11209_v33  ;;  %v11392_v21 = vpop.f32.mrb[141].mxu0  ;;  %v11272_v7 = vpop.f32.mrb[162].mxu1  ;;  %v11725_v33 = vadd.f32 %v16312_v31, %v11370_v47 }
 0xcc4   : > { %v16289_v43 = vadd.f32 %v11269_v56, %v16192_v46  ;;  %v11393_v3 = vadd.f32 %v11392_v21, %v11331_v10  ;;  %v11394_v59 = vpop.f32.mrb[142].mxu0  ;;  %v11273_v25 = vpop.f32.mrb[163].mxu1  ;;  %v11705_v10 = vsub.s32 5, %v15415_v11  ;;  %v16343_v15 = vrot.slane %v11681_v9, %v11709_v13 }
 0xcc5   : > { %v16292_v49 = vadd.f32 %v11391_v19, %v16195_v24  ;;  %v16295_v27 = vadd.f32 %v11271_v63, %v16198_v32  ;;  %v11395_v20 = vpop.f32.mrb[143].mxu0  ;;  %v16309_v32 = vrot.slane %v11681_v9, %v15418_v12  ;;  %v16350_v56 = vrot.slane %v11681_v9, %v11713_v2 }
 0xcc6   : > { %v16298_v62 = vadd.f32 %v11393_v3, %v16201_v54  ;;  %v16315_v54 = vrot.slane %v11681_v9, %v15421_v14  ;;  %v16345_v53 = vrot.slane %v11681_v9, %v11705_v10  ;;  %v16362_v25 = vadd.f32 %v16312_v31, %v16282_v58 }
 0xcc7   : > { %v11723_v57 = vadd.f32 %v16309_v32, %v11248_v28  ;;  %v11731_v14 = vadd.f32 %v16309_v32, %v11252_v41  ;;  %v16333_v8 = vadd.f32 %v16309_v32, %v11258_v50  ;;  %v16336_v28 = vadd.f32 %v16312_v31, %v11380_v40 }
 0xcc8   : > { %v11724_v12 = vadd.f32 %v16315_v54, %v11250_v35  ;;  %v11732_v51 = vadd.f32 %v16315_v54, %v11254_v48  ;;  %v16339_v47 = vadd.f32 %v16315_v54, %v11260_v44  ;;  %v16341_v35 = vrot.slane %v11681_v9, %v11701_v22 }
 0xcc9   : > { %v11763_v11 = vmax.f32 %v11723_v57, 0.0  ;;  %v11765_v41 = vmax.f32 %v11725_v33, 0.0  ;;  %v11766_v48 = vmax.f32 %v11726_v5, 0.0  ;;  %v11771_v23 = vmax.f32 %v11731_v14, 0.0 }
 0xcca   : > { %v11764_v36 = vmax.f32 %v11724_v12, 0.0  ;;  %v16348_v50 = vadd.f32 %v16318_v1, %v11382_v17  ;;  %v11773_v40 = vmax.f32 %v11733_v55, 0.0  ;;  %v11772_v38 = vmax.f32 %v11732_v51, 0.0 }
 0xccb   : > { %v11774_v44 = vmax.f32 %v11734_v30, 0.0  ;;  %v11779_v4 = vmax.f32 %v16333_v8, 0.0  ;;  %v11781_v63 = vmax.f32 %v16336_v28, 0.0  ;;  %v11780_v21 = vmax.f32 %v16339_v47, 0.0 }
 0xccc   : > { %v16357_v7 = vadd.f32 %v16309_v32, %v16280_v45  ;;  %v16366_v20 = vadd.f32 %v16315_v54, %v16284_v26  ;;  %v11782_v45 = vmax.f32 %v16348_v50, 0.0 }
 0xd02   : > { %v16300_v39 = vpop.f32.mrb[164].mxu1 }
 0xd03   : > { %v16302_v61 = vpop.f32.mrb[144].mxu0  ;;  %v16304_v42 = vpop.f32.mrb[165].mxu1 }
 0xd04   : > { %v16306_v46 = vpop.f32.mrb[145].mxu0  ;;  %v11455_v18 = vpop.f32.mrb[166].mxu1 }
 0xd05   : > { %v11577_v29 = vpop.f32.mrb[146].mxu0  ;;  %v11456_v60 = vpop.f32.mrb[167].mxu1 }
 0xd06   : > { %v11578_v24 = vpop.f32.mrb[147].mxu0 }
 0xd33   : > { %v11492_v19 = vpop.f32.mrb[124].mxu1 }
 0xd34   : > { %v11727_v3 = vadd.f32 %v16341_v35, %v11492_v19  ;;  %v11614_v17 = vpop.f32.mrb[104].mxu0  ;;  %v11494_v59 = vpop.f32.mrb[125].mxu1 }
 0xd35   : > { %v11729_v18 = vadd.f32 %v16343_v15, %v11614_v17  ;;  %v11728_v29 = vadd.f32 %v16345_v53, %v11494_v59  ;;  %v11616_v60 = vpop.f32.mrb[105].mxu0  ;;  %v11496_v24 = vpop.f32.mrb[126].mxu1  ;;  %v11787_v17 = vmax.f32 %v16357_v7, 0.0 }
 0xd36   : > { %v11767_v9 = vmax.f32 %v11727_v3, 0.0  ;;  %v11730_v22 = vadd.f32 %v16350_v56, %v11616_v60  ;;  %v11735_v13 = vadd.f32 %v16341_v35, %v11496_v24  ;;  %v11618_v57 = vpop.f32.mrb[106].mxu0  ;;  %v11498_v58 = vpop.f32.mrb[127].mxu1  ;;  %v11750_v24 = vadd.f32 %v16318_v1, %v16286_v16 }
 0xd37   : > { %v11769_v33 = vmax.f32 %v11729_v18, 0.0  ;;  %v11768_v12 = vmax.f32 %v11728_v29, 0.0  ;;  %v11737_v26 = vadd.f32 %v16343_v15, %v11618_v57  ;;  %v11736_v10 = vadd.f32 %v16345_v53, %v11498_v58  ;;  %v11620_v5 = vpop.f32.mrb[107].mxu0 }
 0xd38   : > { %v11803_v14 = vmax.f32 %v11763_v11, %v11767_v9  ;;  %v11770_v2 = vmax.f32 %v11730_v22, 0.0  ;;  %v11775_v55 = vmax.f32 %v11735_v13, 0.0  ;;  %v11738_v51 = vadd.f32 %v16350_v56, %v11620_v5 }
 0xd39   : > { %v11805_v30 = vmax.f32 %v11765_v41, %v11769_v33  ;;  %v11804_v50 = vmax.f32 %v11764_v36, %v11768_v12  ;;  %v11777_v19 = vmax.f32 %v11737_v26, 0.0  ;;  %v11776_v3 = vmax.f32 %v11736_v10, 0.0 }
 0xd3a   : > { %v11806_v59 = vmax.f32 %v11766_v48, %v11770_v2  ;;  %v11807_v60 = vmax.f32 %v11771_v23, %v11775_v55  ;;  %v11778_v18 = vmax.f32 %v11738_v51, 0.0  ;;  %v11789_v29 = vmax.f32 %v16362_v25, 0.0 }
 0xd3b   : > { %v11809_v57 = vmax.f32 %v11773_v40, %v11777_v19  ;;  %v11808_v11 = vmax.f32 %v11772_v38, %v11776_v3  ;;  %v11502_v9 = vpop.f32.mrb[128].mxu1  ;;  %v11788_v22 = vmax.f32 %v16366_v20, 0.0 }
 0xd3c   : > { %v16381_v13 = vpack.c.bf16 %v11807_v60, %v11803_v14  ;;  %v11810_v41 = vmax.f32 %v11774_v44, %v11778_v18  ;;  %v11743_v36 = vadd.f32 %v16341_v35, %v11502_v9  ;;  %v11624_v58 = vpop.f32.mrb[108].mxu0  ;;  %v11504_v7 = vpop.f32.mrb[129].mxu1 }
 0xd3d   : > { %v16384_v48 = vpack.c.bf16 %v11809_v57, %v11805_v30  ;;  %v11745_v23 = vadd.f32 %v16343_v15, %v11624_v58  ;;  %v11744_v25 = vadd.f32 %v16345_v53, %v11504_v7  ;;  %v11626_v33 = vpop.f32.mrb[109].mxu0  ;;  %v11506_v16 = vpop.f32.mrb[130].mxu1  ;;  %v16388_v40 = vpack.c.bf16 %v11808_v11, %v11804_v50 }
 0xd3e   : > { %v11783_v38 = vmax.f32 %v11743_v36, 0.0  ;;  %v11746_v20 = vadd.f32 %v16350_v56, %v11626_v33  ;;  %v11751_v12 = vadd.f32 %v16341_v35, %v11506_v16  ;;  %v11628_v44 = vpop.f32.mrb[110].mxu0  ;;  %v11508_v26 = vpop.f32.mrb[131].mxu1  ;;  %v16392_v10 = vpack.c.bf16 %v11810_v41, %v11806_v59 }
 0xd3f   : > { %v11785_v5 = vmax.f32 %v11745_v23, 0.0  ;;  %v11784_v14 = vmax.f32 %v11744_v25, 0.0  ;;  %v11753_v2 = vadd.f32 %v16343_v15, %v11628_v44  ;;  %v11752_v55 = vadd.f32 %v16345_v53, %v11508_v26  ;;  %v11630_v51 = vpop.f32.mrb[111].mxu0  ;;  %11857 = vmatprep.subr.bf16.mxu1 %v16388_v40 }
 0xd40   : > { %v11811_v30 = vmax.f32 %v11779_v4, %v11783_v38  ;;  %v11786_v50 = vmax.f32 %v11746_v20, 0.0  ;;  %v11791_v19 = vmax.f32 %v11751_v12, 0.0  ;;  %v11754_v3 = vadd.f32 %v16350_v56, %v11630_v51  ;;  %11858 = vmatpush1.bf16.msra.mxu1 %v16381_v13 }
 0xd41   : > { %v11813_v59 = vmax.f32 %v11781_v63, %v11785_v5  ;;  %v11812_v60 = vmax.f32 %v11780_v21, %v11784_v14  ;;  %v11793_v18 = vmax.f32 %v11753_v2, 0.0  ;;  %v11792_v57 = vmax.f32 %v11752_v55, 0.0 }
 0xd42   : > { %v11790_v11 = vmax.f32 %v11750_v24, 0.0  ;;  %v11814_v9 = vmax.f32 %v11782_v45, %v11786_v50  ;;  %v11815_v41 = vmax.f32 %v11787_v17, %v11791_v19  ;;  %v11794_v36 = vmax.f32 %v11754_v3, 0.0  ;;  %v14545_v3 = vld [vmem:[#allocation22 + $0x8] sm:$0xff]  }
 0xd43   : > { %v11817_v8 = vmax.f32 %v11789_v29, %v11793_v18  ;;  %v11816_v4 = vmax.f32 %v11788_v22, %v11792_v57  ;;  %v11512_v58 = vpop.f32.mrb[168].mxu1  ;;  %v11755_v29 = vadd.f32 %v16309_v32, %v16289_v43  ;;  %v11757_v12 = vadd.f32 %v16312_v31, %v16292_v49 }
 0xd44   : > { %v16405_v7 = vpack.c.bf16 %v11815_v41, %v11811_v30  ;;  %v11818_v23 = vmax.f32 %v11790_v11, %v11794_v36  ;;  %v11513_v25 = vadd.f32 %v11512_v58, %v16300_v39  ;;  %v11634_v33 = vpop.f32.mrb[148].mxu0  ;;  %v11514_v28 = vpop.f32.mrb[169].mxu1 }
 0xd45   : > { %v16408_v63 = vpack.c.bf16 %v11817_v8, %v11813_v59  ;;  %v11635_v47 = vadd.f32 %v11634_v33, %v16302_v61  ;;  %v11515_v21 = vadd.f32 %v11514_v28, %v16304_v42  ;;  %v11636_v24 = vpop.f32.mrb[149].mxu0  ;;  %v11516_v45 = vpop.f32.mrb[170].mxu1  ;;  %v11828_v17 = vpack.c.bf16 %v11816_v4, %v11812_v60 }
 0xd46   : > { %v11677_v22 = vadd.f32 %v11513_v25, %v16258_v52  ;;  %v11637_v16 = vadd.f32 %v11636_v24, %v16306_v46  ;;  %v11638_v38 = vpop.f32.mrb[150].mxu0  ;;  %v11517_v39 = vpop.f32.mrb[171].mxu1  ;;  %v11830_v20 = vpack.c.bf16 %v11818_v23, %v11814_v9  ;;  %v11756_v61 = vadd.f32 %v16315_v54, %v16295_v27 }
 0xd47   : > { %v11679_v42 = vadd.f32 %v11635_v47, %v16261_v34  ;;  %v11678_v44 = vadd.f32 %v11515_v21, %v16264_v6  ;;  %v11639_v26 = vpop.f32.mrb[151].mxu0  ;;  %11859 = vmatprep.subr.bf16.mxu1 %v11828_v17  ;;  %v11758_v52 = vadd.f32 %v16318_v1, %v16298_v62  ;;  %v11795_v27 = vmax.f32 %v11755_v29, 0.0 }
 0xd48   : > { %v11759_v43 = vadd.f32 %v16341_v35, %v11677_v22  ;;  %v11680_v46 = vadd.f32 %v11637_v16, %v16267_v37  ;;  %11860 = vmatpush1.bf16.msra.mxu1 %v16405_v7  ;;  %v11797_v6 = vmax.f32 %v11757_v12, 0.0  ;;  %v11796_v54 = vmax.f32 %v11756_v61, 0.0 }
 0xd49   : > { %v11761_v49 = vadd.f32 %v16343_v15, %v11679_v42  ;;  %v11760_v32 = vadd.f32 %v16345_v53, %v11678_v44  ;;  %v11798_v2 = vmax.f32 %v11758_v52, 0.0  ;;  %v14544_v53 = vld [vmem:[#allocation22] sm:$0xff]  }
 0xd4a   : > { %v11799_v31 = vmax.f32 %v11759_v43, 0.0  ;;  %v11762_v34 = vadd.f32 %v16350_v56, %v11680_v46 }
 0xd4b   : > { %v11801_v5 = vmax.f32 %v11761_v49, 0.0  ;;  %v11800_v14 = vmax.f32 %v11760_v32, 0.0 }
 0xd4c   : > { %v11802_v62 = vmax.f32 %v11762_v34, 0.0  ;;  %v11819_v1 = vmax.f32 %v11795_v27, %v11799_v31 }
 0xd4d   : > { %v11820_v35 = vmax.f32 %v11796_v54, %v11800_v14  ;;  %v11821_v55 = vmax.f32 %v11797_v6, %v11801_v5 }
 0xd4e   : > { %v11822_v37 = vmax.f32 %v11798_v2, %v11802_v62  ;;  %v11831_v51 = vpack.c.bf16 %v11819_v1, %v11819_v1 }
 0xd4f   : > { %v11832_v30 = vpack.c.bf16 %v11820_v35, %v11820_v35  ;;  %v11833_v50 = vpack.c.bf16 %v11821_v55, %v11821_v55 }
 0xd50   : > { %v11846_v15 = vsel %vm1174_vm1, %v11831_v51, 0  ;;  %v11834_v56 = vpack.c.bf16 %v11822_v37, %v11822_v37 }
 0xd51   : > { %13482 = vmatprep.subr.msk.bf16.mxu1 %vm1174_vm1, %v11832_v30  ;;  %v11852_v19 = vsel %vm1174_vm1, %v11833_v50, 0 }
 0xd52   : > { %11862 = vmatpush1.bf16.msra.mxu1 %v11846_v15 }
 0xd53   : > { %11900 = vmatprep.subr.bf16.mxu1 %v16392_v10 }
 0xd55   : > { %13483 = vmatmul.mubr.msk.bf16.vlgmr.msra.gmra.mrb[172].mxu1 %vm5191_vm5, %v14544_v53 }
 0xd56   : > { %11901 = vmatpush1.bf16.msra.mxu1 %v16384_v48  ;;  %11932 = vmatprep.mubr.bf16.mxu1 %v14946_v0 }
 0xd57   : > { %11902 = vmatprep.subr.bf16.mxu1 %v11830_v20 }
 0xd5a   : > { %11903 = vmatpush1.bf16.msra.mxu1 %v16408_v63 }
 0xd5b   : > { %13484 = vmatprep.subr.msk.bf16.mxu1 %vm1174_vm1, %v11834_v56 }
 0xd5e   : > { %11905 = vmatpush1.bf16.msra.mxu1 %v11852_v19 }
 0xd5f   : > { %11954 = vmatprep.subr.bf16.mxu1 %v16388_v40 }
 0xd61   : > { %13485 = vmatmul.mubr.msk.bf16.vlgmr.msra.gmra.mrb[176].mxu1 %vm5191_vm5, %v14544_v53 }
 0xd62   : > { %11955 = vmatpush1.bf16.msra.mxu1 %v16381_v13  ;;  %11986 = vmatprep.mubr.bf16.mxu1 %v14946_v0 }
 0xd63   : > { %11956 = vmatprep.subr.bf16.mxu1 %v11828_v17 }
 0xd66   : > { %11957 = vmatpush1.bf16.msra.mxu1 %v16405_v7 }
 0xd67   : > { %13487 = vmatprep.subr.msk.bf16.mxu1 %vm1174_vm1, %v11832_v30 }
 0xd6a   : > { %11959 = vmatpush1.bf16.msra.mxu1 %v11846_v15 }
 0xd6b   : > { %11997 = vmatprep.subr.bf16.mxu1 %v16392_v10 }
 0xd6d   : > { %13488 = vmatmul.mubr.msk.bf16.vlgmr.msra.gmra.mrb[180].mxu1 %vm5191_vm5, %v14545_v3 }
 0xd6e   : > { %11998 = vmatpush1.bf16.msra.mxu1 %v16384_v48  ;;  %12029 = vmatprep.mubr.bf16.mxu1 %v14946_v0 }
 0xd6f   : > { %11999 = vmatprep.subr.bf16.mxu1 %v11830_v20 }
 0xd72   : > { %12000 = vmatpush1.bf16.msra.mxu1 %v16408_v63 }
 0xd73   : > { %13489 = vmatprep.subr.msk.bf16.mxu1 %vm1174_vm1, %v11834_v56 }
 0xd76   : > { %12002 = vmatpush1.bf16.msra.mxu1 %v11852_v19 }
 0xd79   : > { %13490 = vmatmul.mubr.msk.bf16.vlgmr.msra.gmra.mrb[184].mxu1 %vm5191_vm5, %v14545_v3 }
 0xe28   : > { %v11891_v13 = vpop.f32.mrb[172].mxu1 }
 0xe29   : > { %v11893_v40 = vpop.f32.mrb[173].mxu1 }
 0xe2a   : > { %v11895_v59 = vpop.f32.mrb[174].mxu1 }
 0xe2b   : > { %v11897_v60 = vpop.f32.mrb[175].mxu1 }
 0xe34   : > { %v11934_v10 = vpop.f32.mrb[176].mxu1 }
 0xe35   : > { %v11936_v18 = vpop.f32.mrb[177].mxu1 }
 0xe36   : > { %v11938_v57 = vpop.f32.mrb[178].mxu1 }
 0xe37   : > { %v11940_v11 = vpop.f32.mrb[179].mxu1 }
 0xe40   : > { %v11988_v0 = vpop.f32.mrb[180].mxu1 }
 0xe41   : > { %v12040_v48 = vmax.f32 %v11891_v13, %v11988_v0  ;;  %v11990_v9 = vpop.f32.mrb[181].mxu1 }
 0xe42   : > { %v12041_v41 = vmax.f32 %v11893_v40, %v11990_v9  ;;  %v11992_v36 = vpop.f32.mrb[182].mxu1 }
 0xe43   : > { %12048 = vst [vmem:[%s607_s21] sm:$0xff] %v12040_v48  ;;  %v12044_v8 = vmax.f32 %v11895_v59, %v11992_v36  ;;  %v11994_v4 = vpop.f32.mrb[183].mxu1 }
 0xe44   : > { %12049 = vst [vmem:[%s607_s21 + $0x8] sm:$0xff] %v12041_v41  ;;  %v12045_v58 = vmax.f32 %v11897_v60, %v11994_v4 }
 0xe45   : > { %12052 = vst [vmem:[%s607_s21 + $0x20] sm:$0xff] %v12044_v8 }
 0xe46   : > { %12053 = vst [vmem:[%s607_s21 + $0x28] sm:$0xff] %v12045_v58 }
 0xe4c   : > { %v12031_v7 = vpop.f32.mrb[184].mxu1 }
 0xe4d   : > { %v12042_v23 = vmax.f32 %v11934_v10, %v12031_v7  ;;  %v12033_v25 = vpop.f32.mrb[185].mxu1 }
 0xe4e   : > { %v12043_v33 = vmax.f32 %v11936_v18, %v12033_v25  ;;  %v12035_v28 = vpop.f32.mrb[186].mxu1 }
 0xe4f   : > { %12050 = vst [vmem:[%s607_s21 + $0x10] sm:$0xff] %v12042_v23  ;;  %v12046_v63 = vmax.f32 %v11938_v57, %v12035_v28  ;;  %v12037_v47 = vpop.f32.mrb[187].mxu1 }
 0xe50   : > { %12051 = vst [vmem:[%s607_s21 + $0x18] sm:$0xff] %v12043_v33  ;;  %v12047_v21 = vmax.f32 %v11940_v11, %v12037_v47 }
 0xe51   : > { %12054 = vst [vmem:[%s607_s21 + $0x30] sm:$0xff] %v12046_v63 }
 0xe52   : > { %12055 = vst [vmem:[%s607_s21 + $0x38] sm:$0xff] %v12047_v21 }
 0xe53 PF: > { %s16503_s28 = sld [smem:[#allocation31_spill]] }
 0xe59   : > { %s30_s25 = sadd.s32 1, %s16503_s28  }
 0xe5a   : > { %p27_p3 = scmp.ge.s32.totalorder %s30_s25, 4  }
 0xe5c   :  { %29 = sbr.rel (!%p27_p3) target bundleno = 9 (0x9), region = 161 }
 0xe63   :  { %12077 = vsyncpa [#allocation6], 1 }
 0xe64   :  { %12079 = vsyncpa [#allocation6 + $0x1], 1 }
 0xe65   :  { %12080 = vsyncpa [#allocation8], 1 }
 0xe66   :  { %12081 = vsyncpa [#allocation11], 1 }
 0xe67   :  { %12082 = vsyncpa [#allocation14], 1 }
 0xe68   :  { %12083 = vsyncpa [#allocation17], 1 }
 0xe69   :  { %12084 = vsyncpa [#allocation20], 1 }
 0xe6a   :  { %12085 = vsyncpa [#allocation23], 1 }

</bundles_post_ra>
